<compile_context>
chip_gen: v5e
topology: v5e:2x2
jax: 0.10.0
libtpu: 0.0.40
codegen_flags: <defaults>
</compile_context>

<pallas_src>
import functools

import jax
import jax.numpy as jnp
import numpy as np
from jax.experimental import pallas as pl
from jax.experimental.pallas import tpu as pltpu


def _dw_kernel(w_ref, b_ref, x_ref, halo_ref, o_ref, acc_ref, *, activation, act):
    # w_ref:    SMEM (9,)  flattened 3x3 kernel (shared across all planes)
    # b_ref:    SMEM (1,)  bias
    # x_ref:    VMEM (TH, W+2, G, 128)  main rows of the zero-padded input
    # halo_ref: VMEM (2,  W+2, G, 128)  the 2 rows just below the main block
    # o_ref:    VMEM (TH, W,   G, 128)  output block
    # acc_ref:  VMEM (TH, W,   G, 128)  f32 accumulator scratch
    TH, W, G, L = o_ref.shape
    # Hoist the 9 SMEM scalar reads out of the unrolled MAC loops.
    w = [w_ref[i] for i in range(9)]
    # Initialize the accumulator with the bias (folds the bias add away).
    acc_ref[...] = jnp.full((TH, W, G, L), b_ref[0], dtype=jnp.float32)
    # 3x3 "same" conv as 9 statically shifted multiply-accumulates.  Both the
    # row (di) and column (dj) shifts land on the two *leading* dims of the
    # block, so every tap is a plain base-address load of full (8,128) tiles.
    for di in range(3):
        for dj in range(3):
            wk = w[di * 3 + dj]
            # Output rows [0, TH-di) read main-block rows [di, TH).
            acc_ref[0:TH - di, :, :, :] = (
                acc_ref[0:TH - di, :, :, :]
                + wk * x_ref[di:TH, dj:dj + W, :, :].astype(jnp.float32))
            if di > 0:
                # Output rows [TH-di, TH) read halo rows [0, di).
                acc_ref[TH - di:TH, :, :, :] = (
                    acc_ref[TH - di:TH, :, :, :]
                    + wk * halo_ref[0:di, dj:dj + W, :, :].astype(jnp.float32))
    res = acc_ref[...]
    if act:
        if activation == "relu":
            res = jnp.maximum(res, 0.0)
        elif activation == "lrelu":
            res = jnp.where(res > 0.0, res, 0.01 * res)
        elif activation == "tanh":
            res = jnp.tanh(res)
    o_ref[...] = res.astype(o_ref.dtype)


def _vmem_budget():
    """(per-step I/O budget bytes, physical VMEM capacity bytes) for this chip."""
    cap = 64 << 20  # conservative default: v7x has 64 MiB VMEM per TensorCore
    try:
        info = pltpu.get_tpu_info()
        cap = int(getattr(info, "vmem_capacity_bytes", cap) or cap)
    except Exception:
        pass
    if cap >= (100 << 20):       # v5e / v6e class: 128 MiB per core
        return 40 << 20, cap
    return 14 << 20, cap         # v7x class: 64 MiB per TensorCore


def _pick_tiles(H, W, Gp, io_budget):
    """Choose (groups per block, rows per block, #H tiles, padded group count,
    estimated per-step VMEM bytes)."""
    Wp2 = W + 2

    def rnd8(g):
        return -(-g // 8) * 8

    def blk_bytes(tbg, th):
        # Double-buffered main input (th, W+2), 2-row halo and output (th, W)
        # blocks plus the single-buffered f32 accumulator, per 128-plane group;
        # VMEM tiles pad the group (sublane) dim up to 8.
        g = rnd8(tbg)
        return 4 * g * 128 * (th * (2 * Wp2 + 3 * W) + 4 * Wp2)

    def pick_th(tbg):
        g = rnd8(tbg)
        row = 4 * g * 128 * (2 * Wp2 + 3 * W)         # bytes per output row
        fixed = 4 * g * 128 * 4 * Wp2                 # halo rows
        th_fit = (max(2, ((io_budget - fixed) // row) // 2 * 2)
                  if io_budget > fixed else 2)
        th = min(th_fit, H + (H % 2))
        n_h = -(-H // th)
        th = -(-H // n_h)
        th += th % 2          # even, so the 2-row halo blocks stay aligned
        return th, n_h

    # Prefer one block over all plane groups (zero plane-padding waste) and let
    # the H tiling absorb the VMEM budget.
    tbg = Gp
    th, n_h = pick_th(tbg)
    if blk_bytes(tbg, th) > io_budget and Gp > 8:
        # Shrink to sublane-aligned (multiple-of-8) group blocks; among those
        # that fit, minimise padded-plane waste, preferring larger blocks.
        per_group = blk_bytes(8, 2) // 8
        hi = min(max(8, (io_budget // per_group) // 8 * 8), Gp // 8 * 8)
        cands = range(8, hi + 1, 8)
        tbg = min(cands, key=lambda t: (-(-Gp // t) * t, -t))
        th, n_h = pick_th(tbg)
    # TODO(synk): a W-tiled (2-column halo) variant is needed if even
    # (tbg<=8, th=2) blocks exceed the budget (extremely wide images).

    gpad = -(-Gp // tbg) * tbg

    # Guarantee >=2 grid steps so the "parallel" axes can shard across both
    # TensorCores on v7x-class chips; splitting H adds no padding waste.
    if (gpad // tbg) * n_h < 2 and H >= 4:
        n_h = 2
        th = -(-H // 2)
        th += th % 2
    return tbg, th, n_h, gpad, blk_bytes(tbg, th)


def depthwise_block_forward(x, weight, bias, act=True, activation="relu"):
    """x: (N, C, H, W); weight: (3, 3); bias: (1,). Shared 1->1 3x3 conv + act."""
    if act and activation not in ("relu", "lrelu", "tanh"):
        raise ValueError(f"unsupported activation: {activation!r}")
    N, C, H, W = x.shape
    B = N * C
    Gp = max(1, -(-B // 128))                     # 128-plane lane groups
    io_budget, cap = _vmem_budget()
    tbg, th, n_h, gpad, est = _pick_tiles(H, W, Gp, io_budget)
    n_b = gpad // tbg
    Ho, Hp2, Wp2 = n_h * th, n_h * th + 2, W + 2
    Bp = gpad * 128

    # Planes-last, lane-dense layout: plane p -> (group p//128, lane p%128),
    # spatial dims leading.  The "same" zero halo (1 row/col) plus the H/plane
    # round-up padding is fused by XLA into the transpose copy this layout
    # already requires.
    # TODO(synk): keep activations in this (H, W, G, 128) layout across the
    # whole LSeg head instead of transposing in/out around every block -- the
    # wrapper transposes cost up to ~2 extra HBM passes on a bandwidth-bound op.
    xb = x.reshape(B, H, W)
    xp = jnp.pad(xb, ((0, Bp - B), (1, Hp2 - H - 1), (1, 1)))
    xt = jnp.transpose(xp.reshape(gpad, 128, Hp2, Wp2), (2, 3, 0, 1))

    w_flat = weight.reshape(9).astype(jnp.float32)
    b_flat = bias.reshape(1).astype(jnp.float32)

    # Leave headroom for compiler temporaries but never ask for more than ~85%
    # of this generation's physical VMEM (v7x only has 64 MiB per TensorCore).
    vmem_limit = int(min(cap * 0.85, max(est + (10 << 20), 2.5 * io_budget)))

    kernel = functools.partial(_dw_kernel, activation=activation, act=act)
    out_t = pl.pallas_call(
        kernel,
        out_shape=jax.ShapeDtypeStruct((Ho, W, gpad, 128), x.dtype),
        grid=(n_b, n_h),
        in_specs=[
            pl.BlockSpec(memory_space=pltpu.SMEM),                   # weight (9,)
            pl.BlockSpec(memory_space=pltpu.SMEM),                   # bias (1,)
            # Main rows [h*th, h*th+th) of the zero-padded input.
            pl.BlockSpec((th, Wp2, tbg, 128), lambda b, h: (h, 0, b, 0)),
            # 2-row halo [h*th+th, h*th+th+2): same array, 2-row blocks.
            pl.BlockSpec((2, Wp2, tbg, 128),
                         lambda b, h: ((h + 1) * (th // 2), 0, b, 0)),
        ],
        out_specs=pl.BlockSpec((th, W, tbg, 128), lambda b, h: (h, 0, b, 0)),
        scratch_shapes=[pltpu.VMEM((th, W, tbg, 128), jnp.float32)],
        compiler_params=pltpu.CompilerParams(
            dimension_semantics=("parallel", "parallel"),
            vmem_limit_bytes=vmem_limit,
        ),
    )(w_flat, b_flat, xt, xt)

    out = jnp.transpose(out_t, (2, 3, 0, 1)).reshape(Bp, Ho, W)
    return out[:B, :H, :].reshape(N, C, H, W)


def _reference(x, weight, bias, act=True, activation="relu"):
    # Pure-JAX reference: shared 1->1 conv applied to every (n, c) plane.
    N, C, H, W = x.shape
    xb = x.reshape(N * C, 1, H, W)
    w = weight.reshape(1, 1, 3, 3)
    y = jax.lax.conv_general_dilated(
        xb, w, window_strides=(1, 1), padding=((1, 1), (1, 1)),
        dimension_numbers=("NCHW", "OIHW", "NCHW"))
    y = y + bias.reshape(1, 1, 1, 1)
    if act:
        if activation == "relu":
            y = jnp.maximum(y, 0.0)
        elif activation == "lrelu":
            y = jnp.where(y > 0.0, y, 0.01 * y)
        elif activation == "tanh":
            y = jnp.tanh(y)
    return y.reshape(N, C, H, W)


if __name__ == "__main__":
    key = jax.random.PRNGKey(0)
    kx, kw, kb, kx2 = jax.random.split(key, 4)

    # Deterministic synthetic parameters (Conv2d(1,1,3) -> weight (3,3), bias (1,)).
    fan_in = 1 * 3 * 3
    bound = 1.0 / np.sqrt(fan_in)
    weight = jax.random.uniform(kw, (3, 3), jnp.float32, -bound, bound)
    bias = jax.random.uniform(kb, (1,), jnp.float32, -bound, bound)

    # Primary case: small shape from the module's intended use (relu).
    x = jax.random.normal(kx, (2, 4, 16, 16), dtype=jnp.float32)
    out = jax.block_until_ready(
        depthwise_block_forward(x, weight, bias, act=True, activation="relu"))
    ref = _reference(x, weight, bias, act=True, activation="relu")
    if not np.allclose(np.asarray(out), np.asarray(ref), atol=1e-5, rtol=1e-5):
        raise AssertionError("Pallas kernel does not match reference (relu case)")

    # Secondary case: >128 planes (2 lane groups), non-multiple-of-tile H, tanh.
    x2 = jax.random.normal(kx2, (2, 96, 10, 12), dtype=jnp.float32)
    out2 = jax.block_until_ready(
        depthwise_block_forward(x2, weight, bias, act=True, activation="tanh"))
    ref2 = _reference(x2, weight, bias, act=True, activation="tanh")
    if not np.allclose(np.asarray(out2), np.asarray(ref2), atol=1e-5, rtol=1e-5):
        raise AssertionError("Pallas kernel does not match reference (tanh case)")

    print("KERNEL_OK")
</pallas_src>

<mosaic_0001>
module attributes {stable_mosaic.version = 11 : i64} {
  func.func @_dw_kernel(%arg0: i32, %arg1: i32, %arg2: memref<9xf32, #tpu.memory_space<smem>>, %arg3: memref<1xf32, #tpu.memory_space<smem>>, %arg4: memref<8x18x1x128xf32, #tpu.memory_space<vmem>>, %arg5: memref<2x18x1x128xf32, #tpu.memory_space<vmem>>, %arg6: memref<8x16x1x128xf32, #tpu.memory_space<vmem>>, %arg7: memref<8x16x1x128xf32, #tpu.memory_space<vmem>>) attributes {dimension_semantics = [#tpu.dimension_semantics<parallel>, #tpu.dimension_semantics<parallel>], iteration_bounds = array<i64: 1, 2>, scalar_prefetch = 0 : i64, scratch_operands = 1 : i64, tpu.core_type = #tpu.core_type<tc>, window_params = [{transform_indices = @transform_0, window_bounds = array<i64: 9>}, {transform_indices = @transform_1, window_bounds = array<i64: 1>}, {transform_indices = @transform_2, window_bounds = array<i64: 8, 18, 1, 128>}, {transform_indices = @transform_3, window_bounds = array<i64: 2, 18, 1, 128>}, {transform_indices = @transform_4, window_bounds = array<i64: 8, 16, 1, 128>}]} {
    %c0 = arith.constant 0 : index
    %0 = memref.load %arg2[%c0] : memref<9xf32, #tpu.memory_space<smem>>
    %c1 = arith.constant 1 : index
    %1 = memref.load %arg2[%c1] : memref<9xf32, #tpu.memory_space<smem>>
    %c2 = arith.constant 2 : index
    %2 = memref.load %arg2[%c2] : memref<9xf32, #tpu.memory_space<smem>>
    %c3 = arith.constant 3 : index
    %3 = memref.load %arg2[%c3] : memref<9xf32, #tpu.memory_space<smem>>
    %c4 = arith.constant 4 : index
    %4 = memref.load %arg2[%c4] : memref<9xf32, #tpu.memory_space<smem>>
    %c5 = arith.constant 5 : index
    %5 = memref.load %arg2[%c5] : memref<9xf32, #tpu.memory_space<smem>>
    %c6 = arith.constant 6 : index
    %6 = memref.load %arg2[%c6] : memref<9xf32, #tpu.memory_space<smem>>
    %c7 = arith.constant 7 : index
    %7 = memref.load %arg2[%c7] : memref<9xf32, #tpu.memory_space<smem>>
    %c8 = arith.constant 8 : index
    %8 = memref.load %arg2[%c8] : memref<9xf32, #tpu.memory_space<smem>>
    %c0_0 = arith.constant 0 : index
    %9 = memref.load %arg3[%c0_0] : memref<1xf32, #tpu.memory_space<smem>>
    %10 = vector.broadcast %9 : f32 to vector<8x16x1x128xf32>
    %c0_1 = arith.constant 0 : index
    %c0_2 = arith.constant 0 : index
    %c0_3 = arith.constant 0 : index
    %c0_4 = arith.constant 0 : index
    %11 = vector.load %arg7[%c0_1, %c0_2, %c0_3, %c0_4] : memref<8x16x1x128xf32, #tpu.memory_space<vmem>>, vector<8x16x1x128xf32>
    tpu.vector_store %arg7[%c0_1, %c0_2, %c0_3, %c0_4], %10 {strides = array<i32>} : memref<8x16x1x128xf32, #tpu.memory_space<vmem>>, vector<8x16x1x128xf32>,
    %c0_5 = arith.constant 0 : index
    %c0_6 = arith.constant 0 : index
    %c0_7 = arith.constant 0 : index
    %c0_8 = arith.constant 0 : index
    %12 = vector.load %arg7[%c0_5, %c0_6, %c0_7, %c0_8] : memref<8x16x1x128xf32, #tpu.memory_space<vmem>>, vector<8x16x1x128xf32>
    %c0_9 = arith.constant 0 : index
    %c0_10 = arith.constant 0 : index
    %c0_11 = arith.constant 0 : index
    %c0_12 = arith.constant 0 : index
    %13 = vector.load %arg4[%c0_9, %c0_10, %c0_11, %c0_12] : memref<8x18x1x128xf32, #tpu.memory_space<vmem>>, vector<8x16x1x128xf32>
    %14 = vector.broadcast %0 : f32 to vector<8x16x1x128xf32>
    %15 = arith.mulf %14, %13 : vector<8x16x1x128xf32>
    %16 = arith.addf %12, %15 : vector<8x16x1x128xf32>
    %c0_13 = arith.constant 0 : index
    %c0_14 = arith.constant 0 : index
    %c0_15 = arith.constant 0 : index
    %c0_16 = arith.constant 0 : index
    %17 = vector.load %arg7[%c0_13, %c0_14, %c0_15, %c0_16] : memref<8x16x1x128xf32, #tpu.memory_space<vmem>>, vector<8x16x1x128xf32>
    tpu.vector_store %arg7[%c0_13, %c0_14, %c0_15, %c0_16], %16 {strides = array<i32>} : memref<8x16x1x128xf32, #tpu.memory_space<vmem>>, vector<8x16x1x128xf32>,
    %c0_17 = arith.constant 0 : index
    %c0_18 = arith.constant 0 : index
    %c0_19 = arith.constant 0 : index
    %c0_20 = arith.constant 0 : index
    %18 = vector.load %arg7[%c0_17, %c0_18, %c0_19, %c0_20] : memref<8x16x1x128xf32, #tpu.memory_space<vmem>>, vector<8x16x1x128xf32>
    %c0_21 = arith.constant 0 : index
    %c1_22 = arith.constant 1 : index
    %c0_23 = arith.constant 0 : index
    %c0_24 = arith.constant 0 : index
    %19 = vector.load %arg4[%c0_21, %c1_22, %c0_23, %c0_24] : memref<8x18x1x128xf32, #tpu.memory_space<vmem>>, vector<8x16x1x128xf32>
    %20 = vector.broadcast %1 : f32 to vector<8x16x1x128xf32>
    %21 = arith.mulf %20, %19 : vector<8x16x1x128xf32>
    %22 = arith.addf %18, %21 : vector<8x16x1x128xf32>
    %c0_25 = arith.constant 0 : index
    %c0_26 = arith.constant 0 : index
    %c0_27 = arith.constant 0 : index
    %c0_28 = arith.constant 0 : index
    %23 = vector.load %arg7[%c0_25, %c0_26, %c0_27, %c0_28] : memref<8x16x1x128xf32, #tpu.memory_space<vmem>>, vector<8x16x1x128xf32>
    tpu.vector_store %arg7[%c0_25, %c0_26, %c0_27, %c0_28], %22 {strides = array<i32>} : memref<8x16x1x128xf32, #tpu.memory_space<vmem>>, vector<8x16x1x128xf32>,
    %c0_29 = arith.constant 0 : index
    %c0_30 = arith.constant 0 : index
    %c0_31 = arith.constant 0 : index
    %c0_32 = arith.constant 0 : index
    %24 = vector.load %arg7[%c0_29, %c0_30, %c0_31, %c0_32] : memref<8x16x1x128xf32, #tpu.memory_space<vmem>>, vector<8x16x1x128xf32>
    %c0_33 = arith.constant 0 : index
    %c2_34 = arith.constant 2 : index
    %c0_35 = arith.constant 0 : index
    %c0_36 = arith.constant 0 : index
    %25 = vector.load %arg4[%c0_33, %c2_34, %c0_35, %c0_36] : memref<8x18x1x128xf32, #tpu.memory_space<vmem>>, vector<8x16x1x128xf32>
    %26 = vector.broadcast %2 : f32 to vector<8x16x1x128xf32>
    %27 = arith.mulf %26, %25 : vector<8x16x1x128xf32>
    %28 = arith.addf %24, %27 : vector<8x16x1x128xf32>
    %c0_37 = arith.constant 0 : index
    %c0_38 = arith.constant 0 : index
    %c0_39 = arith.constant 0 : index
    %c0_40 = arith.constant 0 : index
    %29 = vector.load %arg7[%c0_37, %c0_38, %c0_39, %c0_40] : memref<8x16x1x128xf32, #tpu.memory_space<vmem>>, vector<8x16x1x128xf32>
    tpu.vector_store %arg7[%c0_37, %c0_38, %c0_39, %c0_40], %28 {strides = array<i32>} : memref<8x16x1x128xf32, #tpu.memory_space<vmem>>, vector<8x16x1x128xf32>,
    %c0_41 = arith.constant 0 : index
    %c0_42 = arith.constant 0 : index
    %c0_43 = arith.constant 0 : index
    %c0_44 = arith.constant 0 : index
    %30 = vector.load %arg7[%c0_41, %c0_42, %c0_43, %c0_44] : memref<8x16x1x128xf32, #tpu.memory_space<vmem>>, vector<7x16x1x128xf32>
    %c1_45 = arith.constant 1 : index
    %c0_46 = arith.constant 0 : index
    %c0_47 = arith.constant 0 : index
    %c0_48 = arith.constant 0 : index
    %31 = vector.load %arg4[%c1_45, %c0_46, %c0_47, %c0_48] : memref<8x18x1x128xf32, #tpu.memory_space<vmem>>, vector<7x16x1x128xf32>
    %32 = vector.broadcast %3 : f32 to vector<7x16x1x128xf32>
    %33 = arith.mulf %32, %31 : vector<7x16x1x128xf32>
    %34 = arith.addf %30, %33 : vector<7x16x1x128xf32>
    %c0_49 = arith.constant 0 : index
    %c0_50 = arith.constant 0 : index
    %c0_51 = arith.constant 0 : index
    %c0_52 = arith.constant 0 : index
    %35 = vector.load %arg7[%c0_49, %c0_50, %c0_51, %c0_52] : memref<8x16x1x128xf32, #tpu.memory_space<vmem>>, vector<7x16x1x128xf32>
    tpu.vector_store %arg7[%c0_49, %c0_50, %c0_51, %c0_52], %34 {strides = array<i32>} : memref<8x16x1x128xf32, #tpu.memory_space<vmem>>, vector<7x16x1x128xf32>,
    %c7_53 = arith.constant 7 : index
    %c0_54 = arith.constant 0 : index
    %c0_55 = arith.constant 0 : index
    %c0_56 = arith.constant 0 : index
    %36 = vector.load %arg7[%c7_53, %c0_54, %c0_55, %c0_56] : memref<8x16x1x128xf32, #tpu.memory_space<vmem>>, vector<1x16x1x128xf32>
    %c0_57 = arith.constant 0 : index
    %c0_58 = arith.constant 0 : index
    %c0_59 = arith.constant 0 : index
    %c0_60 = arith.constant 0 : index
    %37 = vector.load %arg5[%c0_57, %c0_58, %c0_59, %c0_60] : memref<2x18x1x128xf32, #tpu.memory_space<vmem>>, vector<1x16x1x128xf32>
    %38 = vector.broadcast %3 : f32 to vector<1x16x1x128xf32>
    %39 = arith.mulf %38, %37 : vector<1x16x1x128xf32>
    %40 = arith.addf %36, %39 : vector<1x16x1x128xf32>
    %c7_61 = arith.constant 7 : index
    %c0_62 = arith.constant 0 : index
    %c0_63 = arith.constant 0 : index
    %c0_64 = arith.constant 0 : index
    %41 = vector.load %arg7[%c7_61, %c0_62, %c0_63, %c0_64] : memref<8x16x1x128xf32, #tpu.memory_space<vmem>>, vector<1x16x1x128xf32>
    tpu.vector_store %arg7[%c7_61, %c0_62, %c0_63, %c0_64], %40 {strides = array<i32>} : memref<8x16x1x128xf32, #tpu.memory_space<vmem>>, vector<1x16x1x128xf32>,
    %c0_65 = arith.constant 0 : index
    %c0_66 = arith.constant 0 : index
    %c0_67 = arith.constant 0 : index
    %c0_68 = arith.constant 0 : index
    %42 = vector.load %arg7[%c0_65, %c0_66, %c0_67, %c0_68] : memref<8x16x1x128xf32, #tpu.memory_space<vmem>>, vector<7x16x1x128xf32>
    %c1_69 = arith.constant 1 : index
    %c1_70 = arith.constant 1 : index
    %c0_71 = arith.constant 0 : index
    %c0_72 = arith.constant 0 : index
    %43 = vector.load %arg4[%c1_69, %c1_70, %c0_71, %c0_72] : memref<8x18x1x128xf32, #tpu.memory_space<vmem>>, vector<7x16x1x128xf32>
    %44 = vector.broadcast %4 : f32 to vector<7x16x1x128xf32>
    %45 = arith.mulf %44, %43 : vector<7x16x1x128xf32>
    %46 = arith.addf %42, %45 : vector<7x16x1x128xf32>
    %c0_73 = arith.constant 0 : index
    %c0_74 = arith.constant 0 : index
    %c0_75 = arith.constant 0 : index
    %c0_76 = arith.constant 0 : index
    %47 = vector.load %arg7[%c0_73, %c0_74, %c0_75, %c0_76] : memref<8x16x1x128xf32, #tpu.memory_space<vmem>>, vector<7x16x1x128xf32>
    tpu.vector_store %arg7[%c0_73, %c0_74, %c0_75, %c0_76], %46 {strides = array<i32>} : memref<8x16x1x128xf32, #tpu.memory_space<vmem>>, vector<7x16x1x128xf32>,
    %c7_77 = arith.constant 7 : index
    %c0_78 = arith.constant 0 : index
    %c0_79 = arith.constant 0 : index
    %c0_80 = arith.constant 0 : index
    %48 = vector.load %arg7[%c7_77, %c0_78, %c0_79, %c0_80] : memref<8x16x1x128xf32, #tpu.memory_space<vmem>>, vector<1x16x1x128xf32>
    %c0_81 = arith.constant 0 : index
    %c1_82 = arith.constant 1 : index
    %c0_83 = arith.constant 0 : index
    %c0_84 = arith.constant 0 : index
    %49 = vector.load %arg5[%c0_81, %c1_82, %c0_83, %c0_84] : memref<2x18x1x128xf32, #tpu.memory_space<vmem>>, vector<1x16x1x128xf32>
    %50 = vector.broadcast %4 : f32 to vector<1x16x1x128xf32>
    %51 = arith.mulf %50, %49 : vector<1x16x1x128xf32>
    %52 = arith.addf %48, %51 : vector<1x16x1x128xf32>
    %c7_85 = arith.constant 7 : index
    %c0_86 = arith.constant 0 : index
    %c0_87 = arith.constant 0 : index
    %c0_88 = arith.constant 0 : index
    %53 = vector.load %arg7[%c7_85, %c0_86, %c0_87, %c0_88] : memref<8x16x1x128xf32, #tpu.memory_space<vmem>>, vector<1x16x1x128xf32>
    tpu.vector_store %arg7[%c7_85, %c0_86, %c0_87, %c0_88], %52 {strides = array<i32>} : memref<8x16x1x128xf32, #tpu.memory_space<vmem>>, vector<1x16x1x128xf32>,
    %c0_89 = arith.constant 0 : index
    %c0_90 = arith.constant 0 : index
    %c0_91 = arith.constant 0 : index
    %c0_92 = arith.constant 0 : index
    %54 = vector.load %arg7[%c0_89, %c0_90, %c0_91, %c0_92] : memref<8x16x1x128xf32, #tpu.memory_space<vmem>>, vector<7x16x1x128xf32>
    %c1_93 = arith.constant 1 : index
    %c2_94 = arith.constant 2 : index
    %c0_95 = arith.constant 0 : index
    %c0_96 = arith.constant 0 : index
    %55 = vector.load %arg4[%c1_93, %c2_94, %c0_95, %c0_96] : memref<8x18x1x128xf32, #tpu.memory_space<vmem>>, vector<7x16x1x128xf32>
    %56 = vector.broadcast %5 : f32 to vector<7x16x1x128xf32>
    %57 = arith.mulf %56, %55 : vector<7x16x1x128xf32>
    %58 = arith.addf %54, %57 : vector<7x16x1x128xf32>
    %c0_97 = arith.constant 0 : index
    %c0_98 = arith.constant 0 : index
    %c0_99 = arith.constant 0 : index
    %c0_100 = arith.constant 0 : index
    %59 = vector.load %arg7[%c0_97, %c0_98, %c0_99, %c0_100] : memref<8x16x1x128xf32, #tpu.memory_space<vmem>>, vector<7x16x1x128xf32>
    tpu.vector_store %arg7[%c0_97, %c0_98, %c0_99, %c0_100], %58 {strides = array<i32>} : memref<8x16x1x128xf32, #tpu.memory_space<vmem>>, vector<7x16x1x128xf32>,
    %c7_101 = arith.constant 7 : index
    %c0_102 = arith.constant 0 : index
    %c0_103 = arith.constant 0 : index
    %c0_104 = arith.constant 0 : index
    %60 = vector.load %arg7[%c7_101, %c0_102, %c0_103, %c0_104] : memref<8x16x1x128xf32, #tpu.memory_space<vmem>>, vector<1x16x1x128xf32>
    %c0_105 = arith.constant 0 : index
    %c2_106 = arith.constant 2 : index
    %c0_107 = arith.constant 0 : index
    %c0_108 = arith.constant 0 : index
    %61 = vector.load %arg5[%c0_105, %c2_106, %c0_107, %c0_108] : memref<2x18x1x128xf32, #tpu.memory_space<vmem>>, vector<1x16x1x128xf32>
    %62 = vector.broadcast %5 : f32 to vector<1x16x1x128xf32>
    %63 = arith.mulf %62, %61 : vector<1x16x1x128xf32>
    %64 = arith.addf %60, %63 : vector<1x16x1x128xf32>
    %c7_109 = arith.constant 7 : index
    %c0_110 = arith.constant 0 : index
    %c0_111 = arith.constant 0 : index
    %c0_112 = arith.constant 0 : index
    %65 = vector.load %arg7[%c7_109, %c0_110, %c0_111, %c0_112] : memref<8x16x1x128xf32, #tpu.memory_space<vmem>>, vector<1x16x1x128xf32>
    tpu.vector_store %arg7[%c7_109, %c0_110, %c0_111, %c0_112], %64 {strides = array<i32>} : memref<8x16x1x128xf32, #tpu.memory_space<vmem>>, vector<1x16x1x128xf32>,
    %c0_113 = arith.constant 0 : index
    %c0_114 = arith.constant 0 : index
    %c0_115 = arith.constant 0 : index
    %c0_116 = arith.constant 0 : index
    %66 = vector.load %arg7[%c0_113, %c0_114, %c0_115, %c0_116] : memref<8x16x1x128xf32, #tpu.memory_space<vmem>>, vector<6x16x1x128xf32>
    %c2_117 = arith.constant 2 : index
    %c0_118 = arith.constant 0 : index
    %c0_119 = arith.constant 0 : index
    %c0_120 = arith.constant 0 : index
    %67 = vector.load %arg4[%c2_117, %c0_118, %c0_119, %c0_120] : memref<8x18x1x128xf32, #tpu.memory_space<vmem>>, vector<6x16x1x128xf32>
    %68 = vector.broadcast %6 : f32 to vector<6x16x1x128xf32>
    %69 = arith.mulf %68, %67 : vector<6x16x1x128xf32>
    %70 = arith.addf %66, %69 : vector<6x16x1x128xf32>
    %c0_121 = arith.constant 0 : index
    %c0_122 = arith.constant 0 : index
    %c0_123 = arith.constant 0 : index
    %c0_124 = arith.constant 0 : index
    %71 = vector.load %arg7[%c0_121, %c0_122, %c0_123, %c0_124] : memref<8x16x1x128xf32, #tpu.memory_space<vmem>>, vector<6x16x1x128xf32>
    tpu.vector_store %arg7[%c0_121, %c0_122, %c0_123, %c0_124], %70 {strides = array<i32>} : memref<8x16x1x128xf32, #tpu.memory_space<vmem>>, vector<6x16x1x128xf32>,
    %c6_125 = arith.constant 6 : index
    %c0_126 = arith.constant 0 : index
    %c0_127 = arith.constant 0 : index
    %c0_128 = arith.constant 0 : index
    %72 = vector.load %arg7[%c6_125, %c0_126, %c0_127, %c0_128] : memref<8x16x1x128xf32, #tpu.memory_space<vmem>>, vector<2x16x1x128xf32>
    %c0_129 = arith.constant 0 : index
    %c0_130 = arith.constant 0 : index
    %c0_131 = arith.constant 0 : index
    %c0_132 = arith.constant 0 : index
    %73 = vector.load %arg5[%c0_129, %c0_130, %c0_131, %c0_132] : memref<2x18x1x128xf32, #tpu.memory_space<vmem>>, vector<2x16x1x128xf32>
    %74 = vector.broadcast %6 : f32 to vector<2x16x1x128xf32>
    %75 = arith.mulf %74, %73 : vector<2x16x1x128xf32>
    %76 = arith.addf %72, %75 : vector<2x16x1x128xf32>
    %c6_133 = arith.constant 6 : index
    %c0_134 = arith.constant 0 : index
    %c0_135 = arith.constant 0 : index
    %c0_136 = arith.constant 0 : index
    %77 = vector.load %arg7[%c6_133, %c0_134, %c0_135, %c0_136] : memref<8x16x1x128xf32, #tpu.memory_space<vmem>>, vector<2x16x1x128xf32>
    tpu.vector_store %arg7[%c6_133, %c0_134, %c0_135, %c0_136], %76 {strides = array<i32>} : memref<8x16x1x128xf32, #tpu.memory_space<vmem>>, vector<2x16x1x128xf32>,
    %c0_137 = arith.constant 0 : index
    %c0_138 = arith.constant 0 : index
    %c0_139 = arith.constant 0 : index
    %c0_140 = arith.constant 0 : index
    %78 = vector.load %arg7[%c0_137, %c0_138, %c0_139, %c0_140] : memref<8x16x1x128xf32, #tpu.memory_space<vmem>>, vector<6x16x1x128xf32>
    %c2_141 = arith.constant 2 : index
    %c1_142 = arith.constant 1 : index
    %c0_143 = arith.constant 0 : index
    %c0_144 = arith.constant 0 : index
    %79 = vector.load %arg4[%c2_141, %c1_142, %c0_143, %c0_144] : memref<8x18x1x128xf32, #tpu.memory_space<vmem>>, vector<6x16x1x128xf32>
    %80 = vector.broadcast %7 : f32 to vector<6x16x1x128xf32>
    %81 = arith.mulf %80, %79 : vector<6x16x1x128xf32>
    %82 = arith.addf %78, %81 : vector<6x16x1x128xf32>
    %c0_145 = arith.constant 0 : index
    %c0_146 = arith.constant 0 : index
    %c0_147 = arith.constant 0 : index
    %c0_148 = arith.constant 0 : index
    %83 = vector.load %arg7[%c0_145, %c0_146, %c0_147, %c0_148] : memref<8x16x1x128xf32, #tpu.memory_space<vmem>>, vector<6x16x1x128xf32>
    tpu.vector_store %arg7[%c0_145, %c0_146, %c0_147, %c0_148], %82 {strides = array<i32>} : memref<8x16x1x128xf32, #tpu.memory_space<vmem>>, vector<6x16x1x128xf32>,
    %c6_149 = arith.constant 6 : index
    %c0_150 = arith.constant 0 : index
    %c0_151 = arith.constant 0 : index
    %c0_152 = arith.constant 0 : index
    %84 = vector.load %arg7[%c6_149, %c0_150, %c0_151, %c0_152] : memref<8x16x1x128xf32, #tpu.memory_space<vmem>>, vector<2x16x1x128xf32>
    %c0_153 = arith.constant 0 : index
    %c1_154 = arith.constant 1 : index
    %c0_155 = arith.constant 0 : index
    %c0_156 = arith.constant 0 : index
    %85 = vector.load %arg5[%c0_153, %c1_154, %c0_155, %c0_156] : memref<2x18x1x128xf32, #tpu.memory_space<vmem>>, vector<2x16x1x128xf32>
    %86 = vector.broadcast %7 : f32 to vector<2x16x1x128xf32>
    %87 = arith.mulf %86, %85 : vector<2x16x1x128xf32>
    %88 = arith.addf %84, %87 : vector<2x16x1x128xf32>
    %c6_157 = arith.constant 6 : index
    %c0_158 = arith.constant 0 : index
    %c0_159 = arith.constant 0 : index
    %c0_160 = arith.constant 0 : index
    %89 = vector.load %arg7[%c6_157, %c0_158, %c0_159, %c0_160] : memref<8x16x1x128xf32, #tpu.memory_space<vmem>>, vector<2x16x1x128xf32>
    tpu.vector_store %arg7[%c6_157, %c0_158, %c0_159, %c0_160], %88 {strides = array<i32>} : memref<8x16x1x128xf32, #tpu.memory_space<vmem>>, vector<2x16x1x128xf32>,
    %c0_161 = arith.constant 0 : index
    %c0_162 = arith.constant 0 : index
    %c0_163 = arith.constant 0 : index
    %c0_164 = arith.constant 0 : index
    %90 = vector.load %arg7[%c0_161, %c0_162, %c0_163, %c0_164] : memref<8x16x1x128xf32, #tpu.memory_space<vmem>>, vector<6x16x1x128xf32>
    %c2_165 = arith.constant 2 : index
    %c2_166 = arith.constant 2 : index
    %c0_167 = arith.constant 0 : index
    %c0_168 = arith.constant 0 : index
    %91 = vector.load %arg4[%c2_165, %c2_166, %c0_167, %c0_168] : memref<8x18x1x128xf32, #tpu.memory_space<vmem>>, vector<6x16x1x128xf32>
    %92 = vector.broadcast %8 : f32 to vector<6x16x1x128xf32>
    %93 = arith.mulf %92, %91 : vector<6x16x1x128xf32>
    %94 = arith.addf %90, %93 : vector<6x16x1x128xf32>
    %c0_169 = arith.constant 0 : index
    %c0_170 = arith.constant 0 : index
    %c0_171 = arith.constant 0 : index
    %c0_172 = arith.constant 0 : index
    %95 = vector.load %arg7[%c0_169, %c0_170, %c0_171, %c0_172] : memref<8x16x1x128xf32, #tpu.memory_space<vmem>>, vector<6x16x1x128xf32>
    tpu.vector_store %arg7[%c0_169, %c0_170, %c0_171, %c0_172], %94 {strides = array<i32>} : memref<8x16x1x128xf32, #tpu.memory_space<vmem>>, vector<6x16x1x128xf32>,
    %c6_173 = arith.constant 6 : index
    %c0_174 = arith.constant 0 : index
    %c0_175 = arith.constant 0 : index
    %c0_176 = arith.constant 0 : index
    %96 = vector.load %arg7[%c6_173, %c0_174, %c0_175, %c0_176] : memref<8x16x1x128xf32, #tpu.memory_space<vmem>>, vector<2x16x1x128xf32>
    %c0_177 = arith.constant 0 : index
    %c2_178 = arith.constant 2 : index
    %c0_179 = arith.constant 0 : index
    %c0_180 = arith.constant 0 : index
    %97 = vector.load %arg5[%c0_177, %c2_178, %c0_179, %c0_180] : memref<2x18x1x128xf32, #tpu.memory_space<vmem>>, vector<2x16x1x128xf32>
    %98 = vector.broadcast %8 : f32 to vector<2x16x1x128xf32>
    %99 = arith.mulf %98, %97 : vector<2x16x1x128xf32>
    %100 = arith.addf %96, %99 : vector<2x16x1x128xf32>
    %c6_181 = arith.constant 6 : index
    %c0_182 = arith.constant 0 : index
    %c0_183 = arith.constant 0 : index
    %c0_184 = arith.constant 0 : index
    %101 = vector.load %arg7[%c6_181, %c0_182, %c0_183, %c0_184] : memref<8x16x1x128xf32, #tpu.memory_space<vmem>>, vector<2x16x1x128xf32>
    tpu.vector_store %arg7[%c6_181, %c0_182, %c0_183, %c0_184], %100 {strides = array<i32>} : memref<8x16x1x128xf32, #tpu.memory_space<vmem>>, vector<2x16x1x128xf32>,
    %c0_185 = arith.constant 0 : index
    %c0_186 = arith.constant 0 : index
    %c0_187 = arith.constant 0 : index
    %c0_188 = arith.constant 0 : index
    %102 = vector.load %arg7[%c0_185, %c0_186, %c0_187, %c0_188] : memref<8x16x1x128xf32, #tpu.memory_space<vmem>>, vector<8x16x1x128xf32>
    %cst = arith.constant 0.000000e+00 : f32
    %103 = vector.broadcast %cst : f32 to vector<8x16x1x128xf32>
    %104 = arith.maximumf %102, %103 : vector<8x16x1x128xf32>
    %c0_189 = arith.constant 0 : index
    %c0_190 = arith.constant 0 : index
    %c0_191 = arith.constant 0 : index
    %c0_192 = arith.constant 0 : index
    %105 = vector.load %arg6[%c0_189, %c0_190, %c0_191, %c0_192] : memref<8x16x1x128xf32, #tpu.memory_space<vmem>>, vector<8x16x1x128xf32>
    tpu.vector_store %arg6[%c0_189, %c0_190, %c0_191, %c0_192], %104 {strides = array<i32>} : memref<8x16x1x128xf32, #tpu.memory_space<vmem>>, vector<8x16x1x128xf32>,
    return
  }
  func.func @transform_0(%arg0: i32, %arg1: i32) -> i32 {
    %c0_i32 = arith.constant 0 : i32
    %c0_i32_0 = arith.constant 0 : i32
    return %c0_i32 : i32
  }
  func.func @transform_1(%arg0: i32, %arg1: i32) -> i32 {
    %c0_i32 = arith.constant 0 : i32
    %c0_i32_0 = arith.constant 0 : i32
    return %c0_i32 : i32
  }
  func.func @transform_2(%arg0: i32, %arg1: i32) -> (i32, i32, i32, i32) {
    %c0_i32 = arith.constant 0 : i32
    %c0_i32_0 = arith.constant 0 : i32
    %c0_i32_1 = arith.constant 0 : i32
    return %arg1, %c0_i32, %arg0, %c0_i32_0 : i32, i32, i32, i32
  }
  func.func @transform_3(%arg0: i32, %arg1: i32) -> (i32, i32, i32, i32) {
    %c1_i32 = arith.constant 1 : i32
    %0 = arith.addi %arg1, %c1_i32 : i32
    %c4_i32 = arith.constant 4 : i32
    %1 = arith.muli %0, %c4_i32 : i32
    %c0_i32 = arith.constant 0 : i32
    %c0_i32_0 = arith.constant 0 : i32
    %c0_i32_1 = arith.constant 0 : i32
    return %1, %c0_i32, %arg0, %c0_i32_0 : i32, i32, i32, i32
  }
  func.func @transform_4(%arg0: i32, %arg1: i32) -> (i32, i32, i32, i32) {
    %c0_i32 = arith.constant 0 : i32
    %c0_i32_0 = arith.constant 0 : i32
    %c0_i32_1 = arith.constant 0 : i32
    return %arg1, %c0_i32, %arg0, %c0_i32_0 : i32, i32, i32, i32
  }
}

</mosaic_0001>

<bundles_post_ra>
// kernel: tpu_custom_call.1
= control target key start
LH: loop header
LB: loop body
LE: loop exit
PB: predicated region body
PF: predicated region fallthrough
CT: control target
= control target key end

     0   :  { %s10943_s0 = inlined_call_operand.vmem [shape: f32[9], index: 0, kind: input, shape index: {}]   ;;  %s10944_s1 = inlined_call_operand.<no memory space> [shape: f32[1], index: 1, kind: input, shape index: {}]   ;;  %s10945_s2 = inlined_call_operand.hbm [shape: f32[18,18,1,128], index: 2, kind: input, shape index: {}]   ;;  %s10946_s3 = inlined_call_operand.hbm [shape: f32[18,18,1,128], index: 3, kind: input, shape index: {}]   ;;  %s10947_s4 = inlined_call_operand.hbm [shape: f32[16,16,1,128], index: 4, kind: output, shape index: {}]  }
   0x1   :  { %10955 = sst [smem:[#allocation22_spill]] %s10943_s0 }
   0x2   :  { %10956 = sst [smem:[#allocation23_spill]] %s10945_s2 }
   0x3   :  { %9 = sst [smem:[#allocation3]] %s10944_s1 }
   0x4   :  { %10 = vsyncpa [#allocation7], 0 }
   0x5   :  { %11 = vsyncpa [#allocation5], 0 }
   0x6   :  { %13 = vsyncpa [#allocation5 + $0x1], 0 }
   0x7   :  { %14 = vsyncpa [#allocation10], 0 }
   0x8   :  { %16 = vsyncpa [#allocation10 + $0x1], 0 }
   0x9   :  { %17 = vsyncpa [#allocation6], 0 }
   0xa   :  { %19 = vsyncpa [#allocation6 + $0x1], 0  ;;  %s8106_s17 = smov 0   ;;  %s8108_s18 = smov 0  }
   0xb   :  { %s8110_s19 = smov 0   ;;  %s8112_s20 = smov 0  }
   0xc   :  { %s8114_s21 = smov 0   ;;  %s8116_s22 = smov 0  }
   0xd   :  { %s8118_s1 = smov 0   ;;  %s8120_s23 = smov 0  }
   0xe   :  { %s8122_s24 = smov 0  }
   0xf LB: > { %10957 = sst [smem:[#allocation16_spill]] %s8056_s22  ;;  %s6758_s25 = sadd.s32 4294967295, %s8068_s24   ;;  %s8068_s24 = sphi %s8122_s24, %s25_s24   ;;  %s8064_s23 = sphi %s8120_s23, %s10987_s23   ;;  %s8060_s1 = sphi %s8118_s1, %s10986_s1   ;;  %s8056_s22 = sphi %s8116_s22, %s10979_s22   ;;  %s8052_s21 = sphi %s8114_s21, %s10985_s21   ;;  %s8048_s20 = sphi %s8112_s20, %s10984_s20   ;;  %s8044_s19 = sphi %s8110_s19, %s10983_s19   ;;  %s8040_s18 = sphi %s8108_s18, %s10982_s18   ;;  %s8036_s17 = sphi %s8106_s17, %s10981_s17  }
  0x10   : > { %10958 = sst [smem:[#allocation17_spill]] %s8068_s24  ;;  %s6759_s26 = sadd.s32 4294967294, %s8068_s24  }
  0x11   : > { %s34_s27 = sadd.s32 1, %s8064_s23  ;;  %s88_s28 = sadd.s32 1, %s8056_s22 }
  0x12   : > { %p35_p0 = scmp.ge.s32.totalorder %s34_s27, 2  ;;  %p95_p1 = scmp.ne.s32.totalorder %s8056_s22, %s8052_s21 }
  0x13   : > { %p96_p2 = scmp.eq.s32.totalorder %s8068_s24, 0  ;;  %p10948_p3 = scmp.ne.s32.totalorder %s8052_s21, %s8048_s20 }
  0x14   : > { %s10989_s27 = smov (%p35_p0, %s34_s27), 0  ;;  %p8171_p5 = scmp.eq.s32.totalorder %s6758_s25, 0 }
  0x15   : > { %10959 = sst [smem:[#allocation18_spill]] %s10989_s27  ;;  %p8167_p4 = por %p96_p2, %p95_p1 }
  0x16   : > { %s83_s5 = ssub.s32 %s8064_s23, %s10989_s27  ;;  %s7761_s6 = sshll.u32 %s8064_s23, 2 }
  0x17   : > { %p86_p6 = scmp.eq.s32.totalorder %s83_s5, 0  ;;  %p8183_p7 = por %p8171_p5, %p10948_p3 }
  0x18   : > { %s7762_s8 = sadd.s32 4, %s7761_s6  ;;  %s7763_s9 = sshll.u32 %s10989_s27, 2 }
  0x19   : > { %s10962_s7 = scalar_select %p8183_p7, 1, 0 }
  0x1a   : > { %s8189_s10 = scalar_select %p86_p6, %s8056_s22, %s88_s28  }
  0x1b   : > { %s7764_s11 = sadd.s32 4, %s7763_s9  ;;  %s120_s12 = sadd.s32 1, %s8044_s19 }
  0x1c   : > { %10963 = sst [smem:[#allocation19_spill]] %s8189_s10  ;;  %s115_s13 = ssub.s32 %s7762_s8, %s7764_s11 }
  0x1d   : > { %p127_p8 = scmp.ne.s32.totalorder %s8044_s19, %s8040_s18  ;;  %p118_p9 = scmp.eq.s32.totalorder %s115_s13, 0 }
  0x1e   : > { %p133_p10 = scmp.ne.s32.totalorder %s8040_s18, %s8036_s17  ;;  %p159_p12 = scmp.eq.s32.totalorder %s6758_s25, 1 }
  0x1f   : > { %p8198_p11 = por %p127_p8, %p96_p2  ;;  %p165_p6 = scmp.eq.s32.totalorder %s6759_s26, 1 }
  0x20   : > { %s8203_s15 = scalar_select %p118_p9, %s8044_s19, %s120_s12  }
  0x21   : > { %p8207_p13 = por %p133_p10, %p8171_p5  ;;  %p8214_p0 = por %p159_p12, %p95_p1 }
  0x22   : > { %10965 = sst [smem:[#allocation20_spill]] %s8203_s15  ;;  %p6762_p3 = scmp.ge.s32.totalorder %s8068_s24, 1 }
  0x23   : > { %p172_p7 = scmp.lt.s32.totalorder %s8068_s24, 3  ;;  %p10968_p2 = scmp.ne.s32.totalorder %s8052_s21, %s8048_s20 }
  0x24   : > { %s10972_s0 = sld [smem:[#allocation22_spill]]  ;;  %s8070_s26 = smov [#allocation4]  }
  0x25   : > { %p8223_p8 = por %p165_p6, %p10968_p2  ;;  %p8227_p9 = pnand %p6762_p3, %p172_p7 }
  0x26   : > { %p6764_p12 = scmp.ge.s32.totalorder %s8068_s24, 2 }
  0x27   : > { %s10969_s17 = scalar_select %p8223_p8, 1, 0 }
  0x28   : > { %p7780_p1 = pneg %p8227_p9  ;;  %194 = sbr.rel (%p6764_p12) target bundleno = 78 (0x4e), region = 24 }
  0x29   : > { %10970 = sst [smem:[#allocation21_spill]] %s10969_s17 }
  0x2a   : > { %s184_s8 = sshll.u32 %s10972_s0, 4  ;;  %p7781_p10 = pnand %p7780_p1, %p8171_p5  ;;  %s185_s8 = int_to_ptr.vmem [resolvable:$true] %s184_s8 }
  0x2c   : > { %7783 = dma.vmem_to_smem (!%p7781_p10), %s185_s8, 16, %s8070_s26, [#allocation7]  }
  0x2d   : > { %197 = sbr.rel (!%p8167_p4) target bundleno = 71 (0x47), region = 28  ;;  %s198_s9 = sand.u32 (%p8167_p4), 1, %s8056_s22  }
  0x2e   : > { %s7766_s11 = smul.u32 (%p8167_p4), 144, %s198_s9  ;;  %s8244_s12 = scalar_lea.sflag (%p8167_p4), [#allocation5], %s198_s9 }
  0x2f   : > { %s7767_s5 = smul.u32 (%p8167_p4), 144, %s8064_s23  ;;  %s10973_s2 = sld [smem:[#allocation23_spill]] (%p8167_p4) }
  0x30   : > { %s202_s13 = scalar_lea.vmem (%p8167_p4), [#allocation8], %s7766_s11 }
  0x31   : > { %s8247_s6 = sshll.u32 (%p8167_p4), %s202_s13, 4  ;;  %s219_s6 = int_to_ptr.vmem [resolvable:$true] %s8247_s6 }
  0x35   : > { %s214_s26 = scalar_lea.hbm %s10973_s2, %s7767_s5  ;;  %s7896_s9 = scalar_lea.hbm %s10973_s2, 324 }
  0x36   : > { %s216_s27 = sshll.u32 %s214_s26, 4  ;;  %s217_s27 = int_to_ptr.hbm [resolvable:$true] %s216_s27 }
  0x37   : > { %s7885_s29 = sshra.s32 %s217_s27, 4  ;;  %s7886_s29 = int_to_ptr.hbm [resolvable:$true] %s7885_s29 }
  0x38   : > { %s7892_s10 = scalar_lea.hbm %s7886_s29, 144 }
  0x39   : > { %p7893_p3 = scmp.ne.s32.totalorder %s7886_s29, %s7892_s10  ;;  %p7898_p4 = scmp.lt.s32.totalorder %s7896_s9, %s7892_s10 }
  0x3b   : > { %p7900_p7 = pnand %p7898_p4, %p7893_p3 }
  0x3d   : > { %7903 = shalt.err (!%p7900_p7)
}
  0x3e   : > { %s7904_s11 = sshra.s32 %s219_s6, 4  ;;  %s8071_s0 = smov [#allocation8]   ;;  %s7905_s11 = int_to_ptr.vmem [resolvable:$true] %s7904_s11 }
  0x3f   : > { %s7911_s13 = scalar_lea.vmem %s7905_s11, 144  ;;  %s7915_s5 = scalar_lea.vmem %s8071_s0, 288 }
  0x40   : > { %p7912_p6 = scmp.ne.s32.totalorder %s7905_s11, %s7911_s13  ;;  %p7917_p2 = scmp.lt.s32.totalorder %s7915_s5, %s7911_s13 }
  0x42   : > { %p7919_p1 = pnand %p7917_p2, %p7912_p6 }
  0x44   : > { %7922 = shalt.err (!%p7919_p1)
}
  0x45   : > { %s8072_s8 = smov 16   ;;  %s8073_s26 = smov 1  }
  0x46   : > { %224 = dma.hbm_to_vmem [thread:$0]  %s217_s27, 2304, %s219_s6, %s8244_s12, %s8072_s8, %s8072_s8, %s8073_s26  }
  0x47 PF: > { %s228_s22 = sand.u32 1, %s8044_s19   ;;  %s6680_s10 = smul.u32 144, %s8064_s23 }
  0x48   : > { %s7768_s15 = smul.u32 36, %s228_s22  ;;  %s229_s24 = scalar_lea.sflag [#allocation10], %s228_s22 }
  0x49   : > { %s6682_s11 = scalar_lea.hbm %s10946_s3, %s6680_s10  ;;  %s8074_s17 = smov 16  }
  0x4a   : > { %s6683_s2 = scalar_lea.hbm %s6682_s11, 144  ;;  %s232_s13 = scalar_lea.vmem [#allocation9], %s7768_s15 }
  0x4b   : > { %s241_s0 = sshll.u32 %s6683_s2, 4  ;;  %s243_s5 = sshll.u32 %s232_s13, 4  ;;  %s242_s0 = int_to_ptr.hbm [resolvable:$true] %s241_s0  ;;  %s244_s5 = int_to_ptr.vmem [resolvable:$true] %s243_s5 }
  0x4c   : > { %s8075_s27 = smov 1  }
  0x4d   : > { %7773 = dma.hbm_to_vmem [thread:$0]  (%p8198_p11), %s242_s0, 576, %s244_s5, %s229_s24, %s8074_s17, %s8074_s17, %s8075_s27  }
  0x4e PF: > { %255 = sbr.rel (%p8227_p9) target bundleno = 1514 (0x5ea), region = 36 }
  0x53   : > { %8017 = dma.done.wait (%p8171_p5), [#allocation7], 16  }
  0x54   : > { %8019 = vsyncadd (%p8171_p5), [#allocation7], 4294967280  ;;  %s8271_s2 = sand.u32 1, %s8052_s21   ;;  %p10974_p11 = scmp.ne.s32.totalorder %s10962_s7, 0 }
  0x55   : > { %s7769_s12 = smul.u32 144, %s8271_s2  ;;  %s263_s6 = scalar_lea.sflag [#allocation5], %s8271_s2 }
  0x57   : > { %s8275_s14 = scalar_lea.vmem [#allocation8], %s7769_s12 }
  0x58   : > { %8021 = dma.done.wait (%p10974_p11), %s263_s6, 2304  }
  0x59   : > { %8023 = vsyncadd (%p10974_p11), %s263_s6, 4294964992  ;;  %s272_s24 = sand.u32 1, %s8040_s18  }
  0x5a   : > { %s7770_s30 = smul.u32 36, %s272_s24  ;;  %s273_s17 = scalar_lea.sflag [#allocation10], %s272_s24 }
  0x5c   : > { %s8282_s25 = scalar_lea.vmem [#allocation9], %s7770_s30 }
  0x5d   : > { %8025 = dma.done.wait (%p8207_p13), %s273_s17, 576  }
  0x5e   : > { %8027 = vsyncadd (%p8207_p13), %s273_s17, 4294966720 }
  0x5f   : > { %282 = sfence }
  0x60   : > { %s326_s8 = sld [smem:[#allocation3]]  ;;  %v584_v1 = vld [vmem:[%s8275_s14] sm:$0x1]  ;;  %v585_v3 = vld [vmem:[%s8275_s14 + $0x1] sm:$0x1]  ;;  %s6771_s0 = sshll.u32 %s8271_s2, 7 }
  0x61   : > { %s317_s7 = sld [smem:[#allocation4]]  ;;  %v586_v5 = vld [vmem:[%s8275_s14 + $0x2] sm:$0x1]  ;;  %v587_v8 = vld [vmem:[%s8275_s14 + $0x3] sm:$0x1]  ;;  %s10765_s13 = scalar_lea.vmem [#allocation11], %s6771_s0 }
  0x62   : > { %v588_v11 = vld [vmem:[%s8275_s14 + $0x4] sm:$0x1]  ;;  %v589_v14 = vld [vmem:[%s8275_s14 + $0x5] sm:$0x1]  ;;  %v590_v17 = vld [vmem:[%s8275_s14 + $0x6] sm:$0x1] }
  0x63   : > { %v591_v21 = vld [vmem:[%s8275_s14 + $0x7] sm:$0x1]  ;;  %v592_v25 = vld [vmem:[%s8275_s14 + $0x8] sm:$0x1]  ;;  %v593_v29 = vld [vmem:[%s8275_s14 + $0x9] sm:$0x1] }
  0x64   : > { %v594_v33 = vld [vmem:[%s8275_s14 + $0xa] sm:$0x1]  ;;  %v595_v37 = vld [vmem:[%s8275_s14 + $0xb] sm:$0x1]  ;;  %v596_v41 = vld [vmem:[%s8275_s14 + $0xc] sm:$0x1] }
  0x65   : > { %v597_v45 = vld [vmem:[%s8275_s14 + $0xd] sm:$0x1]  ;;  %v598_v49 = vld [vmem:[%s8275_s14 + $0xe] sm:$0x1]  ;;  %v599_v53 = vld [vmem:[%s8275_s14 + $0xf] sm:$0x1] }
  0x66   : > { %v8288_v0 = vstv %s326_s8  ;;  %v600_v57 = vld [vmem:[%s8275_s14 + $0x12] sm:$0x1]  ;;  %v601_v61 = vld [vmem:[%s8275_s14 + $0x13] sm:$0x1]  ;;  %s8659_s16 = sld [smem:[#allocation4 + $0x1]]  ;;  %s7765_s5 = sshll.u32 %s8060_s1, 7 }
  0x67   : > { %328 = vst [vmem:[#allocation2] sm:$0x1] %v8288_v0  ;;  %v8409_v2 = vstv %s317_s7  ;;  %s8920_s26 = sld [smem:[#allocation4 + $0x2]]  ;;  %s6634_s6 = scalar_lea.hbm %s10947_s4, %s7765_s5 }
  0x68   : > { %329 = vst [vmem:[#allocation2 + $0x1] sm:$0x1] %v8288_v0  ;;  %v713_v6 = vmul.f32 %v8409_v2, %v584_v1  ;;  %v714_v9 = vmul.f32 %v8409_v2, %v585_v3  ;;  %v715_v12 = vmul.f32 %v8409_v2, %v586_v5  ;;  %v716_v15 = vmul.f32 %v8409_v2, %v587_v8  ;;  %v602_v1 = vld [vmem:[%s8275_s14 + $0x14] sm:$0x1]  ;;  %s9181_s22 = sld [smem:[#allocation4 + $0x3]]  ;;  %s6635_s1 = sshll.u32 %s10765_s13, 4  ;;  %s6636_s1 = int_to_ptr.vmem [resolvable:$true] %s6635_s1 }
  0x69   : > { %330 = vst [vmem:[#allocation2 + $0x2] sm:$0x1] %v8288_v0  ;;  %v717_v19 = vmul.f32 %v8409_v2, %v588_v11  ;;  %v718_v23 = vmul.f32 %v8409_v2, %v589_v14  ;;  %v719_v27 = vmul.f32 %v8409_v2, %v590_v17  ;;  %v720_v31 = vmul.f32 %v8409_v2, %v591_v21  ;;  %v605_v14 = vld [vmem:[%s8275_s14 + $0x17] sm:$0x1]  ;;  %s9442_s10 = sld [smem:[#allocation4 + $0x4]]  ;;  %s6622_s24 = scalar_lea.sflag [#allocation6], %s8271_s2 }
  0x6a   : > { %331 = vst [vmem:[#allocation2 + $0x3] sm:$0x1] %v8288_v0  ;;  %v721_v35 = vmul.f32 %v8409_v2, %v592_v25  ;;  %v722_v39 = vmul.f32 %v8409_v2, %v593_v29  ;;  %v723_v43 = vmul.f32 %v8409_v2, %v594_v33  ;;  %v724_v47 = vmul.f32 %v8409_v2, %v595_v37  ;;  %s9703_s15 = sld [smem:[#allocation4 + $0x5]]  ;;  %s7972_s7 = scalar_lea.hbm %s10947_s4, 256 }
  0x6b   : > { %332 = vst [vmem:[#allocation2 + $0x4] sm:$0x1] %v8288_v0  ;;  %v725_v51 = vmul.f32 %v8409_v2, %v596_v41  ;;  %v726_v55 = vmul.f32 %v8409_v2, %v597_v45  ;;  %v727_v59 = vmul.f32 %v8409_v2, %v598_v49  ;;  %v728_v63 = vmul.f32 %v8409_v2, %v599_v53  ;;  %s9964_s29 = sld [smem:[#allocation4 + $0x6]] }
  0x6c   : > { %333 = vst [vmem:[#allocation2 + $0x5] sm:$0x1] %v8288_v0  ;;  %v730_v8 = vmul.f32 %v8409_v2, %v601_v61  ;;  %s10225_s9 = sld [smem:[#allocation4 + $0x7]] }
  0x6d   : > { %334 = vst [vmem:[#allocation2 + $0x6] sm:$0x1] %v8288_v0  ;;  %s10486_s11 = sld [smem:[#allocation4 + $0x8]] }
  0x6e   : > { %335 = vst [vmem:[#allocation2 + $0x7] sm:$0x1] %v8288_v0  ;;  %v456_v4 = vld [vmem:[#allocation2] sm:$0x1] }
  0x6f   : > { %336 = vst [vmem:[#allocation2 + $0x8] sm:$0x1] %v8288_v0  ;;  %v457_v7 = vld [vmem:[#allocation2 + $0x1] sm:$0x1]  ;;  %v841_v18 = vadd.f32 %v713_v6, %v456_v4  ;;  %v729_v4 = vmul.f32 %v8409_v2, %v600_v57  ;;  %v603_v6 = vld [vmem:[%s8275_s14 + $0x15] sm:$0x1] }
  0x70   : > { %337 = vst [vmem:[#allocation2 + $0x9] sm:$0x1] %v8288_v0  ;;  %v458_v10 = vld [vmem:[#allocation2 + $0x2] sm:$0x1]  ;;  %v842_v22 = vadd.f32 %v714_v9, %v457_v7 }
  0x71   : > { %338 = vst [vmem:[#allocation2 + $0xa] sm:$0x1] %v8288_v0  ;;  %v459_v13 = vld [vmem:[#allocation2 + $0x3] sm:$0x1]  ;;  %v843_v26 = vadd.f32 %v715_v12, %v458_v10  ;;  %v604_v10 = vld [vmem:[%s8275_s14 + $0x16] sm:$0x1]  ;;  %v731_v12 = vmul.f32 %v8409_v2, %v602_v1 }
  0x72   : > { %339 = vst [vmem:[#allocation2 + $0xb] sm:$0x1] %v8288_v0  ;;  %v460_v16 = vld [vmem:[#allocation2 + $0x4] sm:$0x1]  ;;  %v844_v30 = vadd.f32 %v716_v15, %v459_v13 }
  0x73   : > { %340 = vst [vmem:[#allocation2 + $0xc] sm:$0x1] %v8288_v0  ;;  %v461_v20 = vld [vmem:[#allocation2 + $0x5] sm:$0x1]  ;;  %v845_v34 = vadd.f32 %v717_v19, %v460_v16  ;;  %v732_v16 = vmul.f32 %v8409_v2, %v603_v6 }
  0x74   : > { %341 = vst [vmem:[#allocation2 + $0xd] sm:$0x1] %v8288_v0  ;;  %v462_v24 = vld [vmem:[#allocation2 + $0x6] sm:$0x1]  ;;  %v846_v38 = vadd.f32 %v718_v23, %v461_v20  ;;  %v733_v20 = vmul.f32 %v8409_v2, %v604_v10 }
  0x75   : > { %342 = vst [vmem:[#allocation2 + $0xe] sm:$0x1] %v8288_v0  ;;  %v463_v28 = vld [vmem:[#allocation2 + $0x7] sm:$0x1]  ;;  %v847_v42 = vadd.f32 %v719_v27, %v462_v24  ;;  %v734_v24 = vmul.f32 %v8409_v2, %v605_v14 }
  0x76   : > { %343 = vst [vmem:[#allocation2 + $0xf] sm:$0x1] %v8288_v0  ;;  %v464_v32 = vld [vmem:[#allocation2 + $0x8] sm:$0x1]  ;;  %v848_v46 = vadd.f32 %v720_v31, %v463_v28 }
  0x77   : > { %344 = vst [vmem:[#allocation2 + $0x10] sm:$0x1] %v8288_v0  ;;  %v465_v36 = vld [vmem:[#allocation2 + $0x9] sm:$0x1]  ;;  %v849_v50 = vadd.f32 %v721_v35, %v464_v32 }
  0x78   : > { %345 = vst [vmem:[#allocation2 + $0x11] sm:$0x1] %v8288_v0  ;;  %v466_v40 = vld [vmem:[#allocation2 + $0xa] sm:$0x1]  ;;  %v850_v54 = vadd.f32 %v722_v39, %v465_v36 }
  0x79   : > { %346 = vst [vmem:[#allocation2 + $0x12] sm:$0x1] %v8288_v0  ;;  %v467_v44 = vld [vmem:[#allocation2 + $0xb] sm:$0x1]  ;;  %v851_v58 = vadd.f32 %v723_v43, %v466_v40 }
  0x7a   : > { %347 = vst [vmem:[#allocation2 + $0x13] sm:$0x1] %v8288_v0  ;;  %v468_v48 = vld [vmem:[#allocation2 + $0xc] sm:$0x1]  ;;  %v852_v62 = vadd.f32 %v724_v47, %v467_v44 }
  0x7b   : > { %348 = vst [vmem:[#allocation2 + $0x14] sm:$0x1] %v8288_v0  ;;  %v469_v52 = vld [vmem:[#allocation2 + $0xd] sm:$0x1]  ;;  %v853_v3 = vadd.f32 %v725_v51, %v468_v48 }
  0x7c   : > { %349 = vst [vmem:[#allocation2 + $0x15] sm:$0x1] %v8288_v0  ;;  %v470_v56 = vld [vmem:[#allocation2 + $0xe] sm:$0x1]  ;;  %v854_v7 = vadd.f32 %v726_v55, %v469_v52 }
  0x7d   : > { %350 = vst [vmem:[#allocation2 + $0x16] sm:$0x1] %v8288_v0  ;;  %v471_v60 = vld [vmem:[#allocation2 + $0xf] sm:$0x1]  ;;  %v855_v11 = vadd.f32 %v727_v59, %v470_v56 }
  0x7e   : > { %351 = vst [vmem:[#allocation2 + $0x17] sm:$0x1] %v8288_v0  ;;  %v856_v15 = vadd.f32 %v728_v63, %v471_v60 }
  0x7f   : > { %352 = vst [vmem:[#allocation2 + $0x18] sm:$0x1] %v8288_v0  ;;  %v473_v5 = vld [vmem:[#allocation2 + $0x11] sm:$0x1] }
  0x80   : > { %353 = vst [vmem:[#allocation2 + $0x19] sm:$0x1] %v8288_v0  ;;  %v474_v9 = vld [vmem:[#allocation2 + $0x12] sm:$0x1]  ;;  %v858_v23 = vadd.f32 %v730_v8, %v473_v5 }
  0x81   : > { %354 = vst [vmem:[#allocation2 + $0x1a] sm:$0x1] %v8288_v0  ;;  %v475_v13 = vld [vmem:[#allocation2 + $0x13] sm:$0x1]  ;;  %v859_v27 = vadd.f32 %v731_v12, %v474_v9 }
  0x82   : > { %355 = vst [vmem:[#allocation2 + $0x1b] sm:$0x1] %v8288_v0  ;;  %v476_v17 = vld [vmem:[#allocation2 + $0x14] sm:$0x1]  ;;  %v860_v31 = vadd.f32 %v732_v16, %v475_v13 }
  0x83   : > { %356 = vst [vmem:[#allocation2 + $0x1c] sm:$0x1] %v8288_v0  ;;  %v477_v21 = vld [vmem:[#allocation2 + $0x15] sm:$0x1]  ;;  %v861_v35 = vadd.f32 %v733_v20, %v476_v17 }
  0x84   : > { %357 = vst [vmem:[#allocation2 + $0x1d] sm:$0x1] %v8288_v0  ;;  %v478_v25 = vld [vmem:[#allocation2 + $0x16] sm:$0x1]  ;;  %v862_v39 = vadd.f32 %v734_v24, %v477_v21 }
  0x85   : > { %358 = vst [vmem:[#allocation2 + $0x1e] sm:$0x1] %v8288_v0  ;;  %v479_v29 = vld [vmem:[#allocation2 + $0x17] sm:$0x1] }
  0x86   : > { %359 = vst [vmem:[#allocation2 + $0x1f] sm:$0x1] %v8288_v0  ;;  %v480_v33 = vld [vmem:[#allocation2 + $0x18] sm:$0x1] }
  0x87   : > { %360 = vst [vmem:[#allocation2 + $0x20] sm:$0x1] %v8288_v0  ;;  %v481_v37 = vld [vmem:[#allocation2 + $0x19] sm:$0x1] }
  0x88   : > { %361 = vst [vmem:[#allocation2 + $0x21] sm:$0x1] %v8288_v0  ;;  %v482_v41 = vld [vmem:[#allocation2 + $0x1a] sm:$0x1] }
  0x89   : > { %362 = vst [vmem:[#allocation2 + $0x22] sm:$0x1] %v8288_v0  ;;  %v483_v45 = vld [vmem:[#allocation2 + $0x1b] sm:$0x1] }
  0x8a   : > { %363 = vst [vmem:[#allocation2 + $0x23] sm:$0x1] %v8288_v0  ;;  %v484_v49 = vld [vmem:[#allocation2 + $0x1c] sm:$0x1] }
  0x8b   : > { %364 = vst [vmem:[#allocation2 + $0x24] sm:$0x1] %v8288_v0  ;;  %v485_v53 = vld [vmem:[#allocation2 + $0x1d] sm:$0x1] }
  0x8c   : > { %365 = vst [vmem:[#allocation2 + $0x25] sm:$0x1] %v8288_v0  ;;  %v486_v57 = vld [vmem:[#allocation2 + $0x1e] sm:$0x1] }
  0x8d   : > { %366 = vst [vmem:[#allocation2 + $0x26] sm:$0x1] %v8288_v0  ;;  %v487_v61 = vld [vmem:[#allocation2 + $0x1f] sm:$0x1] }
  0x8e   : > { %367 = vst [vmem:[#allocation2 + $0x27] sm:$0x1] %v8288_v0  ;;  %v488_v1 = vld [vmem:[#allocation2 + $0x20] sm:$0x1] }
  0x8f   : > { %368 = vst [vmem:[#allocation2 + $0x28] sm:$0x1] %v8288_v0  ;;  %v489_v6 = vld [vmem:[#allocation2 + $0x21] sm:$0x1] }
  0x90   : > { %369 = vst [vmem:[#allocation2 + $0x29] sm:$0x1] %v8288_v0  ;;  %v490_v10 = vld [vmem:[#allocation2 + $0x22] sm:$0x1] }
  0x91   : > { %370 = vst [vmem:[#allocation2 + $0x2a] sm:$0x1] %v8288_v0  ;;  %v491_v14 = vld [vmem:[#allocation2 + $0x23] sm:$0x1] }
  0x92   : > { %371 = vst [vmem:[#allocation2 + $0x2b] sm:$0x1] %v8288_v0 }
  0x93   : > { %372 = vst [vmem:[#allocation2 + $0x2c] sm:$0x1] %v8288_v0 }
  0x94   : > { %373 = vst [vmem:[#allocation2 + $0x2d] sm:$0x1] %v8288_v0 }
  0x95   : > { %374 = vst [vmem:[#allocation2 + $0x2e] sm:$0x1] %v8288_v0 }
  0x96   : > { %375 = vst [vmem:[#allocation2 + $0x2f] sm:$0x1] %v8288_v0 }
  0x97   : > { %376 = vst [vmem:[#allocation2 + $0x30] sm:$0x1] %v8288_v0 }
  0x98   : > { %377 = vst [vmem:[#allocation2 + $0x31] sm:$0x1] %v8288_v0 }
  0x99   : > { %378 = vst [vmem:[#allocation2 + $0x32] sm:$0x1] %v8288_v0 }
  0x9a   : > { %379 = vst [vmem:[#allocation2 + $0x33] sm:$0x1] %v8288_v0 }
  0x9b   : > { %380 = vst [vmem:[#allocation2 + $0x34] sm:$0x1] %v8288_v0 }
  0x9c   : > { %381 = vst [vmem:[#allocation2 + $0x35] sm:$0x1] %v8288_v0 }
  0x9d   : > { %382 = vst [vmem:[#allocation2 + $0x36] sm:$0x1] %v8288_v0 }
  0x9e   : > { %383 = vst [vmem:[#allocation2 + $0x37] sm:$0x1] %v8288_v0 }
  0x9f   : > { %384 = vst [vmem:[#allocation2 + $0x38] sm:$0x1] %v8288_v0 }
  0xa0   : > { %385 = vst [vmem:[#allocation2 + $0x39] sm:$0x1] %v8288_v0 }
  0xa1   : > { %386 = vst [vmem:[#allocation2 + $0x3a] sm:$0x1] %v8288_v0 }
  0xa2   : > { %387 = vst [vmem:[#allocation2 + $0x3b] sm:$0x1] %v8288_v0 }
  0xa3   : > { %388 = vst [vmem:[#allocation2 + $0x3c] sm:$0x1] %v8288_v0 }
  0xa4   : > { %389 = vst [vmem:[#allocation2 + $0x3d] sm:$0x1] %v8288_v0 }
  0xa5   : > { %390 = vst [vmem:[#allocation2 + $0x3e] sm:$0x1] %v8288_v0 }
  0xa6   : > { %391 = vst [vmem:[#allocation2 + $0x3f] sm:$0x1] %v8288_v0 }
  0xa7   : > { %392 = vst [vmem:[#allocation2 + $0x40] sm:$0x1] %v8288_v0 }
  0xa8   : > { %393 = vst [vmem:[#allocation2 + $0x41] sm:$0x1] %v8288_v0 }
  0xa9   : > { %394 = vst [vmem:[#allocation2 + $0x42] sm:$0x1] %v8288_v0 }
  0xaa   : > { %395 = vst [vmem:[#allocation2 + $0x43] sm:$0x1] %v8288_v0 }
  0xab   : > { %396 = vst [vmem:[#allocation2 + $0x44] sm:$0x1] %v8288_v0 }
  0xac   : > { %397 = vst [vmem:[#allocation2 + $0x45] sm:$0x1] %v8288_v0 }
  0xad   : > { %398 = vst [vmem:[#allocation2 + $0x46] sm:$0x1] %v8288_v0 }
  0xae   : > { %399 = vst [vmem:[#allocation2 + $0x47] sm:$0x1] %v8288_v0 }
  0xaf   : > { %400 = vst [vmem:[#allocation2 + $0x48] sm:$0x1] %v8288_v0 }
  0xb0   : > { %401 = vst [vmem:[#allocation2 + $0x49] sm:$0x1] %v8288_v0 }
  0xb1   : > { %402 = vst [vmem:[#allocation2 + $0x4a] sm:$0x1] %v8288_v0 }
  0xb2   : > { %403 = vst [vmem:[#allocation2 + $0x4b] sm:$0x1] %v8288_v0 }
  0xb3   : > { %404 = vst [vmem:[#allocation2 + $0x4c] sm:$0x1] %v8288_v0 }
  0xb4   : > { %405 = vst [vmem:[#allocation2 + $0x4d] sm:$0x1] %v8288_v0 }
  0xb5   : > { %406 = vst [vmem:[#allocation2 + $0x4e] sm:$0x1] %v8288_v0 }
  0xb6   : > { %407 = vst [vmem:[#allocation2 + $0x4f] sm:$0x1] %v8288_v0 }
  0xb7   : > { %408 = vst [vmem:[#allocation2 + $0x50] sm:$0x1] %v8288_v0 }
  0xb8   : > { %409 = vst [vmem:[#allocation2 + $0x51] sm:$0x1] %v8288_v0 }
  0xb9   : > { %410 = vst [vmem:[#allocation2 + $0x52] sm:$0x1] %v8288_v0 }
  0xba   : > { %411 = vst [vmem:[#allocation2 + $0x53] sm:$0x1] %v8288_v0 }
  0xbb   : > { %412 = vst [vmem:[#allocation2 + $0x54] sm:$0x1] %v8288_v0 }
  0xbc   : > { %413 = vst [vmem:[#allocation2 + $0x55] sm:$0x1] %v8288_v0 }
  0xbd   : > { %414 = vst [vmem:[#allocation2 + $0x56] sm:$0x1] %v8288_v0 }
  0xbe   : > { %415 = vst [vmem:[#allocation2 + $0x57] sm:$0x1] %v8288_v0 }
  0xbf   : > { %416 = vst [vmem:[#allocation2 + $0x58] sm:$0x1] %v8288_v0 }
  0xc0   : > { %417 = vst [vmem:[#allocation2 + $0x59] sm:$0x1] %v8288_v0 }
  0xc1   : > { %418 = vst [vmem:[#allocation2 + $0x5a] sm:$0x1] %v8288_v0 }
  0xc2   : > { %419 = vst [vmem:[#allocation2 + $0x5b] sm:$0x1] %v8288_v0 }
  0xc3   : > { %420 = vst [vmem:[#allocation2 + $0x5c] sm:$0x1] %v8288_v0 }
  0xc4   : > { %421 = vst [vmem:[#allocation2 + $0x5d] sm:$0x1] %v8288_v0 }
  0xc5   : > { %422 = vst [vmem:[#allocation2 + $0x5e] sm:$0x1] %v8288_v0 }
  0xc6   : > { %423 = vst [vmem:[#allocation2 + $0x5f] sm:$0x1] %v8288_v0 }
  0xc7   : > { %424 = vst [vmem:[#allocation2 + $0x60] sm:$0x1] %v8288_v0 }
  0xc8   : > { %425 = vst [vmem:[#allocation2 + $0x61] sm:$0x1] %v8288_v0 }
  0xc9   : > { %426 = vst [vmem:[#allocation2 + $0x62] sm:$0x1] %v8288_v0 }
  0xca   : > { %427 = vst [vmem:[#allocation2 + $0x63] sm:$0x1] %v8288_v0 }
  0xcb   : > { %428 = vst [vmem:[#allocation2 + $0x64] sm:$0x1] %v8288_v0 }
  0xcc   : > { %429 = vst [vmem:[#allocation2 + $0x65] sm:$0x1] %v8288_v0 }
  0xcd   : > { %430 = vst [vmem:[#allocation2 + $0x66] sm:$0x1] %v8288_v0 }
  0xce   : > { %431 = vst [vmem:[#allocation2 + $0x67] sm:$0x1] %v8288_v0 }
  0xcf   : > { %432 = vst [vmem:[#allocation2 + $0x68] sm:$0x1] %v8288_v0 }
  0xd0   : > { %433 = vst [vmem:[#allocation2 + $0x69] sm:$0x1] %v8288_v0 }
  0xd1   : > { %434 = vst [vmem:[#allocation2 + $0x6a] sm:$0x1] %v8288_v0 }
  0xd2   : > { %435 = vst [vmem:[#allocation2 + $0x6b] sm:$0x1] %v8288_v0 }
  0xd3   : > { %436 = vst [vmem:[#allocation2 + $0x6c] sm:$0x1] %v8288_v0 }
  0xd4   : > { %437 = vst [vmem:[#allocation2 + $0x6d] sm:$0x1] %v8288_v0 }
  0xd5   : > { %438 = vst [vmem:[#allocation2 + $0x6e] sm:$0x1] %v8288_v0 }
  0xd6   : > { %439 = vst [vmem:[#allocation2 + $0x6f] sm:$0x1] %v8288_v0 }
  0xd7   : > { %440 = vst [vmem:[#allocation2 + $0x70] sm:$0x1] %v8288_v0 }
  0xd8   : > { %441 = vst [vmem:[#allocation2 + $0x71] sm:$0x1] %v8288_v0 }
  0xd9   : > { %442 = vst [vmem:[#allocation2 + $0x72] sm:$0x1] %v8288_v0 }
  0xda   : > { %443 = vst [vmem:[#allocation2 + $0x73] sm:$0x1] %v8288_v0 }
  0xdb   : > { %444 = vst [vmem:[#allocation2 + $0x74] sm:$0x1] %v8288_v0 }
  0xdc   : > { %445 = vst [vmem:[#allocation2 + $0x75] sm:$0x1] %v8288_v0 }
  0xdd   : > { %446 = vst [vmem:[#allocation2 + $0x76] sm:$0x1] %v8288_v0 }
  0xde   : > { %447 = vst [vmem:[#allocation2 + $0x77] sm:$0x1] %v8288_v0 }
  0xdf   : > { %448 = vst [vmem:[#allocation2 + $0x78] sm:$0x1] %v8288_v0 }
  0xe0   : > { %449 = vst [vmem:[#allocation2 + $0x79] sm:$0x1] %v8288_v0 }
  0xe1   : > { %450 = vst [vmem:[#allocation2 + $0x7a] sm:$0x1] %v8288_v0 }
  0xe2   : > { %451 = vst [vmem:[#allocation2 + $0x7b] sm:$0x1] %v8288_v0 }
  0xe3   : > { %452 = vst [vmem:[#allocation2 + $0x7c] sm:$0x1] %v8288_v0 }
  0xe4   : > { %453 = vst [vmem:[#allocation2 + $0x7d] sm:$0x1] %v8288_v0 }
  0xe5   : > { %454 = vst [vmem:[#allocation2 + $0x7e] sm:$0x1] %v8288_v0 }
  0xe6   : > { %455 = vst [vmem:[#allocation2 + $0x7f] sm:$0x1] %v8288_v0  ;;  %v472_v0 = vld [vmem:[#allocation2 + $0x10] sm:$0x1] }
  0xe7   : > { %969 = vst [vmem:[#allocation2] sm:$0x1] %v841_v18  ;;  %v606_v18 = vld [vmem:[%s8275_s14 + $0x18] sm:$0x1]  ;;  %v857_v19 = vadd.f32 %v729_v4, %v472_v0 }
  0xe8   : > { %970 = vst [vmem:[#allocation2 + $0x1] sm:$0x1] %v842_v22  ;;  %v607_v22 = vld [vmem:[%s8275_s14 + $0x19] sm:$0x1]  ;;  %v735_v28 = vmul.f32 %v8409_v2, %v606_v18  ;;  %v492_v18 = vld [vmem:[#allocation2 + $0x24] sm:$0x1] }
  0xe9   : > { %971 = vst [vmem:[#allocation2 + $0x2] sm:$0x1] %v843_v26  ;;  %v608_v26 = vld [vmem:[%s8275_s14 + $0x1a] sm:$0x1]  ;;  %v736_v32 = vmul.f32 %v8409_v2, %v607_v22  ;;  %v493_v22 = vld [vmem:[#allocation2 + $0x25] sm:$0x1] }
  0xea   : > { %972 = vst [vmem:[#allocation2 + $0x3] sm:$0x1] %v844_v30  ;;  %v609_v30 = vld [vmem:[%s8275_s14 + $0x1b] sm:$0x1]  ;;  %v737_v36 = vmul.f32 %v8409_v2, %v608_v26  ;;  %v863_v43 = vadd.f32 %v735_v28, %v478_v25  ;;  %v494_v26 = vld [vmem:[#allocation2 + $0x26] sm:$0x1] }
  0xeb   : > { %973 = vst [vmem:[#allocation2 + $0x4] sm:$0x1] %v845_v34  ;;  %v610_v34 = vld [vmem:[%s8275_s14 + $0x1c] sm:$0x1]  ;;  %v738_v40 = vmul.f32 %v8409_v2, %v609_v30  ;;  %v864_v47 = vadd.f32 %v736_v32, %v479_v29  ;;  %v495_v30 = vld [vmem:[#allocation2 + $0x27] sm:$0x1] }
  0xec   : > { %974 = vst [vmem:[#allocation2 + $0x5] sm:$0x1] %v846_v38  ;;  %v611_v38 = vld [vmem:[%s8275_s14 + $0x1d] sm:$0x1]  ;;  %v739_v44 = vmul.f32 %v8409_v2, %v610_v34  ;;  %v865_v51 = vadd.f32 %v737_v36, %v480_v33  ;;  %v496_v34 = vld [vmem:[#allocation2 + $0x28] sm:$0x1] }
  0xed   : > { %975 = vst [vmem:[#allocation2 + $0x6] sm:$0x1] %v847_v42  ;;  %v612_v42 = vld [vmem:[%s8275_s14 + $0x1e] sm:$0x1]  ;;  %v740_v48 = vmul.f32 %v8409_v2, %v611_v38  ;;  %v866_v55 = vadd.f32 %v738_v40, %v481_v37  ;;  %v497_v38 = vld [vmem:[#allocation2 + $0x29] sm:$0x1] }
  0xee   : > { %976 = vst [vmem:[#allocation2 + $0x7] sm:$0x1] %v848_v46  ;;  %v613_v46 = vld [vmem:[%s8275_s14 + $0x1f] sm:$0x1]  ;;  %v741_v52 = vmul.f32 %v8409_v2, %v612_v42  ;;  %v867_v59 = vadd.f32 %v739_v44, %v482_v41  ;;  %v498_v42 = vld [vmem:[#allocation2 + $0x2a] sm:$0x1] }
  0xef   : > { %977 = vst [vmem:[#allocation2 + $0x8] sm:$0x1] %v849_v50  ;;  %v614_v50 = vld [vmem:[%s8275_s14 + $0x20] sm:$0x1]  ;;  %v742_v56 = vmul.f32 %v8409_v2, %v613_v46  ;;  %v868_v63 = vadd.f32 %v740_v48, %v483_v45  ;;  %v499_v46 = vld [vmem:[#allocation2 + $0x2b] sm:$0x1] }
  0xf0   : > { %978 = vst [vmem:[#allocation2 + $0x9] sm:$0x1] %v850_v54  ;;  %v615_v54 = vld [vmem:[%s8275_s14 + $0x21] sm:$0x1]  ;;  %v743_v60 = vmul.f32 %v8409_v2, %v614_v50  ;;  %v869_v4 = vadd.f32 %v741_v52, %v484_v49  ;;  %v500_v50 = vld [vmem:[#allocation2 + $0x2c] sm:$0x1] }
  0xf1   : > { %979 = vst [vmem:[#allocation2 + $0xa] sm:$0x1] %v851_v58  ;;  %v616_v58 = vld [vmem:[%s8275_s14 + $0x24] sm:$0x1]  ;;  %v744_v0 = vmul.f32 %v8409_v2, %v615_v54  ;;  %v870_v8 = vadd.f32 %v742_v56, %v485_v53  ;;  %v501_v54 = vld [vmem:[#allocation2 + $0x2d] sm:$0x1] }
  0xf2   : > { %980 = vst [vmem:[#allocation2 + $0xb] sm:$0x1] %v852_v62  ;;  %v617_v62 = vld [vmem:[%s8275_s14 + $0x25] sm:$0x1]  ;;  %v745_v5 = vmul.f32 %v8409_v2, %v616_v58  ;;  %v871_v12 = vadd.f32 %v743_v60, %v486_v57  ;;  %v502_v58 = vld [vmem:[#allocation2 + $0x2e] sm:$0x1] }
  0xf3   : > { %981 = vst [vmem:[#allocation2 + $0xc] sm:$0x1] %v853_v3  ;;  %v618_v3 = vld [vmem:[%s8275_s14 + $0x26] sm:$0x1]  ;;  %v746_v9 = vmul.f32 %v8409_v2, %v617_v62  ;;  %v872_v16 = vadd.f32 %v744_v0, %v487_v61  ;;  %v503_v62 = vld [vmem:[#allocation2 + $0x2f] sm:$0x1] }
  0xf4   : > { %982 = vst [vmem:[#allocation2 + $0xd] sm:$0x1] %v854_v7  ;;  %v619_v7 = vld [vmem:[%s8275_s14 + $0x27] sm:$0x1]  ;;  %v747_v13 = vmul.f32 %v8409_v2, %v618_v3  ;;  %v873_v20 = vadd.f32 %v745_v5, %v488_v1  ;;  %v504_v3 = vld [vmem:[#allocation2 + $0x30] sm:$0x1] }
  0xf5   : > { %983 = vst [vmem:[#allocation2 + $0xe] sm:$0x1] %v855_v11  ;;  %v620_v11 = vld [vmem:[%s8275_s14 + $0x28] sm:$0x1]  ;;  %v748_v17 = vmul.f32 %v8409_v2, %v619_v7  ;;  %v874_v24 = vadd.f32 %v746_v9, %v489_v6  ;;  %v505_v7 = vld [vmem:[#allocation2 + $0x31] sm:$0x1] }
  0xf6   : > { %984 = vst [vmem:[#allocation2 + $0xf] sm:$0x1] %v856_v15  ;;  %v621_v15 = vld [vmem:[%s8275_s14 + $0x29] sm:$0x1]  ;;  %v749_v21 = vmul.f32 %v8409_v2, %v620_v11  ;;  %v875_v28 = vadd.f32 %v747_v13, %v490_v10  ;;  %v506_v11 = vld [vmem:[#allocation2 + $0x32] sm:$0x1] }
  0xf7   : > { %985 = vst [vmem:[#allocation2 + $0x10] sm:$0x1] %v857_v19  ;;  %v622_v19 = vld [vmem:[%s8275_s14 + $0x2a] sm:$0x1]  ;;  %v750_v25 = vmul.f32 %v8409_v2, %v621_v15  ;;  %v876_v32 = vadd.f32 %v748_v17, %v491_v14  ;;  %v507_v15 = vld [vmem:[#allocation2 + $0x33] sm:$0x1] }
  0xf8   : > { %986 = vst [vmem:[#allocation2 + $0x11] sm:$0x1] %v858_v23  ;;  %v623_v23 = vld [vmem:[%s8275_s14 + $0x2b] sm:$0x1]  ;;  %v751_v29 = vmul.f32 %v8409_v2, %v622_v19  ;;  %v877_v36 = vadd.f32 %v749_v21, %v492_v18  ;;  %v508_v19 = vld [vmem:[#allocation2 + $0x34] sm:$0x1] }
  0xf9   : > { %987 = vst [vmem:[#allocation2 + $0x12] sm:$0x1] %v859_v27  ;;  %v624_v27 = vld [vmem:[%s8275_s14 + $0x2c] sm:$0x1]  ;;  %v752_v33 = vmul.f32 %v8409_v2, %v623_v23  ;;  %v878_v40 = vadd.f32 %v750_v25, %v493_v22  ;;  %v509_v23 = vld [vmem:[#allocation2 + $0x35] sm:$0x1] }
  0xfa   : > { %988 = vst [vmem:[#allocation2 + $0x13] sm:$0x1] %v860_v31  ;;  %v625_v31 = vld [vmem:[%s8275_s14 + $0x2d] sm:$0x1]  ;;  %v753_v37 = vmul.f32 %v8409_v2, %v624_v27  ;;  %v879_v44 = vadd.f32 %v751_v29, %v494_v26  ;;  %v510_v27 = vld [vmem:[#allocation2 + $0x36] sm:$0x1] }
  0xfb   : > { %989 = vst [vmem:[#allocation2 + $0x14] sm:$0x1] %v861_v35  ;;  %v626_v35 = vld [vmem:[%s8275_s14 + $0x2e] sm:$0x1]  ;;  %v754_v41 = vmul.f32 %v8409_v2, %v625_v31  ;;  %v880_v48 = vadd.f32 %v752_v33, %v495_v30  ;;  %v511_v31 = vld [vmem:[#allocation2 + $0x37] sm:$0x1] }
  0xfc   : > { %990 = vst [vmem:[#allocation2 + $0x15] sm:$0x1] %v862_v39  ;;  %v627_v39 = vld [vmem:[%s8275_s14 + $0x2f] sm:$0x1]  ;;  %v755_v45 = vmul.f32 %v8409_v2, %v626_v35  ;;  %v881_v52 = vadd.f32 %v753_v37, %v496_v34  ;;  %v512_v35 = vld [vmem:[#allocation2 + $0x38] sm:$0x1] }
  0xfd   : > { %991 = vst [vmem:[#allocation2 + $0x16] sm:$0x1] %v863_v43  ;;  %v628_v43 = vld [vmem:[%s8275_s14 + $0x30] sm:$0x1]  ;;  %v756_v49 = vmul.f32 %v8409_v2, %v627_v39  ;;  %v882_v56 = vadd.f32 %v754_v41, %v497_v38  ;;  %v513_v39 = vld [vmem:[#allocation2 + $0x39] sm:$0x1] }
  0xfe   : > { %992 = vst [vmem:[#allocation2 + $0x17] sm:$0x1] %v864_v47  ;;  %v629_v47 = vld [vmem:[%s8275_s14 + $0x31] sm:$0x1]  ;;  %v757_v53 = vmul.f32 %v8409_v2, %v628_v43  ;;  %v883_v60 = vadd.f32 %v755_v45, %v498_v42  ;;  %v514_v43 = vld [vmem:[#allocation2 + $0x3a] sm:$0x1] }
  0xff   : > { %993 = vst [vmem:[#allocation2 + $0x18] sm:$0x1] %v865_v51  ;;  %v630_v51 = vld [vmem:[%s8275_s14 + $0x32] sm:$0x1]  ;;  %v758_v57 = vmul.f32 %v8409_v2, %v629_v47  ;;  %v884_v0 = vadd.f32 %v756_v49, %v499_v46  ;;  %v515_v47 = vld [vmem:[#allocation2 + $0x3b] sm:$0x1] }
 0x100   : > { %994 = vst [vmem:[#allocation2 + $0x19] sm:$0x1] %v866_v55  ;;  %v631_v55 = vld [vmem:[%s8275_s14 + $0x33] sm:$0x1]  ;;  %v759_v61 = vmul.f32 %v8409_v2, %v630_v51  ;;  %v885_v5 = vadd.f32 %v757_v53, %v500_v50  ;;  %v516_v51 = vld [vmem:[#allocation2 + $0x3c] sm:$0x1] }
 0x101   : > { %995 = vst [vmem:[#allocation2 + $0x1a] sm:$0x1] %v867_v59  ;;  %v632_v59 = vld [vmem:[%s8275_s14 + $0x36] sm:$0x1]  ;;  %v760_v1 = vmul.f32 %v8409_v2, %v631_v55  ;;  %v886_v9 = vadd.f32 %v758_v57, %v501_v54  ;;  %v517_v55 = vld [vmem:[#allocation2 + $0x3d] sm:$0x1] }
 0x102   : > { %996 = vst [vmem:[#allocation2 + $0x1b] sm:$0x1] %v868_v63  ;;  %v633_v63 = vld [vmem:[%s8275_s14 + $0x37] sm:$0x1]  ;;  %v761_v6 = vmul.f32 %v8409_v2, %v632_v59  ;;  %v887_v13 = vadd.f32 %v759_v61, %v502_v58  ;;  %v518_v59 = vld [vmem:[#allocation2 + $0x3e] sm:$0x1] }
 0x103   : > { %997 = vst [vmem:[#allocation2 + $0x1c] sm:$0x1] %v869_v4  ;;  %v634_v4 = vld [vmem:[%s8275_s14 + $0x38] sm:$0x1]  ;;  %v762_v10 = vmul.f32 %v8409_v2, %v633_v63  ;;  %v888_v17 = vadd.f32 %v760_v1, %v503_v62  ;;  %v519_v63 = vld [vmem:[#allocation2 + $0x3f] sm:$0x1] }
 0x104   : > { %998 = vst [vmem:[#allocation2 + $0x1d] sm:$0x1] %v870_v8  ;;  %v635_v8 = vld [vmem:[%s8275_s14 + $0x39] sm:$0x1]  ;;  %v763_v14 = vmul.f32 %v8409_v2, %v634_v4  ;;  %v889_v21 = vadd.f32 %v761_v6, %v504_v3  ;;  %v520_v4 = vld [vmem:[#allocation2 + $0x40] sm:$0x1] }
 0x105   : > { %999 = vst [vmem:[#allocation2 + $0x1e] sm:$0x1] %v871_v12  ;;  %v636_v12 = vld [vmem:[%s8275_s14 + $0x3a] sm:$0x1]  ;;  %v764_v18 = vmul.f32 %v8409_v2, %v635_v8  ;;  %v890_v25 = vadd.f32 %v762_v10, %v505_v7  ;;  %v521_v8 = vld [vmem:[#allocation2 + $0x41] sm:$0x1] }
 0x106   : > { %1000 = vst [vmem:[#allocation2 + $0x1f] sm:$0x1] %v872_v16  ;;  %v637_v16 = vld [vmem:[%s8275_s14 + $0x3b] sm:$0x1]  ;;  %v765_v22 = vmul.f32 %v8409_v2, %v636_v12  ;;  %v891_v29 = vadd.f32 %v763_v14, %v506_v11  ;;  %v522_v12 = vld [vmem:[#allocation2 + $0x42] sm:$0x1] }
 0x107   : > { %1001 = vst [vmem:[#allocation2 + $0x20] sm:$0x1] %v873_v20  ;;  %v638_v20 = vld [vmem:[%s8275_s14 + $0x3c] sm:$0x1]  ;;  %v766_v26 = vmul.f32 %v8409_v2, %v637_v16  ;;  %v892_v33 = vadd.f32 %v764_v18, %v507_v15  ;;  %v523_v16 = vld [vmem:[#allocation2 + $0x43] sm:$0x1] }
 0x108   : > { %1002 = vst [vmem:[#allocation2 + $0x21] sm:$0x1] %v874_v24  ;;  %v639_v24 = vld [vmem:[%s8275_s14 + $0x3d] sm:$0x1]  ;;  %v767_v30 = vmul.f32 %v8409_v2, %v638_v20  ;;  %v893_v37 = vadd.f32 %v765_v22, %v508_v19  ;;  %v524_v20 = vld [vmem:[#allocation2 + $0x44] sm:$0x1] }
 0x109   : > { %1003 = vst [vmem:[#allocation2 + $0x22] sm:$0x1] %v875_v28  ;;  %v640_v28 = vld [vmem:[%s8275_s14 + $0x3e] sm:$0x1]  ;;  %v768_v34 = vmul.f32 %v8409_v2, %v639_v24  ;;  %v894_v41 = vadd.f32 %v766_v26, %v509_v23  ;;  %v525_v24 = vld [vmem:[#allocation2 + $0x45] sm:$0x1] }
 0x10a   : > { %1004 = vst [vmem:[#allocation2 + $0x23] sm:$0x1] %v876_v32  ;;  %v641_v32 = vld [vmem:[%s8275_s14 + $0x3f] sm:$0x1]  ;;  %v769_v38 = vmul.f32 %v8409_v2, %v640_v28  ;;  %v895_v45 = vadd.f32 %v767_v30, %v510_v27  ;;  %v526_v28 = vld [vmem:[#allocation2 + $0x46] sm:$0x1] }
 0x10b   : > { %1005 = vst [vmem:[#allocation2 + $0x24] sm:$0x1] %v877_v36  ;;  %v642_v36 = vld [vmem:[%s8275_s14 + $0x40] sm:$0x1]  ;;  %v770_v42 = vmul.f32 %v8409_v2, %v641_v32  ;;  %v896_v49 = vadd.f32 %v768_v34, %v511_v31  ;;  %v527_v32 = vld [vmem:[#allocation2 + $0x47] sm:$0x1] }
 0x10c   : > { %1006 = vst [vmem:[#allocation2 + $0x25] sm:$0x1] %v878_v40  ;;  %v643_v40 = vld [vmem:[%s8275_s14 + $0x41] sm:$0x1]  ;;  %v771_v46 = vmul.f32 %v8409_v2, %v642_v36  ;;  %v897_v53 = vadd.f32 %v769_v38, %v512_v35  ;;  %v528_v36 = vld [vmem:[#allocation2 + $0x48] sm:$0x1] }
 0x10d   : > { %1007 = vst [vmem:[#allocation2 + $0x26] sm:$0x1] %v879_v44  ;;  %v644_v44 = vld [vmem:[%s8275_s14 + $0x42] sm:$0x1]  ;;  %v772_v50 = vmul.f32 %v8409_v2, %v643_v40  ;;  %v898_v57 = vadd.f32 %v770_v42, %v513_v39  ;;  %v529_v40 = vld [vmem:[#allocation2 + $0x49] sm:$0x1] }
 0x10e   : > { %1008 = vst [vmem:[#allocation2 + $0x27] sm:$0x1] %v880_v48  ;;  %v645_v48 = vld [vmem:[%s8275_s14 + $0x43] sm:$0x1]  ;;  %v773_v54 = vmul.f32 %v8409_v2, %v644_v44  ;;  %v899_v61 = vadd.f32 %v771_v46, %v514_v43  ;;  %v530_v44 = vld [vmem:[#allocation2 + $0x4a] sm:$0x1] }
 0x10f   : > { %1009 = vst [vmem:[#allocation2 + $0x28] sm:$0x1] %v881_v52  ;;  %v646_v52 = vld [vmem:[%s8275_s14 + $0x44] sm:$0x1]  ;;  %v774_v58 = vmul.f32 %v8409_v2, %v645_v48  ;;  %v900_v1 = vadd.f32 %v772_v50, %v515_v47  ;;  %v531_v48 = vld [vmem:[#allocation2 + $0x4b] sm:$0x1] }
 0x110   : > { %1010 = vst [vmem:[#allocation2 + $0x29] sm:$0x1] %v882_v56  ;;  %v647_v56 = vld [vmem:[%s8275_s14 + $0x45] sm:$0x1]  ;;  %v775_v62 = vmul.f32 %v8409_v2, %v646_v52  ;;  %v901_v6 = vadd.f32 %v773_v54, %v516_v51  ;;  %v532_v52 = vld [vmem:[#allocation2 + $0x4c] sm:$0x1] }
 0x111   : > { %1011 = vst [vmem:[#allocation2 + $0x2a] sm:$0x1] %v883_v60  ;;  %v648_v60 = vld [vmem:[%s8275_s14 + $0x48] sm:$0x1]  ;;  %v776_v3 = vmul.f32 %v8409_v2, %v647_v56  ;;  %v902_v10 = vadd.f32 %v774_v58, %v517_v55  ;;  %v533_v56 = vld [vmem:[#allocation2 + $0x4d] sm:$0x1] }
 0x112   : > { %1012 = vst [vmem:[#allocation2 + $0x2b] sm:$0x1] %v884_v0  ;;  %v649_v0 = vld [vmem:[%s8275_s14 + $0x49] sm:$0x1]  ;;  %v777_v7 = vmul.f32 %v8409_v2, %v648_v60  ;;  %v903_v14 = vadd.f32 %v775_v62, %v518_v59  ;;  %v534_v60 = vld [vmem:[#allocation2 + $0x4e] sm:$0x1] }
 0x113   : > { %1013 = vst [vmem:[#allocation2 + $0x2c] sm:$0x1] %v885_v5  ;;  %v650_v5 = vld [vmem:[%s8275_s14 + $0x4a] sm:$0x1]  ;;  %v778_v11 = vmul.f32 %v8409_v2, %v649_v0  ;;  %v904_v18 = vadd.f32 %v776_v3, %v519_v63  ;;  %v535_v0 = vld [vmem:[#allocation2 + $0x4f] sm:$0x1] }
 0x114   : > { %1014 = vst [vmem:[#allocation2 + $0x2d] sm:$0x1] %v886_v9  ;;  %v651_v9 = vld [vmem:[%s8275_s14 + $0x4b] sm:$0x1]  ;;  %v779_v15 = vmul.f32 %v8409_v2, %v650_v5  ;;  %v905_v22 = vadd.f32 %v777_v7, %v520_v4  ;;  %v536_v5 = vld [vmem:[#allocation2 + $0x50] sm:$0x1] }
 0x115   : > { %1015 = vst [vmem:[#allocation2 + $0x2e] sm:$0x1] %v887_v13  ;;  %v652_v13 = vld [vmem:[%s8275_s14 + $0x4c] sm:$0x1]  ;;  %v780_v19 = vmul.f32 %v8409_v2, %v651_v9  ;;  %v906_v26 = vadd.f32 %v778_v11, %v521_v8  ;;  %v537_v9 = vld [vmem:[#allocation2 + $0x51] sm:$0x1] }
 0x116   : > { %1016 = vst [vmem:[#allocation2 + $0x2f] sm:$0x1] %v888_v17  ;;  %v653_v17 = vld [vmem:[%s8275_s14 + $0x4d] sm:$0x1]  ;;  %v781_v23 = vmul.f32 %v8409_v2, %v652_v13  ;;  %v907_v30 = vadd.f32 %v779_v15, %v522_v12  ;;  %v538_v13 = vld [vmem:[#allocation2 + $0x52] sm:$0x1] }
 0x117   : > { %1017 = vst [vmem:[#allocation2 + $0x30] sm:$0x1] %v889_v21  ;;  %v654_v21 = vld [vmem:[%s8275_s14 + $0x4e] sm:$0x1]  ;;  %v782_v27 = vmul.f32 %v8409_v2, %v653_v17  ;;  %v908_v34 = vadd.f32 %v780_v19, %v523_v16  ;;  %v539_v17 = vld [vmem:[#allocation2 + $0x53] sm:$0x1] }
 0x118   : > { %1018 = vst [vmem:[#allocation2 + $0x31] sm:$0x1] %v890_v25  ;;  %v655_v25 = vld [vmem:[%s8275_s14 + $0x4f] sm:$0x1]  ;;  %v783_v31 = vmul.f32 %v8409_v2, %v654_v21  ;;  %v909_v38 = vadd.f32 %v781_v23, %v524_v20  ;;  %v540_v21 = vld [vmem:[#allocation2 + $0x54] sm:$0x1] }
 0x119   : > { %1019 = vst [vmem:[#allocation2 + $0x32] sm:$0x1] %v891_v29  ;;  %v656_v29 = vld [vmem:[%s8275_s14 + $0x50] sm:$0x1]  ;;  %v784_v35 = vmul.f32 %v8409_v2, %v655_v25  ;;  %v910_v42 = vadd.f32 %v782_v27, %v525_v24  ;;  %v541_v25 = vld [vmem:[#allocation2 + $0x55] sm:$0x1] }
 0x11a   : > { %1020 = vst [vmem:[#allocation2 + $0x33] sm:$0x1] %v892_v33  ;;  %v657_v33 = vld [vmem:[%s8275_s14 + $0x51] sm:$0x1]  ;;  %v785_v39 = vmul.f32 %v8409_v2, %v656_v29  ;;  %v911_v46 = vadd.f32 %v783_v31, %v526_v28  ;;  %v542_v29 = vld [vmem:[#allocation2 + $0x56] sm:$0x1] }
 0x11b   : > { %1021 = vst [vmem:[#allocation2 + $0x34] sm:$0x1] %v893_v37  ;;  %v658_v37 = vld [vmem:[%s8275_s14 + $0x52] sm:$0x1]  ;;  %v786_v43 = vmul.f32 %v8409_v2, %v657_v33  ;;  %v912_v50 = vadd.f32 %v784_v35, %v527_v32  ;;  %v543_v33 = vld [vmem:[#allocation2 + $0x57] sm:$0x1] }
 0x11c   : > { %1022 = vst [vmem:[#allocation2 + $0x35] sm:$0x1] %v894_v41  ;;  %v659_v41 = vld [vmem:[%s8275_s14 + $0x53] sm:$0x1]  ;;  %v787_v47 = vmul.f32 %v8409_v2, %v658_v37  ;;  %v913_v54 = vadd.f32 %v785_v39, %v528_v36  ;;  %v544_v37 = vld [vmem:[#allocation2 + $0x58] sm:$0x1] }
 0x11d   : > { %1023 = vst [vmem:[#allocation2 + $0x36] sm:$0x1] %v895_v45  ;;  %v660_v45 = vld [vmem:[%s8275_s14 + $0x54] sm:$0x1]  ;;  %v788_v51 = vmul.f32 %v8409_v2, %v659_v41  ;;  %v914_v58 = vadd.f32 %v786_v43, %v529_v40  ;;  %v545_v41 = vld [vmem:[#allocation2 + $0x59] sm:$0x1] }
 0x11e   : > { %1024 = vst [vmem:[#allocation2 + $0x37] sm:$0x1] %v896_v49  ;;  %v661_v49 = vld [vmem:[%s8275_s14 + $0x55] sm:$0x1]  ;;  %v789_v55 = vmul.f32 %v8409_v2, %v660_v45  ;;  %v915_v62 = vadd.f32 %v787_v47, %v530_v44  ;;  %v546_v45 = vld [vmem:[#allocation2 + $0x5a] sm:$0x1] }
 0x11f   : > { %1025 = vst [vmem:[#allocation2 + $0x38] sm:$0x1] %v897_v53  ;;  %v662_v53 = vld [vmem:[%s8275_s14 + $0x56] sm:$0x1]  ;;  %v790_v59 = vmul.f32 %v8409_v2, %v661_v49  ;;  %v916_v3 = vadd.f32 %v788_v51, %v531_v48  ;;  %v547_v49 = vld [vmem:[#allocation2 + $0x5b] sm:$0x1] }
 0x120   : > { %1026 = vst [vmem:[#allocation2 + $0x39] sm:$0x1] %v898_v57  ;;  %v663_v57 = vld [vmem:[%s8275_s14 + $0x57] sm:$0x1]  ;;  %v791_v63 = vmul.f32 %v8409_v2, %v662_v53  ;;  %v917_v7 = vadd.f32 %v789_v55, %v532_v52  ;;  %v548_v53 = vld [vmem:[#allocation2 + $0x5c] sm:$0x1] }
 0x121   : > { %1027 = vst [vmem:[#allocation2 + $0x3a] sm:$0x1] %v899_v61  ;;  %v664_v61 = vld [vmem:[%s8275_s14 + $0x5a] sm:$0x1]  ;;  %v792_v4 = vmul.f32 %v8409_v2, %v663_v57  ;;  %v918_v11 = vadd.f32 %v790_v59, %v533_v56  ;;  %v549_v57 = vld [vmem:[#allocation2 + $0x5d] sm:$0x1] }
 0x122   : > { %1028 = vst [vmem:[#allocation2 + $0x3b] sm:$0x1] %v900_v1  ;;  %v665_v1 = vld [vmem:[%s8275_s14 + $0x5b] sm:$0x1]  ;;  %v793_v8 = vmul.f32 %v8409_v2, %v664_v61  ;;  %v919_v15 = vadd.f32 %v791_v63, %v534_v60  ;;  %v550_v61 = vld [vmem:[#allocation2 + $0x5e] sm:$0x1] }
 0x123   : > { %1029 = vst [vmem:[#allocation2 + $0x3c] sm:$0x1] %v901_v6  ;;  %v666_v6 = vld [vmem:[%s8275_s14 + $0x5c] sm:$0x1]  ;;  %v794_v12 = vmul.f32 %v8409_v2, %v665_v1  ;;  %v920_v19 = vadd.f32 %v792_v4, %v535_v0  ;;  %v551_v1 = vld [vmem:[#allocation2 + $0x5f] sm:$0x1] }
 0x124   : > { %1030 = vst [vmem:[#allocation2 + $0x3d] sm:$0x1] %v902_v10  ;;  %v667_v10 = vld [vmem:[%s8275_s14 + $0x5d] sm:$0x1]  ;;  %v795_v16 = vmul.f32 %v8409_v2, %v666_v6  ;;  %v921_v23 = vadd.f32 %v793_v8, %v536_v5  ;;  %v552_v6 = vld [vmem:[#allocation2 + $0x60] sm:$0x1] }
 0x125   : > { %1031 = vst [vmem:[#allocation2 + $0x3e] sm:$0x1] %v903_v14  ;;  %v668_v14 = vld [vmem:[%s8275_s14 + $0x5e] sm:$0x1]  ;;  %v796_v20 = vmul.f32 %v8409_v2, %v667_v10  ;;  %v922_v27 = vadd.f32 %v794_v12, %v537_v9  ;;  %v553_v10 = vld [vmem:[#allocation2 + $0x61] sm:$0x1] }
 0x126   : > { %1032 = vst [vmem:[#allocation2 + $0x3f] sm:$0x1] %v904_v18  ;;  %v669_v18 = vld [vmem:[%s8275_s14 + $0x5f] sm:$0x1]  ;;  %v797_v24 = vmul.f32 %v8409_v2, %v668_v14  ;;  %v923_v31 = vadd.f32 %v795_v16, %v538_v13  ;;  %v554_v14 = vld [vmem:[#allocation2 + $0x62] sm:$0x1] }
 0x127   : > { %1033 = vst [vmem:[#allocation2 + $0x40] sm:$0x1] %v905_v22  ;;  %v670_v22 = vld [vmem:[%s8275_s14 + $0x60] sm:$0x1]  ;;  %v798_v28 = vmul.f32 %v8409_v2, %v669_v18  ;;  %v924_v35 = vadd.f32 %v796_v20, %v539_v17  ;;  %v555_v18 = vld [vmem:[#allocation2 + $0x63] sm:$0x1] }
 0x128   : > { %1034 = vst [vmem:[#allocation2 + $0x41] sm:$0x1] %v906_v26  ;;  %v671_v26 = vld [vmem:[%s8275_s14 + $0x61] sm:$0x1]  ;;  %v799_v32 = vmul.f32 %v8409_v2, %v670_v22  ;;  %v925_v39 = vadd.f32 %v797_v24, %v540_v21  ;;  %v556_v22 = vld [vmem:[#allocation2 + $0x64] sm:$0x1] }
 0x129   : > { %1035 = vst [vmem:[#allocation2 + $0x42] sm:$0x1] %v907_v30  ;;  %v672_v30 = vld [vmem:[%s8275_s14 + $0x62] sm:$0x1]  ;;  %v800_v36 = vmul.f32 %v8409_v2, %v671_v26  ;;  %v926_v43 = vadd.f32 %v798_v28, %v541_v25  ;;  %v557_v26 = vld [vmem:[#allocation2 + $0x65] sm:$0x1] }
 0x12a   : > { %1036 = vst [vmem:[#allocation2 + $0x43] sm:$0x1] %v908_v34  ;;  %v673_v34 = vld [vmem:[%s8275_s14 + $0x63] sm:$0x1]  ;;  %v801_v40 = vmul.f32 %v8409_v2, %v672_v30  ;;  %v927_v47 = vadd.f32 %v799_v32, %v542_v29  ;;  %v558_v30 = vld [vmem:[#allocation2 + $0x66] sm:$0x1] }
 0x12b   : > { %1037 = vst [vmem:[#allocation2 + $0x44] sm:$0x1] %v909_v38  ;;  %v674_v38 = vld [vmem:[%s8275_s14 + $0x64] sm:$0x1]  ;;  %v802_v44 = vmul.f32 %v8409_v2, %v673_v34  ;;  %v928_v51 = vadd.f32 %v800_v36, %v543_v33  ;;  %v559_v34 = vld [vmem:[#allocation2 + $0x67] sm:$0x1] }
 0x12c   : > { %1038 = vst [vmem:[#allocation2 + $0x45] sm:$0x1] %v910_v42  ;;  %v675_v42 = vld [vmem:[%s8275_s14 + $0x65] sm:$0x1]  ;;  %v803_v48 = vmul.f32 %v8409_v2, %v674_v38  ;;  %v929_v55 = vadd.f32 %v801_v40, %v544_v37  ;;  %v560_v38 = vld [vmem:[#allocation2 + $0x68] sm:$0x1] }
 0x12d   : > { %1039 = vst [vmem:[#allocation2 + $0x46] sm:$0x1] %v911_v46  ;;  %v676_v46 = vld [vmem:[%s8275_s14 + $0x66] sm:$0x1]  ;;  %v804_v52 = vmul.f32 %v8409_v2, %v675_v42  ;;  %v930_v59 = vadd.f32 %v802_v44, %v545_v41  ;;  %v561_v42 = vld [vmem:[#allocation2 + $0x69] sm:$0x1] }
 0x12e   : > { %1040 = vst [vmem:[#allocation2 + $0x47] sm:$0x1] %v912_v50  ;;  %v677_v50 = vld [vmem:[%s8275_s14 + $0x67] sm:$0x1]  ;;  %v805_v56 = vmul.f32 %v8409_v2, %v676_v46  ;;  %v931_v63 = vadd.f32 %v803_v48, %v546_v45  ;;  %v562_v46 = vld [vmem:[#allocation2 + $0x6a] sm:$0x1] }
 0x12f   : > { %1041 = vst [vmem:[#allocation2 + $0x48] sm:$0x1] %v913_v54  ;;  %v678_v54 = vld [vmem:[%s8275_s14 + $0x68] sm:$0x1]  ;;  %v806_v60 = vmul.f32 %v8409_v2, %v677_v50  ;;  %v932_v4 = vadd.f32 %v804_v52, %v547_v49  ;;  %v563_v50 = vld [vmem:[#allocation2 + $0x6b] sm:$0x1] }
 0x130   : > { %1042 = vst [vmem:[#allocation2 + $0x49] sm:$0x1] %v914_v58  ;;  %v679_v58 = vld [vmem:[%s8275_s14 + $0x69] sm:$0x1]  ;;  %v807_v0 = vmul.f32 %v8409_v2, %v678_v54  ;;  %v933_v8 = vadd.f32 %v805_v56, %v548_v53  ;;  %v564_v54 = vld [vmem:[#allocation2 + $0x6c] sm:$0x1] }
 0x131   : > { %1043 = vst [vmem:[#allocation2 + $0x4a] sm:$0x1] %v915_v62  ;;  %v680_v62 = vld [vmem:[%s8275_s14 + $0x6c] sm:$0x1]  ;;  %v808_v5 = vmul.f32 %v8409_v2, %v679_v58  ;;  %v934_v12 = vadd.f32 %v806_v60, %v549_v57  ;;  %v565_v58 = vld [vmem:[#allocation2 + $0x6d] sm:$0x1] }
 0x132   : > { %1044 = vst [vmem:[#allocation2 + $0x4b] sm:$0x1] %v916_v3  ;;  %v681_v3 = vld [vmem:[%s8275_s14 + $0x6d] sm:$0x1]  ;;  %v809_v9 = vmul.f32 %v8409_v2, %v680_v62  ;;  %v935_v16 = vadd.f32 %v807_v0, %v550_v61  ;;  %v566_v62 = vld [vmem:[#allocation2 + $0x6e] sm:$0x1] }
 0x133   : > { %1045 = vst [vmem:[#allocation2 + $0x4c] sm:$0x1] %v917_v7  ;;  %v682_v7 = vld [vmem:[%s8275_s14 + $0x6e] sm:$0x1]  ;;  %v810_v13 = vmul.f32 %v8409_v2, %v681_v3  ;;  %v936_v20 = vadd.f32 %v808_v5, %v551_v1  ;;  %v567_v3 = vld [vmem:[#allocation2 + $0x6f] sm:$0x1] }
 0x134   : > { %1046 = vst [vmem:[#allocation2 + $0x4d] sm:$0x1] %v918_v11  ;;  %v683_v11 = vld [vmem:[%s8275_s14 + $0x6f] sm:$0x1]  ;;  %v811_v17 = vmul.f32 %v8409_v2, %v682_v7  ;;  %v937_v24 = vadd.f32 %v809_v9, %v552_v6  ;;  %v568_v7 = vld [vmem:[#allocation2 + $0x70] sm:$0x1] }
 0x135   : > { %1047 = vst [vmem:[#allocation2 + $0x4e] sm:$0x1] %v919_v15  ;;  %v684_v15 = vld [vmem:[%s8275_s14 + $0x70] sm:$0x1]  ;;  %v812_v21 = vmul.f32 %v8409_v2, %v683_v11  ;;  %v938_v28 = vadd.f32 %v810_v13, %v553_v10  ;;  %v569_v11 = vld [vmem:[#allocation2 + $0x71] sm:$0x1] }
 0x136   : > { %1048 = vst [vmem:[#allocation2 + $0x4f] sm:$0x1] %v920_v19  ;;  %v685_v19 = vld [vmem:[%s8275_s14 + $0x71] sm:$0x1]  ;;  %v813_v25 = vmul.f32 %v8409_v2, %v684_v15  ;;  %v939_v32 = vadd.f32 %v811_v17, %v554_v14  ;;  %v570_v15 = vld [vmem:[#allocation2 + $0x72] sm:$0x1] }
 0x137   : > { %1049 = vst [vmem:[#allocation2 + $0x50] sm:$0x1] %v921_v23  ;;  %v686_v23 = vld [vmem:[%s8275_s14 + $0x72] sm:$0x1]  ;;  %v814_v29 = vmul.f32 %v8409_v2, %v685_v19  ;;  %v940_v36 = vadd.f32 %v812_v21, %v555_v18  ;;  %v571_v19 = vld [vmem:[#allocation2 + $0x73] sm:$0x1] }
 0x138   : > { %1050 = vst [vmem:[#allocation2 + $0x51] sm:$0x1] %v922_v27  ;;  %v687_v27 = vld [vmem:[%s8275_s14 + $0x73] sm:$0x1]  ;;  %v815_v33 = vmul.f32 %v8409_v2, %v686_v23  ;;  %v941_v40 = vadd.f32 %v813_v25, %v556_v22  ;;  %v572_v23 = vld [vmem:[#allocation2 + $0x74] sm:$0x1] }
 0x139   : > { %1051 = vst [vmem:[#allocation2 + $0x52] sm:$0x1] %v923_v31  ;;  %v688_v31 = vld [vmem:[%s8275_s14 + $0x74] sm:$0x1]  ;;  %v816_v37 = vmul.f32 %v8409_v2, %v687_v27  ;;  %v942_v44 = vadd.f32 %v814_v29, %v557_v26  ;;  %v573_v27 = vld [vmem:[#allocation2 + $0x75] sm:$0x1] }
 0x13a   : > { %1052 = vst [vmem:[#allocation2 + $0x53] sm:$0x1] %v924_v35  ;;  %v689_v35 = vld [vmem:[%s8275_s14 + $0x75] sm:$0x1]  ;;  %v817_v41 = vmul.f32 %v8409_v2, %v688_v31  ;;  %v943_v48 = vadd.f32 %v815_v33, %v558_v30  ;;  %v574_v31 = vld [vmem:[#allocation2 + $0x76] sm:$0x1] }
 0x13b   : > { %1053 = vst [vmem:[#allocation2 + $0x54] sm:$0x1] %v925_v39  ;;  %v690_v39 = vld [vmem:[%s8275_s14 + $0x76] sm:$0x1]  ;;  %v818_v45 = vmul.f32 %v8409_v2, %v689_v35  ;;  %v944_v52 = vadd.f32 %v816_v37, %v559_v34  ;;  %v575_v35 = vld [vmem:[#allocation2 + $0x77] sm:$0x1] }
 0x13c   : > { %1054 = vst [vmem:[#allocation2 + $0x55] sm:$0x1] %v926_v43  ;;  %v691_v43 = vld [vmem:[%s8275_s14 + $0x77] sm:$0x1]  ;;  %v819_v49 = vmul.f32 %v8409_v2, %v690_v39  ;;  %v945_v56 = vadd.f32 %v817_v41, %v560_v38  ;;  %v576_v39 = vld [vmem:[#allocation2 + $0x78] sm:$0x1] }
 0x13d   : > { %1055 = vst [vmem:[#allocation2 + $0x56] sm:$0x1] %v927_v47  ;;  %v692_v47 = vld [vmem:[%s8275_s14 + $0x78] sm:$0x1]  ;;  %v820_v53 = vmul.f32 %v8409_v2, %v691_v43  ;;  %v946_v60 = vadd.f32 %v818_v45, %v561_v42  ;;  %v577_v43 = vld [vmem:[#allocation2 + $0x79] sm:$0x1] }
 0x13e   : > { %1056 = vst [vmem:[#allocation2 + $0x57] sm:$0x1] %v928_v51  ;;  %v693_v51 = vld [vmem:[%s8275_s14 + $0x79] sm:$0x1]  ;;  %v821_v57 = vmul.f32 %v8409_v2, %v692_v47  ;;  %v947_v0 = vadd.f32 %v819_v49, %v562_v46  ;;  %v578_v47 = vld [vmem:[#allocation2 + $0x7a] sm:$0x1] }
 0x13f   : > { %1057 = vst [vmem:[#allocation2 + $0x58] sm:$0x1] %v929_v55  ;;  %v694_v55 = vld [vmem:[%s8275_s14 + $0x7a] sm:$0x1]  ;;  %v822_v61 = vmul.f32 %v8409_v2, %v693_v51  ;;  %v948_v5 = vadd.f32 %v820_v53, %v563_v50  ;;  %v579_v51 = vld [vmem:[#allocation2 + $0x7b] sm:$0x1] }
 0x140   : > { %1058 = vst [vmem:[#allocation2 + $0x59] sm:$0x1] %v930_v59  ;;  %v695_v59 = vld [vmem:[%s8275_s14 + $0x7b] sm:$0x1]  ;;  %v823_v1 = vmul.f32 %v8409_v2, %v694_v55  ;;  %v949_v9 = vadd.f32 %v821_v57, %v564_v54  ;;  %v580_v55 = vld [vmem:[#allocation2 + $0x7c] sm:$0x1] }
 0x141   : > { %1059 = vst [vmem:[#allocation2 + $0x5a] sm:$0x1] %v931_v63  ;;  %v696_v63 = vld [vmem:[%s8275_s14 + $0x7e] sm:$0x1]  ;;  %v824_v6 = vmul.f32 %v8409_v2, %v695_v59  ;;  %v950_v13 = vadd.f32 %v822_v61, %v565_v58  ;;  %v581_v59 = vld [vmem:[#allocation2 + $0x7d] sm:$0x1] }
 0x142   : > { %1060 = vst [vmem:[#allocation2 + $0x5b] sm:$0x1] %v932_v4  ;;  %v697_v4 = vld [vmem:[%s8275_s14 + $0x7f] sm:$0x1]  ;;  %v825_v10 = vmul.f32 %v8409_v2, %v696_v63  ;;  %v951_v17 = vadd.f32 %v823_v1, %v566_v62  ;;  %v582_v63 = vld [vmem:[#allocation2 + $0x7e] sm:$0x1]  ;;  %v8678_v1 = vstv %s8659_s16 }
 0x143   : > { %1061 = vst [vmem:[#allocation2 + $0x5c] sm:$0x1] %v933_v8  ;;  %v698_v8 = vld [vmem:[%s8275_s14 + $0x80] sm:$0x1]  ;;  %v826_v14 = vmul.f32 %v8409_v2, %v697_v4  ;;  %v952_v21 = vadd.f32 %v824_v6, %v567_v3  ;;  %v6781_v6 = vld [vmem:[%s8275_s14 + $0x2] sm:$0x1] }
 0x144   : > { %1062 = vst [vmem:[#allocation2 + $0x5d] sm:$0x1] %v934_v12  ;;  %v699_v12 = vld [vmem:[%s8275_s14 + $0x81] sm:$0x1]  ;;  %v827_v18 = vmul.f32 %v8409_v2, %v698_v8  ;;  %v953_v25 = vadd.f32 %v825_v10, %v568_v7  ;;  %v6782_v10 = vld [vmem:[%s8275_s14 + $0x3] sm:$0x1] }
 0x145   : > { %1063 = vst [vmem:[#allocation2 + $0x5e] sm:$0x1] %v935_v16  ;;  %v700_v16 = vld [vmem:[%s8275_s14 + $0x82] sm:$0x1]  ;;  %v828_v22 = vmul.f32 %v8409_v2, %v699_v12  ;;  %v954_v29 = vadd.f32 %v826_v14, %v569_v11  ;;  %v6783_v14 = vld [vmem:[%s8275_s14 + $0x4] sm:$0x1] }
 0x146   : > { %1064 = vst [vmem:[#allocation2 + $0x5f] sm:$0x1] %v936_v20  ;;  %v701_v20 = vld [vmem:[%s8275_s14 + $0x83] sm:$0x1]  ;;  %v829_v26 = vmul.f32 %v8409_v2, %v700_v16  ;;  %v955_v33 = vadd.f32 %v827_v18, %v570_v15  ;;  %v1356_v16 = vmul.f32 %v6781_v6, %v8678_v1  ;;  %v6784_v18 = vld [vmem:[%s8275_s14 + $0x5] sm:$0x1] }
 0x147   : > { %1065 = vst [vmem:[#allocation2 + $0x60] sm:$0x1] %v937_v24  ;;  %v702_v24 = vld [vmem:[%s8275_s14 + $0x84] sm:$0x1]  ;;  %v830_v30 = vmul.f32 %v8409_v2, %v701_v20  ;;  %v956_v37 = vadd.f32 %v828_v22, %v571_v19  ;;  %v1100_v20 = vld [vmem:[#allocation2 + $0x3] sm:$0x1] }
 0x148   : > { %1066 = vst [vmem:[#allocation2 + $0x61] sm:$0x1] %v938_v28  ;;  %v703_v28 = vld [vmem:[%s8275_s14 + $0x85] sm:$0x1]  ;;  %v831_v34 = vmul.f32 %v8409_v2, %v702_v24  ;;  %v957_v41 = vadd.f32 %v829_v26, %v572_v23  ;;  %v1358_v23 = vmul.f32 %v6783_v14, %v8678_v1  ;;  %v1101_v24 = vld [vmem:[#allocation2 + $0x4] sm:$0x1] }
 0x149   : > { %1067 = vst [vmem:[#allocation2 + $0x62] sm:$0x1] %v939_v32  ;;  %v704_v32 = vld [vmem:[%s8275_s14 + $0x86] sm:$0x1]  ;;  %v832_v38 = vmul.f32 %v8409_v2, %v703_v28  ;;  %v958_v45 = vadd.f32 %v830_v30, %v573_v27  ;;  %v1359_v27 = vmul.f32 %v6784_v18, %v8678_v1  ;;  %v1102_v28 = vld [vmem:[#allocation2 + $0x5] sm:$0x1] }
 0x14a   : > { %1068 = vst [vmem:[#allocation2 + $0x63] sm:$0x1] %v940_v36  ;;  %v705_v36 = vld [vmem:[%s8275_s14 + $0x87] sm:$0x1]  ;;  %v833_v42 = vmul.f32 %v8409_v2, %v704_v32  ;;  %v959_v49 = vadd.f32 %v831_v34, %v574_v31  ;;  %v1103_v32 = vld [vmem:[#allocation2 + $0x6] sm:$0x1] }
 0x14b   : > { %1069 = vst [vmem:[#allocation2 + $0x64] sm:$0x1] %v941_v40  ;;  %v706_v40 = vld [vmem:[%s8275_s14 + $0x88] sm:$0x1]  ;;  %v834_v46 = vmul.f32 %v8409_v2, %v705_v36  ;;  %v960_v53 = vadd.f32 %v832_v38, %v575_v35  ;;  %v1104_v36 = vld [vmem:[#allocation2 + $0x7] sm:$0x1]  ;;  %v1486_v38 = vadd.f32 %v1358_v23, %v1100_v20 }
 0x14c   : > { %1070 = vst [vmem:[#allocation2 + $0x65] sm:$0x1] %v942_v44  ;;  %v707_v44 = vld [vmem:[%s8275_s14 + $0x89] sm:$0x1]  ;;  %v835_v50 = vmul.f32 %v8409_v2, %v706_v40  ;;  %v961_v57 = vadd.f32 %v833_v42, %v576_v39  ;;  %v1105_v40 = vld [vmem:[#allocation2 + $0x8] sm:$0x1]  ;;  %v1487_v42 = vadd.f32 %v1359_v27, %v1101_v24 }
 0x14d   : > { %1071 = vst [vmem:[#allocation2 + $0x66] sm:$0x1] %v943_v48  ;;  %v708_v48 = vld [vmem:[%s8275_s14 + $0x8a] sm:$0x1]  ;;  %v836_v54 = vmul.f32 %v8409_v2, %v707_v44  ;;  %v962_v61 = vadd.f32 %v834_v46, %v577_v43  ;;  %v1106_v44 = vld [vmem:[#allocation2 + $0x9] sm:$0x1] }
 0x14e   : > { %1072 = vst [vmem:[#allocation2 + $0x67] sm:$0x1] %v944_v52  ;;  %v709_v52 = vld [vmem:[%s8275_s14 + $0x8b] sm:$0x1]  ;;  %v837_v58 = vmul.f32 %v8409_v2, %v708_v48  ;;  %v963_v3 = vadd.f32 %v835_v50, %v578_v47  ;;  %v1107_v48 = vld [vmem:[#allocation2 + $0xa] sm:$0x1] }
 0x14f   : > { %1073 = vst [vmem:[#allocation2 + $0x68] sm:$0x1] %v945_v56  ;;  %v710_v56 = vld [vmem:[%s8275_s14 + $0x8c] sm:$0x1]  ;;  %v838_v62 = vmul.f32 %v8409_v2, %v709_v52  ;;  %v964_v7 = vadd.f32 %v836_v54, %v579_v51  ;;  %v1108_v52 = vld [vmem:[#allocation2 + $0xb] sm:$0x1] }
 0x150   : > { %1074 = vst [vmem:[#allocation2 + $0x69] sm:$0x1] %v946_v60  ;;  %v711_v60 = vld [vmem:[%s8275_s14 + $0x8d] sm:$0x1]  ;;  %v839_v4 = vmul.f32 %v8409_v2, %v710_v56  ;;  %v965_v11 = vadd.f32 %v837_v58, %v580_v55  ;;  %v1109_v56 = vld [vmem:[#allocation2 + $0xc] sm:$0x1] }
 0x151   : > { %1075 = vst [vmem:[#allocation2 + $0x6a] sm:$0x1] %v947_v0  ;;  %v6780_v0 = vld [vmem:[%s8275_s14 + $0x1] sm:$0x1]  ;;  %v840_v8 = vmul.f32 %v8409_v2, %v711_v60  ;;  %v966_v15 = vadd.f32 %v838_v62, %v581_v59  ;;  %v1357_v2 = vmul.f32 %v6782_v10, %v8678_v1  ;;  %v1110_v60 = vld [vmem:[#allocation2 + $0xd] sm:$0x1] }
 0x152   : > { %1076 = vst [vmem:[#allocation2 + $0x6b] sm:$0x1] %v948_v5  ;;  %v583_v5 = vld [vmem:[#allocation2 + $0x7f] sm:$0x1]  ;;  %v1355_v12 = vmul.f32 %v6780_v0, %v8678_v1  ;;  %v967_v19 = vadd.f32 %v839_v4, %v582_v63  ;;  %v1111_v0 = vld [vmem:[#allocation2 + $0xe] sm:$0x1] }
 0x153   : > { %1077 = vst [vmem:[#allocation2 + $0x6c] sm:$0x1] %v949_v9  ;;  %v1097_v9 = vld [vmem:[#allocation2] sm:$0x1]  ;;  %v968_v22 = vadd.f32 %v840_v8, %v583_v5  ;;  %v1112_v6 = vld [vmem:[#allocation2 + $0xf] sm:$0x1] }
 0x154   : > { %1078 = vst [vmem:[#allocation2 + $0x6d] sm:$0x1] %v950_v13  ;;  %v1098_v13 = vld [vmem:[#allocation2 + $0x1] sm:$0x1]  ;;  %v1483_v26 = vadd.f32 %v1355_v12, %v1097_v9  ;;  %v1113_v10 = vld [vmem:[#allocation2 + $0x10] sm:$0x1] }
 0x155   : > { %1079 = vst [vmem:[#allocation2 + $0x6e] sm:$0x1] %v951_v17  ;;  %v1099_v17 = vld [vmem:[#allocation2 + $0x2] sm:$0x1]  ;;  %v1484_v30 = vadd.f32 %v1356_v16, %v1098_v13  ;;  %v1114_v14 = vld [vmem:[#allocation2 + $0x11] sm:$0x1] }
 0x156   : > { %1080 = vst [vmem:[#allocation2 + $0x6f] sm:$0x1] %v952_v21  ;;  %v6785_v21 = vld [vmem:[%s8275_s14 + $0x6] sm:$0x1]  ;;  %v1485_v34 = vadd.f32 %v1357_v2, %v1099_v17  ;;  %v1115_v18 = vld [vmem:[#allocation2 + $0x12] sm:$0x1] }
 0x157   : > { %1081 = vst [vmem:[#allocation2 + $0x70] sm:$0x1] %v953_v25  ;;  %v6786_v25 = vld [vmem:[%s8275_s14 + $0x7] sm:$0x1]  ;;  %v1360_v31 = vmul.f32 %v6785_v21, %v8678_v1  ;;  %v1116_v21 = vld [vmem:[#allocation2 + $0x13] sm:$0x1] }
 0x158   : > { %1082 = vst [vmem:[#allocation2 + $0x71] sm:$0x1] %v954_v29  ;;  %v6787_v29 = vld [vmem:[%s8275_s14 + $0x8] sm:$0x1]  ;;  %v1361_v35 = vmul.f32 %v6786_v25, %v8678_v1  ;;  %v1117_v25 = vld [vmem:[#allocation2 + $0x14] sm:$0x1] }
 0x159   : > { %1083 = vst [vmem:[#allocation2 + $0x72] sm:$0x1] %v955_v33  ;;  %v6788_v33 = vld [vmem:[%s8275_s14 + $0x9] sm:$0x1]  ;;  %v1362_v39 = vmul.f32 %v6787_v29, %v8678_v1  ;;  %v1488_v46 = vadd.f32 %v1360_v31, %v1102_v28  ;;  %v1118_v29 = vld [vmem:[#allocation2 + $0x15] sm:$0x1] }
 0x15a   : > { %1084 = vst [vmem:[#allocation2 + $0x73] sm:$0x1] %v956_v37  ;;  %v6789_v37 = vld [vmem:[%s8275_s14 + $0xa] sm:$0x1]  ;;  %v1363_v43 = vmul.f32 %v6788_v33, %v8678_v1  ;;  %v1489_v50 = vadd.f32 %v1361_v35, %v1103_v32  ;;  %v1119_v33 = vld [vmem:[#allocation2 + $0x16] sm:$0x1] }
 0x15b   : > { %1085 = vst [vmem:[#allocation2 + $0x74] sm:$0x1] %v957_v41  ;;  %v6790_v41 = vld [vmem:[%s8275_s14 + $0xb] sm:$0x1]  ;;  %v1364_v47 = vmul.f32 %v6789_v37, %v8678_v1  ;;  %v1490_v54 = vadd.f32 %v1362_v39, %v1104_v36  ;;  %v1120_v37 = vld [vmem:[#allocation2 + $0x17] sm:$0x1] }
 0x15c   : > { %1086 = vst [vmem:[#allocation2 + $0x75] sm:$0x1] %v958_v45  ;;  %v6791_v45 = vld [vmem:[%s8275_s14 + $0xc] sm:$0x1]  ;;  %v1365_v51 = vmul.f32 %v6790_v41, %v8678_v1  ;;  %v1491_v58 = vadd.f32 %v1363_v43, %v1105_v40  ;;  %v1121_v41 = vld [vmem:[#allocation2 + $0x18] sm:$0x1] }
 0x15d   : > { %1087 = vst [vmem:[#allocation2 + $0x76] sm:$0x1] %v959_v49  ;;  %v6792_v49 = vld [vmem:[%s8275_s14 + $0xd] sm:$0x1]  ;;  %v1366_v55 = vmul.f32 %v6791_v45, %v8678_v1  ;;  %v1492_v62 = vadd.f32 %v1364_v47, %v1106_v44  ;;  %v1122_v45 = vld [vmem:[#allocation2 + $0x19] sm:$0x1] }
 0x15e   : > { %1088 = vst [vmem:[#allocation2 + $0x77] sm:$0x1] %v960_v53  ;;  %v6793_v53 = vld [vmem:[%s8275_s14 + $0xe] sm:$0x1]  ;;  %v1367_v59 = vmul.f32 %v6792_v49, %v8678_v1  ;;  %v1493_v4 = vadd.f32 %v1365_v51, %v1107_v48  ;;  %v1123_v49 = vld [vmem:[#allocation2 + $0x1a] sm:$0x1] }
 0x15f   : > { %1089 = vst [vmem:[#allocation2 + $0x78] sm:$0x1] %v961_v57  ;;  %v6794_v57 = vld [vmem:[%s8275_s14 + $0xf] sm:$0x1]  ;;  %v1368_v63 = vmul.f32 %v6793_v53, %v8678_v1  ;;  %v1494_v8 = vadd.f32 %v1366_v55, %v1108_v52  ;;  %v1124_v53 = vld [vmem:[#allocation2 + $0x1b] sm:$0x1] }
 0x160   : > { %1090 = vst [vmem:[#allocation2 + $0x79] sm:$0x1] %v962_v61  ;;  %v6795_v61 = vld [vmem:[%s8275_s14 + $0x10] sm:$0x1]  ;;  %v1369_v5 = vmul.f32 %v6794_v57, %v8678_v1  ;;  %v1495_v12 = vadd.f32 %v1367_v59, %v1109_v56  ;;  %v1125_v57 = vld [vmem:[#allocation2 + $0x1c] sm:$0x1] }
 0x161   : > { %1091 = vst [vmem:[#allocation2 + $0x7a] sm:$0x1] %v963_v3  ;;  %v6796_v3 = vld [vmem:[%s8275_s14 + $0x13] sm:$0x1]  ;;  %v1370_v9 = vmul.f32 %v6795_v61, %v8678_v1  ;;  %v1496_v16 = vadd.f32 %v1368_v63, %v1110_v60  ;;  %v1126_v61 = vld [vmem:[#allocation2 + $0x1d] sm:$0x1] }
 0x162   : > { %1092 = vst [vmem:[#allocation2 + $0x7b] sm:$0x1] %v964_v7  ;;  %v6797_v7 = vld [vmem:[%s8275_s14 + $0x14] sm:$0x1]  ;;  %v1371_v13 = vmul.f32 %v6796_v3, %v8678_v1  ;;  %v1497_v2 = vadd.f32 %v1369_v5, %v1111_v0  ;;  %v1127_v3 = vld [vmem:[#allocation2 + $0x1e] sm:$0x1] }
 0x163   : > { %1093 = vst [vmem:[#allocation2 + $0x7c] sm:$0x1] %v965_v11  ;;  %v6798_v11 = vld [vmem:[%s8275_s14 + $0x15] sm:$0x1]  ;;  %v1372_v17 = vmul.f32 %v6797_v7, %v8678_v1  ;;  %v1498_v23 = vadd.f32 %v1370_v9, %v1112_v6  ;;  %v1128_v7 = vld [vmem:[#allocation2 + $0x1f] sm:$0x1] }
 0x164   : > { %1094 = vst [vmem:[#allocation2 + $0x7d] sm:$0x1] %v966_v15  ;;  %v6799_v15 = vld [vmem:[%s8275_s14 + $0x16] sm:$0x1]  ;;  %v1373_v20 = vmul.f32 %v6798_v11, %v8678_v1  ;;  %v1499_v27 = vadd.f32 %v1371_v13, %v1113_v10  ;;  %v1129_v11 = vld [vmem:[#allocation2 + $0x20] sm:$0x1] }
 0x165   : > { %1095 = vst [vmem:[#allocation2 + $0x7e] sm:$0x1] %v967_v19  ;;  %v6800_v19 = vld [vmem:[%s8275_s14 + $0x17] sm:$0x1]  ;;  %v1374_v24 = vmul.f32 %v6799_v15, %v8678_v1  ;;  %v1500_v31 = vadd.f32 %v1372_v17, %v1114_v14  ;;  %v1130_v15 = vld [vmem:[#allocation2 + $0x21] sm:$0x1] }
 0x166   : > { %1096 = vst [vmem:[#allocation2 + $0x7f] sm:$0x1] %v968_v22  ;;  %v6801_v22 = vld [vmem:[%s8275_s14 + $0x18] sm:$0x1]  ;;  %v1375_v28 = vmul.f32 %v6800_v19, %v8678_v1  ;;  %v1501_v35 = vadd.f32 %v1373_v20, %v1115_v18  ;;  %v1131_v19 = vld [vmem:[#allocation2 + $0x22] sm:$0x1] }
 0x167   : > { %1611 = vst [vmem:[#allocation2] sm:$0x1] %v1483_v26  ;;  %v6802_v26 = vld [vmem:[%s8275_s14 + $0x19] sm:$0x1]  ;;  %v1376_v32 = vmul.f32 %v6801_v22, %v8678_v1  ;;  %v1502_v39 = vadd.f32 %v1374_v24, %v1116_v21  ;;  %v1132_v22 = vld [vmem:[#allocation2 + $0x23] sm:$0x1] }
 0x168   : > { %1612 = vst [vmem:[#allocation2 + $0x1] sm:$0x1] %v1484_v30  ;;  %v6803_v30 = vld [vmem:[%s8275_s14 + $0x1a] sm:$0x1]  ;;  %v1377_v36 = vmul.f32 %v6802_v26, %v8678_v1  ;;  %v1503_v43 = vadd.f32 %v1375_v28, %v1117_v25  ;;  %v1133_v26 = vld [vmem:[#allocation2 + $0x24] sm:$0x1] }
 0x169   : > { %1613 = vst [vmem:[#allocation2 + $0x2] sm:$0x1] %v1485_v34  ;;  %v6804_v34 = vld [vmem:[%s8275_s14 + $0x1b] sm:$0x1]  ;;  %v1378_v40 = vmul.f32 %v6803_v30, %v8678_v1  ;;  %v1504_v47 = vadd.f32 %v1376_v32, %v1118_v29  ;;  %v1134_v30 = vld [vmem:[#allocation2 + $0x25] sm:$0x1] }
 0x16a   : > { %1614 = vst [vmem:[#allocation2 + $0x3] sm:$0x1] %v1486_v38  ;;  %v6805_v38 = vld [vmem:[%s8275_s14 + $0x1c] sm:$0x1]  ;;  %v1379_v44 = vmul.f32 %v6804_v34, %v8678_v1  ;;  %v1505_v51 = vadd.f32 %v1377_v36, %v1119_v33  ;;  %v1135_v34 = vld [vmem:[#allocation2 + $0x26] sm:$0x1] }
 0x16b   : > { %1615 = vst [vmem:[#allocation2 + $0x4] sm:$0x1] %v1487_v42  ;;  %v6806_v42 = vld [vmem:[%s8275_s14 + $0x1d] sm:$0x1]  ;;  %v1380_v48 = vmul.f32 %v6805_v38, %v8678_v1  ;;  %v1506_v55 = vadd.f32 %v1378_v40, %v1120_v37  ;;  %v1136_v38 = vld [vmem:[#allocation2 + $0x27] sm:$0x1] }
 0x16c   : > { %1616 = vst [vmem:[#allocation2 + $0x5] sm:$0x1] %v1488_v46  ;;  %v6807_v46 = vld [vmem:[%s8275_s14 + $0x1e] sm:$0x1]  ;;  %v1381_v52 = vmul.f32 %v6806_v42, %v8678_v1  ;;  %v1507_v59 = vadd.f32 %v1379_v44, %v1121_v41  ;;  %v1137_v42 = vld [vmem:[#allocation2 + $0x28] sm:$0x1] }
 0x16d   : > { %1617 = vst [vmem:[#allocation2 + $0x6] sm:$0x1] %v1489_v50  ;;  %v6808_v50 = vld [vmem:[%s8275_s14 + $0x1f] sm:$0x1]  ;;  %v1382_v56 = vmul.f32 %v6807_v46, %v8678_v1  ;;  %v1508_v63 = vadd.f32 %v1380_v48, %v1122_v45  ;;  %v1138_v46 = vld [vmem:[#allocation2 + $0x29] sm:$0x1] }
 0x16e   : > { %1618 = vst [vmem:[#allocation2 + $0x7] sm:$0x1] %v1490_v54  ;;  %v6809_v54 = vld [vmem:[%s8275_s14 + $0x20] sm:$0x1]  ;;  %v1383_v60 = vmul.f32 %v6808_v50, %v8678_v1  ;;  %v1509_v5 = vadd.f32 %v1381_v52, %v1123_v49  ;;  %v1139_v50 = vld [vmem:[#allocation2 + $0x2a] sm:$0x1] }
 0x16f   : > { %1619 = vst [vmem:[#allocation2 + $0x8] sm:$0x1] %v1491_v58  ;;  %v6810_v58 = vld [vmem:[%s8275_s14 + $0x21] sm:$0x1]  ;;  %v1384_v0 = vmul.f32 %v6809_v54, %v8678_v1  ;;  %v1510_v9 = vadd.f32 %v1382_v56, %v1124_v53  ;;  %v1140_v54 = vld [vmem:[#allocation2 + $0x2b] sm:$0x1] }
 0x170   : > { %1620 = vst [vmem:[#allocation2 + $0x9] sm:$0x1] %v1492_v62  ;;  %v6811_v62 = vld [vmem:[%s8275_s14 + $0x22] sm:$0x1]  ;;  %v1385_v6 = vmul.f32 %v6810_v58, %v8678_v1  ;;  %v1511_v13 = vadd.f32 %v1383_v60, %v1125_v57  ;;  %v1141_v58 = vld [vmem:[#allocation2 + $0x2c] sm:$0x1] }
 0x171   : > { %1621 = vst [vmem:[#allocation2 + $0xa] sm:$0x1] %v1493_v4  ;;  %v6812_v4 = vld [vmem:[%s8275_s14 + $0x25] sm:$0x1]  ;;  %v1386_v10 = vmul.f32 %v6811_v62, %v8678_v1  ;;  %v1512_v17 = vadd.f32 %v1384_v0, %v1126_v61  ;;  %v1142_v62 = vld [vmem:[#allocation2 + $0x2d] sm:$0x1] }
 0x172   : > { %1622 = vst [vmem:[#allocation2 + $0xb] sm:$0x1] %v1494_v8  ;;  %v6813_v8 = vld [vmem:[%s8275_s14 + $0x26] sm:$0x1]  ;;  %v1387_v14 = vmul.f32 %v6812_v4, %v8678_v1  ;;  %v1513_v20 = vadd.f32 %v1385_v6, %v1127_v3  ;;  %v1143_v4 = vld [vmem:[#allocation2 + $0x2e] sm:$0x1] }
 0x173   : > { %1623 = vst [vmem:[#allocation2 + $0xc] sm:$0x1] %v1495_v12  ;;  %v6814_v12 = vld [vmem:[%s8275_s14 + $0x27] sm:$0x1]  ;;  %v1388_v18 = vmul.f32 %v6813_v8, %v8678_v1  ;;  %v1514_v24 = vadd.f32 %v1386_v10, %v1128_v7  ;;  %v1144_v8 = vld [vmem:[#allocation2 + $0x2f] sm:$0x1] }
 0x174   : > { %1624 = vst [vmem:[#allocation2 + $0xd] sm:$0x1] %v1496_v16  ;;  %v6815_v16 = vld [vmem:[%s8275_s14 + $0x28] sm:$0x1]  ;;  %v1389_v21 = vmul.f32 %v6814_v12, %v8678_v1  ;;  %v1515_v28 = vadd.f32 %v1387_v14, %v1129_v11  ;;  %v1145_v12 = vld [vmem:[#allocation2 + $0x30] sm:$0x1] }
 0x175   : > { %1625 = vst [vmem:[#allocation2 + $0xe] sm:$0x1] %v1497_v2  ;;  %v6816_v2 = vld [vmem:[%s8275_s14 + $0x29] sm:$0x1]  ;;  %v1390_v25 = vmul.f32 %v6815_v16, %v8678_v1  ;;  %v1516_v32 = vadd.f32 %v1388_v18, %v1130_v15  ;;  %v1146_v16 = vld [vmem:[#allocation2 + $0x31] sm:$0x1] }
 0x176   : > { %1626 = vst [vmem:[#allocation2 + $0xf] sm:$0x1] %v1498_v23  ;;  %v6817_v23 = vld [vmem:[%s8275_s14 + $0x2a] sm:$0x1]  ;;  %v1391_v29 = vmul.f32 %v6816_v2, %v8678_v1  ;;  %v1517_v36 = vadd.f32 %v1389_v21, %v1131_v19  ;;  %v1147_v2 = vld [vmem:[#allocation2 + $0x32] sm:$0x1] }
 0x177   : > { %1627 = vst [vmem:[#allocation2 + $0x10] sm:$0x1] %v1499_v27  ;;  %v6818_v27 = vld [vmem:[%s8275_s14 + $0x2b] sm:$0x1]  ;;  %v1392_v33 = vmul.f32 %v6817_v23, %v8678_v1  ;;  %v1518_v40 = vadd.f32 %v1390_v25, %v1132_v22  ;;  %v1148_v23 = vld [vmem:[#allocation2 + $0x33] sm:$0x1] }
 0x178   : > { %1628 = vst [vmem:[#allocation2 + $0x11] sm:$0x1] %v1500_v31  ;;  %v6819_v31 = vld [vmem:[%s8275_s14 + $0x2c] sm:$0x1]  ;;  %v1393_v37 = vmul.f32 %v6818_v27, %v8678_v1  ;;  %v1519_v44 = vadd.f32 %v1391_v29, %v1133_v26  ;;  %v1149_v27 = vld [vmem:[#allocation2 + $0x34] sm:$0x1] }
 0x179   : > { %1629 = vst [vmem:[#allocation2 + $0x12] sm:$0x1] %v1501_v35  ;;  %v6820_v35 = vld [vmem:[%s8275_s14 + $0x2d] sm:$0x1]  ;;  %v1394_v41 = vmul.f32 %v6819_v31, %v8678_v1  ;;  %v1520_v48 = vadd.f32 %v1392_v33, %v1134_v30  ;;  %v1150_v31 = vld [vmem:[#allocation2 + $0x35] sm:$0x1] }
 0x17a   : > { %1630 = vst [vmem:[#allocation2 + $0x13] sm:$0x1] %v1502_v39  ;;  %v6821_v39 = vld [vmem:[%s8275_s14 + $0x2e] sm:$0x1]  ;;  %v1395_v45 = vmul.f32 %v6820_v35, %v8678_v1  ;;  %v1521_v52 = vadd.f32 %v1393_v37, %v1135_v34  ;;  %v1151_v35 = vld [vmem:[#allocation2 + $0x36] sm:$0x1] }
 0x17b   : > { %1631 = vst [vmem:[#allocation2 + $0x14] sm:$0x1] %v1503_v43  ;;  %v6822_v43 = vld [vmem:[%s8275_s14 + $0x2f] sm:$0x1]  ;;  %v1396_v49 = vmul.f32 %v6821_v39, %v8678_v1  ;;  %v1522_v56 = vadd.f32 %v1394_v41, %v1136_v38  ;;  %v1152_v39 = vld [vmem:[#allocation2 + $0x37] sm:$0x1] }
 0x17c   : > { %1632 = vst [vmem:[#allocation2 + $0x15] sm:$0x1] %v1504_v47  ;;  %v6823_v47 = vld [vmem:[%s8275_s14 + $0x30] sm:$0x1]  ;;  %v1397_v53 = vmul.f32 %v6822_v43, %v8678_v1  ;;  %v1523_v60 = vadd.f32 %v1395_v45, %v1137_v42  ;;  %v1153_v43 = vld [vmem:[#allocation2 + $0x38] sm:$0x1] }
 0x17d   : > { %1633 = vst [vmem:[#allocation2 + $0x16] sm:$0x1] %v1505_v51  ;;  %v6824_v51 = vld [vmem:[%s8275_s14 + $0x31] sm:$0x1]  ;;  %v1398_v57 = vmul.f32 %v6823_v47, %v8678_v1  ;;  %v1524_v0 = vadd.f32 %v1396_v49, %v1138_v46  ;;  %v1154_v47 = vld [vmem:[#allocation2 + $0x39] sm:$0x1] }
 0x17e   : > { %1634 = vst [vmem:[#allocation2 + $0x17] sm:$0x1] %v1506_v55  ;;  %v6825_v55 = vld [vmem:[%s8275_s14 + $0x32] sm:$0x1]  ;;  %v1399_v61 = vmul.f32 %v6824_v51, %v8678_v1  ;;  %v1525_v6 = vadd.f32 %v1397_v53, %v1139_v50  ;;  %v1155_v51 = vld [vmem:[#allocation2 + $0x3a] sm:$0x1] }
 0x17f   : > { %1635 = vst [vmem:[#allocation2 + $0x18] sm:$0x1] %v1507_v59  ;;  %v6826_v59 = vld [vmem:[%s8275_s14 + $0x33] sm:$0x1]  ;;  %v1400_v3 = vmul.f32 %v6825_v55, %v8678_v1  ;;  %v1526_v10 = vadd.f32 %v1398_v57, %v1140_v54  ;;  %v1156_v55 = vld [vmem:[#allocation2 + $0x3b] sm:$0x1] }
 0x180   : > { %1636 = vst [vmem:[#allocation2 + $0x19] sm:$0x1] %v1508_v63  ;;  %v6827_v63 = vld [vmem:[%s8275_s14 + $0x34] sm:$0x1]  ;;  %v1401_v7 = vmul.f32 %v6826_v59, %v8678_v1  ;;  %v1527_v14 = vadd.f32 %v1399_v61, %v1141_v58  ;;  %v1157_v59 = vld [vmem:[#allocation2 + $0x3c] sm:$0x1] }
 0x181   : > { %1637 = vst [vmem:[#allocation2 + $0x1a] sm:$0x1] %v1509_v5  ;;  %v6828_v5 = vld [vmem:[%s8275_s14 + $0x37] sm:$0x1]  ;;  %v1402_v11 = vmul.f32 %v6827_v63, %v8678_v1  ;;  %v1528_v18 = vadd.f32 %v1400_v3, %v1142_v62  ;;  %v1158_v63 = vld [vmem:[#allocation2 + $0x3d] sm:$0x1] }
 0x182   : > { %1638 = vst [vmem:[#allocation2 + $0x1b] sm:$0x1] %v1510_v9  ;;  %v6829_v9 = vld [vmem:[%s8275_s14 + $0x38] sm:$0x1]  ;;  %v1403_v15 = vmul.f32 %v6828_v5, %v8678_v1  ;;  %v1529_v21 = vadd.f32 %v1401_v7, %v1143_v4  ;;  %v1159_v5 = vld [vmem:[#allocation2 + $0x3e] sm:$0x1] }
 0x183   : > { %1639 = vst [vmem:[#allocation2 + $0x1c] sm:$0x1] %v1511_v13  ;;  %v6830_v13 = vld [vmem:[%s8275_s14 + $0x39] sm:$0x1]  ;;  %v1404_v19 = vmul.f32 %v6829_v9, %v8678_v1  ;;  %v1530_v25 = vadd.f32 %v1402_v11, %v1144_v8  ;;  %v1160_v9 = vld [vmem:[#allocation2 + $0x3f] sm:$0x1] }
 0x184   : > { %1640 = vst [vmem:[#allocation2 + $0x1d] sm:$0x1] %v1512_v17  ;;  %v6831_v17 = vld [vmem:[%s8275_s14 + $0x3a] sm:$0x1]  ;;  %v1405_v22 = vmul.f32 %v6830_v13, %v8678_v1  ;;  %v1531_v29 = vadd.f32 %v1403_v15, %v1145_v12  ;;  %v1161_v13 = vld [vmem:[#allocation2 + $0x40] sm:$0x1] }
 0x185   : > { %1641 = vst [vmem:[#allocation2 + $0x1e] sm:$0x1] %v1513_v20  ;;  %v6832_v20 = vld [vmem:[%s8275_s14 + $0x3b] sm:$0x1]  ;;  %v1406_v26 = vmul.f32 %v6831_v17, %v8678_v1  ;;  %v1532_v33 = vadd.f32 %v1404_v19, %v1146_v16  ;;  %v1162_v17 = vld [vmem:[#allocation2 + $0x41] sm:$0x1] }
 0x186   : > { %1642 = vst [vmem:[#allocation2 + $0x1f] sm:$0x1] %v1514_v24  ;;  %v6833_v24 = vld [vmem:[%s8275_s14 + $0x3c] sm:$0x1]  ;;  %v1407_v30 = vmul.f32 %v6832_v20, %v8678_v1  ;;  %v1533_v37 = vadd.f32 %v1405_v22, %v1147_v2  ;;  %v1163_v20 = vld [vmem:[#allocation2 + $0x42] sm:$0x1] }
 0x187   : > { %1643 = vst [vmem:[#allocation2 + $0x20] sm:$0x1] %v1515_v28  ;;  %v6834_v28 = vld [vmem:[%s8275_s14 + $0x3d] sm:$0x1]  ;;  %v1408_v34 = vmul.f32 %v6833_v24, %v8678_v1  ;;  %v1534_v41 = vadd.f32 %v1406_v26, %v1148_v23  ;;  %v1164_v24 = vld [vmem:[#allocation2 + $0x43] sm:$0x1] }
 0x188   : > { %1644 = vst [vmem:[#allocation2 + $0x21] sm:$0x1] %v1516_v32  ;;  %v6835_v32 = vld [vmem:[%s8275_s14 + $0x3e] sm:$0x1]  ;;  %v1409_v38 = vmul.f32 %v6834_v28, %v8678_v1  ;;  %v1535_v45 = vadd.f32 %v1407_v30, %v1149_v27  ;;  %v1165_v28 = vld [vmem:[#allocation2 + $0x44] sm:$0x1] }
 0x189   : > { %1645 = vst [vmem:[#allocation2 + $0x22] sm:$0x1] %v1517_v36  ;;  %v6836_v36 = vld [vmem:[%s8275_s14 + $0x3f] sm:$0x1]  ;;  %v1410_v42 = vmul.f32 %v6835_v32, %v8678_v1  ;;  %v1536_v49 = vadd.f32 %v1408_v34, %v1150_v31  ;;  %v1166_v32 = vld [vmem:[#allocation2 + $0x45] sm:$0x1] }
 0x18a   : > { %1646 = vst [vmem:[#allocation2 + $0x23] sm:$0x1] %v1518_v40  ;;  %v6837_v40 = vld [vmem:[%s8275_s14 + $0x40] sm:$0x1]  ;;  %v1411_v46 = vmul.f32 %v6836_v36, %v8678_v1  ;;  %v1537_v53 = vadd.f32 %v1409_v38, %v1151_v35  ;;  %v1167_v36 = vld [vmem:[#allocation2 + $0x46] sm:$0x1] }
 0x18b   : > { %1647 = vst [vmem:[#allocation2 + $0x24] sm:$0x1] %v1519_v44  ;;  %v6838_v44 = vld [vmem:[%s8275_s14 + $0x41] sm:$0x1]  ;;  %v1412_v50 = vmul.f32 %v6837_v40, %v8678_v1  ;;  %v1538_v57 = vadd.f32 %v1410_v42, %v1152_v39  ;;  %v1168_v40 = vld [vmem:[#allocation2 + $0x47] sm:$0x1] }
 0x18c   : > { %1648 = vst [vmem:[#allocation2 + $0x25] sm:$0x1] %v1520_v48  ;;  %v6839_v48 = vld [vmem:[%s8275_s14 + $0x42] sm:$0x1]  ;;  %v1413_v54 = vmul.f32 %v6838_v44, %v8678_v1  ;;  %v1539_v61 = vadd.f32 %v1411_v46, %v1153_v43  ;;  %v1169_v44 = vld [vmem:[#allocation2 + $0x48] sm:$0x1] }
 0x18d   : > { %1649 = vst [vmem:[#allocation2 + $0x26] sm:$0x1] %v1521_v52  ;;  %v6840_v52 = vld [vmem:[%s8275_s14 + $0x43] sm:$0x1]  ;;  %v1414_v58 = vmul.f32 %v6839_v48, %v8678_v1  ;;  %v1540_v3 = vadd.f32 %v1412_v50, %v1154_v47  ;;  %v1170_v48 = vld [vmem:[#allocation2 + $0x49] sm:$0x1] }
 0x18e   : > { %1650 = vst [vmem:[#allocation2 + $0x27] sm:$0x1] %v1522_v56  ;;  %v6841_v56 = vld [vmem:[%s8275_s14 + $0x44] sm:$0x1]  ;;  %v1415_v62 = vmul.f32 %v6840_v52, %v8678_v1  ;;  %v1541_v7 = vadd.f32 %v1413_v54, %v1155_v51  ;;  %v1171_v52 = vld [vmem:[#allocation2 + $0x4a] sm:$0x1] }
 0x18f   : > { %1651 = vst [vmem:[#allocation2 + $0x28] sm:$0x1] %v1523_v60  ;;  %v6842_v60 = vld [vmem:[%s8275_s14 + $0x45] sm:$0x1]  ;;  %v1416_v4 = vmul.f32 %v6841_v56, %v8678_v1  ;;  %v1542_v11 = vadd.f32 %v1414_v58, %v1156_v55  ;;  %v1172_v56 = vld [vmem:[#allocation2 + $0x4b] sm:$0x1] }
 0x190   : > { %1652 = vst [vmem:[#allocation2 + $0x29] sm:$0x1] %v1524_v0  ;;  %v6843_v0 = vld [vmem:[%s8275_s14 + $0x46] sm:$0x1]  ;;  %v1417_v8 = vmul.f32 %v6842_v60, %v8678_v1  ;;  %v1543_v15 = vadd.f32 %v1415_v62, %v1157_v59  ;;  %v1173_v60 = vld [vmem:[#allocation2 + $0x4c] sm:$0x1] }
 0x191   : > { %1653 = vst [vmem:[#allocation2 + $0x2a] sm:$0x1] %v1525_v6  ;;  %v6844_v6 = vld [vmem:[%s8275_s14 + $0x49] sm:$0x1]  ;;  %v1418_v12 = vmul.f32 %v6843_v0, %v8678_v1  ;;  %v1544_v19 = vadd.f32 %v1416_v4, %v1158_v63  ;;  %v1174_v0 = vld [vmem:[#allocation2 + $0x4d] sm:$0x1] }
 0x192   : > { %1654 = vst [vmem:[#allocation2 + $0x2b] sm:$0x1] %v1526_v10  ;;  %v6845_v10 = vld [vmem:[%s8275_s14 + $0x4a] sm:$0x1]  ;;  %v1419_v16 = vmul.f32 %v6844_v6, %v8678_v1  ;;  %v1545_v22 = vadd.f32 %v1417_v8, %v1159_v5  ;;  %v1175_v6 = vld [vmem:[#allocation2 + $0x4e] sm:$0x1] }
 0x193   : > { %1655 = vst [vmem:[#allocation2 + $0x2c] sm:$0x1] %v1527_v14  ;;  %v6846_v14 = vld [vmem:[%s8275_s14 + $0x4b] sm:$0x1]  ;;  %v1420_v2 = vmul.f32 %v6845_v10, %v8678_v1  ;;  %v1546_v26 = vadd.f32 %v1418_v12, %v1160_v9  ;;  %v1176_v10 = vld [vmem:[#allocation2 + $0x4f] sm:$0x1] }
 0x194   : > { %1656 = vst [vmem:[#allocation2 + $0x2d] sm:$0x1] %v1528_v18  ;;  %v6847_v18 = vld [vmem:[%s8275_s14 + $0x4c] sm:$0x1]  ;;  %v1421_v23 = vmul.f32 %v6846_v14, %v8678_v1  ;;  %v1547_v30 = vadd.f32 %v1419_v16, %v1161_v13  ;;  %v1177_v14 = vld [vmem:[#allocation2 + $0x50] sm:$0x1] }
 0x195   : > { %1657 = vst [vmem:[#allocation2 + $0x2e] sm:$0x1] %v1529_v21  ;;  %v6848_v21 = vld [vmem:[%s8275_s14 + $0x4d] sm:$0x1]  ;;  %v1422_v27 = vmul.f32 %v6847_v18, %v8678_v1  ;;  %v1548_v34 = vadd.f32 %v1420_v2, %v1162_v17  ;;  %v1178_v18 = vld [vmem:[#allocation2 + $0x51] sm:$0x1] }
 0x196   : > { %1658 = vst [vmem:[#allocation2 + $0x2f] sm:$0x1] %v1530_v25  ;;  %v6849_v25 = vld [vmem:[%s8275_s14 + $0x4e] sm:$0x1]  ;;  %v1423_v31 = vmul.f32 %v6848_v21, %v8678_v1  ;;  %v1549_v38 = vadd.f32 %v1421_v23, %v1163_v20  ;;  %v1179_v21 = vld [vmem:[#allocation2 + $0x52] sm:$0x1] }
 0x197   : > { %1659 = vst [vmem:[#allocation2 + $0x30] sm:$0x1] %v1531_v29  ;;  %v6850_v29 = vld [vmem:[%s8275_s14 + $0x4f] sm:$0x1]  ;;  %v1424_v35 = vmul.f32 %v6849_v25, %v8678_v1  ;;  %v1550_v42 = vadd.f32 %v1422_v27, %v1164_v24  ;;  %v1180_v25 = vld [vmem:[#allocation2 + $0x53] sm:$0x1] }
 0x198   : > { %1660 = vst [vmem:[#allocation2 + $0x31] sm:$0x1] %v1532_v33  ;;  %v6851_v33 = vld [vmem:[%s8275_s14 + $0x50] sm:$0x1]  ;;  %v1425_v39 = vmul.f32 %v6850_v29, %v8678_v1  ;;  %v1551_v46 = vadd.f32 %v1423_v31, %v1165_v28  ;;  %v1181_v29 = vld [vmem:[#allocation2 + $0x54] sm:$0x1] }
 0x199   : > { %1661 = vst [vmem:[#allocation2 + $0x32] sm:$0x1] %v1533_v37  ;;  %v6852_v37 = vld [vmem:[%s8275_s14 + $0x51] sm:$0x1]  ;;  %v1426_v43 = vmul.f32 %v6851_v33, %v8678_v1  ;;  %v1552_v50 = vadd.f32 %v1424_v35, %v1166_v32  ;;  %v1182_v33 = vld [vmem:[#allocation2 + $0x55] sm:$0x1] }
 0x19a   : > { %1662 = vst [vmem:[#allocation2 + $0x33] sm:$0x1] %v1534_v41  ;;  %v6853_v41 = vld [vmem:[%s8275_s14 + $0x52] sm:$0x1]  ;;  %v1427_v47 = vmul.f32 %v6852_v37, %v8678_v1  ;;  %v1553_v54 = vadd.f32 %v1425_v39, %v1167_v36  ;;  %v1183_v37 = vld [vmem:[#allocation2 + $0x56] sm:$0x1] }
 0x19b   : > { %1663 = vst [vmem:[#allocation2 + $0x34] sm:$0x1] %v1535_v45  ;;  %v6854_v45 = vld [vmem:[%s8275_s14 + $0x53] sm:$0x1]  ;;  %v1428_v51 = vmul.f32 %v6853_v41, %v8678_v1  ;;  %v1554_v58 = vadd.f32 %v1426_v43, %v1168_v40  ;;  %v1184_v41 = vld [vmem:[#allocation2 + $0x57] sm:$0x1] }
 0x19c   : > { %1664 = vst [vmem:[#allocation2 + $0x35] sm:$0x1] %v1536_v49  ;;  %v6855_v49 = vld [vmem:[%s8275_s14 + $0x54] sm:$0x1]  ;;  %v1429_v55 = vmul.f32 %v6854_v45, %v8678_v1  ;;  %v1555_v62 = vadd.f32 %v1427_v47, %v1169_v44  ;;  %v1185_v45 = vld [vmem:[#allocation2 + $0x58] sm:$0x1] }
 0x19d   : > { %1665 = vst [vmem:[#allocation2 + $0x36] sm:$0x1] %v1537_v53  ;;  %v6856_v53 = vld [vmem:[%s8275_s14 + $0x55] sm:$0x1]  ;;  %v1430_v59 = vmul.f32 %v6855_v49, %v8678_v1  ;;  %v1556_v4 = vadd.f32 %v1428_v51, %v1170_v48  ;;  %v1186_v49 = vld [vmem:[#allocation2 + $0x59] sm:$0x1] }
 0x19e   : > { %1666 = vst [vmem:[#allocation2 + $0x37] sm:$0x1] %v1538_v57  ;;  %v6857_v57 = vld [vmem:[%s8275_s14 + $0x56] sm:$0x1]  ;;  %v1431_v63 = vmul.f32 %v6856_v53, %v8678_v1  ;;  %v1557_v8 = vadd.f32 %v1429_v55, %v1171_v52  ;;  %v1187_v53 = vld [vmem:[#allocation2 + $0x5a] sm:$0x1] }
 0x19f   : > { %1667 = vst [vmem:[#allocation2 + $0x38] sm:$0x1] %v1539_v61  ;;  %v6858_v61 = vld [vmem:[%s8275_s14 + $0x57] sm:$0x1]  ;;  %v1432_v5 = vmul.f32 %v6857_v57, %v8678_v1  ;;  %v1558_v12 = vadd.f32 %v1430_v59, %v1172_v56  ;;  %v1188_v57 = vld [vmem:[#allocation2 + $0x5b] sm:$0x1] }
 0x1a0   : > { %1668 = vst [vmem:[#allocation2 + $0x39] sm:$0x1] %v1540_v3  ;;  %v6859_v3 = vld [vmem:[%s8275_s14 + $0x58] sm:$0x1]  ;;  %v1433_v9 = vmul.f32 %v6858_v61, %v8678_v1  ;;  %v1559_v16 = vadd.f32 %v1431_v63, %v1173_v60  ;;  %v1189_v61 = vld [vmem:[#allocation2 + $0x5c] sm:$0x1] }
 0x1a1   : > { %1669 = vst [vmem:[#allocation2 + $0x3a] sm:$0x1] %v1541_v7  ;;  %v6860_v7 = vld [vmem:[%s8275_s14 + $0x5b] sm:$0x1]  ;;  %v1434_v13 = vmul.f32 %v6859_v3, %v8678_v1  ;;  %v1560_v2 = vadd.f32 %v1432_v5, %v1174_v0  ;;  %v1190_v3 = vld [vmem:[#allocation2 + $0x5d] sm:$0x1] }
 0x1a2   : > { %1670 = vst [vmem:[#allocation2 + $0x3b] sm:$0x1] %v1542_v11  ;;  %v6861_v11 = vld [vmem:[%s8275_s14 + $0x5c] sm:$0x1]  ;;  %v1435_v17 = vmul.f32 %v6860_v7, %v8678_v1  ;;  %v1561_v23 = vadd.f32 %v1433_v9, %v1175_v6  ;;  %v1191_v7 = vld [vmem:[#allocation2 + $0x5e] sm:$0x1] }
 0x1a3   : > { %1671 = vst [vmem:[#allocation2 + $0x3c] sm:$0x1] %v1543_v15  ;;  %v6862_v15 = vld [vmem:[%s8275_s14 + $0x5d] sm:$0x1]  ;;  %v1436_v20 = vmul.f32 %v6861_v11, %v8678_v1  ;;  %v1562_v27 = vadd.f32 %v1434_v13, %v1176_v10  ;;  %v1192_v11 = vld [vmem:[#allocation2 + $0x5f] sm:$0x1] }
 0x1a4   : > { %1672 = vst [vmem:[#allocation2 + $0x3d] sm:$0x1] %v1544_v19  ;;  %v6863_v19 = vld [vmem:[%s8275_s14 + $0x5e] sm:$0x1]  ;;  %v1437_v24 = vmul.f32 %v6862_v15, %v8678_v1  ;;  %v1563_v31 = vadd.f32 %v1435_v17, %v1177_v14  ;;  %v1193_v15 = vld [vmem:[#allocation2 + $0x60] sm:$0x1] }
 0x1a5   : > { %1673 = vst [vmem:[#allocation2 + $0x3e] sm:$0x1] %v1545_v22  ;;  %v6864_v22 = vld [vmem:[%s8275_s14 + $0x5f] sm:$0x1]  ;;  %v1438_v28 = vmul.f32 %v6863_v19, %v8678_v1  ;;  %v1564_v35 = vadd.f32 %v1436_v20, %v1178_v18  ;;  %v1194_v19 = vld [vmem:[#allocation2 + $0x61] sm:$0x1] }
 0x1a6   : > { %1674 = vst [vmem:[#allocation2 + $0x3f] sm:$0x1] %v1546_v26  ;;  %v6865_v26 = vld [vmem:[%s8275_s14 + $0x60] sm:$0x1]  ;;  %v1439_v32 = vmul.f32 %v6864_v22, %v8678_v1  ;;  %v1565_v39 = vadd.f32 %v1437_v24, %v1179_v21  ;;  %v1195_v22 = vld [vmem:[#allocation2 + $0x62] sm:$0x1] }
 0x1a7   : > { %1675 = vst [vmem:[#allocation2 + $0x40] sm:$0x1] %v1547_v30  ;;  %v6866_v30 = vld [vmem:[%s8275_s14 + $0x61] sm:$0x1]  ;;  %v1440_v36 = vmul.f32 %v6865_v26, %v8678_v1  ;;  %v1566_v43 = vadd.f32 %v1438_v28, %v1180_v25  ;;  %v1196_v26 = vld [vmem:[#allocation2 + $0x63] sm:$0x1] }
 0x1a8   : > { %1676 = vst [vmem:[#allocation2 + $0x41] sm:$0x1] %v1548_v34  ;;  %v6867_v34 = vld [vmem:[%s8275_s14 + $0x62] sm:$0x1]  ;;  %v1441_v40 = vmul.f32 %v6866_v30, %v8678_v1  ;;  %v1567_v47 = vadd.f32 %v1439_v32, %v1181_v29  ;;  %v1197_v30 = vld [vmem:[#allocation2 + $0x64] sm:$0x1] }
 0x1a9   : > { %1677 = vst [vmem:[#allocation2 + $0x42] sm:$0x1] %v1549_v38  ;;  %v6868_v38 = vld [vmem:[%s8275_s14 + $0x63] sm:$0x1]  ;;  %v1442_v44 = vmul.f32 %v6867_v34, %v8678_v1  ;;  %v1568_v51 = vadd.f32 %v1440_v36, %v1182_v33  ;;  %v1198_v34 = vld [vmem:[#allocation2 + $0x65] sm:$0x1] }
 0x1aa   : > { %1678 = vst [vmem:[#allocation2 + $0x43] sm:$0x1] %v1550_v42  ;;  %v6869_v42 = vld [vmem:[%s8275_s14 + $0x64] sm:$0x1]  ;;  %v1443_v48 = vmul.f32 %v6868_v38, %v8678_v1  ;;  %v1569_v55 = vadd.f32 %v1441_v40, %v1183_v37  ;;  %v1199_v38 = vld [vmem:[#allocation2 + $0x66] sm:$0x1] }
 0x1ab   : > { %1679 = vst [vmem:[#allocation2 + $0x44] sm:$0x1] %v1551_v46  ;;  %v6870_v46 = vld [vmem:[%s8275_s14 + $0x65] sm:$0x1]  ;;  %v1444_v52 = vmul.f32 %v6869_v42, %v8678_v1  ;;  %v1570_v59 = vadd.f32 %v1442_v44, %v1184_v41  ;;  %v1200_v42 = vld [vmem:[#allocation2 + $0x67] sm:$0x1] }
 0x1ac   : > { %1680 = vst [vmem:[#allocation2 + $0x45] sm:$0x1] %v1552_v50  ;;  %v6871_v50 = vld [vmem:[%s8275_s14 + $0x66] sm:$0x1]  ;;  %v1445_v56 = vmul.f32 %v6870_v46, %v8678_v1  ;;  %v1571_v63 = vadd.f32 %v1443_v48, %v1185_v45  ;;  %v1201_v46 = vld [vmem:[#allocation2 + $0x68] sm:$0x1] }
 0x1ad   : > { %1681 = vst [vmem:[#allocation2 + $0x46] sm:$0x1] %v1553_v54  ;;  %v6872_v54 = vld [vmem:[%s8275_s14 + $0x67] sm:$0x1]  ;;  %v1446_v60 = vmul.f32 %v6871_v50, %v8678_v1  ;;  %v1572_v5 = vadd.f32 %v1444_v52, %v1186_v49  ;;  %v1202_v50 = vld [vmem:[#allocation2 + $0x69] sm:$0x1] }
 0x1ae   : > { %1682 = vst [vmem:[#allocation2 + $0x47] sm:$0x1] %v1554_v58  ;;  %v6873_v58 = vld [vmem:[%s8275_s14 + $0x68] sm:$0x1]  ;;  %v1447_v0 = vmul.f32 %v6872_v54, %v8678_v1  ;;  %v1573_v9 = vadd.f32 %v1445_v56, %v1187_v53  ;;  %v1203_v54 = vld [vmem:[#allocation2 + $0x6a] sm:$0x1] }
 0x1af   : > { %1683 = vst [vmem:[#allocation2 + $0x48] sm:$0x1] %v1555_v62  ;;  %v6874_v62 = vld [vmem:[%s8275_s14 + $0x69] sm:$0x1]  ;;  %v1448_v6 = vmul.f32 %v6873_v58, %v8678_v1  ;;  %v1574_v13 = vadd.f32 %v1446_v60, %v1188_v57  ;;  %v1204_v58 = vld [vmem:[#allocation2 + $0x6b] sm:$0x1] }
 0x1b0   : > { %1684 = vst [vmem:[#allocation2 + $0x49] sm:$0x1] %v1556_v4  ;;  %v6875_v4 = vld [vmem:[%s8275_s14 + $0x6a] sm:$0x1]  ;;  %v1449_v10 = vmul.f32 %v6874_v62, %v8678_v1  ;;  %v1575_v17 = vadd.f32 %v1447_v0, %v1189_v61  ;;  %v1205_v62 = vld [vmem:[#allocation2 + $0x6c] sm:$0x1] }
 0x1b1   : > { %1685 = vst [vmem:[#allocation2 + $0x4a] sm:$0x1] %v1557_v8  ;;  %v6876_v8 = vld [vmem:[%s8275_s14 + $0x6d] sm:$0x1]  ;;  %v1450_v14 = vmul.f32 %v6875_v4, %v8678_v1  ;;  %v1576_v20 = vadd.f32 %v1448_v6, %v1190_v3 }
 0x1b2   : > { %1686 = vst [vmem:[#allocation2 + $0x4b] sm:$0x1] %v1558_v12  ;;  %v6877_v12 = vld [vmem:[%s8275_s14 + $0x6e] sm:$0x1]  ;;  %v1451_v18 = vmul.f32 %v6876_v8, %v8678_v1  ;;  %v1577_v24 = vadd.f32 %v1449_v10, %v1191_v7  ;;  %v1206_v4 = vld [vmem:[#allocation2 + $0x6d] sm:$0x1] }
 0x1b3   : > { %1687 = vst [vmem:[#allocation2 + $0x4c] sm:$0x1] %v1559_v16  ;;  %v6878_v16 = vld [vmem:[%s8275_s14 + $0x6f] sm:$0x1]  ;;  %v1452_v21 = vmul.f32 %v6877_v12, %v8678_v1  ;;  %v1578_v28 = vadd.f32 %v1450_v14, %v1192_v11  ;;  %v1207_v8 = vld [vmem:[#allocation2 + $0x6e] sm:$0x1] }
 0x1b4   : > { %1688 = vst [vmem:[#allocation2 + $0x4d] sm:$0x1] %v1560_v2  ;;  %v6879_v2 = vld [vmem:[%s8275_s14 + $0x70] sm:$0x1]  ;;  %v1453_v25 = vmul.f32 %v6878_v16, %v8678_v1  ;;  %v1579_v32 = vadd.f32 %v1451_v18, %v1193_v15  ;;  %v1208_v12 = vld [vmem:[#allocation2 + $0x6f] sm:$0x1] }
 0x1b5   : > { %1689 = vst [vmem:[#allocation2 + $0x4e] sm:$0x1] %v1561_v23  ;;  %v6880_v23 = vld [vmem:[%s8275_s14 + $0x71] sm:$0x1]  ;;  %v1454_v29 = vmul.f32 %v6879_v2, %v8678_v1  ;;  %v1580_v36 = vadd.f32 %v1452_v21, %v1194_v19  ;;  %v1209_v16 = vld [vmem:[#allocation2 + $0x70] sm:$0x1] }
 0x1b6   : > { %1690 = vst [vmem:[#allocation2 + $0x4f] sm:$0x1] %v1562_v27  ;;  %v6881_v27 = vld [vmem:[%s8275_s14 + $0x72] sm:$0x1]  ;;  %v1455_v33 = vmul.f32 %v6880_v23, %v8678_v1  ;;  %v1581_v40 = vadd.f32 %v1453_v25, %v1195_v22  ;;  %v1210_v2 = vld [vmem:[#allocation2 + $0x71] sm:$0x1] }
 0x1b7   : > { %1691 = vst [vmem:[#allocation2 + $0x50] sm:$0x1] %v1563_v31  ;;  %v6882_v31 = vld [vmem:[%s8275_s14 + $0x73] sm:$0x1]  ;;  %v1456_v37 = vmul.f32 %v6881_v27, %v8678_v1  ;;  %v1582_v44 = vadd.f32 %v1454_v29, %v1196_v26  ;;  %v1211_v23 = vld [vmem:[#allocation2 + $0x72] sm:$0x1] }
 0x1b8   : > { %1692 = vst [vmem:[#allocation2 + $0x51] sm:$0x1] %v1564_v35  ;;  %v6883_v35 = vld [vmem:[%s8275_s14 + $0x74] sm:$0x1]  ;;  %v1457_v41 = vmul.f32 %v6882_v31, %v8678_v1  ;;  %v1583_v48 = vadd.f32 %v1455_v33, %v1197_v30  ;;  %v1212_v27 = vld [vmem:[#allocation2 + $0x73] sm:$0x1] }
 0x1b9   : > { %1693 = vst [vmem:[#allocation2 + $0x52] sm:$0x1] %v1565_v39  ;;  %v6884_v39 = vld [vmem:[%s8275_s14 + $0x75] sm:$0x1]  ;;  %v1458_v45 = vmul.f32 %v6883_v35, %v8678_v1  ;;  %v1584_v52 = vadd.f32 %v1456_v37, %v1198_v34  ;;  %v1213_v31 = vld [vmem:[#allocation2 + $0x74] sm:$0x1] }
 0x1ba   : > { %1694 = vst [vmem:[#allocation2 + $0x53] sm:$0x1] %v1566_v43  ;;  %v6885_v43 = vld [vmem:[%s8275_s14 + $0x76] sm:$0x1]  ;;  %v1459_v49 = vmul.f32 %v6884_v39, %v8678_v1  ;;  %v1585_v56 = vadd.f32 %v1457_v41, %v1199_v38  ;;  %v1214_v35 = vld [vmem:[#allocation2 + $0x75] sm:$0x1] }
 0x1bb   : > { %1695 = vst [vmem:[#allocation2 + $0x54] sm:$0x1] %v1567_v47  ;;  %v6886_v47 = vld [vmem:[%s8275_s14 + $0x77] sm:$0x1]  ;;  %v1460_v53 = vmul.f32 %v6885_v43, %v8678_v1  ;;  %v1586_v60 = vadd.f32 %v1458_v45, %v1200_v42  ;;  %v1215_v39 = vld [vmem:[#allocation2 + $0x76] sm:$0x1] }
 0x1bc   : > { %1696 = vst [vmem:[#allocation2 + $0x55] sm:$0x1] %v1568_v51  ;;  %v6887_v51 = vld [vmem:[%s8275_s14 + $0x78] sm:$0x1]  ;;  %v1461_v57 = vmul.f32 %v6886_v47, %v8678_v1  ;;  %v1587_v0 = vadd.f32 %v1459_v49, %v1201_v46  ;;  %v1216_v43 = vld [vmem:[#allocation2 + $0x77] sm:$0x1] }
 0x1bd   : > { %1697 = vst [vmem:[#allocation2 + $0x56] sm:$0x1] %v1569_v55  ;;  %v6888_v55 = vld [vmem:[%s8275_s14 + $0x79] sm:$0x1]  ;;  %v1462_v61 = vmul.f32 %v6887_v51, %v8678_v1  ;;  %v1588_v6 = vadd.f32 %v1460_v53, %v1202_v50  ;;  %v1217_v47 = vld [vmem:[#allocation2 + $0x78] sm:$0x1] }
 0x1be   : > { %1698 = vst [vmem:[#allocation2 + $0x57] sm:$0x1] %v1570_v59  ;;  %v6889_v59 = vld [vmem:[%s8275_s14 + $0x7a] sm:$0x1]  ;;  %v1463_v3 = vmul.f32 %v6888_v55, %v8678_v1  ;;  %v1589_v10 = vadd.f32 %v1461_v57, %v1203_v54  ;;  %v1218_v51 = vld [vmem:[#allocation2 + $0x79] sm:$0x1] }
 0x1bf   : > { %1699 = vst [vmem:[#allocation2 + $0x58] sm:$0x1] %v1571_v63  ;;  %v6890_v63 = vld [vmem:[%s8275_s14 + $0x7b] sm:$0x1]  ;;  %v1464_v7 = vmul.f32 %v6889_v59, %v8678_v1  ;;  %v1590_v14 = vadd.f32 %v1462_v61, %v1204_v58  ;;  %v1219_v55 = vld [vmem:[#allocation2 + $0x7a] sm:$0x1] }
 0x1c0   : > { %1700 = vst [vmem:[#allocation2 + $0x59] sm:$0x1] %v1572_v5  ;;  %v6891_v5 = vld [vmem:[%s8275_s14 + $0x7c] sm:$0x1]  ;;  %v1465_v11 = vmul.f32 %v6890_v63, %v8678_v1  ;;  %v1591_v18 = vadd.f32 %v1463_v3, %v1205_v62  ;;  %v1220_v59 = vld [vmem:[#allocation2 + $0x7b] sm:$0x1] }
 0x1c1   : > { %1701 = vst [vmem:[#allocation2 + $0x5a] sm:$0x1] %v1573_v9  ;;  %v6892_v9 = vld [vmem:[%s8275_s14 + $0x7f] sm:$0x1]  ;;  %v1466_v15 = vmul.f32 %v6891_v5, %v8678_v1  ;;  %v1592_v21 = vadd.f32 %v1464_v7, %v1206_v4  ;;  %v1221_v63 = vld [vmem:[#allocation2 + $0x7c] sm:$0x1] }
 0x1c2   : > { %1702 = vst [vmem:[#allocation2 + $0x5b] sm:$0x1] %v1574_v13  ;;  %v6893_v13 = vld [vmem:[%s8275_s14 + $0x80] sm:$0x1]  ;;  %v1467_v19 = vmul.f32 %v6892_v9, %v8678_v1  ;;  %v1593_v25 = vadd.f32 %v1465_v11, %v1207_v8  ;;  %v1222_v5 = vld [vmem:[#allocation2 + $0x7d] sm:$0x1]  ;;  %v8939_v11 = vstv %s8920_s26 }
 0x1c3   : > { %1703 = vst [vmem:[#allocation2 + $0x5c] sm:$0x1] %v1575_v17  ;;  %v6894_v17 = vld [vmem:[%s8275_s14 + $0x81] sm:$0x1]  ;;  %v1468_v22 = vmul.f32 %v6893_v13, %v8678_v1  ;;  %v1594_v29 = vadd.f32 %v1466_v15, %v1208_v12  ;;  %v1223_v9 = vld [vmem:[#allocation2 + $0x7e] sm:$0x1] }
 0x1c4   : > { %1704 = vst [vmem:[#allocation2 + $0x5d] sm:$0x1] %v1576_v20  ;;  %v6895_v20 = vld [vmem:[%s8275_s14 + $0x82] sm:$0x1]  ;;  %v1469_v26 = vmul.f32 %v6894_v17, %v8678_v1  ;;  %v1595_v33 = vadd.f32 %v1467_v19, %v1209_v16  ;;  %v6909_v15 = vld [vmem:[%s8275_s14 + $0x3] sm:$0x1] }
 0x1c5   : > { %1705 = vst [vmem:[#allocation2 + $0x5e] sm:$0x1] %v1577_v24  ;;  %v6896_v24 = vld [vmem:[%s8275_s14 + $0x83] sm:$0x1]  ;;  %v1470_v30 = vmul.f32 %v6895_v20, %v8678_v1  ;;  %v1596_v37 = vadd.f32 %v1468_v22, %v1210_v2  ;;  %v6910_v19 = vld [vmem:[%s8275_s14 + $0x4] sm:$0x1] }
 0x1c6   : > { %1706 = vst [vmem:[#allocation2 + $0x5f] sm:$0x1] %v1578_v28  ;;  %v6897_v28 = vld [vmem:[%s8275_s14 + $0x84] sm:$0x1]  ;;  %v1471_v34 = vmul.f32 %v6896_v24, %v8678_v1  ;;  %v1597_v41 = vadd.f32 %v1469_v26, %v1211_v23  ;;  %v6911_v22 = vld [vmem:[%s8275_s14 + $0x5] sm:$0x1]  ;;  %v1998_v24 = vmul.f32 %v6909_v15, %v8939_v11 }
 0x1c7   : > { %1707 = vst [vmem:[#allocation2 + $0x60] sm:$0x1] %v1579_v32  ;;  %v6898_v32 = vld [vmem:[%s8275_s14 + $0x85] sm:$0x1]  ;;  %v1472_v38 = vmul.f32 %v6897_v28, %v8678_v1  ;;  %v1598_v45 = vadd.f32 %v1470_v30, %v1212_v27  ;;  %v6912_v26 = vld [vmem:[%s8275_s14 + $0x6] sm:$0x1] }
 0x1c8   : > { %1708 = vst [vmem:[#allocation2 + $0x61] sm:$0x1] %v1580_v36  ;;  %v6899_v36 = vld [vmem:[%s8275_s14 + $0x86] sm:$0x1]  ;;  %v1473_v42 = vmul.f32 %v6898_v32, %v8678_v1  ;;  %v1599_v49 = vadd.f32 %v1471_v34, %v1213_v31  ;;  %v1742_v28 = vld [vmem:[#allocation2 + $0x3] sm:$0x1]  ;;  %v2000_v31 = vmul.f32 %v6911_v22, %v8939_v11 }
 0x1c9   : > { %1709 = vst [vmem:[#allocation2 + $0x62] sm:$0x1] %v1581_v40  ;;  %v6900_v40 = vld [vmem:[%s8275_s14 + $0x87] sm:$0x1]  ;;  %v1474_v46 = vmul.f32 %v6899_v36, %v8678_v1  ;;  %v1600_v53 = vadd.f32 %v1472_v38, %v1214_v35  ;;  %v1743_v32 = vld [vmem:[#allocation2 + $0x4] sm:$0x1]  ;;  %v2001_v35 = vmul.f32 %v6912_v26, %v8939_v11 }
 0x1ca   : > { %1710 = vst [vmem:[#allocation2 + $0x63] sm:$0x1] %v1582_v44  ;;  %v6901_v44 = vld [vmem:[%s8275_s14 + $0x88] sm:$0x1]  ;;  %v1475_v50 = vmul.f32 %v6900_v40, %v8678_v1  ;;  %v1601_v57 = vadd.f32 %v1473_v42, %v1215_v39  ;;  %v1744_v36 = vld [vmem:[#allocation2 + $0x5] sm:$0x1] }
 0x1cb   : > { %1711 = vst [vmem:[#allocation2 + $0x64] sm:$0x1] %v1583_v48  ;;  %v6902_v48 = vld [vmem:[%s8275_s14 + $0x89] sm:$0x1]  ;;  %v1476_v54 = vmul.f32 %v6901_v44, %v8678_v1  ;;  %v1602_v61 = vadd.f32 %v1474_v46, %v1216_v43  ;;  %v1745_v40 = vld [vmem:[#allocation2 + $0x6] sm:$0x1]  ;;  %v2128_v46 = vadd.f32 %v2000_v31, %v1742_v28 }
 0x1cc   : > { %1712 = vst [vmem:[#allocation2 + $0x65] sm:$0x1] %v1584_v52  ;;  %v6903_v52 = vld [vmem:[%s8275_s14 + $0x8a] sm:$0x1]  ;;  %v1477_v58 = vmul.f32 %v6902_v48, %v8678_v1  ;;  %v1603_v3 = vadd.f32 %v1475_v50, %v1217_v47  ;;  %v1746_v44 = vld [vmem:[#allocation2 + $0x7] sm:$0x1]  ;;  %v2129_v50 = vadd.f32 %v2001_v35, %v1743_v32 }
 0x1cd   : > { %1713 = vst [vmem:[#allocation2 + $0x66] sm:$0x1] %v1585_v56  ;;  %v6904_v56 = vld [vmem:[%s8275_s14 + $0x8b] sm:$0x1]  ;;  %v1478_v62 = vmul.f32 %v6903_v52, %v8678_v1  ;;  %v1604_v7 = vadd.f32 %v1476_v54, %v1218_v51  ;;  %v1747_v48 = vld [vmem:[#allocation2 + $0x8] sm:$0x1] }
 0x1ce   : > { %1714 = vst [vmem:[#allocation2 + $0x67] sm:$0x1] %v1586_v60  ;;  %v6905_v60 = vld [vmem:[%s8275_s14 + $0x8c] sm:$0x1]  ;;  %v1479_v4 = vmul.f32 %v6904_v56, %v8678_v1  ;;  %v1605_v12 = vadd.f32 %v1477_v58, %v1219_v55  ;;  %v1748_v52 = vld [vmem:[#allocation2 + $0x9] sm:$0x1] }
 0x1cf   : > { %1715 = vst [vmem:[#allocation2 + $0x68] sm:$0x1] %v1587_v0  ;;  %v6906_v0 = vld [vmem:[%s8275_s14 + $0x8d] sm:$0x1]  ;;  %v1480_v8 = vmul.f32 %v6905_v60, %v8678_v1  ;;  %v1606_v16 = vadd.f32 %v1478_v62, %v1220_v59  ;;  %v1749_v56 = vld [vmem:[#allocation2 + $0xa] sm:$0x1] }
 0x1d0   : > { %1716 = vst [vmem:[#allocation2 + $0x69] sm:$0x1] %v1588_v6  ;;  %v6907_v6 = vld [vmem:[%s8275_s14 + $0x8e] sm:$0x1]  ;;  %v1481_v13 = vmul.f32 %v6906_v0, %v8678_v1  ;;  %v1607_v2 = vadd.f32 %v1479_v4, %v1221_v63  ;;  %v1750_v60 = vld [vmem:[#allocation2 + $0xb] sm:$0x1] }
 0x1d1   : > { %1717 = vst [vmem:[#allocation2 + $0x6a] sm:$0x1] %v1589_v10  ;;  %v6908_v10 = vld [vmem:[%s8275_s14 + $0x2] sm:$0x1]  ;;  %v1482_v17 = vmul.f32 %v6907_v6, %v8678_v1  ;;  %v1608_v23 = vadd.f32 %v1480_v8, %v1222_v5  ;;  %v1999_v1 = vmul.f32 %v6910_v19, %v8939_v11  ;;  %v1751_v0 = vld [vmem:[#allocation2 + $0xc] sm:$0x1] }
 0x1d2   : > { %1718 = vst [vmem:[#allocation2 + $0x6b] sm:$0x1] %v1590_v14  ;;  %v1224_v14 = vld [vmem:[#allocation2 + $0x7f] sm:$0x1]  ;;  %v1997_v20 = vmul.f32 %v6908_v10, %v8939_v11  ;;  %v1609_v27 = vadd.f32 %v1481_v13, %v1223_v9  ;;  %v1752_v6 = vld [vmem:[#allocation2 + $0xd] sm:$0x1] }
 0x1d3   : > { %1719 = vst [vmem:[#allocation2 + $0x6c] sm:$0x1] %v1591_v18  ;;  %v1739_v18 = vld [vmem:[#allocation2] sm:$0x1]  ;;  %v1610_v30 = vadd.f32 %v1482_v17, %v1224_v14  ;;  %v1753_v10 = vld [vmem:[#allocation2 + $0xe] sm:$0x1] }
 0x1d4   : > { %1720 = vst [vmem:[#allocation2 + $0x6d] sm:$0x1] %v1592_v21  ;;  %v1740_v21 = vld [vmem:[#allocation2 + $0x1] sm:$0x1]  ;;  %v2125_v34 = vadd.f32 %v1997_v20, %v1739_v18  ;;  %v1754_v15 = vld [vmem:[#allocation2 + $0xf] sm:$0x1] }
 0x1d5   : > { %1721 = vst [vmem:[#allocation2 + $0x6e] sm:$0x1] %v1593_v25  ;;  %v1741_v25 = vld [vmem:[#allocation2 + $0x2] sm:$0x1]  ;;  %v2126_v38 = vadd.f32 %v1998_v24, %v1740_v21  ;;  %v1755_v19 = vld [vmem:[#allocation2 + $0x10] sm:$0x1] }
 0x1d6   : > { %1722 = vst [vmem:[#allocation2 + $0x6f] sm:$0x1] %v1594_v29  ;;  %v6913_v29 = vld [vmem:[%s8275_s14 + $0x7] sm:$0x1]  ;;  %v2127_v42 = vadd.f32 %v1999_v1, %v1741_v25  ;;  %v1756_v22 = vld [vmem:[#allocation2 + $0x11] sm:$0x1] }
 0x1d7   : > { %1723 = vst [vmem:[#allocation2 + $0x70] sm:$0x1] %v1595_v33  ;;  %v6914_v33 = vld [vmem:[%s8275_s14 + $0x8] sm:$0x1]  ;;  %v2002_v39 = vmul.f32 %v6913_v29, %v8939_v11  ;;  %v1757_v26 = vld [vmem:[#allocation2 + $0x12] sm:$0x1] }
 0x1d8   : > { %1724 = vst [vmem:[#allocation2 + $0x71] sm:$0x1] %v1596_v37  ;;  %v6915_v37 = vld [vmem:[%s8275_s14 + $0x9] sm:$0x1]  ;;  %v2003_v43 = vmul.f32 %v6914_v33, %v8939_v11  ;;  %v1758_v29 = vld [vmem:[#allocation2 + $0x13] sm:$0x1] }
 0x1d9   : > { %1725 = vst [vmem:[#allocation2 + $0x72] sm:$0x1] %v1597_v41  ;;  %v6916_v41 = vld [vmem:[%s8275_s14 + $0xa] sm:$0x1]  ;;  %v2004_v47 = vmul.f32 %v6915_v37, %v8939_v11  ;;  %v2130_v54 = vadd.f32 %v2002_v39, %v1744_v36  ;;  %v1759_v33 = vld [vmem:[#allocation2 + $0x14] sm:$0x1] }
 0x1da   : > { %1726 = vst [vmem:[#allocation2 + $0x73] sm:$0x1] %v1598_v45  ;;  %v6917_v45 = vld [vmem:[%s8275_s14 + $0xb] sm:$0x1]  ;;  %v2005_v51 = vmul.f32 %v6916_v41, %v8939_v11  ;;  %v2131_v58 = vadd.f32 %v2003_v43, %v1745_v40  ;;  %v1760_v37 = vld [vmem:[#allocation2 + $0x15] sm:$0x1] }
 0x1db   : > { %1727 = vst [vmem:[#allocation2 + $0x74] sm:$0x1] %v1599_v49  ;;  %v6918_v49 = vld [vmem:[%s8275_s14 + $0xc] sm:$0x1]  ;;  %v2006_v55 = vmul.f32 %v6917_v45, %v8939_v11  ;;  %v2132_v62 = vadd.f32 %v2004_v47, %v1746_v44  ;;  %v1761_v41 = vld [vmem:[#allocation2 + $0x16] sm:$0x1] }
 0x1dc   : > { %1728 = vst [vmem:[#allocation2 + $0x75] sm:$0x1] %v1600_v53  ;;  %v6919_v53 = vld [vmem:[%s8275_s14 + $0xd] sm:$0x1]  ;;  %v2007_v59 = vmul.f32 %v6918_v49, %v8939_v11  ;;  %v2133_v4 = vadd.f32 %v2005_v51, %v1747_v48  ;;  %v1762_v45 = vld [vmem:[#allocation2 + $0x17] sm:$0x1] }
 0x1dd   : > { %1729 = vst [vmem:[#allocation2 + $0x76] sm:$0x1] %v1601_v57  ;;  %v6920_v57 = vld [vmem:[%s8275_s14 + $0xe] sm:$0x1]  ;;  %v2008_v63 = vmul.f32 %v6919_v53, %v8939_v11  ;;  %v2134_v8 = vadd.f32 %v2006_v55, %v1748_v52  ;;  %v1763_v49 = vld [vmem:[#allocation2 + $0x18] sm:$0x1] }
 0x1de   : > { %1730 = vst [vmem:[#allocation2 + $0x77] sm:$0x1] %v1602_v61  ;;  %v6921_v61 = vld [vmem:[%s8275_s14 + $0xf] sm:$0x1]  ;;  %v2009_v5 = vmul.f32 %v6920_v57, %v8939_v11  ;;  %v2135_v13 = vadd.f32 %v2007_v59, %v1749_v56  ;;  %v1764_v53 = vld [vmem:[#allocation2 + $0x19] sm:$0x1] }
 0x1df   : > { %1731 = vst [vmem:[#allocation2 + $0x78] sm:$0x1] %v1603_v3  ;;  %v6922_v3 = vld [vmem:[%s8275_s14 + $0x10] sm:$0x1]  ;;  %v2010_v9 = vmul.f32 %v6921_v61, %v8939_v11  ;;  %v2136_v17 = vadd.f32 %v2008_v63, %v1750_v60  ;;  %v1765_v57 = vld [vmem:[#allocation2 + $0x1a] sm:$0x1] }
 0x1e0   : > { %1732 = vst [vmem:[#allocation2 + $0x79] sm:$0x1] %v1604_v7  ;;  %v6923_v7 = vld [vmem:[%s8275_s14 + $0x11] sm:$0x1]  ;;  %v2011_v14 = vmul.f32 %v6922_v3, %v8939_v11  ;;  %v2137_v20 = vadd.f32 %v2009_v5, %v1751_v0  ;;  %v1766_v61 = vld [vmem:[#allocation2 + $0x1b] sm:$0x1] }
 0x1e1   : > { %1733 = vst [vmem:[#allocation2 + $0x7a] sm:$0x1] %v1605_v12  ;;  %v6924_v12 = vld [vmem:[%s8275_s14 + $0x14] sm:$0x1]  ;;  %v2012_v18 = vmul.f32 %v6923_v7, %v8939_v11  ;;  %v2138_v24 = vadd.f32 %v2010_v9, %v1752_v6  ;;  %v1767_v3 = vld [vmem:[#allocation2 + $0x1c] sm:$0x1] }
 0x1e2   : > { %1734 = vst [vmem:[#allocation2 + $0x7b] sm:$0x1] %v1606_v16  ;;  %v6925_v16 = vld [vmem:[%s8275_s14 + $0x15] sm:$0x1]  ;;  %v2013_v21 = vmul.f32 %v6924_v12, %v8939_v11  ;;  %v2139_v1 = vadd.f32 %v2011_v14, %v1753_v10  ;;  %v1768_v7 = vld [vmem:[#allocation2 + $0x1d] sm:$0x1] }
 0x1e3   : > { %1735 = vst [vmem:[#allocation2 + $0x7c] sm:$0x1] %v1607_v2  ;;  %v6926_v2 = vld [vmem:[%s8275_s14 + $0x16] sm:$0x1]  ;;  %v2014_v25 = vmul.f32 %v6925_v16, %v8939_v11  ;;  %v2140_v31 = vadd.f32 %v2012_v18, %v1754_v15  ;;  %v1769_v12 = vld [vmem:[#allocation2 + $0x1e] sm:$0x1] }
 0x1e4   : > { %1736 = vst [vmem:[#allocation2 + $0x7d] sm:$0x1] %v1608_v23  ;;  %v6927_v23 = vld [vmem:[%s8275_s14 + $0x17] sm:$0x1]  ;;  %v2015_v28 = vmul.f32 %v6926_v2, %v8939_v11  ;;  %v2141_v35 = vadd.f32 %v2013_v21, %v1755_v19  ;;  %v1770_v16 = vld [vmem:[#allocation2 + $0x1f] sm:$0x1] }
 0x1e5   : > { %1737 = vst [vmem:[#allocation2 + $0x7e] sm:$0x1] %v1609_v27  ;;  %v6928_v27 = vld [vmem:[%s8275_s14 + $0x18] sm:$0x1]  ;;  %v2016_v32 = vmul.f32 %v6927_v23, %v8939_v11  ;;  %v2142_v39 = vadd.f32 %v2014_v25, %v1756_v22  ;;  %v1771_v2 = vld [vmem:[#allocation2 + $0x20] sm:$0x1] }
 0x1e6   : > { %1738 = vst [vmem:[#allocation2 + $0x7f] sm:$0x1] %v1610_v30  ;;  %v6929_v30 = vld [vmem:[%s8275_s14 + $0x19] sm:$0x1]  ;;  %v2017_v36 = vmul.f32 %v6928_v27, %v8939_v11  ;;  %v2143_v43 = vadd.f32 %v2015_v28, %v1757_v26  ;;  %v1772_v23 = vld [vmem:[#allocation2 + $0x21] sm:$0x1] }
 0x1e7   : > { %2253 = vst [vmem:[#allocation2] sm:$0x1] %v2125_v34  ;;  %v6930_v34 = vld [vmem:[%s8275_s14 + $0x1a] sm:$0x1]  ;;  %v2018_v40 = vmul.f32 %v6929_v30, %v8939_v11  ;;  %v2144_v47 = vadd.f32 %v2016_v32, %v1758_v29  ;;  %v1773_v27 = vld [vmem:[#allocation2 + $0x22] sm:$0x1] }
 0x1e8   : > { %2254 = vst [vmem:[#allocation2 + $0x1] sm:$0x1] %v2126_v38  ;;  %v6931_v38 = vld [vmem:[%s8275_s14 + $0x1b] sm:$0x1]  ;;  %v2019_v44 = vmul.f32 %v6930_v34, %v8939_v11  ;;  %v2145_v51 = vadd.f32 %v2017_v36, %v1759_v33  ;;  %v1774_v30 = vld [vmem:[#allocation2 + $0x23] sm:$0x1] }
 0x1e9   : > { %2255 = vst [vmem:[#allocation2 + $0x2] sm:$0x1] %v2127_v42  ;;  %v6932_v42 = vld [vmem:[%s8275_s14 + $0x1c] sm:$0x1]  ;;  %v2020_v48 = vmul.f32 %v6931_v38, %v8939_v11  ;;  %v2146_v55 = vadd.f32 %v2018_v40, %v1760_v37  ;;  %v1775_v34 = vld [vmem:[#allocation2 + $0x24] sm:$0x1] }
 0x1ea   : > { %2256 = vst [vmem:[#allocation2 + $0x3] sm:$0x1] %v2128_v46  ;;  %v6933_v46 = vld [vmem:[%s8275_s14 + $0x1d] sm:$0x1]  ;;  %v2021_v52 = vmul.f32 %v6932_v42, %v8939_v11  ;;  %v2147_v59 = vadd.f32 %v2019_v44, %v1761_v41  ;;  %v1776_v38 = vld [vmem:[#allocation2 + $0x25] sm:$0x1] }
 0x1eb   : > { %2257 = vst [vmem:[#allocation2 + $0x4] sm:$0x1] %v2129_v50  ;;  %v6934_v50 = vld [vmem:[%s8275_s14 + $0x1e] sm:$0x1]  ;;  %v2022_v56 = vmul.f32 %v6933_v46, %v8939_v11  ;;  %v2148_v63 = vadd.f32 %v2020_v48, %v1762_v45  ;;  %v1777_v42 = vld [vmem:[#allocation2 + $0x26] sm:$0x1] }
 0x1ec   : > { %2258 = vst [vmem:[#allocation2 + $0x5] sm:$0x1] %v2130_v54  ;;  %v6935_v54 = vld [vmem:[%s8275_s14 + $0x1f] sm:$0x1]  ;;  %v2023_v60 = vmul.f32 %v6934_v50, %v8939_v11  ;;  %v2149_v5 = vadd.f32 %v2021_v52, %v1763_v49  ;;  %v1778_v46 = vld [vmem:[#allocation2 + $0x27] sm:$0x1] }
 0x1ed   : > { %2259 = vst [vmem:[#allocation2 + $0x6] sm:$0x1] %v2131_v58  ;;  %v6936_v58 = vld [vmem:[%s8275_s14 + $0x20] sm:$0x1]  ;;  %v2024_v0 = vmul.f32 %v6935_v54, %v8939_v11  ;;  %v2150_v9 = vadd.f32 %v2022_v56, %v1764_v53  ;;  %v1779_v50 = vld [vmem:[#allocation2 + $0x28] sm:$0x1] }
 0x1ee   : > { %2260 = vst [vmem:[#allocation2 + $0x7] sm:$0x1] %v2132_v62  ;;  %v6937_v62 = vld [vmem:[%s8275_s14 + $0x21] sm:$0x1]  ;;  %v2025_v6 = vmul.f32 %v6936_v58, %v8939_v11  ;;  %v2151_v14 = vadd.f32 %v2023_v60, %v1765_v57  ;;  %v1780_v54 = vld [vmem:[#allocation2 + $0x29] sm:$0x1] }
 0x1ef   : > { %2261 = vst [vmem:[#allocation2 + $0x8] sm:$0x1] %v2133_v4  ;;  %v6938_v4 = vld [vmem:[%s8275_s14 + $0x22] sm:$0x1]  ;;  %v2026_v10 = vmul.f32 %v6937_v62, %v8939_v11  ;;  %v2152_v18 = vadd.f32 %v2024_v0, %v1766_v61  ;;  %v1781_v58 = vld [vmem:[#allocation2 + $0x2a] sm:$0x1] }
 0x1f0   : > { %2262 = vst [vmem:[#allocation2 + $0x9] sm:$0x1] %v2134_v8  ;;  %v6939_v8 = vld [vmem:[%s8275_s14 + $0x23] sm:$0x1]  ;;  %v2027_v15 = vmul.f32 %v6938_v4, %v8939_v11  ;;  %v2153_v21 = vadd.f32 %v2025_v6, %v1767_v3  ;;  %v1782_v62 = vld [vmem:[#allocation2 + $0x2b] sm:$0x1] }
 0x1f1   : > { %2263 = vst [vmem:[#allocation2 + $0xa] sm:$0x1] %v2135_v13  ;;  %v6940_v13 = vld [vmem:[%s8275_s14 + $0x26] sm:$0x1]  ;;  %v2028_v19 = vmul.f32 %v6939_v8, %v8939_v11  ;;  %v2154_v25 = vadd.f32 %v2026_v10, %v1768_v7  ;;  %v1783_v4 = vld [vmem:[#allocation2 + $0x2c] sm:$0x1] }
 0x1f2   : > { %2264 = vst [vmem:[#allocation2 + $0xb] sm:$0x1] %v2136_v17  ;;  %v6941_v17 = vld [vmem:[%s8275_s14 + $0x27] sm:$0x1]  ;;  %v2029_v22 = vmul.f32 %v6940_v13, %v8939_v11  ;;  %v2155_v28 = vadd.f32 %v2027_v15, %v1769_v12  ;;  %v1784_v8 = vld [vmem:[#allocation2 + $0x2d] sm:$0x1] }
 0x1f3   : > { %2265 = vst [vmem:[#allocation2 + $0xc] sm:$0x1] %v2137_v20  ;;  %v6942_v20 = vld [vmem:[%s8275_s14 + $0x28] sm:$0x1]  ;;  %v2030_v26 = vmul.f32 %v6941_v17, %v8939_v11  ;;  %v2156_v32 = vadd.f32 %v2028_v19, %v1770_v16  ;;  %v1785_v13 = vld [vmem:[#allocation2 + $0x2e] sm:$0x1] }
 0x1f4   : > { %2266 = vst [vmem:[#allocation2 + $0xd] sm:$0x1] %v2138_v24  ;;  %v6943_v24 = vld [vmem:[%s8275_s14 + $0x29] sm:$0x1]  ;;  %v2031_v29 = vmul.f32 %v6942_v20, %v8939_v11  ;;  %v2157_v36 = vadd.f32 %v2029_v22, %v1771_v2  ;;  %v1786_v17 = vld [vmem:[#allocation2 + $0x2f] sm:$0x1] }
 0x1f5   : > { %2267 = vst [vmem:[#allocation2 + $0xe] sm:$0x1] %v2139_v1  ;;  %v6944_v1 = vld [vmem:[%s8275_s14 + $0x2a] sm:$0x1]  ;;  %v2032_v33 = vmul.f32 %v6943_v24, %v8939_v11  ;;  %v2158_v40 = vadd.f32 %v2030_v26, %v1772_v23  ;;  %v1787_v20 = vld [vmem:[#allocation2 + $0x30] sm:$0x1] }
 0x1f6   : > { %2268 = vst [vmem:[#allocation2 + $0xf] sm:$0x1] %v2140_v31  ;;  %v6945_v31 = vld [vmem:[%s8275_s14 + $0x2b] sm:$0x1]  ;;  %v2033_v37 = vmul.f32 %v6944_v1, %v8939_v11  ;;  %v2159_v44 = vadd.f32 %v2031_v29, %v1773_v27  ;;  %v1788_v24 = vld [vmem:[#allocation2 + $0x31] sm:$0x1] }
 0x1f7   : > { %2269 = vst [vmem:[#allocation2 + $0x10] sm:$0x1] %v2141_v35  ;;  %v6946_v35 = vld [vmem:[%s8275_s14 + $0x2c] sm:$0x1]  ;;  %v2034_v41 = vmul.f32 %v6945_v31, %v8939_v11  ;;  %v2160_v48 = vadd.f32 %v2032_v33, %v1774_v30  ;;  %v1789_v1 = vld [vmem:[#allocation2 + $0x32] sm:$0x1] }
 0x1f8   : > { %2270 = vst [vmem:[#allocation2 + $0x11] sm:$0x1] %v2142_v39  ;;  %v6947_v39 = vld [vmem:[%s8275_s14 + $0x2d] sm:$0x1]  ;;  %v2035_v45 = vmul.f32 %v6946_v35, %v8939_v11  ;;  %v2161_v52 = vadd.f32 %v2033_v37, %v1775_v34  ;;  %v1790_v31 = vld [vmem:[#allocation2 + $0x33] sm:$0x1] }
 0x1f9   : > { %2271 = vst [vmem:[#allocation2 + $0x12] sm:$0x1] %v2143_v43  ;;  %v6948_v43 = vld [vmem:[%s8275_s14 + $0x2e] sm:$0x1]  ;;  %v2036_v49 = vmul.f32 %v6947_v39, %v8939_v11  ;;  %v2162_v56 = vadd.f32 %v2034_v41, %v1776_v38  ;;  %v1791_v35 = vld [vmem:[#allocation2 + $0x34] sm:$0x1] }
 0x1fa   : > { %2272 = vst [vmem:[#allocation2 + $0x13] sm:$0x1] %v2144_v47  ;;  %v6949_v47 = vld [vmem:[%s8275_s14 + $0x2f] sm:$0x1]  ;;  %v2037_v53 = vmul.f32 %v6948_v43, %v8939_v11  ;;  %v2163_v60 = vadd.f32 %v2035_v45, %v1777_v42  ;;  %v1792_v39 = vld [vmem:[#allocation2 + $0x35] sm:$0x1] }
 0x1fb   : > { %2273 = vst [vmem:[#allocation2 + $0x14] sm:$0x1] %v2145_v51  ;;  %v6950_v51 = vld [vmem:[%s8275_s14 + $0x30] sm:$0x1]  ;;  %v2038_v57 = vmul.f32 %v6949_v47, %v8939_v11  ;;  %v2164_v0 = vadd.f32 %v2036_v49, %v1778_v46  ;;  %v1793_v43 = vld [vmem:[#allocation2 + $0x36] sm:$0x1] }
 0x1fc   : > { %2274 = vst [vmem:[#allocation2 + $0x15] sm:$0x1] %v2146_v55  ;;  %v6951_v55 = vld [vmem:[%s8275_s14 + $0x31] sm:$0x1]  ;;  %v2039_v61 = vmul.f32 %v6950_v51, %v8939_v11  ;;  %v2165_v6 = vadd.f32 %v2037_v53, %v1779_v50  ;;  %v1794_v47 = vld [vmem:[#allocation2 + $0x37] sm:$0x1] }
 0x1fd   : > { %2275 = vst [vmem:[#allocation2 + $0x16] sm:$0x1] %v2147_v59  ;;  %v6952_v59 = vld [vmem:[%s8275_s14 + $0x32] sm:$0x1]  ;;  %v2040_v3 = vmul.f32 %v6951_v55, %v8939_v11  ;;  %v2166_v10 = vadd.f32 %v2038_v57, %v1780_v54  ;;  %v1795_v51 = vld [vmem:[#allocation2 + $0x38] sm:$0x1] }
 0x1fe   : > { %2276 = vst [vmem:[#allocation2 + $0x17] sm:$0x1] %v2148_v63  ;;  %v6953_v63 = vld [vmem:[%s8275_s14 + $0x33] sm:$0x1]  ;;  %v2041_v7 = vmul.f32 %v6952_v59, %v8939_v11  ;;  %v2167_v15 = vadd.f32 %v2039_v61, %v1781_v58  ;;  %v1796_v55 = vld [vmem:[#allocation2 + $0x39] sm:$0x1] }
 0x1ff   : > { %2277 = vst [vmem:[#allocation2 + $0x18] sm:$0x1] %v2149_v5  ;;  %v6954_v5 = vld [vmem:[%s8275_s14 + $0x34] sm:$0x1]  ;;  %v2042_v12 = vmul.f32 %v6953_v63, %v8939_v11  ;;  %v2168_v19 = vadd.f32 %v2040_v3, %v1782_v62  ;;  %v1797_v59 = vld [vmem:[#allocation2 + $0x3a] sm:$0x1] }
 0x200   : > { %2278 = vst [vmem:[#allocation2 + $0x19] sm:$0x1] %v2150_v9  ;;  %v6955_v9 = vld [vmem:[%s8275_s14 + $0x35] sm:$0x1]  ;;  %v2043_v16 = vmul.f32 %v6954_v5, %v8939_v11  ;;  %v2169_v22 = vadd.f32 %v2041_v7, %v1783_v4  ;;  %v1798_v63 = vld [vmem:[#allocation2 + $0x3b] sm:$0x1] }
 0x201   : > { %2279 = vst [vmem:[#allocation2 + $0x1a] sm:$0x1] %v2151_v14  ;;  %v6956_v14 = vld [vmem:[%s8275_s14 + $0x38] sm:$0x1]  ;;  %v2044_v2 = vmul.f32 %v6955_v9, %v8939_v11  ;;  %v2170_v26 = vadd.f32 %v2042_v12, %v1784_v8  ;;  %v1799_v5 = vld [vmem:[#allocation2 + $0x3c] sm:$0x1] }
 0x202   : > { %2280 = vst [vmem:[#allocation2 + $0x1b] sm:$0x1] %v2152_v18  ;;  %v6957_v18 = vld [vmem:[%s8275_s14 + $0x39] sm:$0x1]  ;;  %v2045_v23 = vmul.f32 %v6956_v14, %v8939_v11  ;;  %v2171_v29 = vadd.f32 %v2043_v16, %v1785_v13  ;;  %v1800_v9 = vld [vmem:[#allocation2 + $0x3d] sm:$0x1] }
 0x203   : > { %2281 = vst [vmem:[#allocation2 + $0x1c] sm:$0x1] %v2153_v21  ;;  %v6958_v21 = vld [vmem:[%s8275_s14 + $0x3a] sm:$0x1]  ;;  %v2046_v27 = vmul.f32 %v6957_v18, %v8939_v11  ;;  %v2172_v33 = vadd.f32 %v2044_v2, %v1786_v17  ;;  %v1801_v14 = vld [vmem:[#allocation2 + $0x3e] sm:$0x1] }
 0x204   : > { %2282 = vst [vmem:[#allocation2 + $0x1d] sm:$0x1] %v2154_v25  ;;  %v6959_v25 = vld [vmem:[%s8275_s14 + $0x3b] sm:$0x1]  ;;  %v2047_v30 = vmul.f32 %v6958_v21, %v8939_v11  ;;  %v2173_v37 = vadd.f32 %v2045_v23, %v1787_v20  ;;  %v1802_v18 = vld [vmem:[#allocation2 + $0x3f] sm:$0x1] }
 0x205   : > { %2283 = vst [vmem:[#allocation2 + $0x1e] sm:$0x1] %v2155_v28  ;;  %v6960_v28 = vld [vmem:[%s8275_s14 + $0x3c] sm:$0x1]  ;;  %v2048_v34 = vmul.f32 %v6959_v25, %v8939_v11  ;;  %v2174_v41 = vadd.f32 %v2046_v27, %v1788_v24  ;;  %v1803_v21 = vld [vmem:[#allocation2 + $0x40] sm:$0x1] }
 0x206   : > { %2284 = vst [vmem:[#allocation2 + $0x1f] sm:$0x1] %v2156_v32  ;;  %v6961_v32 = vld [vmem:[%s8275_s14 + $0x3d] sm:$0x1]  ;;  %v2049_v38 = vmul.f32 %v6960_v28, %v8939_v11  ;;  %v2175_v45 = vadd.f32 %v2047_v30, %v1789_v1  ;;  %v1804_v25 = vld [vmem:[#allocation2 + $0x41] sm:$0x1] }
 0x207   : > { %2285 = vst [vmem:[#allocation2 + $0x20] sm:$0x1] %v2157_v36  ;;  %v6962_v36 = vld [vmem:[%s8275_s14 + $0x3e] sm:$0x1]  ;;  %v2050_v42 = vmul.f32 %v6961_v32, %v8939_v11  ;;  %v2176_v49 = vadd.f32 %v2048_v34, %v1790_v31  ;;  %v1805_v28 = vld [vmem:[#allocation2 + $0x42] sm:$0x1] }
 0x208   : > { %2286 = vst [vmem:[#allocation2 + $0x21] sm:$0x1] %v2158_v40  ;;  %v6963_v40 = vld [vmem:[%s8275_s14 + $0x3f] sm:$0x1]  ;;  %v2051_v46 = vmul.f32 %v6962_v36, %v8939_v11  ;;  %v2177_v53 = vadd.f32 %v2049_v38, %v1791_v35  ;;  %v1806_v32 = vld [vmem:[#allocation2 + $0x43] sm:$0x1] }
 0x209   : > { %2287 = vst [vmem:[#allocation2 + $0x22] sm:$0x1] %v2159_v44  ;;  %v6964_v44 = vld [vmem:[%s8275_s14 + $0x40] sm:$0x1]  ;;  %v2052_v50 = vmul.f32 %v6963_v40, %v8939_v11  ;;  %v2178_v57 = vadd.f32 %v2050_v42, %v1792_v39  ;;  %v1807_v36 = vld [vmem:[#allocation2 + $0x44] sm:$0x1] }
 0x20a   : > { %2288 = vst [vmem:[#allocation2 + $0x23] sm:$0x1] %v2160_v48  ;;  %v6965_v48 = vld [vmem:[%s8275_s14 + $0x41] sm:$0x1]  ;;  %v2053_v54 = vmul.f32 %v6964_v44, %v8939_v11  ;;  %v2179_v61 = vadd.f32 %v2051_v46, %v1793_v43  ;;  %v1808_v40 = vld [vmem:[#allocation2 + $0x45] sm:$0x1] }
 0x20b   : > { %2289 = vst [vmem:[#allocation2 + $0x24] sm:$0x1] %v2161_v52  ;;  %v6966_v52 = vld [vmem:[%s8275_s14 + $0x42] sm:$0x1]  ;;  %v2054_v58 = vmul.f32 %v6965_v48, %v8939_v11  ;;  %v2180_v3 = vadd.f32 %v2052_v50, %v1794_v47  ;;  %v1809_v44 = vld [vmem:[#allocation2 + $0x46] sm:$0x1] }
 0x20c   : > { %2290 = vst [vmem:[#allocation2 + $0x25] sm:$0x1] %v2162_v56  ;;  %v6967_v56 = vld [vmem:[%s8275_s14 + $0x43] sm:$0x1]  ;;  %v2055_v62 = vmul.f32 %v6966_v52, %v8939_v11  ;;  %v2181_v7 = vadd.f32 %v2053_v54, %v1795_v51  ;;  %v1810_v48 = vld [vmem:[#allocation2 + $0x47] sm:$0x1] }
 0x20d   : > { %2291 = vst [vmem:[#allocation2 + $0x26] sm:$0x1] %v2163_v60  ;;  %v6968_v60 = vld [vmem:[%s8275_s14 + $0x44] sm:$0x1]  ;;  %v2056_v4 = vmul.f32 %v6967_v56, %v8939_v11  ;;  %v2182_v12 = vadd.f32 %v2054_v58, %v1796_v55  ;;  %v1811_v52 = vld [vmem:[#allocation2 + $0x48] sm:$0x1] }
 0x20e   : > { %2292 = vst [vmem:[#allocation2 + $0x27] sm:$0x1] %v2164_v0  ;;  %v6969_v0 = vld [vmem:[%s8275_s14 + $0x45] sm:$0x1]  ;;  %v2057_v8 = vmul.f32 %v6968_v60, %v8939_v11  ;;  %v2183_v16 = vadd.f32 %v2055_v62, %v1797_v59  ;;  %v1812_v56 = vld [vmem:[#allocation2 + $0x49] sm:$0x1] }
 0x20f   : > { %2293 = vst [vmem:[#allocation2 + $0x28] sm:$0x1] %v2165_v6  ;;  %v6970_v6 = vld [vmem:[%s8275_s14 + $0x46] sm:$0x1]  ;;  %v2058_v13 = vmul.f32 %v6969_v0, %v8939_v11  ;;  %v2184_v2 = vadd.f32 %v2056_v4, %v1798_v63  ;;  %v1813_v60 = vld [vmem:[#allocation2 + $0x4a] sm:$0x1] }
 0x210   : > { %2294 = vst [vmem:[#allocation2 + $0x29] sm:$0x1] %v2166_v10  ;;  %v6971_v10 = vld [vmem:[%s8275_s14 + $0x47] sm:$0x1]  ;;  %v2059_v17 = vmul.f32 %v6970_v6, %v8939_v11  ;;  %v2185_v23 = vadd.f32 %v2057_v8, %v1799_v5  ;;  %v1814_v0 = vld [vmem:[#allocation2 + $0x4b] sm:$0x1] }
 0x211   : > { %2295 = vst [vmem:[#allocation2 + $0x2a] sm:$0x1] %v2167_v15  ;;  %v6972_v15 = vld [vmem:[%s8275_s14 + $0x4a] sm:$0x1]  ;;  %v2060_v20 = vmul.f32 %v6971_v10, %v8939_v11  ;;  %v2186_v27 = vadd.f32 %v2058_v13, %v1800_v9  ;;  %v1815_v6 = vld [vmem:[#allocation2 + $0x4c] sm:$0x1] }
 0x212   : > { %2296 = vst [vmem:[#allocation2 + $0x2b] sm:$0x1] %v2168_v19  ;;  %v6973_v19 = vld [vmem:[%s8275_s14 + $0x4b] sm:$0x1]  ;;  %v2061_v24 = vmul.f32 %v6972_v15, %v8939_v11  ;;  %v2187_v30 = vadd.f32 %v2059_v17, %v1801_v14  ;;  %v1816_v10 = vld [vmem:[#allocation2 + $0x4d] sm:$0x1] }
 0x213   : > { %2297 = vst [vmem:[#allocation2 + $0x2c] sm:$0x1] %v2169_v22  ;;  %v6974_v22 = vld [vmem:[%s8275_s14 + $0x4c] sm:$0x1]  ;;  %v2062_v1 = vmul.f32 %v6973_v19, %v8939_v11  ;;  %v2188_v34 = vadd.f32 %v2060_v20, %v1802_v18  ;;  %v1817_v15 = vld [vmem:[#allocation2 + $0x4e] sm:$0x1] }
 0x214   : > { %2298 = vst [vmem:[#allocation2 + $0x2d] sm:$0x1] %v2170_v26  ;;  %v6975_v26 = vld [vmem:[%s8275_s14 + $0x4d] sm:$0x1]  ;;  %v2063_v31 = vmul.f32 %v6974_v22, %v8939_v11  ;;  %v2189_v38 = vadd.f32 %v2061_v24, %v1803_v21  ;;  %v1818_v19 = vld [vmem:[#allocation2 + $0x4f] sm:$0x1] }
 0x215   : > { %2299 = vst [vmem:[#allocation2 + $0x2e] sm:$0x1] %v2171_v29  ;;  %v6976_v29 = vld [vmem:[%s8275_s14 + $0x4e] sm:$0x1]  ;;  %v2064_v35 = vmul.f32 %v6975_v26, %v8939_v11  ;;  %v2190_v42 = vadd.f32 %v2062_v1, %v1804_v25  ;;  %v1819_v22 = vld [vmem:[#allocation2 + $0x50] sm:$0x1] }
 0x216   : > { %2300 = vst [vmem:[#allocation2 + $0x2f] sm:$0x1] %v2172_v33  ;;  %v6977_v33 = vld [vmem:[%s8275_s14 + $0x4f] sm:$0x1]  ;;  %v2065_v39 = vmul.f32 %v6976_v29, %v8939_v11  ;;  %v2191_v46 = vadd.f32 %v2063_v31, %v1805_v28  ;;  %v1820_v26 = vld [vmem:[#allocation2 + $0x51] sm:$0x1] }
 0x217   : > { %2301 = vst [vmem:[#allocation2 + $0x30] sm:$0x1] %v2173_v37  ;;  %v6978_v37 = vld [vmem:[%s8275_s14 + $0x50] sm:$0x1]  ;;  %v2066_v43 = vmul.f32 %v6977_v33, %v8939_v11  ;;  %v2192_v50 = vadd.f32 %v2064_v35, %v1806_v32  ;;  %v1821_v29 = vld [vmem:[#allocation2 + $0x52] sm:$0x1] }
 0x218   : > { %2302 = vst [vmem:[#allocation2 + $0x31] sm:$0x1] %v2174_v41  ;;  %v6979_v41 = vld [vmem:[%s8275_s14 + $0x51] sm:$0x1]  ;;  %v2067_v47 = vmul.f32 %v6978_v37, %v8939_v11  ;;  %v2193_v54 = vadd.f32 %v2065_v39, %v1807_v36  ;;  %v1822_v33 = vld [vmem:[#allocation2 + $0x53] sm:$0x1] }
 0x219   : > { %2303 = vst [vmem:[#allocation2 + $0x32] sm:$0x1] %v2175_v45  ;;  %v6980_v45 = vld [vmem:[%s8275_s14 + $0x52] sm:$0x1]  ;;  %v2068_v51 = vmul.f32 %v6979_v41, %v8939_v11  ;;  %v2194_v58 = vadd.f32 %v2066_v43, %v1808_v40  ;;  %v1823_v37 = vld [vmem:[#allocation2 + $0x54] sm:$0x1] }
 0x21a   : > { %2304 = vst [vmem:[#allocation2 + $0x33] sm:$0x1] %v2176_v49  ;;  %v6981_v49 = vld [vmem:[%s8275_s14 + $0x53] sm:$0x1]  ;;  %v2069_v55 = vmul.f32 %v6980_v45, %v8939_v11  ;;  %v2195_v62 = vadd.f32 %v2067_v47, %v1809_v44  ;;  %v1824_v41 = vld [vmem:[#allocation2 + $0x55] sm:$0x1] }
 0x21b   : > { %2305 = vst [vmem:[#allocation2 + $0x34] sm:$0x1] %v2177_v53  ;;  %v6982_v53 = vld [vmem:[%s8275_s14 + $0x54] sm:$0x1]  ;;  %v2070_v59 = vmul.f32 %v6981_v49, %v8939_v11  ;;  %v2196_v4 = vadd.f32 %v2068_v51, %v1810_v48  ;;  %v1825_v45 = vld [vmem:[#allocation2 + $0x56] sm:$0x1] }
 0x21c   : > { %2306 = vst [vmem:[#allocation2 + $0x35] sm:$0x1] %v2178_v57  ;;  %v6983_v57 = vld [vmem:[%s8275_s14 + $0x55] sm:$0x1]  ;;  %v2071_v63 = vmul.f32 %v6982_v53, %v8939_v11  ;;  %v2197_v8 = vadd.f32 %v2069_v55, %v1811_v52  ;;  %v1826_v49 = vld [vmem:[#allocation2 + $0x57] sm:$0x1] }
 0x21d   : > { %2307 = vst [vmem:[#allocation2 + $0x36] sm:$0x1] %v2179_v61  ;;  %v6984_v61 = vld [vmem:[%s8275_s14 + $0x56] sm:$0x1]  ;;  %v2072_v5 = vmul.f32 %v6983_v57, %v8939_v11  ;;  %v2198_v13 = vadd.f32 %v2070_v59, %v1812_v56  ;;  %v1827_v53 = vld [vmem:[#allocation2 + $0x58] sm:$0x1] }
 0x21e   : > { %2308 = vst [vmem:[#allocation2 + $0x37] sm:$0x1] %v2180_v3  ;;  %v6985_v3 = vld [vmem:[%s8275_s14 + $0x57] sm:$0x1]  ;;  %v2073_v9 = vmul.f32 %v6984_v61, %v8939_v11  ;;  %v2199_v17 = vadd.f32 %v2071_v63, %v1813_v60  ;;  %v1828_v57 = vld [vmem:[#allocation2 + $0x59] sm:$0x1] }
 0x21f   : > { %2309 = vst [vmem:[#allocation2 + $0x38] sm:$0x1] %v2181_v7  ;;  %v6986_v7 = vld [vmem:[%s8275_s14 + $0x58] sm:$0x1]  ;;  %v2074_v14 = vmul.f32 %v6985_v3, %v8939_v11  ;;  %v2200_v20 = vadd.f32 %v2072_v5, %v1814_v0  ;;  %v1829_v61 = vld [vmem:[#allocation2 + $0x5a] sm:$0x1] }
 0x220   : > { %2310 = vst [vmem:[#allocation2 + $0x39] sm:$0x1] %v2182_v12  ;;  %v6987_v12 = vld [vmem:[%s8275_s14 + $0x59] sm:$0x1]  ;;  %v2075_v18 = vmul.f32 %v6986_v7, %v8939_v11  ;;  %v2201_v24 = vadd.f32 %v2073_v9, %v1815_v6  ;;  %v1830_v3 = vld [vmem:[#allocation2 + $0x5b] sm:$0x1] }
 0x221   : > { %2311 = vst [vmem:[#allocation2 + $0x3a] sm:$0x1] %v2183_v16  ;;  %v6988_v16 = vld [vmem:[%s8275_s14 + $0x5c] sm:$0x1]  ;;  %v2076_v21 = vmul.f32 %v6987_v12, %v8939_v11  ;;  %v2202_v1 = vadd.f32 %v2074_v14, %v1816_v10  ;;  %v1832_v12 = vld [vmem:[#allocation2 + $0x5d] sm:$0x1] }
 0x222   : > { %2312 = vst [vmem:[#allocation2 + $0x3b] sm:$0x1] %v2184_v2  ;;  %v6989_v2 = vld [vmem:[%s8275_s14 + $0x5d] sm:$0x1]  ;;  %v2077_v25 = vmul.f32 %v6988_v16, %v8939_v11  ;;  %v2203_v31 = vadd.f32 %v2075_v18, %v1817_v15  ;;  %v1831_v7 = vld [vmem:[#allocation2 + $0x5c] sm:$0x1] }
 0x223   : > { %2313 = vst [vmem:[#allocation2 + $0x3c] sm:$0x1] %v2185_v23  ;;  %v6990_v23 = vld [vmem:[%s8275_s14 + $0x5e] sm:$0x1]  ;;  %v2078_v28 = vmul.f32 %v6989_v2, %v8939_v11  ;;  %v2204_v35 = vadd.f32 %v2076_v21, %v1818_v19  ;;  %v1834_v2 = vld [vmem:[#allocation2 + $0x5f] sm:$0x1] }
 0x224   : > { %2314 = vst [vmem:[#allocation2 + $0x3d] sm:$0x1] %v2186_v27  ;;  %v6991_v27 = vld [vmem:[%s8275_s14 + $0x5f] sm:$0x1]  ;;  %v2079_v32 = vmul.f32 %v6990_v23, %v8939_v11  ;;  %v2205_v39 = vadd.f32 %v2077_v25, %v1819_v22  ;;  %v1833_v16 = vld [vmem:[#allocation2 + $0x5e] sm:$0x1] }
 0x225   : > { %2315 = vst [vmem:[#allocation2 + $0x3e] sm:$0x1] %v2187_v30  ;;  %v6992_v30 = vld [vmem:[%s8275_s14 + $0x60] sm:$0x1]  ;;  %v2080_v36 = vmul.f32 %v6991_v27, %v8939_v11  ;;  %v2206_v43 = vadd.f32 %v2078_v28, %v1820_v26  ;;  %v1836_v27 = vld [vmem:[#allocation2 + $0x61] sm:$0x1] }
 0x226   : > { %2316 = vst [vmem:[#allocation2 + $0x3f] sm:$0x1] %v2188_v34  ;;  %v6993_v34 = vld [vmem:[%s8275_s14 + $0x61] sm:$0x1]  ;;  %v2081_v40 = vmul.f32 %v6992_v30, %v8939_v11  ;;  %v2207_v47 = vadd.f32 %v2079_v32, %v1821_v29  ;;  %v1835_v23 = vld [vmem:[#allocation2 + $0x60] sm:$0x1] }
 0x227   : > { %2317 = vst [vmem:[#allocation2 + $0x40] sm:$0x1] %v2189_v38  ;;  %v6994_v38 = vld [vmem:[%s8275_s14 + $0x62] sm:$0x1]  ;;  %v2082_v44 = vmul.f32 %v6993_v34, %v8939_v11  ;;  %v2208_v51 = vadd.f32 %v2080_v36, %v1822_v33  ;;  %v1838_v34 = vld [vmem:[#allocation2 + $0x63] sm:$0x1] }
 0x228   : > { %2318 = vst [vmem:[#allocation2 + $0x41] sm:$0x1] %v2190_v42  ;;  %v6995_v42 = vld [vmem:[%s8275_s14 + $0x63] sm:$0x1]  ;;  %v2083_v48 = vmul.f32 %v6994_v38, %v8939_v11  ;;  %v2209_v55 = vadd.f32 %v2081_v40, %v1823_v37  ;;  %v1837_v30 = vld [vmem:[#allocation2 + $0x62] sm:$0x1] }
 0x229   : > { %2319 = vst [vmem:[#allocation2 + $0x42] sm:$0x1] %v2191_v46  ;;  %v6996_v46 = vld [vmem:[%s8275_s14 + $0x64] sm:$0x1]  ;;  %v2084_v52 = vmul.f32 %v6995_v42, %v8939_v11  ;;  %v2210_v59 = vadd.f32 %v2082_v44, %v1824_v41  ;;  %v1840_v42 = vld [vmem:[#allocation2 + $0x65] sm:$0x1] }
 0x22a   : > { %2320 = vst [vmem:[#allocation2 + $0x43] sm:$0x1] %v2192_v50  ;;  %v6997_v50 = vld [vmem:[%s8275_s14 + $0x65] sm:$0x1]  ;;  %v2085_v56 = vmul.f32 %v6996_v46, %v8939_v11  ;;  %v2211_v63 = vadd.f32 %v2083_v48, %v1825_v45  ;;  %v1839_v38 = vld [vmem:[#allocation2 + $0x64] sm:$0x1] }
 0x22b   : > { %2321 = vst [vmem:[#allocation2 + $0x44] sm:$0x1] %v2193_v54  ;;  %v6998_v54 = vld [vmem:[%s8275_s14 + $0x66] sm:$0x1]  ;;  %v2086_v60 = vmul.f32 %v6997_v50, %v8939_v11  ;;  %v2212_v5 = vadd.f32 %v2084_v52, %v1826_v49  ;;  %v1842_v50 = vld [vmem:[#allocation2 + $0x67] sm:$0x1] }
 0x22c   : > { %2322 = vst [vmem:[#allocation2 + $0x45] sm:$0x1] %v2194_v58  ;;  %v6999_v58 = vld [vmem:[%s8275_s14 + $0x67] sm:$0x1]  ;;  %v2087_v0 = vmul.f32 %v6998_v54, %v8939_v11  ;;  %v2213_v9 = vadd.f32 %v2085_v56, %v1827_v53  ;;  %v1841_v46 = vld [vmem:[#allocation2 + $0x66] sm:$0x1] }
 0x22d   : > { %2323 = vst [vmem:[#allocation2 + $0x46] sm:$0x1] %v2195_v62  ;;  %v7000_v62 = vld [vmem:[%s8275_s14 + $0x68] sm:$0x1]  ;;  %v2088_v6 = vmul.f32 %v6999_v58, %v8939_v11  ;;  %v2214_v14 = vadd.f32 %v2086_v60, %v1828_v57  ;;  %v1844_v58 = vld [vmem:[#allocation2 + $0x69] sm:$0x1] }
 0x22e   : > { %2324 = vst [vmem:[#allocation2 + $0x47] sm:$0x1] %v2196_v4  ;;  %v7001_v4 = vld [vmem:[%s8275_s14 + $0x69] sm:$0x1]  ;;  %v2089_v10 = vmul.f32 %v7000_v62, %v8939_v11  ;;  %v2215_v18 = vadd.f32 %v2087_v0, %v1829_v61  ;;  %v1843_v54 = vld [vmem:[#allocation2 + $0x68] sm:$0x1] }
 0x22f   : > { %2325 = vst [vmem:[#allocation2 + $0x48] sm:$0x1] %v2197_v8  ;;  %v7002_v8 = vld [vmem:[%s8275_s14 + $0x6a] sm:$0x1]  ;;  %v2090_v15 = vmul.f32 %v7001_v4, %v8939_v11  ;;  %v2216_v21 = vadd.f32 %v2088_v6, %v1830_v3  ;;  %v1846_v4 = vld [vmem:[#allocation2 + $0x6b] sm:$0x1] }
 0x230   : > { %2326 = vst [vmem:[#allocation2 + $0x49] sm:$0x1] %v2198_v13  ;;  %v7003_v13 = vld [vmem:[%s8275_s14 + $0x6b] sm:$0x1]  ;;  %v2091_v19 = vmul.f32 %v7002_v8, %v8939_v11  ;;  %v2217_v25 = vadd.f32 %v2089_v10, %v1831_v7  ;;  %v1845_v62 = vld [vmem:[#allocation2 + $0x6a] sm:$0x1] }
 0x231   : > { %2327 = vst [vmem:[#allocation2 + $0x4a] sm:$0x1] %v2199_v17  ;;  %v7004_v17 = vld [vmem:[%s8275_s14 + $0x6e] sm:$0x1]  ;;  %v2092_v22 = vmul.f32 %v7003_v13, %v8939_v11  ;;  %v2218_v28 = vadd.f32 %v2090_v15, %v1832_v12  ;;  %v1847_v8 = vld [vmem:[#allocation2 + $0x6c] sm:$0x1] }
 0x232   : > { %2328 = vst [vmem:[#allocation2 + $0x4b] sm:$0x1] %v2200_v20  ;;  %v7005_v20 = vld [vmem:[%s8275_s14 + $0x6f] sm:$0x1]  ;;  %v2093_v26 = vmul.f32 %v7004_v17, %v8939_v11  ;;  %v2219_v32 = vadd.f32 %v2091_v19, %v1833_v16  ;;  %v1848_v13 = vld [vmem:[#allocation2 + $0x6d] sm:$0x1] }
 0x233   : > { %2329 = vst [vmem:[#allocation2 + $0x4c] sm:$0x1] %v2201_v24  ;;  %v7006_v24 = vld [vmem:[%s8275_s14 + $0x70] sm:$0x1]  ;;  %v2094_v29 = vmul.f32 %v7005_v20, %v8939_v11  ;;  %v2220_v36 = vadd.f32 %v2092_v22, %v1834_v2  ;;  %v1849_v17 = vld [vmem:[#allocation2 + $0x6e] sm:$0x1] }
 0x234   : > { %2330 = vst [vmem:[#allocation2 + $0x4d] sm:$0x1] %v2202_v1  ;;  %v7007_v1 = vld [vmem:[%s8275_s14 + $0x71] sm:$0x1]  ;;  %v2095_v33 = vmul.f32 %v7006_v24, %v8939_v11  ;;  %v2221_v40 = vadd.f32 %v2093_v26, %v1835_v23  ;;  %v1850_v20 = vld [vmem:[#allocation2 + $0x6f] sm:$0x1] }
 0x235   : > { %2331 = vst [vmem:[#allocation2 + $0x4e] sm:$0x1] %v2203_v31  ;;  %v7008_v31 = vld [vmem:[%s8275_s14 + $0x72] sm:$0x1]  ;;  %v2096_v37 = vmul.f32 %v7007_v1, %v8939_v11  ;;  %v2222_v44 = vadd.f32 %v2094_v29, %v1836_v27  ;;  %v1851_v24 = vld [vmem:[#allocation2 + $0x70] sm:$0x1] }
 0x236   : > { %2332 = vst [vmem:[#allocation2 + $0x4f] sm:$0x1] %v2204_v35  ;;  %v7009_v35 = vld [vmem:[%s8275_s14 + $0x73] sm:$0x1]  ;;  %v2097_v41 = vmul.f32 %v7008_v31, %v8939_v11  ;;  %v2223_v48 = vadd.f32 %v2095_v33, %v1837_v30  ;;  %v1852_v1 = vld [vmem:[#allocation2 + $0x71] sm:$0x1] }
 0x237   : > { %2333 = vst [vmem:[#allocation2 + $0x50] sm:$0x1] %v2205_v39  ;;  %v7010_v39 = vld [vmem:[%s8275_s14 + $0x74] sm:$0x1]  ;;  %v2098_v45 = vmul.f32 %v7009_v35, %v8939_v11  ;;  %v2224_v52 = vadd.f32 %v2096_v37, %v1838_v34  ;;  %v1853_v31 = vld [vmem:[#allocation2 + $0x72] sm:$0x1] }
 0x238   : > { %2334 = vst [vmem:[#allocation2 + $0x51] sm:$0x1] %v2206_v43  ;;  %v7011_v43 = vld [vmem:[%s8275_s14 + $0x75] sm:$0x1]  ;;  %v2099_v49 = vmul.f32 %v7010_v39, %v8939_v11  ;;  %v2225_v56 = vadd.f32 %v2097_v41, %v1839_v38  ;;  %v1854_v35 = vld [vmem:[#allocation2 + $0x73] sm:$0x1] }
 0x239   : > { %2335 = vst [vmem:[#allocation2 + $0x52] sm:$0x1] %v2207_v47  ;;  %v7012_v47 = vld [vmem:[%s8275_s14 + $0x76] sm:$0x1]  ;;  %v2100_v53 = vmul.f32 %v7011_v43, %v8939_v11  ;;  %v2226_v60 = vadd.f32 %v2098_v45, %v1840_v42  ;;  %v1855_v39 = vld [vmem:[#allocation2 + $0x74] sm:$0x1] }
 0x23a   : > { %2336 = vst [vmem:[#allocation2 + $0x53] sm:$0x1] %v2208_v51  ;;  %v7013_v51 = vld [vmem:[%s8275_s14 + $0x77] sm:$0x1]  ;;  %v2101_v57 = vmul.f32 %v7012_v47, %v8939_v11  ;;  %v2227_v0 = vadd.f32 %v2099_v49, %v1841_v46  ;;  %v1856_v43 = vld [vmem:[#allocation2 + $0x75] sm:$0x1] }
 0x23b   : > { %2337 = vst [vmem:[#allocation2 + $0x54] sm:$0x1] %v2209_v55  ;;  %v7014_v55 = vld [vmem:[%s8275_s14 + $0x78] sm:$0x1]  ;;  %v2102_v61 = vmul.f32 %v7013_v51, %v8939_v11  ;;  %v2228_v6 = vadd.f32 %v2100_v53, %v1842_v50  ;;  %v1857_v47 = vld [vmem:[#allocation2 + $0x76] sm:$0x1] }
 0x23c   : > { %2338 = vst [vmem:[#allocation2 + $0x55] sm:$0x1] %v2210_v59  ;;  %v7015_v59 = vld [vmem:[%s8275_s14 + $0x79] sm:$0x1]  ;;  %v2103_v3 = vmul.f32 %v7014_v55, %v8939_v11  ;;  %v2229_v10 = vadd.f32 %v2101_v57, %v1843_v54  ;;  %v1858_v51 = vld [vmem:[#allocation2 + $0x77] sm:$0x1] }
 0x23d   : > { %2339 = vst [vmem:[#allocation2 + $0x56] sm:$0x1] %v2211_v63  ;;  %v7016_v63 = vld [vmem:[%s8275_s14 + $0x7a] sm:$0x1]  ;;  %v2104_v7 = vmul.f32 %v7015_v59, %v8939_v11  ;;  %v2230_v15 = vadd.f32 %v2102_v61, %v1844_v58  ;;  %v1859_v55 = vld [vmem:[#allocation2 + $0x78] sm:$0x1] }
 0x23e   : > { %2340 = vst [vmem:[#allocation2 + $0x57] sm:$0x1] %v2212_v5  ;;  %v7017_v5 = vld [vmem:[%s8275_s14 + $0x7b] sm:$0x1]  ;;  %v2105_v12 = vmul.f32 %v7016_v63, %v8939_v11  ;;  %v2231_v19 = vadd.f32 %v2103_v3, %v1845_v62  ;;  %v1860_v59 = vld [vmem:[#allocation2 + $0x79] sm:$0x1] }
 0x23f   : > { %2341 = vst [vmem:[#allocation2 + $0x58] sm:$0x1] %v2213_v9  ;;  %v7018_v9 = vld [vmem:[%s8275_s14 + $0x7c] sm:$0x1]  ;;  %v2106_v16 = vmul.f32 %v7017_v5, %v8939_v11  ;;  %v2232_v22 = vadd.f32 %v2104_v7, %v1846_v4  ;;  %v1861_v63 = vld [vmem:[#allocation2 + $0x7a] sm:$0x1] }
 0x240   : > { %2342 = vst [vmem:[#allocation2 + $0x59] sm:$0x1] %v2214_v14  ;;  %v7019_v14 = vld [vmem:[%s8275_s14 + $0x7d] sm:$0x1]  ;;  %v2107_v2 = vmul.f32 %v7018_v9, %v8939_v11  ;;  %v2233_v26 = vadd.f32 %v2105_v12, %v1847_v8  ;;  %v1862_v5 = vld [vmem:[#allocation2 + $0x7b] sm:$0x1] }
 0x241   : > { %2343 = vst [vmem:[#allocation2 + $0x5a] sm:$0x1] %v2215_v18  ;;  %v7020_v18 = vld [vmem:[%s8275_s14 + $0x80] sm:$0x1]  ;;  %v2108_v23 = vmul.f32 %v7019_v14, %v8939_v11  ;;  %v2234_v29 = vadd.f32 %v2106_v16, %v1848_v13  ;;  %v1863_v9 = vld [vmem:[#allocation2 + $0x7c] sm:$0x1] }
 0x242   : > { %2344 = vst [vmem:[#allocation2 + $0x5b] sm:$0x1] %v2216_v21  ;;  %v7021_v21 = vld [vmem:[%s8275_s14 + $0x81] sm:$0x1]  ;;  %v2109_v27 = vmul.f32 %v7020_v18, %v8939_v11  ;;  %v2235_v33 = vadd.f32 %v2107_v2, %v1849_v17  ;;  %v1864_v14 = vld [vmem:[#allocation2 + $0x7d] sm:$0x1]  ;;  %v9200_v2 = vstv %s9181_s22 }
 0x243   : > { %2345 = vst [vmem:[#allocation2 + $0x5c] sm:$0x1] %v2217_v25  ;;  %v7022_v25 = vld [vmem:[%s8275_s14 + $0x82] sm:$0x1]  ;;  %v2110_v30 = vmul.f32 %v7021_v21, %v8939_v11  ;;  %v2236_v37 = vadd.f32 %v2108_v23, %v1850_v20  ;;  %v1865_v18 = vld [vmem:[#allocation2 + $0x7e] sm:$0x1] }
 0x244   : > { %2346 = vst [vmem:[#allocation2 + $0x5d] sm:$0x1] %v2218_v28  ;;  %v7023_v28 = vld [vmem:[%s8275_s14 + $0x83] sm:$0x1]  ;;  %v2111_v34 = vmul.f32 %v7022_v25, %v8939_v11  ;;  %v2237_v41 = vadd.f32 %v2109_v27, %v1851_v24  ;;  %v7037_v23 = vld [vmem:[%s8275_s14 + $0x13] sm:$0x1] }
 0x245   : > { %2347 = vst [vmem:[#allocation2 + $0x5e] sm:$0x1] %v2219_v32  ;;  %v7024_v32 = vld [vmem:[%s8275_s14 + $0x84] sm:$0x1]  ;;  %v2112_v38 = vmul.f32 %v7023_v28, %v8939_v11  ;;  %v2238_v45 = vadd.f32 %v2110_v30, %v1852_v1  ;;  %v7038_v27 = vld [vmem:[%s8275_s14 + $0x14] sm:$0x1] }
 0x246   : > { %2348 = vst [vmem:[#allocation2 + $0x5f] sm:$0x1] %v2220_v36  ;;  %v7025_v36 = vld [vmem:[%s8275_s14 + $0x85] sm:$0x1]  ;;  %v2113_v42 = vmul.f32 %v7024_v32, %v8939_v11  ;;  %v2239_v49 = vadd.f32 %v2111_v34, %v1853_v31  ;;  %v7039_v30 = vld [vmem:[%s8275_s14 + $0x15] sm:$0x1]  ;;  %v2608_v32 = vmul.f32 %v7037_v23, %v9200_v2 }
 0x247   : > { %2349 = vst [vmem:[#allocation2 + $0x60] sm:$0x1] %v2221_v40  ;;  %v7026_v40 = vld [vmem:[%s8275_s14 + $0x86] sm:$0x1]  ;;  %v2114_v46 = vmul.f32 %v7025_v36, %v8939_v11  ;;  %v2240_v53 = vadd.f32 %v2112_v38, %v1854_v35  ;;  %v7040_v34 = vld [vmem:[%s8275_s14 + $0x16] sm:$0x1] }
 0x248   : > { %2350 = vst [vmem:[#allocation2 + $0x61] sm:$0x1] %v2222_v44  ;;  %v7027_v44 = vld [vmem:[%s8275_s14 + $0x87] sm:$0x1]  ;;  %v2115_v50 = vmul.f32 %v7026_v40, %v8939_v11  ;;  %v2241_v57 = vadd.f32 %v2113_v42, %v1855_v39  ;;  %v2384_v36 = vld [vmem:[#allocation2 + $0x3] sm:$0x1]  ;;  %v2610_v39 = vmul.f32 %v7039_v30, %v9200_v2 }
 0x249   : > { %2351 = vst [vmem:[#allocation2 + $0x62] sm:$0x1] %v2223_v48  ;;  %v7028_v48 = vld [vmem:[%s8275_s14 + $0x88] sm:$0x1]  ;;  %v2116_v54 = vmul.f32 %v7027_v44, %v8939_v11  ;;  %v2242_v61 = vadd.f32 %v2114_v46, %v1856_v43  ;;  %v2385_v40 = vld [vmem:[#allocation2 + $0x4] sm:$0x1]  ;;  %v2611_v43 = vmul.f32 %v7040_v34, %v9200_v2 }
 0x24a   : > { %2352 = vst [vmem:[#allocation2 + $0x63] sm:$0x1] %v2224_v52  ;;  %v7029_v52 = vld [vmem:[%s8275_s14 + $0x89] sm:$0x1]  ;;  %v2117_v58 = vmul.f32 %v7028_v48, %v8939_v11  ;;  %v2243_v3 = vadd.f32 %v2115_v50, %v1857_v47  ;;  %v2386_v44 = vld [vmem:[#allocation2 + $0x5] sm:$0x1] }
 0x24b   : > { %2353 = vst [vmem:[#allocation2 + $0x64] sm:$0x1] %v2225_v56  ;;  %v7030_v56 = vld [vmem:[%s8275_s14 + $0x8a] sm:$0x1]  ;;  %v2118_v62 = vmul.f32 %v7029_v52, %v8939_v11  ;;  %v2244_v7 = vadd.f32 %v2116_v54, %v1858_v51  ;;  %v2387_v48 = vld [vmem:[#allocation2 + $0x6] sm:$0x1]  ;;  %v2722_v54 = vadd.f32 %v2610_v39, %v2384_v36 }
 0x24c   : > { %2354 = vst [vmem:[#allocation2 + $0x65] sm:$0x1] %v2226_v60  ;;  %v7031_v60 = vld [vmem:[%s8275_s14 + $0x8b] sm:$0x1]  ;;  %v2119_v4 = vmul.f32 %v7030_v56, %v8939_v11  ;;  %v2245_v12 = vadd.f32 %v2117_v58, %v1859_v55  ;;  %v2388_v52 = vld [vmem:[#allocation2 + $0x7] sm:$0x1]  ;;  %v2723_v58 = vadd.f32 %v2611_v43, %v2385_v40 }
 0x24d   : > { %2355 = vst [vmem:[#allocation2 + $0x66] sm:$0x1] %v2227_v0  ;;  %v7032_v0 = vld [vmem:[%s8275_s14 + $0x8c] sm:$0x1]  ;;  %v2120_v8 = vmul.f32 %v7031_v60, %v8939_v11  ;;  %v2246_v16 = vadd.f32 %v2118_v62, %v1860_v59  ;;  %v2389_v56 = vld [vmem:[#allocation2 + $0x8] sm:$0x1] }
 0x24e   : > { %2356 = vst [vmem:[#allocation2 + $0x67] sm:$0x1] %v2228_v6  ;;  %v7033_v6 = vld [vmem:[%s8275_s14 + $0x8d] sm:$0x1]  ;;  %v2121_v13 = vmul.f32 %v7032_v0, %v8939_v11  ;;  %v2247_v20 = vadd.f32 %v2119_v4, %v1861_v63  ;;  %v2390_v60 = vld [vmem:[#allocation2 + $0x9] sm:$0x1] }
 0x24f   : > { %2357 = vst [vmem:[#allocation2 + $0x68] sm:$0x1] %v2229_v10  ;;  %v7034_v10 = vld [vmem:[%s8275_s14 + $0x8e] sm:$0x1]  ;;  %v2122_v17 = vmul.f32 %v7033_v6, %v8939_v11  ;;  %v2248_v24 = vadd.f32 %v2120_v8, %v1862_v5  ;;  %v2391_v0 = vld [vmem:[#allocation2 + $0xa] sm:$0x1] }
 0x250   : > { %2358 = vst [vmem:[#allocation2 + $0x69] sm:$0x1] %v2230_v15  ;;  %v7035_v15 = vld [vmem:[%s8275_s14 + $0x8f] sm:$0x1]  ;;  %v2123_v21 = vmul.f32 %v7034_v10, %v8939_v11  ;;  %v2249_v1 = vadd.f32 %v2121_v13, %v1863_v9  ;;  %v2392_v6 = vld [vmem:[#allocation2 + $0xb] sm:$0x1] }
 0x251   : > { %2359 = vst [vmem:[#allocation2 + $0x6a] sm:$0x1] %v2231_v19  ;;  %v7036_v19 = vld [vmem:[%s8275_s14 + $0x12] sm:$0x1]  ;;  %v2124_v25 = vmul.f32 %v7035_v15, %v8939_v11  ;;  %v2250_v31 = vadd.f32 %v2122_v17, %v1864_v14  ;;  %v2609_v11 = vmul.f32 %v7038_v27, %v9200_v2  ;;  %v2393_v10 = vld [vmem:[#allocation2 + $0xc] sm:$0x1] }
 0x252   : > { %2360 = vst [vmem:[#allocation2 + $0x6b] sm:$0x1] %v2232_v22  ;;  %v1866_v22 = vld [vmem:[#allocation2 + $0x7f] sm:$0x1]  ;;  %v2607_v28 = vmul.f32 %v7036_v19, %v9200_v2  ;;  %v2251_v35 = vadd.f32 %v2123_v21, %v1865_v18  ;;  %v2394_v15 = vld [vmem:[#allocation2 + $0xd] sm:$0x1] }
 0x253   : > { %2361 = vst [vmem:[#allocation2 + $0x6c] sm:$0x1] %v2233_v26  ;;  %v2381_v26 = vld [vmem:[#allocation2] sm:$0x1]  ;;  %v2252_v38 = vadd.f32 %v2124_v25, %v1866_v22  ;;  %v2395_v19 = vld [vmem:[#allocation2 + $0xe] sm:$0x1] }
 0x254   : > { %2362 = vst [vmem:[#allocation2 + $0x6d] sm:$0x1] %v2234_v29  ;;  %v2382_v29 = vld [vmem:[#allocation2 + $0x1] sm:$0x1]  ;;  %v2719_v42 = vadd.f32 %v2607_v28, %v2381_v26  ;;  %v2396_v23 = vld [vmem:[#allocation2 + $0xf] sm:$0x1] }
 0x255   : > { %2363 = vst [vmem:[#allocation2 + $0x6e] sm:$0x1] %v2235_v33  ;;  %v2383_v33 = vld [vmem:[#allocation2 + $0x2] sm:$0x1]  ;;  %v2720_v46 = vadd.f32 %v2608_v32, %v2382_v29  ;;  %v2397_v27 = vld [vmem:[#allocation2 + $0x10] sm:$0x1] }
 0x256   : > { %2364 = vst [vmem:[#allocation2 + $0x6f] sm:$0x1] %v2236_v37  ;;  %v7041_v37 = vld [vmem:[%s8275_s14 + $0x17] sm:$0x1]  ;;  %v2721_v50 = vadd.f32 %v2609_v11, %v2383_v33  ;;  %v2398_v30 = vld [vmem:[#allocation2 + $0x11] sm:$0x1] }
 0x257   : > { %2365 = vst [vmem:[#allocation2 + $0x70] sm:$0x1] %v2237_v41  ;;  %v7042_v41 = vld [vmem:[%s8275_s14 + $0x18] sm:$0x1]  ;;  %v2612_v47 = vmul.f32 %v7041_v37, %v9200_v2  ;;  %v2399_v34 = vld [vmem:[#allocation2 + $0x12] sm:$0x1] }
 0x258   : > { %2366 = vst [vmem:[#allocation2 + $0x71] sm:$0x1] %v2238_v45  ;;  %v7043_v45 = vld [vmem:[%s8275_s14 + $0x19] sm:$0x1]  ;;  %v2613_v51 = vmul.f32 %v7042_v41, %v9200_v2  ;;  %v2400_v37 = vld [vmem:[#allocation2 + $0x13] sm:$0x1] }
 0x259   : > { %2367 = vst [vmem:[#allocation2 + $0x72] sm:$0x1] %v2239_v49  ;;  %v7044_v49 = vld [vmem:[%s8275_s14 + $0x1a] sm:$0x1]  ;;  %v2614_v55 = vmul.f32 %v7043_v45, %v9200_v2  ;;  %v2724_v62 = vadd.f32 %v2612_v47, %v2386_v44  ;;  %v2401_v41 = vld [vmem:[#allocation2 + $0x14] sm:$0x1] }
 0x25a   : > { %2368 = vst [vmem:[#allocation2 + $0x73] sm:$0x1] %v2240_v53  ;;  %v7045_v53 = vld [vmem:[%s8275_s14 + $0x1b] sm:$0x1]  ;;  %v2615_v59 = vmul.f32 %v7044_v49, %v9200_v2  ;;  %v2725_v4 = vadd.f32 %v2613_v51, %v2387_v48  ;;  %v2402_v45 = vld [vmem:[#allocation2 + $0x15] sm:$0x1] }
 0x25b   : > { %2369 = vst [vmem:[#allocation2 + $0x74] sm:$0x1] %v2241_v57  ;;  %v7046_v57 = vld [vmem:[%s8275_s14 + $0x1c] sm:$0x1]  ;;  %v2616_v63 = vmul.f32 %v7045_v53, %v9200_v2  ;;  %v2726_v8 = vadd.f32 %v2614_v55, %v2388_v52  ;;  %v2403_v49 = vld [vmem:[#allocation2 + $0x16] sm:$0x1] }
 0x25c   : > { %2370 = vst [vmem:[#allocation2 + $0x75] sm:$0x1] %v2242_v61  ;;  %v7047_v61 = vld [vmem:[%s8275_s14 + $0x1d] sm:$0x1]  ;;  %v2617_v5 = vmul.f32 %v7046_v57, %v9200_v2  ;;  %v2727_v13 = vadd.f32 %v2615_v59, %v2389_v56  ;;  %v2404_v53 = vld [vmem:[#allocation2 + $0x17] sm:$0x1] }
 0x25d   : > { %2371 = vst [vmem:[#allocation2 + $0x76] sm:$0x1] %v2243_v3  ;;  %v7048_v3 = vld [vmem:[%s8275_s14 + $0x1e] sm:$0x1]  ;;  %v2618_v9 = vmul.f32 %v7047_v61, %v9200_v2  ;;  %v2728_v17 = vadd.f32 %v2616_v63, %v2390_v60  ;;  %v2405_v57 = vld [vmem:[#allocation2 + $0x18] sm:$0x1] }
 0x25e   : > { %2372 = vst [vmem:[#allocation2 + $0x77] sm:$0x1] %v2244_v7  ;;  %v7049_v7 = vld [vmem:[%s8275_s14 + $0x1f] sm:$0x1]  ;;  %v2619_v14 = vmul.f32 %v7048_v3, %v9200_v2  ;;  %v2729_v21 = vadd.f32 %v2617_v5, %v2391_v0  ;;  %v2406_v61 = vld [vmem:[#allocation2 + $0x19] sm:$0x1] }
 0x25f   : > { %2373 = vst [vmem:[#allocation2 + $0x78] sm:$0x1] %v2245_v12  ;;  %v7050_v12 = vld [vmem:[%s8275_s14 + $0x20] sm:$0x1]  ;;  %v2620_v18 = vmul.f32 %v7049_v7, %v9200_v2  ;;  %v2730_v25 = vadd.f32 %v2618_v9, %v2392_v6  ;;  %v2407_v3 = vld [vmem:[#allocation2 + $0x1a] sm:$0x1] }
 0x260   : > { %2374 = vst [vmem:[#allocation2 + $0x79] sm:$0x1] %v2246_v16  ;;  %v7051_v16 = vld [vmem:[%s8275_s14 + $0x21] sm:$0x1]  ;;  %v2621_v22 = vmul.f32 %v7050_v12, %v9200_v2  ;;  %v2731_v28 = vadd.f32 %v2619_v14, %v2393_v10  ;;  %v2408_v7 = vld [vmem:[#allocation2 + $0x1b] sm:$0x1] }
 0x261   : > { %2375 = vst [vmem:[#allocation2 + $0x7a] sm:$0x1] %v2247_v20  ;;  %v7052_v20 = vld [vmem:[%s8275_s14 + $0x24] sm:$0x1]  ;;  %v2622_v26 = vmul.f32 %v7051_v16, %v9200_v2  ;;  %v2732_v32 = vadd.f32 %v2620_v18, %v2394_v15  ;;  %v2409_v12 = vld [vmem:[#allocation2 + $0x1c] sm:$0x1] }
 0x262   : > { %2376 = vst [vmem:[#allocation2 + $0x7b] sm:$0x1] %v2248_v24  ;;  %v7053_v24 = vld [vmem:[%s8275_s14 + $0x25] sm:$0x1]  ;;  %v2623_v29 = vmul.f32 %v7052_v20, %v9200_v2  ;;  %v2733_v11 = vadd.f32 %v2621_v22, %v2395_v19  ;;  %v2410_v16 = vld [vmem:[#allocation2 + $0x1d] sm:$0x1] }
 0x263   : > { %2377 = vst [vmem:[#allocation2 + $0x7c] sm:$0x1] %v2249_v1  ;;  %v7054_v1 = vld [vmem:[%s8275_s14 + $0x26] sm:$0x1]  ;;  %v2624_v33 = vmul.f32 %v7053_v24, %v9200_v2  ;;  %v2734_v39 = vadd.f32 %v2622_v26, %v2396_v23  ;;  %v2411_v20 = vld [vmem:[#allocation2 + $0x1e] sm:$0x1] }
 0x264   : > { %2378 = vst [vmem:[#allocation2 + $0x7d] sm:$0x1] %v2250_v31  ;;  %v7055_v31 = vld [vmem:[%s8275_s14 + $0x27] sm:$0x1]  ;;  %v2625_v36 = vmul.f32 %v7054_v1, %v9200_v2  ;;  %v2735_v43 = vadd.f32 %v2623_v29, %v2397_v27  ;;  %v2412_v24 = vld [vmem:[#allocation2 + $0x1f] sm:$0x1] }
 0x265   : > { %2379 = vst [vmem:[#allocation2 + $0x7e] sm:$0x1] %v2251_v35  ;;  %v7056_v35 = vld [vmem:[%s8275_s14 + $0x28] sm:$0x1]  ;;  %v2626_v40 = vmul.f32 %v7055_v31, %v9200_v2  ;;  %v2736_v47 = vadd.f32 %v2624_v33, %v2398_v30  ;;  %v2413_v1 = vld [vmem:[#allocation2 + $0x20] sm:$0x1] }
 0x266   : > { %2380 = vst [vmem:[#allocation2 + $0x7f] sm:$0x1] %v2252_v38  ;;  %v7057_v38 = vld [vmem:[%s8275_s14 + $0x29] sm:$0x1]  ;;  %v2627_v44 = vmul.f32 %v7056_v35, %v9200_v2  ;;  %v2737_v51 = vadd.f32 %v2625_v36, %v2399_v34  ;;  %v2414_v31 = vld [vmem:[#allocation2 + $0x21] sm:$0x1] }
 0x267   : > { %2831 = vst [vmem:[#allocation2] sm:$0x1] %v2719_v42  ;;  %v7058_v42 = vld [vmem:[%s8275_s14 + $0x2a] sm:$0x1]  ;;  %v2628_v48 = vmul.f32 %v7057_v38, %v9200_v2  ;;  %v2738_v55 = vadd.f32 %v2626_v40, %v2400_v37  ;;  %v2415_v35 = vld [vmem:[#allocation2 + $0x22] sm:$0x1] }
 0x268   : > { %2832 = vst [vmem:[#allocation2 + $0x1] sm:$0x1] %v2720_v46  ;;  %v7059_v46 = vld [vmem:[%s8275_s14 + $0x2b] sm:$0x1]  ;;  %v2629_v52 = vmul.f32 %v7058_v42, %v9200_v2  ;;  %v2739_v59 = vadd.f32 %v2627_v44, %v2401_v41  ;;  %v2416_v38 = vld [vmem:[#allocation2 + $0x23] sm:$0x1] }
 0x269   : > { %2833 = vst [vmem:[#allocation2 + $0x2] sm:$0x1] %v2721_v50  ;;  %v7060_v50 = vld [vmem:[%s8275_s14 + $0x2c] sm:$0x1]  ;;  %v2630_v56 = vmul.f32 %v7059_v46, %v9200_v2  ;;  %v2740_v63 = vadd.f32 %v2628_v48, %v2402_v45  ;;  %v2417_v42 = vld [vmem:[#allocation2 + $0x24] sm:$0x1] }
 0x26a   : > { %2834 = vst [vmem:[#allocation2 + $0x3] sm:$0x1] %v2722_v54  ;;  %v7061_v54 = vld [vmem:[%s8275_s14 + $0x2d] sm:$0x1]  ;;  %v2631_v60 = vmul.f32 %v7060_v50, %v9200_v2  ;;  %v2741_v5 = vadd.f32 %v2629_v52, %v2403_v49  ;;  %v2418_v46 = vld [vmem:[#allocation2 + $0x25] sm:$0x1] }
 0x26b   : > { %2835 = vst [vmem:[#allocation2 + $0x4] sm:$0x1] %v2723_v58  ;;  %v7062_v58 = vld [vmem:[%s8275_s14 + $0x2e] sm:$0x1]  ;;  %v2632_v0 = vmul.f32 %v7061_v54, %v9200_v2  ;;  %v2742_v9 = vadd.f32 %v2630_v56, %v2404_v53  ;;  %v2419_v50 = vld [vmem:[#allocation2 + $0x26] sm:$0x1] }
 0x26c   : > { %2836 = vst [vmem:[#allocation2 + $0x5] sm:$0x1] %v2724_v62  ;;  %v7063_v62 = vld [vmem:[%s8275_s14 + $0x2f] sm:$0x1]  ;;  %v2633_v6 = vmul.f32 %v7062_v58, %v9200_v2  ;;  %v2743_v14 = vadd.f32 %v2631_v60, %v2405_v57  ;;  %v2420_v54 = vld [vmem:[#allocation2 + $0x27] sm:$0x1] }
 0x26d   : > { %2837 = vst [vmem:[#allocation2 + $0x6] sm:$0x1] %v2725_v4  ;;  %v7064_v4 = vld [vmem:[%s8275_s14 + $0x30] sm:$0x1]  ;;  %v2634_v10 = vmul.f32 %v7063_v62, %v9200_v2  ;;  %v2744_v18 = vadd.f32 %v2632_v0, %v2406_v61  ;;  %v2421_v58 = vld [vmem:[#allocation2 + $0x28] sm:$0x1] }
 0x26e   : > { %2838 = vst [vmem:[#allocation2 + $0x7] sm:$0x1] %v2726_v8  ;;  %v7065_v8 = vld [vmem:[%s8275_s14 + $0x31] sm:$0x1]  ;;  %v2635_v15 = vmul.f32 %v7064_v4, %v9200_v2  ;;  %v2745_v22 = vadd.f32 %v2633_v6, %v2407_v3  ;;  %v2422_v62 = vld [vmem:[#allocation2 + $0x29] sm:$0x1] }
 0x26f   : > { %2839 = vst [vmem:[#allocation2 + $0x8] sm:$0x1] %v2727_v13  ;;  %v7066_v13 = vld [vmem:[%s8275_s14 + $0x32] sm:$0x1]  ;;  %v2636_v19 = vmul.f32 %v7065_v8, %v9200_v2  ;;  %v2746_v26 = vadd.f32 %v2634_v10, %v2408_v7  ;;  %v2423_v4 = vld [vmem:[#allocation2 + $0x2a] sm:$0x1] }
 0x270   : > { %2840 = vst [vmem:[#allocation2 + $0x9] sm:$0x1] %v2728_v17  ;;  %v7067_v17 = vld [vmem:[%s8275_s14 + $0x33] sm:$0x1]  ;;  %v2637_v23 = vmul.f32 %v7066_v13, %v9200_v2  ;;  %v2747_v29 = vadd.f32 %v2635_v15, %v2409_v12  ;;  %v2424_v8 = vld [vmem:[#allocation2 + $0x2b] sm:$0x1] }
 0x271   : > { %2841 = vst [vmem:[#allocation2 + $0xa] sm:$0x1] %v2729_v21  ;;  %v7068_v21 = vld [vmem:[%s8275_s14 + $0x36] sm:$0x1]  ;;  %v2638_v27 = vmul.f32 %v7067_v17, %v9200_v2  ;;  %v2748_v33 = vadd.f32 %v2636_v19, %v2410_v16  ;;  %v2425_v13 = vld [vmem:[#allocation2 + $0x2c] sm:$0x1] }
 0x272   : > { %2842 = vst [vmem:[#allocation2 + $0xb] sm:$0x1] %v2730_v25  ;;  %v7069_v25 = vld [vmem:[%s8275_s14 + $0x37] sm:$0x1]  ;;  %v2639_v30 = vmul.f32 %v7068_v21, %v9200_v2  ;;  %v2749_v36 = vadd.f32 %v2637_v23, %v2411_v20  ;;  %v2426_v17 = vld [vmem:[#allocation2 + $0x2d] sm:$0x1] }
 0x273   : > { %2843 = vst [vmem:[#allocation2 + $0xc] sm:$0x1] %v2731_v28  ;;  %v7070_v28 = vld [vmem:[%s8275_s14 + $0x38] sm:$0x1]  ;;  %v2640_v34 = vmul.f32 %v7069_v25, %v9200_v2  ;;  %v2750_v40 = vadd.f32 %v2638_v27, %v2412_v24  ;;  %v2427_v21 = vld [vmem:[#allocation2 + $0x2e] sm:$0x1] }
 0x274   : > { %2844 = vst [vmem:[#allocation2 + $0xd] sm:$0x1] %v2732_v32  ;;  %v7071_v32 = vld [vmem:[%s8275_s14 + $0x39] sm:$0x1]  ;;  %v2641_v37 = vmul.f32 %v7070_v28, %v9200_v2  ;;  %v2751_v44 = vadd.f32 %v2639_v30, %v2413_v1  ;;  %v2428_v25 = vld [vmem:[#allocation2 + $0x2f] sm:$0x1] }
 0x275   : > { %2845 = vst [vmem:[#allocation2 + $0xe] sm:$0x1] %v2733_v11  ;;  %v7072_v11 = vld [vmem:[%s8275_s14 + $0x3a] sm:$0x1]  ;;  %v2642_v41 = vmul.f32 %v7071_v32, %v9200_v2  ;;  %v2752_v48 = vadd.f32 %v2640_v34, %v2414_v31  ;;  %v2429_v28 = vld [vmem:[#allocation2 + $0x30] sm:$0x1] }
 0x276   : > { %2846 = vst [vmem:[#allocation2 + $0xf] sm:$0x1] %v2734_v39  ;;  %v7073_v39 = vld [vmem:[%s8275_s14 + $0x3b] sm:$0x1]  ;;  %v2643_v45 = vmul.f32 %v7072_v11, %v9200_v2  ;;  %v2753_v52 = vadd.f32 %v2641_v37, %v2415_v35  ;;  %v2430_v32 = vld [vmem:[#allocation2 + $0x31] sm:$0x1] }
 0x277   : > { %2847 = vst [vmem:[#allocation2 + $0x10] sm:$0x1] %v2735_v43  ;;  %v7074_v43 = vld [vmem:[%s8275_s14 + $0x3c] sm:$0x1]  ;;  %v2644_v49 = vmul.f32 %v7073_v39, %v9200_v2  ;;  %v2754_v56 = vadd.f32 %v2642_v41, %v2416_v38  ;;  %v2431_v11 = vld [vmem:[#allocation2 + $0x32] sm:$0x1] }
 0x278   : > { %2848 = vst [vmem:[#allocation2 + $0x11] sm:$0x1] %v2736_v47  ;;  %v7075_v47 = vld [vmem:[%s8275_s14 + $0x3d] sm:$0x1]  ;;  %v2645_v53 = vmul.f32 %v7074_v43, %v9200_v2  ;;  %v2755_v60 = vadd.f32 %v2643_v45, %v2417_v42  ;;  %v2432_v39 = vld [vmem:[#allocation2 + $0x33] sm:$0x1] }
 0x279   : > { %2849 = vst [vmem:[#allocation2 + $0x12] sm:$0x1] %v2737_v51  ;;  %v7076_v51 = vld [vmem:[%s8275_s14 + $0x3e] sm:$0x1]  ;;  %v2646_v57 = vmul.f32 %v7075_v47, %v9200_v2  ;;  %v2756_v0 = vadd.f32 %v2644_v49, %v2418_v46  ;;  %v2433_v43 = vld [vmem:[#allocation2 + $0x34] sm:$0x1] }
 0x27a   : > { %2850 = vst [vmem:[#allocation2 + $0x13] sm:$0x1] %v2738_v55  ;;  %v7077_v55 = vld [vmem:[%s8275_s14 + $0x3f] sm:$0x1]  ;;  %v2647_v61 = vmul.f32 %v7076_v51, %v9200_v2  ;;  %v2757_v6 = vadd.f32 %v2645_v53, %v2419_v50  ;;  %v2434_v47 = vld [vmem:[#allocation2 + $0x35] sm:$0x1] }
 0x27b   : > { %2851 = vst [vmem:[#allocation2 + $0x14] sm:$0x1] %v2739_v59  ;;  %v7078_v59 = vld [vmem:[%s8275_s14 + $0x40] sm:$0x1]  ;;  %v2648_v3 = vmul.f32 %v7077_v55, %v9200_v2  ;;  %v2758_v10 = vadd.f32 %v2646_v57, %v2420_v54  ;;  %v2435_v51 = vld [vmem:[#allocation2 + $0x36] sm:$0x1] }
 0x27c   : > { %2852 = vst [vmem:[#allocation2 + $0x15] sm:$0x1] %v2740_v63  ;;  %v7079_v63 = vld [vmem:[%s8275_s14 + $0x41] sm:$0x1]  ;;  %v2649_v7 = vmul.f32 %v7078_v59, %v9200_v2  ;;  %v2759_v15 = vadd.f32 %v2647_v61, %v2421_v58  ;;  %v2436_v55 = vld [vmem:[#allocation2 + $0x37] sm:$0x1] }
 0x27d   : > { %2853 = vst [vmem:[#allocation2 + $0x16] sm:$0x1] %v2741_v5  ;;  %v7080_v5 = vld [vmem:[%s8275_s14 + $0x42] sm:$0x1]  ;;  %v2650_v12 = vmul.f32 %v7079_v63, %v9200_v2  ;;  %v2760_v19 = vadd.f32 %v2648_v3, %v2422_v62  ;;  %v2437_v59 = vld [vmem:[#allocation2 + $0x38] sm:$0x1] }
 0x27e   : > { %2854 = vst [vmem:[#allocation2 + $0x17] sm:$0x1] %v2742_v9  ;;  %v7081_v9 = vld [vmem:[%s8275_s14 + $0x43] sm:$0x1]  ;;  %v2651_v16 = vmul.f32 %v7080_v5, %v9200_v2  ;;  %v2761_v23 = vadd.f32 %v2649_v7, %v2423_v4  ;;  %v2438_v63 = vld [vmem:[#allocation2 + $0x39] sm:$0x1] }
 0x27f   : > { %2855 = vst [vmem:[#allocation2 + $0x18] sm:$0x1] %v2743_v14  ;;  %v7082_v14 = vld [vmem:[%s8275_s14 + $0x44] sm:$0x1]  ;;  %v2652_v20 = vmul.f32 %v7081_v9, %v9200_v2  ;;  %v2762_v27 = vadd.f32 %v2650_v12, %v2424_v8  ;;  %v2439_v5 = vld [vmem:[#allocation2 + $0x3a] sm:$0x1] }
 0x280   : > { %2856 = vst [vmem:[#allocation2 + $0x19] sm:$0x1] %v2744_v18  ;;  %v7083_v18 = vld [vmem:[%s8275_s14 + $0x45] sm:$0x1]  ;;  %v2653_v24 = vmul.f32 %v7082_v14, %v9200_v2  ;;  %v2763_v30 = vadd.f32 %v2651_v16, %v2425_v13  ;;  %v2440_v9 = vld [vmem:[#allocation2 + $0x3b] sm:$0x1] }
 0x281   : > { %2857 = vst [vmem:[#allocation2 + $0x1a] sm:$0x1] %v2745_v22  ;;  %v7084_v22 = vld [vmem:[%s8275_s14 + $0x48] sm:$0x1]  ;;  %v2654_v1 = vmul.f32 %v7083_v18, %v9200_v2  ;;  %v2764_v34 = vadd.f32 %v2652_v20, %v2426_v17  ;;  %v2441_v14 = vld [vmem:[#allocation2 + $0x3c] sm:$0x1] }
 0x282   : > { %2858 = vst [vmem:[#allocation2 + $0x1b] sm:$0x1] %v2746_v26  ;;  %v7085_v26 = vld [vmem:[%s8275_s14 + $0x49] sm:$0x1]  ;;  %v2655_v31 = vmul.f32 %v7084_v22, %v9200_v2  ;;  %v2765_v37 = vadd.f32 %v2653_v24, %v2427_v21  ;;  %v2442_v18 = vld [vmem:[#allocation2 + $0x3d] sm:$0x1] }
 0x283   : > { %2859 = vst [vmem:[#allocation2 + $0x1c] sm:$0x1] %v2747_v29  ;;  %v7086_v29 = vld [vmem:[%s8275_s14 + $0x4a] sm:$0x1]  ;;  %v2656_v35 = vmul.f32 %v7085_v26, %v9200_v2  ;;  %v2766_v41 = vadd.f32 %v2654_v1, %v2428_v25  ;;  %v2443_v22 = vld [vmem:[#allocation2 + $0x3e] sm:$0x1] }
 0x284   : > { %2860 = vst [vmem:[#allocation2 + $0x1d] sm:$0x1] %v2748_v33  ;;  %v7087_v33 = vld [vmem:[%s8275_s14 + $0x4b] sm:$0x1]  ;;  %v2657_v38 = vmul.f32 %v7086_v29, %v9200_v2  ;;  %v2767_v45 = vadd.f32 %v2655_v31, %v2429_v28  ;;  %v2444_v26 = vld [vmem:[#allocation2 + $0x3f] sm:$0x1] }
 0x285   : > { %2861 = vst [vmem:[#allocation2 + $0x1e] sm:$0x1] %v2749_v36  ;;  %v7088_v36 = vld [vmem:[%s8275_s14 + $0x4c] sm:$0x1]  ;;  %v2658_v42 = vmul.f32 %v7087_v33, %v9200_v2  ;;  %v2768_v49 = vadd.f32 %v2656_v35, %v2430_v32  ;;  %v2445_v29 = vld [vmem:[#allocation2 + $0x40] sm:$0x1] }
 0x286   : > { %2862 = vst [vmem:[#allocation2 + $0x1f] sm:$0x1] %v2750_v40  ;;  %v7089_v40 = vld [vmem:[%s8275_s14 + $0x4d] sm:$0x1]  ;;  %v2659_v46 = vmul.f32 %v7088_v36, %v9200_v2  ;;  %v2769_v53 = vadd.f32 %v2657_v38, %v2431_v11  ;;  %v2446_v33 = vld [vmem:[#allocation2 + $0x41] sm:$0x1] }
 0x287   : > { %2863 = vst [vmem:[#allocation2 + $0x20] sm:$0x1] %v2751_v44  ;;  %v7090_v44 = vld [vmem:[%s8275_s14 + $0x4e] sm:$0x1]  ;;  %v2660_v50 = vmul.f32 %v7089_v40, %v9200_v2  ;;  %v2770_v57 = vadd.f32 %v2658_v42, %v2432_v39  ;;  %v2447_v36 = vld [vmem:[#allocation2 + $0x42] sm:$0x1] }
 0x288   : > { %2864 = vst [vmem:[#allocation2 + $0x21] sm:$0x1] %v2752_v48  ;;  %v7091_v48 = vld [vmem:[%s8275_s14 + $0x4f] sm:$0x1]  ;;  %v2661_v54 = vmul.f32 %v7090_v44, %v9200_v2  ;;  %v2771_v61 = vadd.f32 %v2659_v46, %v2433_v43  ;;  %v2448_v40 = vld [vmem:[#allocation2 + $0x43] sm:$0x1] }
 0x289   : > { %2865 = vst [vmem:[#allocation2 + $0x22] sm:$0x1] %v2753_v52  ;;  %v7092_v52 = vld [vmem:[%s8275_s14 + $0x50] sm:$0x1]  ;;  %v2662_v58 = vmul.f32 %v7091_v48, %v9200_v2  ;;  %v2772_v3 = vadd.f32 %v2660_v50, %v2434_v47  ;;  %v2449_v44 = vld [vmem:[#allocation2 + $0x44] sm:$0x1] }
 0x28a   : > { %2866 = vst [vmem:[#allocation2 + $0x23] sm:$0x1] %v2754_v56  ;;  %v7093_v56 = vld [vmem:[%s8275_s14 + $0x51] sm:$0x1]  ;;  %v2663_v62 = vmul.f32 %v7092_v52, %v9200_v2  ;;  %v2773_v7 = vadd.f32 %v2661_v54, %v2435_v51  ;;  %v2450_v48 = vld [vmem:[#allocation2 + $0x45] sm:$0x1] }
 0x28b   : > { %2867 = vst [vmem:[#allocation2 + $0x24] sm:$0x1] %v2755_v60  ;;  %v7094_v60 = vld [vmem:[%s8275_s14 + $0x52] sm:$0x1]  ;;  %v2664_v4 = vmul.f32 %v7093_v56, %v9200_v2  ;;  %v2774_v12 = vadd.f32 %v2662_v58, %v2436_v55  ;;  %v2451_v52 = vld [vmem:[#allocation2 + $0x46] sm:$0x1] }
 0x28c   : > { %2868 = vst [vmem:[#allocation2 + $0x25] sm:$0x1] %v2756_v0  ;;  %v7095_v0 = vld [vmem:[%s8275_s14 + $0x53] sm:$0x1]  ;;  %v2665_v8 = vmul.f32 %v7094_v60, %v9200_v2  ;;  %v2775_v16 = vadd.f32 %v2663_v62, %v2437_v59  ;;  %v2452_v56 = vld [vmem:[#allocation2 + $0x47] sm:$0x1] }
 0x28d   : > { %2869 = vst [vmem:[#allocation2 + $0x26] sm:$0x1] %v2757_v6  ;;  %v7096_v6 = vld [vmem:[%s8275_s14 + $0x54] sm:$0x1]  ;;  %v2666_v13 = vmul.f32 %v7095_v0, %v9200_v2  ;;  %v2776_v20 = vadd.f32 %v2664_v4, %v2438_v63  ;;  %v2453_v60 = vld [vmem:[#allocation2 + $0x48] sm:$0x1] }
 0x28e   : > { %2870 = vst [vmem:[#allocation2 + $0x27] sm:$0x1] %v2758_v10  ;;  %v7097_v10 = vld [vmem:[%s8275_s14 + $0x55] sm:$0x1]  ;;  %v2667_v17 = vmul.f32 %v7096_v6, %v9200_v2  ;;  %v2777_v24 = vadd.f32 %v2665_v8, %v2439_v5  ;;  %v2454_v0 = vld [vmem:[#allocation2 + $0x49] sm:$0x1] }
 0x28f   : > { %2871 = vst [vmem:[#allocation2 + $0x28] sm:$0x1] %v2759_v15  ;;  %v7098_v15 = vld [vmem:[%s8275_s14 + $0x56] sm:$0x1]  ;;  %v2668_v21 = vmul.f32 %v7097_v10, %v9200_v2  ;;  %v2778_v1 = vadd.f32 %v2666_v13, %v2440_v9  ;;  %v2455_v6 = vld [vmem:[#allocation2 + $0x4a] sm:$0x1] }
 0x290   : > { %2872 = vst [vmem:[#allocation2 + $0x29] sm:$0x1] %v2760_v19  ;;  %v7099_v19 = vld [vmem:[%s8275_s14 + $0x57] sm:$0x1]  ;;  %v2669_v25 = vmul.f32 %v7098_v15, %v9200_v2  ;;  %v2779_v31 = vadd.f32 %v2667_v17, %v2441_v14  ;;  %v2456_v10 = vld [vmem:[#allocation2 + $0x4b] sm:$0x1] }
 0x291   : > { %2873 = vst [vmem:[#allocation2 + $0x2a] sm:$0x1] %v2761_v23  ;;  %v7100_v23 = vld [vmem:[%s8275_s14 + $0x5a] sm:$0x1]  ;;  %v2670_v28 = vmul.f32 %v7099_v19, %v9200_v2  ;;  %v2780_v35 = vadd.f32 %v2668_v21, %v2442_v18  ;;  %v2457_v15 = vld [vmem:[#allocation2 + $0x4c] sm:$0x1] }
 0x292   : > { %2874 = vst [vmem:[#allocation2 + $0x2b] sm:$0x1] %v2762_v27  ;;  %v7101_v27 = vld [vmem:[%s8275_s14 + $0x5b] sm:$0x1]  ;;  %v2671_v32 = vmul.f32 %v7100_v23, %v9200_v2  ;;  %v2781_v38 = vadd.f32 %v2669_v25, %v2443_v22  ;;  %v2458_v19 = vld [vmem:[#allocation2 + $0x4d] sm:$0x1] }
 0x293   : > { %2875 = vst [vmem:[#allocation2 + $0x2c] sm:$0x1] %v2763_v30  ;;  %v7102_v30 = vld [vmem:[%s8275_s14 + $0x5c] sm:$0x1]  ;;  %v2672_v11 = vmul.f32 %v7101_v27, %v9200_v2  ;;  %v2782_v42 = vadd.f32 %v2670_v28, %v2444_v26  ;;  %v2459_v23 = vld [vmem:[#allocation2 + $0x4e] sm:$0x1] }
 0x294   : > { %2876 = vst [vmem:[#allocation2 + $0x2d] sm:$0x1] %v2764_v34  ;;  %v7103_v34 = vld [vmem:[%s8275_s14 + $0x5d] sm:$0x1]  ;;  %v2673_v39 = vmul.f32 %v7102_v30, %v9200_v2  ;;  %v2783_v46 = vadd.f32 %v2671_v32, %v2445_v29  ;;  %v2460_v27 = vld [vmem:[#allocation2 + $0x4f] sm:$0x1] }
 0x295   : > { %2877 = vst [vmem:[#allocation2 + $0x2e] sm:$0x1] %v2765_v37  ;;  %v7104_v37 = vld [vmem:[%s8275_s14 + $0x5e] sm:$0x1]  ;;  %v2674_v43 = vmul.f32 %v7103_v34, %v9200_v2  ;;  %v2784_v50 = vadd.f32 %v2672_v11, %v2446_v33  ;;  %v2461_v30 = vld [vmem:[#allocation2 + $0x50] sm:$0x1] }
 0x296   : > { %2878 = vst [vmem:[#allocation2 + $0x2f] sm:$0x1] %v2766_v41  ;;  %v7105_v41 = vld [vmem:[%s8275_s14 + $0x5f] sm:$0x1]  ;;  %v2675_v47 = vmul.f32 %v7104_v37, %v9200_v2  ;;  %v2785_v54 = vadd.f32 %v2673_v39, %v2447_v36  ;;  %v2462_v34 = vld [vmem:[#allocation2 + $0x51] sm:$0x1] }
 0x297   : > { %2879 = vst [vmem:[#allocation2 + $0x30] sm:$0x1] %v2767_v45  ;;  %v7106_v45 = vld [vmem:[%s8275_s14 + $0x60] sm:$0x1]  ;;  %v2676_v51 = vmul.f32 %v7105_v41, %v9200_v2  ;;  %v2786_v58 = vadd.f32 %v2674_v43, %v2448_v40  ;;  %v2463_v37 = vld [vmem:[#allocation2 + $0x52] sm:$0x1] }
 0x298   : > { %2880 = vst [vmem:[#allocation2 + $0x31] sm:$0x1] %v2768_v49  ;;  %v7107_v49 = vld [vmem:[%s8275_s14 + $0x61] sm:$0x1]  ;;  %v2677_v55 = vmul.f32 %v7106_v45, %v9200_v2  ;;  %v2787_v62 = vadd.f32 %v2675_v47, %v2449_v44  ;;  %v2464_v41 = vld [vmem:[#allocation2 + $0x53] sm:$0x1] }
 0x299   : > { %2881 = vst [vmem:[#allocation2 + $0x32] sm:$0x1] %v2769_v53  ;;  %v7108_v53 = vld [vmem:[%s8275_s14 + $0x62] sm:$0x1]  ;;  %v2678_v59 = vmul.f32 %v7107_v49, %v9200_v2  ;;  %v2788_v4 = vadd.f32 %v2676_v51, %v2450_v48  ;;  %v2465_v45 = vld [vmem:[#allocation2 + $0x54] sm:$0x1] }
 0x29a   : > { %2882 = vst [vmem:[#allocation2 + $0x33] sm:$0x1] %v2770_v57  ;;  %v7109_v57 = vld [vmem:[%s8275_s14 + $0x63] sm:$0x1]  ;;  %v2679_v63 = vmul.f32 %v7108_v53, %v9200_v2  ;;  %v2789_v8 = vadd.f32 %v2677_v55, %v2451_v52  ;;  %v2466_v49 = vld [vmem:[#allocation2 + $0x55] sm:$0x1] }
 0x29b   : > { %2883 = vst [vmem:[#allocation2 + $0x34] sm:$0x1] %v2771_v61  ;;  %v7110_v61 = vld [vmem:[%s8275_s14 + $0x64] sm:$0x1]  ;;  %v2680_v5 = vmul.f32 %v7109_v57, %v9200_v2  ;;  %v2790_v13 = vadd.f32 %v2678_v59, %v2452_v56  ;;  %v2467_v53 = vld [vmem:[#allocation2 + $0x56] sm:$0x1] }
 0x29c   : > { %2884 = vst [vmem:[#allocation2 + $0x35] sm:$0x1] %v2772_v3  ;;  %v7111_v3 = vld [vmem:[%s8275_s14 + $0x65] sm:$0x1]  ;;  %v2681_v9 = vmul.f32 %v7110_v61, %v9200_v2  ;;  %v2791_v17 = vadd.f32 %v2679_v63, %v2453_v60  ;;  %v2468_v57 = vld [vmem:[#allocation2 + $0x57] sm:$0x1] }
 0x29d   : > { %2885 = vst [vmem:[#allocation2 + $0x36] sm:$0x1] %v2773_v7  ;;  %v7112_v7 = vld [vmem:[%s8275_s14 + $0x66] sm:$0x1]  ;;  %v2682_v14 = vmul.f32 %v7111_v3, %v9200_v2  ;;  %v2792_v21 = vadd.f32 %v2680_v5, %v2454_v0  ;;  %v2469_v61 = vld [vmem:[#allocation2 + $0x58] sm:$0x1] }
 0x29e   : > { %2886 = vst [vmem:[#allocation2 + $0x37] sm:$0x1] %v2774_v12  ;;  %v7113_v12 = vld [vmem:[%s8275_s14 + $0x67] sm:$0x1]  ;;  %v2683_v18 = vmul.f32 %v7112_v7, %v9200_v2  ;;  %v2793_v25 = vadd.f32 %v2681_v9, %v2455_v6  ;;  %v2470_v3 = vld [vmem:[#allocation2 + $0x59] sm:$0x1] }
 0x29f   : > { %2887 = vst [vmem:[#allocation2 + $0x38] sm:$0x1] %v2775_v16  ;;  %v7114_v16 = vld [vmem:[%s8275_s14 + $0x68] sm:$0x1]  ;;  %v2684_v22 = vmul.f32 %v7113_v12, %v9200_v2  ;;  %v2794_v28 = vadd.f32 %v2682_v14, %v2456_v10  ;;  %v2471_v7 = vld [vmem:[#allocation2 + $0x5a] sm:$0x1] }
 0x2a0   : > { %2888 = vst [vmem:[#allocation2 + $0x39] sm:$0x1] %v2776_v20  ;;  %v7115_v20 = vld [vmem:[%s8275_s14 + $0x69] sm:$0x1]  ;;  %v2685_v26 = vmul.f32 %v7114_v16, %v9200_v2  ;;  %v2795_v32 = vadd.f32 %v2683_v18, %v2457_v15  ;;  %v2472_v12 = vld [vmem:[#allocation2 + $0x5b] sm:$0x1] }
 0x2a1   : > { %2889 = vst [vmem:[#allocation2 + $0x3a] sm:$0x1] %v2777_v24  ;;  %v7116_v24 = vld [vmem:[%s8275_s14 + $0x6c] sm:$0x1]  ;;  %v2686_v29 = vmul.f32 %v7115_v20, %v9200_v2  ;;  %v2796_v11 = vadd.f32 %v2684_v22, %v2458_v19  ;;  %v2474_v20 = vld [vmem:[#allocation2 + $0x5d] sm:$0x1] }
 0x2a2   : > { %2890 = vst [vmem:[#allocation2 + $0x3b] sm:$0x1] %v2778_v1  ;;  %v7117_v1 = vld [vmem:[%s8275_s14 + $0x6d] sm:$0x1]  ;;  %v2687_v33 = vmul.f32 %v7116_v24, %v9200_v2  ;;  %v2797_v39 = vadd.f32 %v2685_v26, %v2459_v23  ;;  %v2473_v16 = vld [vmem:[#allocation2 + $0x5c] sm:$0x1] }
 0x2a3   : > { %2891 = vst [vmem:[#allocation2 + $0x3c] sm:$0x1] %v2779_v31  ;;  %v7118_v31 = vld [vmem:[%s8275_s14 + $0x6e] sm:$0x1]  ;;  %v2688_v36 = vmul.f32 %v7117_v1, %v9200_v2  ;;  %v2798_v43 = vadd.f32 %v2686_v29, %v2460_v27  ;;  %v2476_v1 = vld [vmem:[#allocation2 + $0x5f] sm:$0x1] }
 0x2a4   : > { %2892 = vst [vmem:[#allocation2 + $0x3d] sm:$0x1] %v2780_v35  ;;  %v7119_v35 = vld [vmem:[%s8275_s14 + $0x6f] sm:$0x1]  ;;  %v2689_v40 = vmul.f32 %v7118_v31, %v9200_v2  ;;  %v2799_v47 = vadd.f32 %v2687_v33, %v2461_v30  ;;  %v2475_v24 = vld [vmem:[#allocation2 + $0x5e] sm:$0x1] }
 0x2a5   : > { %2893 = vst [vmem:[#allocation2 + $0x3e] sm:$0x1] %v2781_v38  ;;  %v7120_v38 = vld [vmem:[%s8275_s14 + $0x70] sm:$0x1]  ;;  %v2690_v44 = vmul.f32 %v7119_v35, %v9200_v2  ;;  %v2800_v51 = vadd.f32 %v2688_v36, %v2462_v34  ;;  %v2478_v35 = vld [vmem:[#allocation2 + $0x61] sm:$0x1] }
 0x2a6   : > { %2894 = vst [vmem:[#allocation2 + $0x3f] sm:$0x1] %v2782_v42  ;;  %v7121_v42 = vld [vmem:[%s8275_s14 + $0x71] sm:$0x1]  ;;  %v2691_v48 = vmul.f32 %v7120_v38, %v9200_v2  ;;  %v2801_v55 = vadd.f32 %v2689_v40, %v2463_v37  ;;  %v2477_v31 = vld [vmem:[#allocation2 + $0x60] sm:$0x1] }
 0x2a7   : > { %2895 = vst [vmem:[#allocation2 + $0x40] sm:$0x1] %v2783_v46  ;;  %v7122_v46 = vld [vmem:[%s8275_s14 + $0x72] sm:$0x1]  ;;  %v2692_v52 = vmul.f32 %v7121_v42, %v9200_v2  ;;  %v2802_v59 = vadd.f32 %v2690_v44, %v2464_v41  ;;  %v2480_v42 = vld [vmem:[#allocation2 + $0x63] sm:$0x1] }
 0x2a8   : > { %2896 = vst [vmem:[#allocation2 + $0x41] sm:$0x1] %v2784_v50  ;;  %v7123_v50 = vld [vmem:[%s8275_s14 + $0x73] sm:$0x1]  ;;  %v2693_v56 = vmul.f32 %v7122_v46, %v9200_v2  ;;  %v2803_v63 = vadd.f32 %v2691_v48, %v2465_v45  ;;  %v2479_v38 = vld [vmem:[#allocation2 + $0x62] sm:$0x1] }
 0x2a9   : > { %2897 = vst [vmem:[#allocation2 + $0x42] sm:$0x1] %v2785_v54  ;;  %v7124_v54 = vld [vmem:[%s8275_s14 + $0x74] sm:$0x1]  ;;  %v2694_v60 = vmul.f32 %v7123_v50, %v9200_v2  ;;  %v2804_v5 = vadd.f32 %v2692_v52, %v2466_v49  ;;  %v2482_v50 = vld [vmem:[#allocation2 + $0x65] sm:$0x1] }
 0x2aa   : > { %2898 = vst [vmem:[#allocation2 + $0x43] sm:$0x1] %v2786_v58  ;;  %v7125_v58 = vld [vmem:[%s8275_s14 + $0x75] sm:$0x1]  ;;  %v2695_v0 = vmul.f32 %v7124_v54, %v9200_v2  ;;  %v2805_v9 = vadd.f32 %v2693_v56, %v2467_v53  ;;  %v2481_v46 = vld [vmem:[#allocation2 + $0x64] sm:$0x1] }
 0x2ab   : > { %2899 = vst [vmem:[#allocation2 + $0x44] sm:$0x1] %v2787_v62  ;;  %v7126_v62 = vld [vmem:[%s8275_s14 + $0x76] sm:$0x1]  ;;  %v2696_v6 = vmul.f32 %v7125_v58, %v9200_v2  ;;  %v2806_v14 = vadd.f32 %v2694_v60, %v2468_v57  ;;  %v2484_v58 = vld [vmem:[#allocation2 + $0x67] sm:$0x1] }
 0x2ac   : > { %2900 = vst [vmem:[#allocation2 + $0x45] sm:$0x1] %v2788_v4  ;;  %v7127_v4 = vld [vmem:[%s8275_s14 + $0x77] sm:$0x1]  ;;  %v2697_v10 = vmul.f32 %v7126_v62, %v9200_v2  ;;  %v2807_v18 = vadd.f32 %v2695_v0, %v2469_v61  ;;  %v2483_v54 = vld [vmem:[#allocation2 + $0x66] sm:$0x1] }
 0x2ad   : > { %2901 = vst [vmem:[#allocation2 + $0x46] sm:$0x1] %v2789_v8  ;;  %v7128_v8 = vld [vmem:[%s8275_s14 + $0x78] sm:$0x1]  ;;  %v2698_v15 = vmul.f32 %v7127_v4, %v9200_v2  ;;  %v2808_v22 = vadd.f32 %v2696_v6, %v2470_v3  ;;  %v2486_v4 = vld [vmem:[#allocation2 + $0x69] sm:$0x1] }
 0x2ae   : > { %2902 = vst [vmem:[#allocation2 + $0x47] sm:$0x1] %v2790_v13  ;;  %v7129_v13 = vld [vmem:[%s8275_s14 + $0x79] sm:$0x1]  ;;  %v2699_v19 = vmul.f32 %v7128_v8, %v9200_v2  ;;  %v2809_v26 = vadd.f32 %v2697_v10, %v2471_v7  ;;  %v2485_v62 = vld [vmem:[#allocation2 + $0x68] sm:$0x1] }
 0x2af   : > { %2903 = vst [vmem:[#allocation2 + $0x48] sm:$0x1] %v2791_v17  ;;  %v7130_v17 = vld [vmem:[%s8275_s14 + $0x7a] sm:$0x1]  ;;  %v2700_v23 = vmul.f32 %v7129_v13, %v9200_v2  ;;  %v2810_v29 = vadd.f32 %v2698_v15, %v2472_v12  ;;  %v2488_v13 = vld [vmem:[#allocation2 + $0x6b] sm:$0x1] }
 0x2b0   : > { %2904 = vst [vmem:[#allocation2 + $0x49] sm:$0x1] %v2792_v21  ;;  %v7131_v21 = vld [vmem:[%s8275_s14 + $0x7b] sm:$0x1]  ;;  %v2701_v27 = vmul.f32 %v7130_v17, %v9200_v2  ;;  %v2811_v33 = vadd.f32 %v2699_v19, %v2473_v16  ;;  %v2487_v8 = vld [vmem:[#allocation2 + $0x6a] sm:$0x1] }
 0x2b1   : > { %2905 = vst [vmem:[#allocation2 + $0x4a] sm:$0x1] %v2793_v25  ;;  %v7132_v25 = vld [vmem:[%s8275_s14 + $0x7e] sm:$0x1]  ;;  %v2702_v30 = vmul.f32 %v7131_v21, %v9200_v2  ;;  %v2812_v36 = vadd.f32 %v2700_v23, %v2474_v20  ;;  %v2489_v17 = vld [vmem:[#allocation2 + $0x6c] sm:$0x1] }
 0x2b2   : > { %2906 = vst [vmem:[#allocation2 + $0x4b] sm:$0x1] %v2794_v28  ;;  %v7133_v28 = vld [vmem:[%s8275_s14 + $0x7f] sm:$0x1]  ;;  %v2703_v34 = vmul.f32 %v7132_v25, %v9200_v2  ;;  %v2813_v40 = vadd.f32 %v2701_v27, %v2475_v24  ;;  %v2490_v21 = vld [vmem:[#allocation2 + $0x6d] sm:$0x1] }
 0x2b3   : > { %2907 = vst [vmem:[#allocation2 + $0x4c] sm:$0x1] %v2795_v32  ;;  %v7134_v32 = vld [vmem:[%s8275_s14 + $0x80] sm:$0x1]  ;;  %v2704_v37 = vmul.f32 %v7133_v28, %v9200_v2  ;;  %v2814_v44 = vadd.f32 %v2702_v30, %v2476_v1  ;;  %v2491_v25 = vld [vmem:[#allocation2 + $0x6e] sm:$0x1] }
 0x2b4   : > { %2908 = vst [vmem:[#allocation2 + $0x4d] sm:$0x1] %v2796_v11  ;;  %v7135_v11 = vld [vmem:[%s8275_s14 + $0x81] sm:$0x1]  ;;  %v2705_v41 = vmul.f32 %v7134_v32, %v9200_v2  ;;  %v2815_v48 = vadd.f32 %v2703_v34, %v2477_v31  ;;  %v2492_v28 = vld [vmem:[#allocation2 + $0x6f] sm:$0x1] }
 0x2b5   : > { %2909 = vst [vmem:[#allocation2 + $0x4e] sm:$0x1] %v2797_v39  ;;  %v7136_v39 = vld [vmem:[%s8275_s14 + $0x82] sm:$0x1]  ;;  %v2706_v45 = vmul.f32 %v7135_v11, %v9200_v2  ;;  %v2816_v52 = vadd.f32 %v2704_v37, %v2478_v35  ;;  %v2944_v32 = vld [vmem:[#allocation2 + $0x70] sm:$0x1] }
 0x2b6   : > { %2910 = vst [vmem:[#allocation2 + $0x4f] sm:$0x1] %v2798_v43  ;;  %v7137_v43 = vld [vmem:[%s8275_s14 + $0x83] sm:$0x1]  ;;  %v2707_v49 = vmul.f32 %v7136_v39, %v9200_v2  ;;  %v2817_v56 = vadd.f32 %v2705_v41, %v2479_v38  ;;  %v2945_v11 = vld [vmem:[#allocation2 + $0x71] sm:$0x1] }
 0x2b7   : > { %2911 = vst [vmem:[#allocation2 + $0x50] sm:$0x1] %v2799_v47  ;;  %v7138_v47 = vld [vmem:[%s8275_s14 + $0x84] sm:$0x1]  ;;  %v2708_v53 = vmul.f32 %v7137_v43, %v9200_v2  ;;  %v2818_v60 = vadd.f32 %v2706_v45, %v2480_v42  ;;  %v2946_v39 = vld [vmem:[#allocation2 + $0x72] sm:$0x1] }
 0x2b8   : > { %2912 = vst [vmem:[#allocation2 + $0x51] sm:$0x1] %v2800_v51  ;;  %v7139_v51 = vld [vmem:[%s8275_s14 + $0x85] sm:$0x1]  ;;  %v2709_v57 = vmul.f32 %v7138_v47, %v9200_v2  ;;  %v2819_v0 = vadd.f32 %v2707_v49, %v2481_v46  ;;  %v2947_v43 = vld [vmem:[#allocation2 + $0x73] sm:$0x1] }
 0x2b9   : > { %2913 = vst [vmem:[#allocation2 + $0x52] sm:$0x1] %v2801_v55  ;;  %v7140_v55 = vld [vmem:[%s8275_s14 + $0x86] sm:$0x1]  ;;  %v2710_v61 = vmul.f32 %v7139_v51, %v9200_v2  ;;  %v2820_v6 = vadd.f32 %v2708_v53, %v2482_v50  ;;  %v2948_v47 = vld [vmem:[#allocation2 + $0x74] sm:$0x1] }
 0x2ba   : > { %2914 = vst [vmem:[#allocation2 + $0x53] sm:$0x1] %v2802_v59  ;;  %v7141_v59 = vld [vmem:[%s8275_s14 + $0x87] sm:$0x1]  ;;  %v2711_v3 = vmul.f32 %v7140_v55, %v9200_v2  ;;  %v2821_v10 = vadd.f32 %v2709_v57, %v2483_v54  ;;  %v2949_v51 = vld [vmem:[#allocation2 + $0x75] sm:$0x1] }
 0x2bb   : > { %2915 = vst [vmem:[#allocation2 + $0x54] sm:$0x1] %v2803_v63  ;;  %v7142_v63 = vld [vmem:[%s8275_s14 + $0x88] sm:$0x1]  ;;  %v2712_v7 = vmul.f32 %v7141_v59, %v9200_v2  ;;  %v2822_v15 = vadd.f32 %v2710_v61, %v2484_v58  ;;  %v2950_v55 = vld [vmem:[#allocation2 + $0x76] sm:$0x1] }
 0x2bc   : > { %2916 = vst [vmem:[#allocation2 + $0x55] sm:$0x1] %v2804_v5  ;;  %v7143_v5 = vld [vmem:[%s8275_s14 + $0x89] sm:$0x1]  ;;  %v2713_v12 = vmul.f32 %v7142_v63, %v9200_v2  ;;  %v2823_v19 = vadd.f32 %v2711_v3, %v2485_v62  ;;  %v2951_v59 = vld [vmem:[#allocation2 + $0x77] sm:$0x1] }
 0x2bd   : > { %2917 = vst [vmem:[#allocation2 + $0x56] sm:$0x1] %v2805_v9  ;;  %v7144_v9 = vld [vmem:[%s8275_s14 + $0x8a] sm:$0x1]  ;;  %v2714_v16 = vmul.f32 %v7143_v5, %v9200_v2  ;;  %v2824_v23 = vadd.f32 %v2712_v7, %v2486_v4  ;;  %v2952_v63 = vld [vmem:[#allocation2 + $0x78] sm:$0x1] }
 0x2be   : > { %2918 = vst [vmem:[#allocation2 + $0x57] sm:$0x1] %v2806_v14  ;;  %v7145_v14 = vld [vmem:[%s8275_s14 + $0x8b] sm:$0x1]  ;;  %v2715_v20 = vmul.f32 %v7144_v9, %v9200_v2  ;;  %v2825_v27 = vadd.f32 %v2713_v12, %v2487_v8  ;;  %v2953_v5 = vld [vmem:[#allocation2 + $0x79] sm:$0x1] }
 0x2bf   : > { %2919 = vst [vmem:[#allocation2 + $0x58] sm:$0x1] %v2807_v18  ;;  %v7146_v18 = vld [vmem:[%s8275_s14 + $0x8c] sm:$0x1]  ;;  %v2716_v24 = vmul.f32 %v7145_v14, %v9200_v2  ;;  %v2826_v30 = vadd.f32 %v2714_v16, %v2488_v13  ;;  %v2954_v9 = vld [vmem:[#allocation2 + $0x7a] sm:$0x1] }
 0x2c0   : > { %2920 = vst [vmem:[#allocation2 + $0x59] sm:$0x1] %v2808_v22  ;;  %v7147_v22 = vld [vmem:[%s8275_s14 + $0x8d] sm:$0x1]  ;;  %v2717_v1 = vmul.f32 %v7146_v18, %v9200_v2  ;;  %v2827_v34 = vadd.f32 %v2715_v20, %v2489_v17  ;;  %v2955_v14 = vld [vmem:[#allocation2 + $0x7b] sm:$0x1] }
 0x2c1   : > { %2921 = vst [vmem:[#allocation2 + $0x5a] sm:$0x1] %v2809_v26  ;;  %v2960_v26 = vld [vmem:[%s8282_s25] sm:$0x1]  ;;  %v2718_v31 = vmul.f32 %v7147_v22, %v9200_v2  ;;  %v2828_v37 = vadd.f32 %v2716_v24, %v2490_v21  ;;  %v2956_v18 = vld [vmem:[#allocation2 + $0x7c] sm:$0x1] }
 0x2c2   : > { %2922 = vst [vmem:[#allocation2 + $0x5b] sm:$0x1] %v2810_v29  ;;  %v2961_v29 = vld [vmem:[%s8282_s25 + $0x1] sm:$0x1]  ;;  %v2976_v35 = vmul.f32 %v2960_v26, %v9200_v2  ;;  %v2829_v41 = vadd.f32 %v2717_v1, %v2491_v25  ;;  %v2957_v22 = vld [vmem:[#allocation2 + $0x7d] sm:$0x1]  ;;  %v9461_v1 = vstv %s9442_s10 }
 0x2c3   : > { %2923 = vst [vmem:[#allocation2 + $0x5c] sm:$0x1] %v2811_v33  ;;  %v2962_v33 = vld [vmem:[%s8282_s25 + $0x2] sm:$0x1]  ;;  %v2977_v38 = vmul.f32 %v2961_v29, %v9200_v2  ;;  %v2830_v45 = vadd.f32 %v2718_v31, %v2492_v28  ;;  %v2958_v26 = vld [vmem:[#allocation2 + $0x7e] sm:$0x1] }
 0x2c4   : > { %2924 = vst [vmem:[#allocation2 + $0x5d] sm:$0x1] %v2812_v36  ;;  %v2963_v36 = vld [vmem:[%s8282_s25 + $0x3] sm:$0x1]  ;;  %v2978_v42 = vmul.f32 %v2962_v33, %v9200_v2  ;;  %v2992_v49 = vadd.f32 %v2976_v35, %v2944_v32  ;;  %v7149_v31 = vld [vmem:[%s8275_s14 + $0x14] sm:$0x1] }
 0x2c5   : > { %2925 = vst [vmem:[#allocation2 + $0x5e] sm:$0x1] %v2813_v40  ;;  %v2964_v40 = vld [vmem:[%s8282_s25 + $0x4] sm:$0x1]  ;;  %v2979_v46 = vmul.f32 %v2963_v36, %v9200_v2  ;;  %v2993_v53 = vadd.f32 %v2977_v38, %v2945_v11  ;;  %v7150_v35 = vld [vmem:[%s8275_s14 + $0x15] sm:$0x1] }
 0x2c6   : > { %2926 = vst [vmem:[#allocation2 + $0x5f] sm:$0x1] %v2814_v44  ;;  %v2965_v44 = vld [vmem:[%s8282_s25 + $0x5] sm:$0x1]  ;;  %v2980_v50 = vmul.f32 %v2964_v40, %v9200_v2  ;;  %v2994_v57 = vadd.f32 %v2978_v42, %v2946_v39  ;;  %v7151_v38 = vld [vmem:[%s8275_s14 + $0x16] sm:$0x1]  ;;  %v3251_v40 = vmul.f32 %v7149_v31, %v9461_v1 }
 0x2c7   : > { %2927 = vst [vmem:[#allocation2 + $0x60] sm:$0x1] %v2815_v48  ;;  %v2966_v48 = vld [vmem:[%s8282_s25 + $0x6] sm:$0x1]  ;;  %v2981_v54 = vmul.f32 %v2965_v44, %v9200_v2  ;;  %v2995_v61 = vadd.f32 %v2979_v46, %v2947_v43  ;;  %v7152_v42 = vld [vmem:[%s8275_s14 + $0x17] sm:$0x1] }
 0x2c8   : > { %2928 = vst [vmem:[#allocation2 + $0x61] sm:$0x1] %v2816_v52  ;;  %v2967_v52 = vld [vmem:[%s8282_s25 + $0x7] sm:$0x1]  ;;  %v2982_v58 = vmul.f32 %v2966_v48, %v9200_v2  ;;  %v2996_v3 = vadd.f32 %v2980_v50, %v2948_v47  ;;  %v3027_v44 = vld [vmem:[#allocation2 + $0x3] sm:$0x1]  ;;  %v3253_v47 = vmul.f32 %v7151_v38, %v9461_v1 }
 0x2c9   : > { %2929 = vst [vmem:[#allocation2 + $0x62] sm:$0x1] %v2817_v56  ;;  %v2968_v56 = vld [vmem:[%s8282_s25 + $0x8] sm:$0x1]  ;;  %v2983_v62 = vmul.f32 %v2967_v52, %v9200_v2  ;;  %v2997_v7 = vadd.f32 %v2981_v54, %v2949_v51  ;;  %v3028_v48 = vld [vmem:[#allocation2 + $0x4] sm:$0x1]  ;;  %v3254_v51 = vmul.f32 %v7152_v42, %v9461_v1 }
 0x2ca   : > { %2930 = vst [vmem:[#allocation2 + $0x63] sm:$0x1] %v2818_v60  ;;  %v2969_v60 = vld [vmem:[%s8282_s25 + $0x9] sm:$0x1]  ;;  %v2984_v4 = vmul.f32 %v2968_v56, %v9200_v2  ;;  %v2998_v12 = vadd.f32 %v2982_v58, %v2950_v55  ;;  %v3029_v52 = vld [vmem:[#allocation2 + $0x5] sm:$0x1] }
 0x2cb   : > { %2931 = vst [vmem:[#allocation2 + $0x64] sm:$0x1] %v2819_v0  ;;  %v2970_v0 = vld [vmem:[%s8282_s25 + $0xa] sm:$0x1]  ;;  %v2985_v8 = vmul.f32 %v2969_v60, %v9200_v2  ;;  %v2999_v16 = vadd.f32 %v2983_v62, %v2951_v59  ;;  %v3030_v56 = vld [vmem:[#allocation2 + $0x6] sm:$0x1]  ;;  %v3365_v62 = vadd.f32 %v3253_v47, %v3027_v44 }
 0x2cc   : > { %2932 = vst [vmem:[#allocation2 + $0x65] sm:$0x1] %v2820_v6  ;;  %v2971_v6 = vld [vmem:[%s8282_s25 + $0xb] sm:$0x1]  ;;  %v2986_v13 = vmul.f32 %v2970_v0, %v9200_v2  ;;  %v3000_v20 = vadd.f32 %v2984_v4, %v2952_v63  ;;  %v3031_v60 = vld [vmem:[#allocation2 + $0x7] sm:$0x1]  ;;  %v3366_v4 = vadd.f32 %v3254_v51, %v3028_v48 }
 0x2cd   : > { %2933 = vst [vmem:[#allocation2 + $0x66] sm:$0x1] %v2821_v10  ;;  %v2972_v10 = vld [vmem:[%s8282_s25 + $0xc] sm:$0x1]  ;;  %v2987_v17 = vmul.f32 %v2971_v6, %v9200_v2  ;;  %v3001_v24 = vadd.f32 %v2985_v8, %v2953_v5  ;;  %v3032_v0 = vld [vmem:[#allocation2 + $0x8] sm:$0x1] }
 0x2ce   : > { %2934 = vst [vmem:[#allocation2 + $0x67] sm:$0x1] %v2822_v15  ;;  %v2973_v15 = vld [vmem:[%s8282_s25 + $0xd] sm:$0x1]  ;;  %v2988_v21 = vmul.f32 %v2972_v10, %v9200_v2  ;;  %v3002_v28 = vadd.f32 %v2986_v13, %v2954_v9  ;;  %v3033_v6 = vld [vmem:[#allocation2 + $0x9] sm:$0x1] }
 0x2cf   : > { %2935 = vst [vmem:[#allocation2 + $0x68] sm:$0x1] %v2823_v19  ;;  %v2974_v19 = vld [vmem:[%s8282_s25 + $0xe] sm:$0x1]  ;;  %v2989_v25 = vmul.f32 %v2973_v15, %v9200_v2  ;;  %v3003_v32 = vadd.f32 %v2987_v17, %v2955_v14  ;;  %v3034_v10 = vld [vmem:[#allocation2 + $0xa] sm:$0x1] }
 0x2d0   : > { %2936 = vst [vmem:[#allocation2 + $0x69] sm:$0x1] %v2824_v23  ;;  %v2975_v23 = vld [vmem:[%s8282_s25 + $0xf] sm:$0x1]  ;;  %v2990_v29 = vmul.f32 %v2974_v19, %v9200_v2  ;;  %v3004_v11 = vadd.f32 %v2988_v21, %v2956_v18  ;;  %v3035_v15 = vld [vmem:[#allocation2 + $0xb] sm:$0x1] }
 0x2d1   : > { %2937 = vst [vmem:[#allocation2 + $0x6a] sm:$0x1] %v2825_v27  ;;  %v7148_v27 = vld [vmem:[%s8275_s14 + $0x13] sm:$0x1]  ;;  %v2991_v33 = vmul.f32 %v2975_v23, %v9200_v2  ;;  %v3005_v39 = vadd.f32 %v2989_v25, %v2957_v22  ;;  %v3252_v2 = vmul.f32 %v7150_v35, %v9461_v1  ;;  %v3036_v19 = vld [vmem:[#allocation2 + $0xc] sm:$0x1] }
 0x2d2   : > { %2938 = vst [vmem:[#allocation2 + $0x6b] sm:$0x1] %v2826_v30  ;;  %v2959_v30 = vld [vmem:[#allocation2 + $0x7f] sm:$0x1]  ;;  %v3250_v36 = vmul.f32 %v7148_v27, %v9461_v1  ;;  %v3006_v43 = vadd.f32 %v2990_v29, %v2958_v26  ;;  %v3037_v23 = vld [vmem:[#allocation2 + $0xd] sm:$0x1] }
 0x2d3   : > { %2939 = vst [vmem:[#allocation2 + $0x6c] sm:$0x1] %v2827_v34  ;;  %v3024_v34 = vld [vmem:[#allocation2] sm:$0x1]  ;;  %v3007_v46 = vadd.f32 %v2991_v33, %v2959_v30  ;;  %v3038_v27 = vld [vmem:[#allocation2 + $0xe] sm:$0x1] }
 0x2d4   : > { %2940 = vst [vmem:[#allocation2 + $0x6d] sm:$0x1] %v2828_v37  ;;  %v3025_v37 = vld [vmem:[#allocation2 + $0x1] sm:$0x1]  ;;  %v3362_v50 = vadd.f32 %v3250_v36, %v3024_v34  ;;  %v3039_v31 = vld [vmem:[#allocation2 + $0xf] sm:$0x1] }
 0x2d5   : > { %2941 = vst [vmem:[#allocation2 + $0x6e] sm:$0x1] %v2829_v41  ;;  %v3026_v41 = vld [vmem:[#allocation2 + $0x2] sm:$0x1]  ;;  %v3363_v54 = vadd.f32 %v3251_v40, %v3025_v37  ;;  %v3040_v35 = vld [vmem:[#allocation2 + $0x10] sm:$0x1] }
 0x2d6   : > { %2942 = vst [vmem:[#allocation2 + $0x6f] sm:$0x1] %v2830_v45  ;;  %v7153_v45 = vld [vmem:[%s8275_s14 + $0x18] sm:$0x1]  ;;  %v3364_v58 = vadd.f32 %v3252_v2, %v3026_v41  ;;  %v3041_v38 = vld [vmem:[#allocation2 + $0x11] sm:$0x1] }
 0x2d7   : > { %3008 = vst [vmem:[#allocation2 + $0x70] sm:$0x1] %v2992_v49  ;;  %v7154_v49 = vld [vmem:[%s8275_s14 + $0x19] sm:$0x1]  ;;  %v3255_v55 = vmul.f32 %v7153_v45, %v9461_v1  ;;  %v3042_v42 = vld [vmem:[#allocation2 + $0x12] sm:$0x1] }
 0x2d8   : > { %3009 = vst [vmem:[#allocation2 + $0x71] sm:$0x1] %v2993_v53  ;;  %v7155_v53 = vld [vmem:[%s8275_s14 + $0x1a] sm:$0x1]  ;;  %v3256_v59 = vmul.f32 %v7154_v49, %v9461_v1  ;;  %v3043_v45 = vld [vmem:[#allocation2 + $0x13] sm:$0x1] }
 0x2d9   : > { %3010 = vst [vmem:[#allocation2 + $0x72] sm:$0x1] %v2994_v57  ;;  %v7156_v57 = vld [vmem:[%s8275_s14 + $0x1b] sm:$0x1]  ;;  %v3257_v63 = vmul.f32 %v7155_v53, %v9461_v1  ;;  %v3367_v8 = vadd.f32 %v3255_v55, %v3029_v52  ;;  %v3044_v49 = vld [vmem:[#allocation2 + $0x14] sm:$0x1] }
 0x2da   : > { %3011 = vst [vmem:[#allocation2 + $0x73] sm:$0x1] %v2995_v61  ;;  %v7157_v61 = vld [vmem:[%s8275_s14 + $0x1c] sm:$0x1]  ;;  %v3258_v5 = vmul.f32 %v7156_v57, %v9461_v1  ;;  %v3368_v13 = vadd.f32 %v3256_v59, %v3030_v56  ;;  %v3045_v53 = vld [vmem:[#allocation2 + $0x15] sm:$0x1] }
 0x2db   : > { %3012 = vst [vmem:[#allocation2 + $0x74] sm:$0x1] %v2996_v3  ;;  %v7158_v3 = vld [vmem:[%s8275_s14 + $0x1d] sm:$0x1]  ;;  %v3259_v9 = vmul.f32 %v7157_v61, %v9461_v1  ;;  %v3369_v17 = vadd.f32 %v3257_v63, %v3031_v60  ;;  %v3046_v57 = vld [vmem:[#allocation2 + $0x16] sm:$0x1] }
 0x2dc   : > { %3013 = vst [vmem:[#allocation2 + $0x75] sm:$0x1] %v2997_v7  ;;  %v7159_v7 = vld [vmem:[%s8275_s14 + $0x1e] sm:$0x1]  ;;  %v3260_v14 = vmul.f32 %v7158_v3, %v9461_v1  ;;  %v3370_v21 = vadd.f32 %v3258_v5, %v3032_v0  ;;  %v3047_v61 = vld [vmem:[#allocation2 + $0x17] sm:$0x1] }
 0x2dd   : > { %3014 = vst [vmem:[#allocation2 + $0x76] sm:$0x1] %v2998_v12  ;;  %v7160_v12 = vld [vmem:[%s8275_s14 + $0x1f] sm:$0x1]  ;;  %v3261_v18 = vmul.f32 %v7159_v7, %v9461_v1  ;;  %v3371_v25 = vadd.f32 %v3259_v9, %v3033_v6  ;;  %v3048_v3 = vld [vmem:[#allocation2 + $0x18] sm:$0x1] }
 0x2de   : > { %3015 = vst [vmem:[#allocation2 + $0x77] sm:$0x1] %v2999_v16  ;;  %v7161_v16 = vld [vmem:[%s8275_s14 + $0x20] sm:$0x1]  ;;  %v3262_v22 = vmul.f32 %v7160_v12, %v9461_v1  ;;  %v3372_v29 = vadd.f32 %v3260_v14, %v3034_v10  ;;  %v3049_v7 = vld [vmem:[#allocation2 + $0x19] sm:$0x1] }
 0x2df   : > { %3016 = vst [vmem:[#allocation2 + $0x78] sm:$0x1] %v3000_v20  ;;  %v7162_v20 = vld [vmem:[%s8275_s14 + $0x21] sm:$0x1]  ;;  %v3263_v26 = vmul.f32 %v7161_v16, %v9461_v1  ;;  %v3373_v33 = vadd.f32 %v3261_v18, %v3035_v15  ;;  %v3050_v12 = vld [vmem:[#allocation2 + $0x1a] sm:$0x1] }
 0x2e0   : > { %3017 = vst [vmem:[#allocation2 + $0x79] sm:$0x1] %v3001_v24  ;;  %v7163_v24 = vld [vmem:[%s8275_s14 + $0x22] sm:$0x1]  ;;  %v3264_v30 = vmul.f32 %v7162_v20, %v9461_v1  ;;  %v3374_v36 = vadd.f32 %v3262_v22, %v3036_v19  ;;  %v3051_v16 = vld [vmem:[#allocation2 + $0x1b] sm:$0x1] }
 0x2e1   : > { %3018 = vst [vmem:[#allocation2 + $0x7a] sm:$0x1] %v3002_v28  ;;  %v7164_v28 = vld [vmem:[%s8275_s14 + $0x25] sm:$0x1]  ;;  %v3265_v34 = vmul.f32 %v7163_v24, %v9461_v1  ;;  %v3375_v40 = vadd.f32 %v3263_v26, %v3037_v23  ;;  %v3052_v20 = vld [vmem:[#allocation2 + $0x1c] sm:$0x1] }
 0x2e2   : > { %3019 = vst [vmem:[#allocation2 + $0x7b] sm:$0x1] %v3003_v32  ;;  %v7165_v32 = vld [vmem:[%s8275_s14 + $0x26] sm:$0x1]  ;;  %v3266_v37 = vmul.f32 %v7164_v28, %v9461_v1  ;;  %v3376_v2 = vadd.f32 %v3264_v30, %v3038_v27  ;;  %v3053_v24 = vld [vmem:[#allocation2 + $0x1d] sm:$0x1] }
 0x2e3   : > { %3020 = vst [vmem:[#allocation2 + $0x7c] sm:$0x1] %v3004_v11  ;;  %v7166_v11 = vld [vmem:[%s8275_s14 + $0x27] sm:$0x1]  ;;  %v3267_v41 = vmul.f32 %v7165_v32, %v9461_v1  ;;  %v3377_v47 = vadd.f32 %v3265_v34, %v3039_v31  ;;  %v3054_v28 = vld [vmem:[#allocation2 + $0x1e] sm:$0x1] }
 0x2e4   : > { %3021 = vst [vmem:[#allocation2 + $0x7d] sm:$0x1] %v3005_v39  ;;  %v7167_v39 = vld [vmem:[%s8275_s14 + $0x28] sm:$0x1]  ;;  %v3268_v44 = vmul.f32 %v7166_v11, %v9461_v1  ;;  %v3378_v51 = vadd.f32 %v3266_v37, %v3040_v35  ;;  %v3055_v32 = vld [vmem:[#allocation2 + $0x1f] sm:$0x1] }
 0x2e5   : > { %3022 = vst [vmem:[#allocation2 + $0x7e] sm:$0x1] %v3006_v43  ;;  %v7168_v43 = vld [vmem:[%s8275_s14 + $0x29] sm:$0x1]  ;;  %v3269_v48 = vmul.f32 %v7167_v39, %v9461_v1  ;;  %v3379_v55 = vadd.f32 %v3267_v41, %v3041_v38  ;;  %v3056_v11 = vld [vmem:[#allocation2 + $0x20] sm:$0x1] }
 0x2e6   : > { %3023 = vst [vmem:[#allocation2 + $0x7f] sm:$0x1] %v3007_v46  ;;  %v7169_v46 = vld [vmem:[%s8275_s14 + $0x2a] sm:$0x1]  ;;  %v3270_v52 = vmul.f32 %v7168_v43, %v9461_v1  ;;  %v3380_v59 = vadd.f32 %v3268_v44, %v3042_v42  ;;  %v3057_v39 = vld [vmem:[#allocation2 + $0x21] sm:$0x1] }
 0x2e7   : > { %3474 = vst [vmem:[#allocation2] sm:$0x1] %v3362_v50  ;;  %v7170_v50 = vld [vmem:[%s8275_s14 + $0x2b] sm:$0x1]  ;;  %v3271_v56 = vmul.f32 %v7169_v46, %v9461_v1  ;;  %v3381_v63 = vadd.f32 %v3269_v48, %v3043_v45  ;;  %v3058_v43 = vld [vmem:[#allocation2 + $0x22] sm:$0x1] }
 0x2e8   : > { %3475 = vst [vmem:[#allocation2 + $0x1] sm:$0x1] %v3363_v54  ;;  %v7171_v54 = vld [vmem:[%s8275_s14 + $0x2c] sm:$0x1]  ;;  %v3272_v60 = vmul.f32 %v7170_v50, %v9461_v1  ;;  %v3382_v5 = vadd.f32 %v3270_v52, %v3044_v49  ;;  %v3059_v46 = vld [vmem:[#allocation2 + $0x23] sm:$0x1] }
 0x2e9   : > { %3476 = vst [vmem:[#allocation2 + $0x2] sm:$0x1] %v3364_v58  ;;  %v7172_v58 = vld [vmem:[%s8275_s14 + $0x2d] sm:$0x1]  ;;  %v3273_v0 = vmul.f32 %v7171_v54, %v9461_v1  ;;  %v3383_v9 = vadd.f32 %v3271_v56, %v3045_v53  ;;  %v3060_v50 = vld [vmem:[#allocation2 + $0x24] sm:$0x1] }
 0x2ea   : > { %3477 = vst [vmem:[#allocation2 + $0x3] sm:$0x1] %v3365_v62  ;;  %v7173_v62 = vld [vmem:[%s8275_s14 + $0x2e] sm:$0x1]  ;;  %v3274_v6 = vmul.f32 %v7172_v58, %v9461_v1  ;;  %v3384_v14 = vadd.f32 %v3272_v60, %v3046_v57  ;;  %v3061_v54 = vld [vmem:[#allocation2 + $0x25] sm:$0x1] }
 0x2eb   : > { %3478 = vst [vmem:[#allocation2 + $0x4] sm:$0x1] %v3366_v4  ;;  %v7174_v4 = vld [vmem:[%s8275_s14 + $0x2f] sm:$0x1]  ;;  %v3275_v10 = vmul.f32 %v7173_v62, %v9461_v1  ;;  %v3385_v18 = vadd.f32 %v3273_v0, %v3047_v61  ;;  %v3062_v58 = vld [vmem:[#allocation2 + $0x26] sm:$0x1] }
 0x2ec   : > { %3479 = vst [vmem:[#allocation2 + $0x5] sm:$0x1] %v3367_v8  ;;  %v7175_v8 = vld [vmem:[%s8275_s14 + $0x30] sm:$0x1]  ;;  %v3276_v15 = vmul.f32 %v7174_v4, %v9461_v1  ;;  %v3386_v22 = vadd.f32 %v3274_v6, %v3048_v3  ;;  %v3063_v62 = vld [vmem:[#allocation2 + $0x27] sm:$0x1] }
 0x2ed   : > { %3480 = vst [vmem:[#allocation2 + $0x6] sm:$0x1] %v3368_v13  ;;  %v7176_v13 = vld [vmem:[%s8275_s14 + $0x31] sm:$0x1]  ;;  %v3277_v19 = vmul.f32 %v7175_v8, %v9461_v1  ;;  %v3387_v26 = vadd.f32 %v3275_v10, %v3049_v7  ;;  %v3064_v4 = vld [vmem:[#allocation2 + $0x28] sm:$0x1] }
 0x2ee   : > { %3481 = vst [vmem:[#allocation2 + $0x7] sm:$0x1] %v3369_v17  ;;  %v7177_v17 = vld [vmem:[%s8275_s14 + $0x32] sm:$0x1]  ;;  %v3278_v23 = vmul.f32 %v7176_v13, %v9461_v1  ;;  %v3388_v30 = vadd.f32 %v3276_v15, %v3050_v12  ;;  %v3065_v8 = vld [vmem:[#allocation2 + $0x29] sm:$0x1] }
 0x2ef   : > { %3482 = vst [vmem:[#allocation2 + $0x8] sm:$0x1] %v3370_v21  ;;  %v7178_v21 = vld [vmem:[%s8275_s14 + $0x33] sm:$0x1]  ;;  %v3279_v27 = vmul.f32 %v7177_v17, %v9461_v1  ;;  %v3389_v34 = vadd.f32 %v3277_v19, %v3051_v16  ;;  %v3066_v13 = vld [vmem:[#allocation2 + $0x2a] sm:$0x1] }
 0x2f0   : > { %3483 = vst [vmem:[#allocation2 + $0x9] sm:$0x1] %v3371_v25  ;;  %v7179_v25 = vld [vmem:[%s8275_s14 + $0x34] sm:$0x1]  ;;  %v3280_v31 = vmul.f32 %v7178_v21, %v9461_v1  ;;  %v3390_v37 = vadd.f32 %v3278_v23, %v3052_v20  ;;  %v3067_v17 = vld [vmem:[#allocation2 + $0x2b] sm:$0x1] }
 0x2f1   : > { %3484 = vst [vmem:[#allocation2 + $0xa] sm:$0x1] %v3372_v29  ;;  %v7180_v29 = vld [vmem:[%s8275_s14 + $0x37] sm:$0x1]  ;;  %v3281_v35 = vmul.f32 %v7179_v25, %v9461_v1  ;;  %v3391_v41 = vadd.f32 %v3279_v27, %v3053_v24  ;;  %v3068_v21 = vld [vmem:[#allocation2 + $0x2c] sm:$0x1] }
 0x2f2   : > { %3485 = vst [vmem:[#allocation2 + $0xb] sm:$0x1] %v3373_v33  ;;  %v7181_v33 = vld [vmem:[%s8275_s14 + $0x38] sm:$0x1]  ;;  %v3282_v38 = vmul.f32 %v7180_v29, %v9461_v1  ;;  %v3392_v44 = vadd.f32 %v3280_v31, %v3054_v28  ;;  %v3069_v25 = vld [vmem:[#allocation2 + $0x2d] sm:$0x1] }
 0x2f3   : > { %3486 = vst [vmem:[#allocation2 + $0xc] sm:$0x1] %v3374_v36  ;;  %v7182_v36 = vld [vmem:[%s8275_s14 + $0x39] sm:$0x1]  ;;  %v3283_v42 = vmul.f32 %v7181_v33, %v9461_v1  ;;  %v3393_v48 = vadd.f32 %v3281_v35, %v3055_v32  ;;  %v3070_v29 = vld [vmem:[#allocation2 + $0x2e] sm:$0x1] }
 0x2f4   : > { %3487 = vst [vmem:[#allocation2 + $0xd] sm:$0x1] %v3375_v40  ;;  %v7183_v40 = vld [vmem:[%s8275_s14 + $0x3a] sm:$0x1]  ;;  %v3284_v45 = vmul.f32 %v7182_v36, %v9461_v1  ;;  %v3394_v52 = vadd.f32 %v3282_v38, %v3056_v11  ;;  %v3071_v33 = vld [vmem:[#allocation2 + $0x2f] sm:$0x1] }
 0x2f5   : > { %3488 = vst [vmem:[#allocation2 + $0xe] sm:$0x1] %v3376_v2  ;;  %v7184_v2 = vld [vmem:[%s8275_s14 + $0x3b] sm:$0x1]  ;;  %v3285_v49 = vmul.f32 %v7183_v40, %v9461_v1  ;;  %v3395_v56 = vadd.f32 %v3283_v42, %v3057_v39  ;;  %v3072_v36 = vld [vmem:[#allocation2 + $0x30] sm:$0x1] }
 0x2f6   : > { %3489 = vst [vmem:[#allocation2 + $0xf] sm:$0x1] %v3377_v47  ;;  %v7185_v47 = vld [vmem:[%s8275_s14 + $0x3c] sm:$0x1]  ;;  %v3286_v53 = vmul.f32 %v7184_v2, %v9461_v1  ;;  %v3396_v60 = vadd.f32 %v3284_v45, %v3058_v43  ;;  %v3073_v40 = vld [vmem:[#allocation2 + $0x31] sm:$0x1] }
 0x2f7   : > { %3490 = vst [vmem:[#allocation2 + $0x10] sm:$0x1] %v3378_v51  ;;  %v7186_v51 = vld [vmem:[%s8275_s14 + $0x3d] sm:$0x1]  ;;  %v3287_v57 = vmul.f32 %v7185_v47, %v9461_v1  ;;  %v3397_v0 = vadd.f32 %v3285_v49, %v3059_v46  ;;  %v3074_v2 = vld [vmem:[#allocation2 + $0x32] sm:$0x1] }
 0x2f8   : > { %3491 = vst [vmem:[#allocation2 + $0x11] sm:$0x1] %v3379_v55  ;;  %v7187_v55 = vld [vmem:[%s8275_s14 + $0x3e] sm:$0x1]  ;;  %v3288_v61 = vmul.f32 %v7186_v51, %v9461_v1  ;;  %v3398_v6 = vadd.f32 %v3286_v53, %v3060_v50  ;;  %v3075_v47 = vld [vmem:[#allocation2 + $0x33] sm:$0x1] }
 0x2f9   : > { %3492 = vst [vmem:[#allocation2 + $0x12] sm:$0x1] %v3380_v59  ;;  %v7188_v59 = vld [vmem:[%s8275_s14 + $0x3f] sm:$0x1]  ;;  %v3289_v3 = vmul.f32 %v7187_v55, %v9461_v1  ;;  %v3399_v10 = vadd.f32 %v3287_v57, %v3061_v54  ;;  %v3076_v51 = vld [vmem:[#allocation2 + $0x34] sm:$0x1] }
 0x2fa   : > { %3493 = vst [vmem:[#allocation2 + $0x13] sm:$0x1] %v3381_v63  ;;  %v7189_v63 = vld [vmem:[%s8275_s14 + $0x40] sm:$0x1]  ;;  %v3290_v7 = vmul.f32 %v7188_v59, %v9461_v1  ;;  %v3400_v15 = vadd.f32 %v3288_v61, %v3062_v58  ;;  %v3077_v55 = vld [vmem:[#allocation2 + $0x35] sm:$0x1] }
 0x2fb   : > { %3494 = vst [vmem:[#allocation2 + $0x14] sm:$0x1] %v3382_v5  ;;  %v7190_v5 = vld [vmem:[%s8275_s14 + $0x41] sm:$0x1]  ;;  %v3291_v12 = vmul.f32 %v7189_v63, %v9461_v1  ;;  %v3401_v19 = vadd.f32 %v3289_v3, %v3063_v62  ;;  %v3078_v59 = vld [vmem:[#allocation2 + $0x36] sm:$0x1] }
 0x2fc   : > { %3495 = vst [vmem:[#allocation2 + $0x15] sm:$0x1] %v3383_v9  ;;  %v7191_v9 = vld [vmem:[%s8275_s14 + $0x42] sm:$0x1]  ;;  %v3292_v16 = vmul.f32 %v7190_v5, %v9461_v1  ;;  %v3402_v23 = vadd.f32 %v3290_v7, %v3064_v4  ;;  %v3079_v63 = vld [vmem:[#allocation2 + $0x37] sm:$0x1] }
 0x2fd   : > { %3496 = vst [vmem:[#allocation2 + $0x16] sm:$0x1] %v3384_v14  ;;  %v7192_v14 = vld [vmem:[%s8275_s14 + $0x43] sm:$0x1]  ;;  %v3293_v20 = vmul.f32 %v7191_v9, %v9461_v1  ;;  %v3403_v27 = vadd.f32 %v3291_v12, %v3065_v8  ;;  %v3080_v5 = vld [vmem:[#allocation2 + $0x38] sm:$0x1] }
 0x2fe   : > { %3497 = vst [vmem:[#allocation2 + $0x17] sm:$0x1] %v3385_v18  ;;  %v7193_v18 = vld [vmem:[%s8275_s14 + $0x44] sm:$0x1]  ;;  %v3294_v24 = vmul.f32 %v7192_v14, %v9461_v1  ;;  %v3404_v31 = vadd.f32 %v3292_v16, %v3066_v13  ;;  %v3081_v9 = vld [vmem:[#allocation2 + $0x39] sm:$0x1] }
 0x2ff   : > { %3498 = vst [vmem:[#allocation2 + $0x18] sm:$0x1] %v3386_v22  ;;  %v7194_v22 = vld [vmem:[%s8275_s14 + $0x45] sm:$0x1]  ;;  %v3295_v28 = vmul.f32 %v7193_v18, %v9461_v1  ;;  %v3405_v35 = vadd.f32 %v3293_v20, %v3067_v17  ;;  %v3082_v14 = vld [vmem:[#allocation2 + $0x3a] sm:$0x1] }
 0x300   : > { %3499 = vst [vmem:[#allocation2 + $0x19] sm:$0x1] %v3387_v26  ;;  %v7195_v26 = vld [vmem:[%s8275_s14 + $0x46] sm:$0x1]  ;;  %v3296_v32 = vmul.f32 %v7194_v22, %v9461_v1  ;;  %v3406_v38 = vadd.f32 %v3294_v24, %v3068_v21  ;;  %v3083_v18 = vld [vmem:[#allocation2 + $0x3b] sm:$0x1] }
 0x301   : > { %3500 = vst [vmem:[#allocation2 + $0x1a] sm:$0x1] %v3388_v30  ;;  %v7196_v30 = vld [vmem:[%s8275_s14 + $0x49] sm:$0x1]  ;;  %v3297_v11 = vmul.f32 %v7195_v26, %v9461_v1  ;;  %v3407_v42 = vadd.f32 %v3295_v28, %v3069_v25  ;;  %v3084_v22 = vld [vmem:[#allocation2 + $0x3c] sm:$0x1] }
 0x302   : > { %3501 = vst [vmem:[#allocation2 + $0x1b] sm:$0x1] %v3389_v34  ;;  %v7197_v34 = vld [vmem:[%s8275_s14 + $0x4a] sm:$0x1]  ;;  %v3298_v39 = vmul.f32 %v7196_v30, %v9461_v1  ;;  %v3408_v45 = vadd.f32 %v3296_v32, %v3070_v29  ;;  %v3085_v26 = vld [vmem:[#allocation2 + $0x3d] sm:$0x1] }
 0x303   : > { %3502 = vst [vmem:[#allocation2 + $0x1c] sm:$0x1] %v3390_v37  ;;  %v7198_v37 = vld [vmem:[%s8275_s14 + $0x4b] sm:$0x1]  ;;  %v3299_v43 = vmul.f32 %v7197_v34, %v9461_v1  ;;  %v3409_v49 = vadd.f32 %v3297_v11, %v3071_v33  ;;  %v3086_v30 = vld [vmem:[#allocation2 + $0x3e] sm:$0x1] }
 0x304   : > { %3503 = vst [vmem:[#allocation2 + $0x1d] sm:$0x1] %v3391_v41  ;;  %v7199_v41 = vld [vmem:[%s8275_s14 + $0x4c] sm:$0x1]  ;;  %v3300_v46 = vmul.f32 %v7198_v37, %v9461_v1  ;;  %v3410_v53 = vadd.f32 %v3298_v39, %v3072_v36  ;;  %v3087_v34 = vld [vmem:[#allocation2 + $0x3f] sm:$0x1] }
 0x305   : > { %3504 = vst [vmem:[#allocation2 + $0x1e] sm:$0x1] %v3392_v44  ;;  %v7200_v44 = vld [vmem:[%s8275_s14 + $0x4d] sm:$0x1]  ;;  %v3301_v50 = vmul.f32 %v7199_v41, %v9461_v1  ;;  %v3411_v57 = vadd.f32 %v3299_v43, %v3073_v40  ;;  %v3088_v37 = vld [vmem:[#allocation2 + $0x40] sm:$0x1] }
 0x306   : > { %3505 = vst [vmem:[#allocation2 + $0x1f] sm:$0x1] %v3393_v48  ;;  %v7201_v48 = vld [vmem:[%s8275_s14 + $0x4e] sm:$0x1]  ;;  %v3302_v54 = vmul.f32 %v7200_v44, %v9461_v1  ;;  %v3412_v61 = vadd.f32 %v3300_v46, %v3074_v2  ;;  %v3089_v41 = vld [vmem:[#allocation2 + $0x41] sm:$0x1] }
 0x307   : > { %3506 = vst [vmem:[#allocation2 + $0x20] sm:$0x1] %v3394_v52  ;;  %v7202_v52 = vld [vmem:[%s8275_s14 + $0x4f] sm:$0x1]  ;;  %v3303_v58 = vmul.f32 %v7201_v48, %v9461_v1  ;;  %v3413_v3 = vadd.f32 %v3301_v50, %v3075_v47  ;;  %v3090_v44 = vld [vmem:[#allocation2 + $0x42] sm:$0x1] }
 0x308   : > { %3507 = vst [vmem:[#allocation2 + $0x21] sm:$0x1] %v3395_v56  ;;  %v7203_v56 = vld [vmem:[%s8275_s14 + $0x50] sm:$0x1]  ;;  %v3304_v62 = vmul.f32 %v7202_v52, %v9461_v1  ;;  %v3414_v7 = vadd.f32 %v3302_v54, %v3076_v51  ;;  %v3091_v48 = vld [vmem:[#allocation2 + $0x43] sm:$0x1] }
 0x309   : > { %3508 = vst [vmem:[#allocation2 + $0x22] sm:$0x1] %v3396_v60  ;;  %v7204_v60 = vld [vmem:[%s8275_s14 + $0x51] sm:$0x1]  ;;  %v3305_v4 = vmul.f32 %v7203_v56, %v9461_v1  ;;  %v3415_v12 = vadd.f32 %v3303_v58, %v3077_v55  ;;  %v3092_v52 = vld [vmem:[#allocation2 + $0x44] sm:$0x1] }
 0x30a   : > { %3509 = vst [vmem:[#allocation2 + $0x23] sm:$0x1] %v3397_v0  ;;  %v7205_v0 = vld [vmem:[%s8275_s14 + $0x52] sm:$0x1]  ;;  %v3306_v8 = vmul.f32 %v7204_v60, %v9461_v1  ;;  %v3416_v16 = vadd.f32 %v3304_v62, %v3078_v59  ;;  %v3093_v56 = vld [vmem:[#allocation2 + $0x45] sm:$0x1] }
 0x30b   : > { %3510 = vst [vmem:[#allocation2 + $0x24] sm:$0x1] %v3398_v6  ;;  %v7206_v6 = vld [vmem:[%s8275_s14 + $0x53] sm:$0x1]  ;;  %v3307_v13 = vmul.f32 %v7205_v0, %v9461_v1  ;;  %v3417_v20 = vadd.f32 %v3305_v4, %v3079_v63  ;;  %v3094_v60 = vld [vmem:[#allocation2 + $0x46] sm:$0x1] }
 0x30c   : > { %3511 = vst [vmem:[#allocation2 + $0x25] sm:$0x1] %v3399_v10  ;;  %v7207_v10 = vld [vmem:[%s8275_s14 + $0x54] sm:$0x1]  ;;  %v3308_v17 = vmul.f32 %v7206_v6, %v9461_v1  ;;  %v3418_v24 = vadd.f32 %v3306_v8, %v3080_v5  ;;  %v3095_v0 = vld [vmem:[#allocation2 + $0x47] sm:$0x1] }
 0x30d   : > { %3512 = vst [vmem:[#allocation2 + $0x26] sm:$0x1] %v3400_v15  ;;  %v7208_v15 = vld [vmem:[%s8275_s14 + $0x55] sm:$0x1]  ;;  %v3309_v21 = vmul.f32 %v7207_v10, %v9461_v1  ;;  %v3419_v28 = vadd.f32 %v3307_v13, %v3081_v9  ;;  %v3096_v6 = vld [vmem:[#allocation2 + $0x48] sm:$0x1] }
 0x30e   : > { %3513 = vst [vmem:[#allocation2 + $0x27] sm:$0x1] %v3401_v19  ;;  %v7209_v19 = vld [vmem:[%s8275_s14 + $0x56] sm:$0x1]  ;;  %v3310_v25 = vmul.f32 %v7208_v15, %v9461_v1  ;;  %v3420_v32 = vadd.f32 %v3308_v17, %v3082_v14  ;;  %v3097_v10 = vld [vmem:[#allocation2 + $0x49] sm:$0x1] }
 0x30f   : > { %3514 = vst [vmem:[#allocation2 + $0x28] sm:$0x1] %v3402_v23  ;;  %v7210_v23 = vld [vmem:[%s8275_s14 + $0x57] sm:$0x1]  ;;  %v3311_v29 = vmul.f32 %v7209_v19, %v9461_v1  ;;  %v3421_v11 = vadd.f32 %v3309_v21, %v3083_v18  ;;  %v3098_v15 = vld [vmem:[#allocation2 + $0x4a] sm:$0x1] }
 0x310   : > { %3515 = vst [vmem:[#allocation2 + $0x29] sm:$0x1] %v3403_v27  ;;  %v7211_v27 = vld [vmem:[%s8275_s14 + $0x58] sm:$0x1]  ;;  %v3312_v33 = vmul.f32 %v7210_v23, %v9461_v1  ;;  %v3422_v39 = vadd.f32 %v3310_v25, %v3084_v22  ;;  %v3099_v19 = vld [vmem:[#allocation2 + $0x4b] sm:$0x1] }
 0x311   : > { %3516 = vst [vmem:[#allocation2 + $0x2a] sm:$0x1] %v3404_v31  ;;  %v7212_v31 = vld [vmem:[%s8275_s14 + $0x5b] sm:$0x1]  ;;  %v3313_v36 = vmul.f32 %v7211_v27, %v9461_v1  ;;  %v3423_v43 = vadd.f32 %v3311_v29, %v3085_v26  ;;  %v3100_v23 = vld [vmem:[#allocation2 + $0x4c] sm:$0x1] }
 0x312   : > { %3517 = vst [vmem:[#allocation2 + $0x2b] sm:$0x1] %v3405_v35  ;;  %v7213_v35 = vld [vmem:[%s8275_s14 + $0x5c] sm:$0x1]  ;;  %v3314_v40 = vmul.f32 %v7212_v31, %v9461_v1  ;;  %v3424_v46 = vadd.f32 %v3312_v33, %v3086_v30  ;;  %v3101_v27 = vld [vmem:[#allocation2 + $0x4d] sm:$0x1] }
 0x313   : > { %3518 = vst [vmem:[#allocation2 + $0x2c] sm:$0x1] %v3406_v38  ;;  %v7214_v38 = vld [vmem:[%s8275_s14 + $0x5d] sm:$0x1]  ;;  %v3315_v2 = vmul.f32 %v7213_v35, %v9461_v1  ;;  %v3425_v50 = vadd.f32 %v3313_v36, %v3087_v34  ;;  %v3102_v31 = vld [vmem:[#allocation2 + $0x4e] sm:$0x1] }
 0x314   : > { %3519 = vst [vmem:[#allocation2 + $0x2d] sm:$0x1] %v3407_v42  ;;  %v7215_v42 = vld [vmem:[%s8275_s14 + $0x5e] sm:$0x1]  ;;  %v3316_v47 = vmul.f32 %v7214_v38, %v9461_v1  ;;  %v3426_v54 = vadd.f32 %v3314_v40, %v3088_v37  ;;  %v3103_v35 = vld [vmem:[#allocation2 + $0x4f] sm:$0x1] }
 0x315   : > { %3520 = vst [vmem:[#allocation2 + $0x2e] sm:$0x1] %v3408_v45  ;;  %v7216_v45 = vld [vmem:[%s8275_s14 + $0x5f] sm:$0x1]  ;;  %v3317_v51 = vmul.f32 %v7215_v42, %v9461_v1  ;;  %v3427_v58 = vadd.f32 %v3315_v2, %v3089_v41  ;;  %v3104_v38 = vld [vmem:[#allocation2 + $0x50] sm:$0x1] }
 0x316   : > { %3521 = vst [vmem:[#allocation2 + $0x2f] sm:$0x1] %v3409_v49  ;;  %v7217_v49 = vld [vmem:[%s8275_s14 + $0x60] sm:$0x1]  ;;  %v3318_v55 = vmul.f32 %v7216_v45, %v9461_v1  ;;  %v3428_v62 = vadd.f32 %v3316_v47, %v3090_v44  ;;  %v3105_v42 = vld [vmem:[#allocation2 + $0x51] sm:$0x1] }
 0x317   : > { %3522 = vst [vmem:[#allocation2 + $0x30] sm:$0x1] %v3410_v53  ;;  %v7218_v53 = vld [vmem:[%s8275_s14 + $0x61] sm:$0x1]  ;;  %v3319_v59 = vmul.f32 %v7217_v49, %v9461_v1  ;;  %v3429_v4 = vadd.f32 %v3317_v51, %v3091_v48  ;;  %v3106_v45 = vld [vmem:[#allocation2 + $0x52] sm:$0x1] }
 0x318   : > { %3523 = vst [vmem:[#allocation2 + $0x31] sm:$0x1] %v3411_v57  ;;  %v7219_v57 = vld [vmem:[%s8275_s14 + $0x62] sm:$0x1]  ;;  %v3320_v63 = vmul.f32 %v7218_v53, %v9461_v1  ;;  %v3430_v8 = vadd.f32 %v3318_v55, %v3092_v52  ;;  %v3107_v49 = vld [vmem:[#allocation2 + $0x53] sm:$0x1] }
 0x319   : > { %3524 = vst [vmem:[#allocation2 + $0x32] sm:$0x1] %v3412_v61  ;;  %v7220_v61 = vld [vmem:[%s8275_s14 + $0x63] sm:$0x1]  ;;  %v3321_v5 = vmul.f32 %v7219_v57, %v9461_v1  ;;  %v3431_v13 = vadd.f32 %v3319_v59, %v3093_v56  ;;  %v3108_v53 = vld [vmem:[#allocation2 + $0x54] sm:$0x1] }
 0x31a   : > { %3525 = vst [vmem:[#allocation2 + $0x33] sm:$0x1] %v3413_v3  ;;  %v7221_v3 = vld [vmem:[%s8275_s14 + $0x64] sm:$0x1]  ;;  %v3322_v9 = vmul.f32 %v7220_v61, %v9461_v1  ;;  %v3432_v17 = vadd.f32 %v3320_v63, %v3094_v60  ;;  %v3109_v57 = vld [vmem:[#allocation2 + $0x55] sm:$0x1] }
 0x31b   : > { %3526 = vst [vmem:[#allocation2 + $0x34] sm:$0x1] %v3414_v7  ;;  %v7222_v7 = vld [vmem:[%s8275_s14 + $0x65] sm:$0x1]  ;;  %v3323_v14 = vmul.f32 %v7221_v3, %v9461_v1  ;;  %v3433_v21 = vadd.f32 %v3321_v5, %v3095_v0  ;;  %v3110_v61 = vld [vmem:[#allocation2 + $0x56] sm:$0x1] }
 0x31c   : > { %3527 = vst [vmem:[#allocation2 + $0x35] sm:$0x1] %v3415_v12  ;;  %v7223_v12 = vld [vmem:[%s8275_s14 + $0x66] sm:$0x1]  ;;  %v3324_v18 = vmul.f32 %v7222_v7, %v9461_v1  ;;  %v3434_v25 = vadd.f32 %v3322_v9, %v3096_v6  ;;  %v3111_v3 = vld [vmem:[#allocation2 + $0x57] sm:$0x1] }
 0x31d   : > { %3528 = vst [vmem:[#allocation2 + $0x36] sm:$0x1] %v3416_v16  ;;  %v7224_v16 = vld [vmem:[%s8275_s14 + $0x67] sm:$0x1]  ;;  %v3325_v22 = vmul.f32 %v7223_v12, %v9461_v1  ;;  %v3435_v29 = vadd.f32 %v3323_v14, %v3097_v10  ;;  %v3112_v7 = vld [vmem:[#allocation2 + $0x58] sm:$0x1] }
 0x31e   : > { %3529 = vst [vmem:[#allocation2 + $0x37] sm:$0x1] %v3417_v20  ;;  %v7225_v20 = vld [vmem:[%s8275_s14 + $0x68] sm:$0x1]  ;;  %v3326_v26 = vmul.f32 %v7224_v16, %v9461_v1  ;;  %v3436_v33 = vadd.f32 %v3324_v18, %v3098_v15  ;;  %v3113_v12 = vld [vmem:[#allocation2 + $0x59] sm:$0x1] }
 0x31f   : > { %3530 = vst [vmem:[#allocation2 + $0x38] sm:$0x1] %v3418_v24  ;;  %v7226_v24 = vld [vmem:[%s8275_s14 + $0x69] sm:$0x1]  ;;  %v3327_v30 = vmul.f32 %v7225_v20, %v9461_v1  ;;  %v3437_v36 = vadd.f32 %v3325_v22, %v3099_v19  ;;  %v3114_v16 = vld [vmem:[#allocation2 + $0x5a] sm:$0x1] }
 0x320   : > { %3531 = vst [vmem:[#allocation2 + $0x39] sm:$0x1] %v3419_v28  ;;  %v7227_v28 = vld [vmem:[%s8275_s14 + $0x6a] sm:$0x1]  ;;  %v3328_v34 = vmul.f32 %v7226_v24, %v9461_v1  ;;  %v3438_v40 = vadd.f32 %v3326_v26, %v3100_v23  ;;  %v3115_v20 = vld [vmem:[#allocation2 + $0x5b] sm:$0x1] }
 0x321   : > { %3532 = vst [vmem:[#allocation2 + $0x3a] sm:$0x1] %v3420_v32  ;;  %v7228_v32 = vld [vmem:[%s8275_s14 + $0x6d] sm:$0x1]  ;;  %v3329_v37 = vmul.f32 %v7227_v28, %v9461_v1  ;;  %v3439_v2 = vadd.f32 %v3327_v30, %v3101_v27  ;;  %v3116_v24 = vld [vmem:[#allocation2 + $0x5c] sm:$0x1] }
 0x322   : > { %3533 = vst [vmem:[#allocation2 + $0x3b] sm:$0x1] %v3421_v11  ;;  %v7229_v11 = vld [vmem:[%s8275_s14 + $0x6e] sm:$0x1]  ;;  %v3330_v41 = vmul.f32 %v7228_v32, %v9461_v1  ;;  %v3440_v47 = vadd.f32 %v3328_v34, %v3102_v31  ;;  %v3117_v28 = vld [vmem:[#allocation2 + $0x5d] sm:$0x1] }
 0x323   : > { %3534 = vst [vmem:[#allocation2 + $0x3c] sm:$0x1] %v3422_v39  ;;  %v7230_v39 = vld [vmem:[%s8275_s14 + $0x6f] sm:$0x1]  ;;  %v3331_v44 = vmul.f32 %v7229_v11, %v9461_v1  ;;  %v3441_v51 = vadd.f32 %v3329_v37, %v3103_v35  ;;  %v3118_v32 = vld [vmem:[#allocation2 + $0x5e] sm:$0x1] }
 0x324   : > { %3535 = vst [vmem:[#allocation2 + $0x3d] sm:$0x1] %v3423_v43  ;;  %v7231_v43 = vld [vmem:[%s8275_s14 + $0x70] sm:$0x1]  ;;  %v3332_v48 = vmul.f32 %v7230_v39, %v9461_v1  ;;  %v3442_v55 = vadd.f32 %v3330_v41, %v3104_v38  ;;  %v3119_v11 = vld [vmem:[#allocation2 + $0x5f] sm:$0x1] }
 0x325   : > { %3536 = vst [vmem:[#allocation2 + $0x3e] sm:$0x1] %v3424_v46  ;;  %v7232_v46 = vld [vmem:[%s8275_s14 + $0x71] sm:$0x1]  ;;  %v3333_v52 = vmul.f32 %v7231_v43, %v9461_v1  ;;  %v3443_v59 = vadd.f32 %v3331_v44, %v3105_v42  ;;  %v3120_v39 = vld [vmem:[#allocation2 + $0x60] sm:$0x1] }
 0x326   : > { %3537 = vst [vmem:[#allocation2 + $0x3f] sm:$0x1] %v3425_v50  ;;  %v7233_v50 = vld [vmem:[%s8275_s14 + $0x72] sm:$0x1]  ;;  %v3334_v56 = vmul.f32 %v7232_v46, %v9461_v1  ;;  %v3444_v63 = vadd.f32 %v3332_v48, %v3106_v45  ;;  %v3121_v43 = vld [vmem:[#allocation2 + $0x61] sm:$0x1] }
 0x327   : > { %3538 = vst [vmem:[#allocation2 + $0x40] sm:$0x1] %v3426_v54  ;;  %v7234_v54 = vld [vmem:[%s8275_s14 + $0x73] sm:$0x1]  ;;  %v3335_v60 = vmul.f32 %v7233_v50, %v9461_v1  ;;  %v3445_v5 = vadd.f32 %v3333_v52, %v3107_v49  ;;  %v3122_v46 = vld [vmem:[#allocation2 + $0x62] sm:$0x1] }
 0x328   : > { %3539 = vst [vmem:[#allocation2 + $0x41] sm:$0x1] %v3427_v58  ;;  %v7235_v58 = vld [vmem:[%s8275_s14 + $0x74] sm:$0x1]  ;;  %v3336_v0 = vmul.f32 %v7234_v54, %v9461_v1  ;;  %v3446_v9 = vadd.f32 %v3334_v56, %v3108_v53  ;;  %v3123_v50 = vld [vmem:[#allocation2 + $0x63] sm:$0x1] }
 0x329   : > { %3540 = vst [vmem:[#allocation2 + $0x42] sm:$0x1] %v3428_v62  ;;  %v7236_v62 = vld [vmem:[%s8275_s14 + $0x75] sm:$0x1]  ;;  %v3337_v6 = vmul.f32 %v7235_v58, %v9461_v1  ;;  %v3447_v14 = vadd.f32 %v3335_v60, %v3109_v57  ;;  %v3124_v54 = vld [vmem:[#allocation2 + $0x64] sm:$0x1] }
 0x32a   : > { %3541 = vst [vmem:[#allocation2 + $0x43] sm:$0x1] %v3429_v4  ;;  %v7237_v4 = vld [vmem:[%s8275_s14 + $0x76] sm:$0x1]  ;;  %v3338_v10 = vmul.f32 %v7236_v62, %v9461_v1  ;;  %v3448_v18 = vadd.f32 %v3336_v0, %v3110_v61  ;;  %v3125_v58 = vld [vmem:[#allocation2 + $0x65] sm:$0x1] }
 0x32b   : > { %3542 = vst [vmem:[#allocation2 + $0x44] sm:$0x1] %v3430_v8  ;;  %v7238_v8 = vld [vmem:[%s8275_s14 + $0x77] sm:$0x1]  ;;  %v3339_v15 = vmul.f32 %v7237_v4, %v9461_v1  ;;  %v3449_v22 = vadd.f32 %v3337_v6, %v3111_v3  ;;  %v3126_v62 = vld [vmem:[#allocation2 + $0x66] sm:$0x1] }
 0x32c   : > { %3543 = vst [vmem:[#allocation2 + $0x45] sm:$0x1] %v3431_v13  ;;  %v7239_v13 = vld [vmem:[%s8275_s14 + $0x78] sm:$0x1]  ;;  %v3340_v19 = vmul.f32 %v7238_v8, %v9461_v1  ;;  %v3450_v26 = vadd.f32 %v3338_v10, %v3112_v7  ;;  %v3127_v4 = vld [vmem:[#allocation2 + $0x67] sm:$0x1] }
 0x32d   : > { %3544 = vst [vmem:[#allocation2 + $0x46] sm:$0x1] %v3432_v17  ;;  %v7240_v17 = vld [vmem:[%s8275_s14 + $0x79] sm:$0x1]  ;;  %v3341_v23 = vmul.f32 %v7239_v13, %v9461_v1  ;;  %v3451_v30 = vadd.f32 %v3339_v15, %v3113_v12  ;;  %v3128_v8 = vld [vmem:[#allocation2 + $0x68] sm:$0x1] }
 0x32e   : > { %3545 = vst [vmem:[#allocation2 + $0x47] sm:$0x1] %v3433_v21  ;;  %v7241_v21 = vld [vmem:[%s8275_s14 + $0x7a] sm:$0x1]  ;;  %v3342_v27 = vmul.f32 %v7240_v17, %v9461_v1  ;;  %v3452_v34 = vadd.f32 %v3340_v19, %v3114_v16  ;;  %v3129_v13 = vld [vmem:[#allocation2 + $0x69] sm:$0x1] }
 0x32f   : > { %3546 = vst [vmem:[#allocation2 + $0x48] sm:$0x1] %v3434_v25  ;;  %v7242_v25 = vld [vmem:[%s8275_s14 + $0x7b] sm:$0x1]  ;;  %v3343_v31 = vmul.f32 %v7241_v21, %v9461_v1  ;;  %v3453_v37 = vadd.f32 %v3341_v23, %v3115_v20  ;;  %v3130_v17 = vld [vmem:[#allocation2 + $0x6a] sm:$0x1] }
 0x330   : > { %3547 = vst [vmem:[#allocation2 + $0x49] sm:$0x1] %v3435_v29  ;;  %v7243_v29 = vld [vmem:[%s8275_s14 + $0x7c] sm:$0x1]  ;;  %v3344_v35 = vmul.f32 %v7242_v25, %v9461_v1  ;;  %v3454_v41 = vadd.f32 %v3342_v27, %v3116_v24  ;;  %v3131_v21 = vld [vmem:[#allocation2 + $0x6b] sm:$0x1] }
 0x331   : > { %3548 = vst [vmem:[#allocation2 + $0x4a] sm:$0x1] %v3436_v33  ;;  %v7244_v33 = vld [vmem:[%s8275_s14 + $0x7f] sm:$0x1]  ;;  %v3345_v38 = vmul.f32 %v7243_v29, %v9461_v1  ;;  %v3455_v44 = vadd.f32 %v3343_v31, %v3117_v28  ;;  %v3132_v25 = vld [vmem:[#allocation2 + $0x6c] sm:$0x1] }
 0x332   : > { %3549 = vst [vmem:[#allocation2 + $0x4b] sm:$0x1] %v3437_v36  ;;  %v7245_v36 = vld [vmem:[%s8275_s14 + $0x80] sm:$0x1]  ;;  %v3346_v42 = vmul.f32 %v7244_v33, %v9461_v1  ;;  %v3456_v48 = vadd.f32 %v3344_v35, %v3118_v32  ;;  %v3133_v29 = vld [vmem:[#allocation2 + $0x6d] sm:$0x1] }
 0x333   : > { %3550 = vst [vmem:[#allocation2 + $0x4c] sm:$0x1] %v3438_v40  ;;  %v7246_v40 = vld [vmem:[%s8275_s14 + $0x81] sm:$0x1]  ;;  %v3347_v45 = vmul.f32 %v7245_v36, %v9461_v1  ;;  %v3457_v52 = vadd.f32 %v3345_v38, %v3119_v11  ;;  %v3134_v33 = vld [vmem:[#allocation2 + $0x6e] sm:$0x1] }
 0x334   : > { %3551 = vst [vmem:[#allocation2 + $0x4d] sm:$0x1] %v3439_v2  ;;  %v7247_v2 = vld [vmem:[%s8275_s14 + $0x82] sm:$0x1]  ;;  %v3348_v49 = vmul.f32 %v7246_v40, %v9461_v1  ;;  %v3458_v56 = vadd.f32 %v3346_v42, %v3120_v39  ;;  %v3135_v36 = vld [vmem:[#allocation2 + $0x6f] sm:$0x1] }
 0x335   : > { %3552 = vst [vmem:[#allocation2 + $0x4e] sm:$0x1] %v3440_v47  ;;  %v7248_v47 = vld [vmem:[%s8275_s14 + $0x83] sm:$0x1]  ;;  %v3349_v53 = vmul.f32 %v7247_v2, %v9461_v1  ;;  %v3459_v60 = vadd.f32 %v3347_v45, %v3121_v43  ;;  %v3586_v40 = vld [vmem:[#allocation2 + $0x70] sm:$0x1] }
 0x336   : > { %3553 = vst [vmem:[#allocation2 + $0x4f] sm:$0x1] %v3441_v51  ;;  %v7249_v51 = vld [vmem:[%s8275_s14 + $0x84] sm:$0x1]  ;;  %v3350_v57 = vmul.f32 %v7248_v47, %v9461_v1  ;;  %v3460_v0 = vadd.f32 %v3348_v49, %v3122_v46  ;;  %v3587_v2 = vld [vmem:[#allocation2 + $0x71] sm:$0x1] }
 0x337   : > { %3554 = vst [vmem:[#allocation2 + $0x50] sm:$0x1] %v3442_v55  ;;  %v7250_v55 = vld [vmem:[%s8275_s14 + $0x85] sm:$0x1]  ;;  %v3351_v61 = vmul.f32 %v7249_v51, %v9461_v1  ;;  %v3461_v6 = vadd.f32 %v3349_v53, %v3123_v50  ;;  %v3588_v47 = vld [vmem:[#allocation2 + $0x72] sm:$0x1] }
 0x338   : > { %3555 = vst [vmem:[#allocation2 + $0x51] sm:$0x1] %v3443_v59  ;;  %v7251_v59 = vld [vmem:[%s8275_s14 + $0x86] sm:$0x1]  ;;  %v3352_v3 = vmul.f32 %v7250_v55, %v9461_v1  ;;  %v3462_v10 = vadd.f32 %v3350_v57, %v3124_v54  ;;  %v3589_v51 = vld [vmem:[#allocation2 + $0x73] sm:$0x1] }
 0x339   : > { %3556 = vst [vmem:[#allocation2 + $0x52] sm:$0x1] %v3444_v63  ;;  %v7252_v63 = vld [vmem:[%s8275_s14 + $0x87] sm:$0x1]  ;;  %v3353_v7 = vmul.f32 %v7251_v59, %v9461_v1  ;;  %v3463_v15 = vadd.f32 %v3351_v61, %v3125_v58  ;;  %v3590_v55 = vld [vmem:[#allocation2 + $0x74] sm:$0x1] }
 0x33a   : > { %3557 = vst [vmem:[#allocation2 + $0x53] sm:$0x1] %v3445_v5  ;;  %v7253_v5 = vld [vmem:[%s8275_s14 + $0x88] sm:$0x1]  ;;  %v3354_v12 = vmul.f32 %v7252_v63, %v9461_v1  ;;  %v3464_v19 = vadd.f32 %v3352_v3, %v3126_v62  ;;  %v3591_v59 = vld [vmem:[#allocation2 + $0x75] sm:$0x1] }
 0x33b   : > { %3558 = vst [vmem:[#allocation2 + $0x54] sm:$0x1] %v3446_v9  ;;  %v7254_v9 = vld [vmem:[%s8275_s14 + $0x89] sm:$0x1]  ;;  %v3355_v16 = vmul.f32 %v7253_v5, %v9461_v1  ;;  %v3465_v23 = vadd.f32 %v3353_v7, %v3127_v4  ;;  %v3592_v63 = vld [vmem:[#allocation2 + $0x76] sm:$0x1] }
 0x33c   : > { %3559 = vst [vmem:[#allocation2 + $0x55] sm:$0x1] %v3447_v14  ;;  %v7255_v14 = vld [vmem:[%s8275_s14 + $0x8a] sm:$0x1]  ;;  %v3356_v20 = vmul.f32 %v7254_v9, %v9461_v1  ;;  %v3466_v27 = vadd.f32 %v3354_v12, %v3128_v8  ;;  %v3593_v5 = vld [vmem:[#allocation2 + $0x77] sm:$0x1] }
 0x33d   : > { %3560 = vst [vmem:[#allocation2 + $0x56] sm:$0x1] %v3448_v18  ;;  %v7256_v18 = vld [vmem:[%s8275_s14 + $0x8b] sm:$0x1]  ;;  %v3357_v24 = vmul.f32 %v7255_v14, %v9461_v1  ;;  %v3467_v31 = vadd.f32 %v3355_v16, %v3129_v13  ;;  %v3594_v9 = vld [vmem:[#allocation2 + $0x78] sm:$0x1] }
 0x33e   : > { %3561 = vst [vmem:[#allocation2 + $0x57] sm:$0x1] %v3449_v22  ;;  %v7257_v22 = vld [vmem:[%s8275_s14 + $0x8c] sm:$0x1]  ;;  %v3358_v28 = vmul.f32 %v7256_v18, %v9461_v1  ;;  %v3468_v35 = vadd.f32 %v3356_v20, %v3130_v17  ;;  %v3595_v14 = vld [vmem:[#allocation2 + $0x79] sm:$0x1] }
 0x33f   : > { %3562 = vst [vmem:[#allocation2 + $0x58] sm:$0x1] %v3450_v26  ;;  %v7258_v26 = vld [vmem:[%s8275_s14 + $0x8d] sm:$0x1]  ;;  %v3359_v32 = vmul.f32 %v7257_v22, %v9461_v1  ;;  %v3469_v38 = vadd.f32 %v3357_v24, %v3131_v21  ;;  %v3596_v18 = vld [vmem:[#allocation2 + $0x7a] sm:$0x1] }
 0x340   : > { %3563 = vst [vmem:[#allocation2 + $0x59] sm:$0x1] %v3451_v30  ;;  %v7259_v30 = vld [vmem:[%s8275_s14 + $0x8e] sm:$0x1]  ;;  %v3360_v11 = vmul.f32 %v7258_v26, %v9461_v1  ;;  %v3470_v42 = vadd.f32 %v3358_v28, %v3132_v25  ;;  %v3597_v22 = vld [vmem:[#allocation2 + $0x7b] sm:$0x1] }
 0x341   : > { %3564 = vst [vmem:[#allocation2 + $0x5a] sm:$0x1] %v3452_v34  ;;  %v7260_v34 = vld [vmem:[%s8282_s25 + $0x1] sm:$0x1]  ;;  %v3361_v39 = vmul.f32 %v7259_v30, %v9461_v1  ;;  %v3471_v45 = vadd.f32 %v3359_v32, %v3133_v29  ;;  %v3598_v26 = vld [vmem:[#allocation2 + $0x7c] sm:$0x1] }
 0x342   : > { %3565 = vst [vmem:[#allocation2 + $0x5b] sm:$0x1] %v3453_v37  ;;  %v7261_v37 = vld [vmem:[%s8282_s25 + $0x2] sm:$0x1]  ;;  %v3619_v43 = vmul.f32 %v7260_v34, %v9461_v1  ;;  %v3472_v49 = vadd.f32 %v3360_v11, %v3134_v33  ;;  %v3599_v30 = vld [vmem:[#allocation2 + $0x7d] sm:$0x1]  ;;  %v9722_v11 = vstv %s9703_s15 }
 0x343   : > { %3566 = vst [vmem:[#allocation2 + $0x5c] sm:$0x1] %v3454_v41  ;;  %v7262_v41 = vld [vmem:[%s8282_s25 + $0x3] sm:$0x1]  ;;  %v3620_v46 = vmul.f32 %v7261_v37, %v9461_v1  ;;  %v3473_v53 = vadd.f32 %v3361_v39, %v3135_v36  ;;  %v3600_v34 = vld [vmem:[#allocation2 + $0x7e] sm:$0x1] }
 0x344   : > { %3567 = vst [vmem:[#allocation2 + $0x5d] sm:$0x1] %v3455_v44  ;;  %v7263_v44 = vld [vmem:[%s8282_s25 + $0x4] sm:$0x1]  ;;  %v3621_v50 = vmul.f32 %v7262_v41, %v9461_v1  ;;  %v3635_v57 = vadd.f32 %v3619_v43, %v3586_v40  ;;  %v7277_v39 = vld [vmem:[%s8275_s14 + $0x15] sm:$0x1] }
 0x345   : > { %3568 = vst [vmem:[#allocation2 + $0x5e] sm:$0x1] %v3456_v48  ;;  %v7264_v48 = vld [vmem:[%s8282_s25 + $0x5] sm:$0x1]  ;;  %v3622_v54 = vmul.f32 %v7263_v44, %v9461_v1  ;;  %v3636_v61 = vadd.f32 %v3620_v46, %v3587_v2  ;;  %v7278_v43 = vld [vmem:[%s8275_s14 + $0x16] sm:$0x1] }
 0x346   : > { %3569 = vst [vmem:[#allocation2 + $0x5f] sm:$0x1] %v3457_v52  ;;  %v7265_v52 = vld [vmem:[%s8282_s25 + $0x6] sm:$0x1]  ;;  %v3623_v58 = vmul.f32 %v7264_v48, %v9461_v1  ;;  %v3637_v3 = vadd.f32 %v3621_v50, %v3588_v47  ;;  %v7279_v46 = vld [vmem:[%s8275_s14 + $0x17] sm:$0x1]  ;;  %v3894_v48 = vmul.f32 %v7277_v39, %v9722_v11 }
 0x347   : > { %3570 = vst [vmem:[#allocation2 + $0x60] sm:$0x1] %v3458_v56  ;;  %v7266_v56 = vld [vmem:[%s8282_s25 + $0x7] sm:$0x1]  ;;  %v3624_v62 = vmul.f32 %v7265_v52, %v9461_v1  ;;  %v3638_v7 = vadd.f32 %v3622_v54, %v3589_v51  ;;  %v7280_v50 = vld [vmem:[%s8275_s14 + $0x18] sm:$0x1] }
 0x348   : > { %3571 = vst [vmem:[#allocation2 + $0x61] sm:$0x1] %v3459_v60  ;;  %v7267_v60 = vld [vmem:[%s8282_s25 + $0x8] sm:$0x1]  ;;  %v3625_v4 = vmul.f32 %v7266_v56, %v9461_v1  ;;  %v3639_v12 = vadd.f32 %v3623_v58, %v3590_v55  ;;  %v3670_v52 = vld [vmem:[#allocation2 + $0x3] sm:$0x1]  ;;  %v3896_v55 = vmul.f32 %v7279_v46, %v9722_v11 }
 0x349   : > { %3572 = vst [vmem:[#allocation2 + $0x62] sm:$0x1] %v3460_v0  ;;  %v7268_v0 = vld [vmem:[%s8282_s25 + $0x9] sm:$0x1]  ;;  %v3626_v8 = vmul.f32 %v7267_v60, %v9461_v1  ;;  %v3640_v16 = vadd.f32 %v3624_v62, %v3591_v59  ;;  %v3671_v56 = vld [vmem:[#allocation2 + $0x4] sm:$0x1]  ;;  %v3897_v59 = vmul.f32 %v7280_v50, %v9722_v11 }
 0x34a   : > { %3573 = vst [vmem:[#allocation2 + $0x63] sm:$0x1] %v3461_v6  ;;  %v7269_v6 = vld [vmem:[%s8282_s25 + $0xa] sm:$0x1]  ;;  %v3627_v13 = vmul.f32 %v7268_v0, %v9461_v1  ;;  %v3641_v20 = vadd.f32 %v3625_v4, %v3592_v63  ;;  %v3672_v60 = vld [vmem:[#allocation2 + $0x5] sm:$0x1] }
 0x34b   : > { %3574 = vst [vmem:[#allocation2 + $0x64] sm:$0x1] %v3462_v10  ;;  %v7270_v10 = vld [vmem:[%s8282_s25 + $0xb] sm:$0x1]  ;;  %v3628_v17 = vmul.f32 %v7269_v6, %v9461_v1  ;;  %v3642_v24 = vadd.f32 %v3626_v8, %v3593_v5  ;;  %v3673_v0 = vld [vmem:[#allocation2 + $0x6] sm:$0x1]  ;;  %v4008_v8 = vadd.f32 %v3896_v55, %v3670_v52 }
 0x34c   : > { %3575 = vst [vmem:[#allocation2 + $0x65] sm:$0x1] %v3463_v15  ;;  %v7271_v15 = vld [vmem:[%s8282_s25 + $0xc] sm:$0x1]  ;;  %v3629_v21 = vmul.f32 %v7270_v10, %v9461_v1  ;;  %v3643_v28 = vadd.f32 %v3627_v13, %v3594_v9  ;;  %v3674_v6 = vld [vmem:[#allocation2 + $0x7] sm:$0x1]  ;;  %v4009_v13 = vadd.f32 %v3897_v59, %v3671_v56 }
 0x34d   : > { %3576 = vst [vmem:[#allocation2 + $0x66] sm:$0x1] %v3464_v19  ;;  %v7272_v19 = vld [vmem:[%s8282_s25 + $0xd] sm:$0x1]  ;;  %v3630_v25 = vmul.f32 %v7271_v15, %v9461_v1  ;;  %v3644_v32 = vadd.f32 %v3628_v17, %v3595_v14  ;;  %v3675_v10 = vld [vmem:[#allocation2 + $0x8] sm:$0x1] }
 0x34e   : > { %3577 = vst [vmem:[#allocation2 + $0x67] sm:$0x1] %v3465_v23  ;;  %v7273_v23 = vld [vmem:[%s8282_s25 + $0xe] sm:$0x1]  ;;  %v3631_v29 = vmul.f32 %v7272_v19, %v9461_v1  ;;  %v3645_v36 = vadd.f32 %v3629_v21, %v3596_v18  ;;  %v3676_v15 = vld [vmem:[#allocation2 + $0x9] sm:$0x1] }
 0x34f   : > { %3578 = vst [vmem:[#allocation2 + $0x68] sm:$0x1] %v3466_v27  ;;  %v7274_v27 = vld [vmem:[%s8282_s25 + $0xf] sm:$0x1]  ;;  %v3632_v33 = vmul.f32 %v7273_v23, %v9461_v1  ;;  %v3646_v40 = vadd.f32 %v3630_v25, %v3597_v22  ;;  %v3677_v19 = vld [vmem:[#allocation2 + $0xa] sm:$0x1] }
 0x350   : > { %3579 = vst [vmem:[#allocation2 + $0x69] sm:$0x1] %v3467_v31  ;;  %v7275_v31 = vld [vmem:[%s8282_s25 + $0x10] sm:$0x1]  ;;  %v3633_v37 = vmul.f32 %v7274_v27, %v9461_v1  ;;  %v3647_v2 = vadd.f32 %v3631_v29, %v3598_v26  ;;  %v3678_v23 = vld [vmem:[#allocation2 + $0xb] sm:$0x1] }
 0x351   : > { %3580 = vst [vmem:[#allocation2 + $0x6a] sm:$0x1] %v3468_v35  ;;  %v7276_v35 = vld [vmem:[%s8275_s14 + $0x14] sm:$0x1]  ;;  %v3634_v41 = vmul.f32 %v7275_v31, %v9461_v1  ;;  %v3648_v47 = vadd.f32 %v3632_v33, %v3599_v30  ;;  %v3895_v1 = vmul.f32 %v7278_v43, %v9722_v11  ;;  %v3679_v27 = vld [vmem:[#allocation2 + $0xc] sm:$0x1] }
 0x352   : > { %3581 = vst [vmem:[#allocation2 + $0x6b] sm:$0x1] %v3469_v38  ;;  %v3601_v38 = vld [vmem:[#allocation2 + $0x7f] sm:$0x1]  ;;  %v3893_v44 = vmul.f32 %v7276_v35, %v9722_v11  ;;  %v3649_v51 = vadd.f32 %v3633_v37, %v3600_v34  ;;  %v3680_v31 = vld [vmem:[#allocation2 + $0xd] sm:$0x1] }
 0x353   : > { %3582 = vst [vmem:[#allocation2 + $0x6c] sm:$0x1] %v3470_v42  ;;  %v3667_v42 = vld [vmem:[#allocation2] sm:$0x1]  ;;  %v3650_v54 = vadd.f32 %v3634_v41, %v3601_v38  ;;  %v3681_v35 = vld [vmem:[#allocation2 + $0xe] sm:$0x1] }
 0x354   : > { %3583 = vst [vmem:[#allocation2 + $0x6d] sm:$0x1] %v3471_v45  ;;  %v3668_v45 = vld [vmem:[#allocation2 + $0x1] sm:$0x1]  ;;  %v4005_v58 = vadd.f32 %v3893_v44, %v3667_v42  ;;  %v3682_v39 = vld [vmem:[#allocation2 + $0xf] sm:$0x1] }
 0x355   : > { %3584 = vst [vmem:[#allocation2 + $0x6e] sm:$0x1] %v3472_v49  ;;  %v3669_v49 = vld [vmem:[#allocation2 + $0x2] sm:$0x1]  ;;  %v4006_v62 = vadd.f32 %v3894_v48, %v3668_v45  ;;  %v3683_v43 = vld [vmem:[#allocation2 + $0x10] sm:$0x1] }
 0x356   : > { %3585 = vst [vmem:[#allocation2 + $0x6f] sm:$0x1] %v3473_v53  ;;  %v7281_v53 = vld [vmem:[%s8275_s14 + $0x19] sm:$0x1]  ;;  %v4007_v4 = vadd.f32 %v3895_v1, %v3669_v49  ;;  %v3684_v46 = vld [vmem:[#allocation2 + $0x11] sm:$0x1] }
 0x357   : > { %3651 = vst [vmem:[#allocation2 + $0x70] sm:$0x1] %v3635_v57  ;;  %v7282_v57 = vld [vmem:[%s8275_s14 + $0x1a] sm:$0x1]  ;;  %v3898_v63 = vmul.f32 %v7281_v53, %v9722_v11  ;;  %v3685_v50 = vld [vmem:[#allocation2 + $0x12] sm:$0x1] }
 0x358   : > { %3652 = vst [vmem:[#allocation2 + $0x71] sm:$0x1] %v3636_v61  ;;  %v7283_v61 = vld [vmem:[%s8275_s14 + $0x1b] sm:$0x1]  ;;  %v3899_v5 = vmul.f32 %v7282_v57, %v9722_v11  ;;  %v3686_v53 = vld [vmem:[#allocation2 + $0x13] sm:$0x1] }
 0x359   : > { %3653 = vst [vmem:[#allocation2 + $0x72] sm:$0x1] %v3637_v3  ;;  %v7284_v3 = vld [vmem:[%s8275_s14 + $0x1c] sm:$0x1]  ;;  %v3900_v9 = vmul.f32 %v7283_v61, %v9722_v11  ;;  %v4010_v17 = vadd.f32 %v3898_v63, %v3672_v60  ;;  %v3687_v57 = vld [vmem:[#allocation2 + $0x14] sm:$0x1] }
 0x35a   : > { %3654 = vst [vmem:[#allocation2 + $0x73] sm:$0x1] %v3638_v7  ;;  %v7285_v7 = vld [vmem:[%s8275_s14 + $0x1d] sm:$0x1]  ;;  %v3901_v14 = vmul.f32 %v7284_v3, %v9722_v11  ;;  %v4011_v21 = vadd.f32 %v3899_v5, %v3673_v0  ;;  %v3688_v61 = vld [vmem:[#allocation2 + $0x15] sm:$0x1] }
 0x35b   : > { %3655 = vst [vmem:[#allocation2 + $0x74] sm:$0x1] %v3639_v12  ;;  %v7286_v12 = vld [vmem:[%s8275_s14 + $0x1e] sm:$0x1]  ;;  %v3902_v18 = vmul.f32 %v7285_v7, %v9722_v11  ;;  %v4012_v25 = vadd.f32 %v3900_v9, %v3674_v6  ;;  %v3689_v3 = vld [vmem:[#allocation2 + $0x16] sm:$0x1] }
 0x35c   : > { %3656 = vst [vmem:[#allocation2 + $0x75] sm:$0x1] %v3640_v16  ;;  %v7287_v16 = vld [vmem:[%s8275_s14 + $0x1f] sm:$0x1]  ;;  %v3903_v22 = vmul.f32 %v7286_v12, %v9722_v11  ;;  %v4013_v29 = vadd.f32 %v3901_v14, %v3675_v10  ;;  %v3690_v7 = vld [vmem:[#allocation2 + $0x17] sm:$0x1] }
 0x35d   : > { %3657 = vst [vmem:[#allocation2 + $0x76] sm:$0x1] %v3641_v20  ;;  %v7288_v20 = vld [vmem:[%s8275_s14 + $0x20] sm:$0x1]  ;;  %v3904_v26 = vmul.f32 %v7287_v16, %v9722_v11  ;;  %v4014_v33 = vadd.f32 %v3902_v18, %v3676_v15  ;;  %v3691_v12 = vld [vmem:[#allocation2 + $0x18] sm:$0x1] }
 0x35e   : > { %3658 = vst [vmem:[#allocation2 + $0x77] sm:$0x1] %v3642_v24  ;;  %v7289_v24 = vld [vmem:[%s8275_s14 + $0x21] sm:$0x1]  ;;  %v3905_v30 = vmul.f32 %v7288_v20, %v9722_v11  ;;  %v4015_v37 = vadd.f32 %v3903_v22, %v3677_v19  ;;  %v3692_v16 = vld [vmem:[#allocation2 + $0x19] sm:$0x1] }
 0x35f   : > { %3659 = vst [vmem:[#allocation2 + $0x78] sm:$0x1] %v3643_v28  ;;  %v7290_v28 = vld [vmem:[%s8275_s14 + $0x22] sm:$0x1]  ;;  %v3906_v34 = vmul.f32 %v7289_v24, %v9722_v11  ;;  %v4016_v41 = vadd.f32 %v3904_v26, %v3678_v23  ;;  %v3693_v20 = vld [vmem:[#allocation2 + $0x1a] sm:$0x1] }
 0x360   : > { %3660 = vst [vmem:[#allocation2 + $0x79] sm:$0x1] %v3644_v32  ;;  %v7291_v32 = vld [vmem:[%s8275_s14 + $0x23] sm:$0x1]  ;;  %v3907_v38 = vmul.f32 %v7290_v28, %v9722_v11  ;;  %v4017_v44 = vadd.f32 %v3905_v30, %v3679_v27  ;;  %v3694_v24 = vld [vmem:[#allocation2 + $0x1b] sm:$0x1] }
 0x361   : > { %3661 = vst [vmem:[#allocation2 + $0x7a] sm:$0x1] %v3645_v36  ;;  %v7292_v36 = vld [vmem:[%s8275_s14 + $0x26] sm:$0x1]  ;;  %v3908_v42 = vmul.f32 %v7291_v32, %v9722_v11  ;;  %v4018_v48 = vadd.f32 %v3906_v34, %v3680_v31  ;;  %v3695_v28 = vld [vmem:[#allocation2 + $0x1c] sm:$0x1] }
 0x362   : > { %3662 = vst [vmem:[#allocation2 + $0x7b] sm:$0x1] %v3646_v40  ;;  %v7293_v40 = vld [vmem:[%s8275_s14 + $0x27] sm:$0x1]  ;;  %v3909_v45 = vmul.f32 %v7292_v36, %v9722_v11  ;;  %v4019_v1 = vadd.f32 %v3907_v38, %v3681_v35  ;;  %v3696_v32 = vld [vmem:[#allocation2 + $0x1d] sm:$0x1] }
 0x363   : > { %3663 = vst [vmem:[#allocation2 + $0x7c] sm:$0x1] %v3647_v2  ;;  %v7294_v2 = vld [vmem:[%s8275_s14 + $0x28] sm:$0x1]  ;;  %v3910_v49 = vmul.f32 %v7293_v40, %v9722_v11  ;;  %v4020_v55 = vadd.f32 %v3908_v42, %v3682_v39  ;;  %v3697_v36 = vld [vmem:[#allocation2 + $0x1e] sm:$0x1] }
 0x364   : > { %3664 = vst [vmem:[#allocation2 + $0x7d] sm:$0x1] %v3648_v47  ;;  %v7295_v47 = vld [vmem:[%s8275_s14 + $0x29] sm:$0x1]  ;;  %v3911_v52 = vmul.f32 %v7294_v2, %v9722_v11  ;;  %v4021_v59 = vadd.f32 %v3909_v45, %v3683_v43  ;;  %v3698_v40 = vld [vmem:[#allocation2 + $0x1f] sm:$0x1] }
 0x365   : > { %3665 = vst [vmem:[#allocation2 + $0x7e] sm:$0x1] %v3649_v51  ;;  %v7296_v51 = vld [vmem:[%s8275_s14 + $0x2a] sm:$0x1]  ;;  %v3912_v56 = vmul.f32 %v7295_v47, %v9722_v11  ;;  %v4022_v63 = vadd.f32 %v3910_v49, %v3684_v46  ;;  %v3699_v2 = vld [vmem:[#allocation2 + $0x20] sm:$0x1] }
 0x366   : > { %3666 = vst [vmem:[#allocation2 + $0x7f] sm:$0x1] %v3650_v54  ;;  %v7297_v54 = vld [vmem:[%s8275_s14 + $0x2b] sm:$0x1]  ;;  %v3913_v60 = vmul.f32 %v7296_v51, %v9722_v11  ;;  %v4023_v5 = vadd.f32 %v3911_v52, %v3685_v50  ;;  %v3700_v47 = vld [vmem:[#allocation2 + $0x21] sm:$0x1] }
 0x367   : > { %4117 = vst [vmem:[#allocation2] sm:$0x1] %v4005_v58  ;;  %v7298_v58 = vld [vmem:[%s8275_s14 + $0x2c] sm:$0x1]  ;;  %v3914_v0 = vmul.f32 %v7297_v54, %v9722_v11  ;;  %v4024_v9 = vadd.f32 %v3912_v56, %v3686_v53  ;;  %v3701_v51 = vld [vmem:[#allocation2 + $0x22] sm:$0x1] }
 0x368   : > { %4118 = vst [vmem:[#allocation2 + $0x1] sm:$0x1] %v4006_v62  ;;  %v7299_v62 = vld [vmem:[%s8275_s14 + $0x2d] sm:$0x1]  ;;  %v3915_v6 = vmul.f32 %v7298_v58, %v9722_v11  ;;  %v4025_v14 = vadd.f32 %v3913_v60, %v3687_v57  ;;  %v3702_v54 = vld [vmem:[#allocation2 + $0x23] sm:$0x1] }
 0x369   : > { %4119 = vst [vmem:[#allocation2 + $0x2] sm:$0x1] %v4007_v4  ;;  %v7300_v4 = vld [vmem:[%s8275_s14 + $0x2e] sm:$0x1]  ;;  %v3916_v10 = vmul.f32 %v7299_v62, %v9722_v11  ;;  %v4026_v18 = vadd.f32 %v3914_v0, %v3688_v61  ;;  %v3703_v58 = vld [vmem:[#allocation2 + $0x24] sm:$0x1] }
 0x36a   : > { %4120 = vst [vmem:[#allocation2 + $0x3] sm:$0x1] %v4008_v8  ;;  %v7301_v8 = vld [vmem:[%s8275_s14 + $0x2f] sm:$0x1]  ;;  %v3917_v15 = vmul.f32 %v7300_v4, %v9722_v11  ;;  %v4027_v22 = vadd.f32 %v3915_v6, %v3689_v3  ;;  %v3704_v62 = vld [vmem:[#allocation2 + $0x25] sm:$0x1] }
 0x36b   : > { %4121 = vst [vmem:[#allocation2 + $0x4] sm:$0x1] %v4009_v13  ;;  %v7302_v13 = vld [vmem:[%s8275_s14 + $0x30] sm:$0x1]  ;;  %v3918_v19 = vmul.f32 %v7301_v8, %v9722_v11  ;;  %v4028_v26 = vadd.f32 %v3916_v10, %v3690_v7  ;;  %v3705_v4 = vld [vmem:[#allocation2 + $0x26] sm:$0x1] }
 0x36c   : > { %4122 = vst [vmem:[#allocation2 + $0x5] sm:$0x1] %v4010_v17  ;;  %v7303_v17 = vld [vmem:[%s8275_s14 + $0x31] sm:$0x1]  ;;  %v3919_v23 = vmul.f32 %v7302_v13, %v9722_v11  ;;  %v4029_v30 = vadd.f32 %v3917_v15, %v3691_v12  ;;  %v3706_v8 = vld [vmem:[#allocation2 + $0x27] sm:$0x1] }
 0x36d   : > { %4123 = vst [vmem:[#allocation2 + $0x6] sm:$0x1] %v4011_v21  ;;  %v7304_v21 = vld [vmem:[%s8275_s14 + $0x32] sm:$0x1]  ;;  %v3920_v27 = vmul.f32 %v7303_v17, %v9722_v11  ;;  %v4030_v34 = vadd.f32 %v3918_v19, %v3692_v16  ;;  %v3707_v13 = vld [vmem:[#allocation2 + $0x28] sm:$0x1] }
 0x36e   : > { %4124 = vst [vmem:[#allocation2 + $0x7] sm:$0x1] %v4012_v25  ;;  %v7305_v25 = vld [vmem:[%s8275_s14 + $0x33] sm:$0x1]  ;;  %v3921_v31 = vmul.f32 %v7304_v21, %v9722_v11  ;;  %v4031_v38 = vadd.f32 %v3919_v23, %v3693_v20  ;;  %v3708_v17 = vld [vmem:[#allocation2 + $0x29] sm:$0x1] }
 0x36f   : > { %4125 = vst [vmem:[#allocation2 + $0x8] sm:$0x1] %v4013_v29  ;;  %v7306_v29 = vld [vmem:[%s8275_s14 + $0x34] sm:$0x1]  ;;  %v3922_v35 = vmul.f32 %v7305_v25, %v9722_v11  ;;  %v4032_v42 = vadd.f32 %v3920_v27, %v3694_v24  ;;  %v3709_v21 = vld [vmem:[#allocation2 + $0x2a] sm:$0x1] }
 0x370   : > { %4126 = vst [vmem:[#allocation2 + $0x9] sm:$0x1] %v4014_v33  ;;  %v7307_v33 = vld [vmem:[%s8275_s14 + $0x35] sm:$0x1]  ;;  %v3923_v39 = vmul.f32 %v7306_v29, %v9722_v11  ;;  %v4033_v45 = vadd.f32 %v3921_v31, %v3695_v28  ;;  %v3710_v25 = vld [vmem:[#allocation2 + $0x2b] sm:$0x1] }
 0x371   : > { %4127 = vst [vmem:[#allocation2 + $0xa] sm:$0x1] %v4015_v37  ;;  %v7308_v37 = vld [vmem:[%s8275_s14 + $0x38] sm:$0x1]  ;;  %v3924_v43 = vmul.f32 %v7307_v33, %v9722_v11  ;;  %v4034_v49 = vadd.f32 %v3922_v35, %v3696_v32  ;;  %v3711_v29 = vld [vmem:[#allocation2 + $0x2c] sm:$0x1] }
 0x372   : > { %4128 = vst [vmem:[#allocation2 + $0xb] sm:$0x1] %v4016_v41  ;;  %v7309_v41 = vld [vmem:[%s8275_s14 + $0x39] sm:$0x1]  ;;  %v3925_v46 = vmul.f32 %v7308_v37, %v9722_v11  ;;  %v4035_v52 = vadd.f32 %v3923_v39, %v3697_v36  ;;  %v3712_v33 = vld [vmem:[#allocation2 + $0x2d] sm:$0x1] }
 0x373   : > { %4129 = vst [vmem:[#allocation2 + $0xc] sm:$0x1] %v4017_v44  ;;  %v7310_v44 = vld [vmem:[%s8275_s14 + $0x3a] sm:$0x1]  ;;  %v3926_v50 = vmul.f32 %v7309_v41, %v9722_v11  ;;  %v4036_v56 = vadd.f32 %v3924_v43, %v3698_v40  ;;  %v3713_v37 = vld [vmem:[#allocation2 + $0x2e] sm:$0x1] }
 0x374   : > { %4130 = vst [vmem:[#allocation2 + $0xd] sm:$0x1] %v4018_v48  ;;  %v7311_v48 = vld [vmem:[%s8275_s14 + $0x3b] sm:$0x1]  ;;  %v3927_v53 = vmul.f32 %v7310_v44, %v9722_v11  ;;  %v4037_v60 = vadd.f32 %v3925_v46, %v3699_v2  ;;  %v3714_v41 = vld [vmem:[#allocation2 + $0x2f] sm:$0x1] }
 0x375   : > { %4131 = vst [vmem:[#allocation2 + $0xe] sm:$0x1] %v4019_v1  ;;  %v7312_v1 = vld [vmem:[%s8275_s14 + $0x3c] sm:$0x1]  ;;  %v3928_v57 = vmul.f32 %v7311_v48, %v9722_v11  ;;  %v4038_v0 = vadd.f32 %v3926_v50, %v3700_v47  ;;  %v3715_v44 = vld [vmem:[#allocation2 + $0x30] sm:$0x1] }
 0x376   : > { %4132 = vst [vmem:[#allocation2 + $0xf] sm:$0x1] %v4020_v55  ;;  %v7313_v55 = vld [vmem:[%s8275_s14 + $0x3d] sm:$0x1]  ;;  %v3929_v61 = vmul.f32 %v7312_v1, %v9722_v11  ;;  %v4039_v6 = vadd.f32 %v3927_v53, %v3701_v51  ;;  %v3716_v48 = vld [vmem:[#allocation2 + $0x31] sm:$0x1] }
 0x377   : > { %4133 = vst [vmem:[#allocation2 + $0x10] sm:$0x1] %v4021_v59  ;;  %v7314_v59 = vld [vmem:[%s8275_s14 + $0x3e] sm:$0x1]  ;;  %v3930_v3 = vmul.f32 %v7313_v55, %v9722_v11  ;;  %v4040_v10 = vadd.f32 %v3928_v57, %v3702_v54  ;;  %v3717_v1 = vld [vmem:[#allocation2 + $0x32] sm:$0x1] }
 0x378   : > { %4134 = vst [vmem:[#allocation2 + $0x11] sm:$0x1] %v4022_v63  ;;  %v7315_v63 = vld [vmem:[%s8275_s14 + $0x3f] sm:$0x1]  ;;  %v3931_v7 = vmul.f32 %v7314_v59, %v9722_v11  ;;  %v4041_v15 = vadd.f32 %v3929_v61, %v3703_v58  ;;  %v3718_v55 = vld [vmem:[#allocation2 + $0x33] sm:$0x1] }
 0x379   : > { %4135 = vst [vmem:[#allocation2 + $0x12] sm:$0x1] %v4023_v5  ;;  %v7316_v5 = vld [vmem:[%s8275_s14 + $0x40] sm:$0x1]  ;;  %v3932_v12 = vmul.f32 %v7315_v63, %v9722_v11  ;;  %v4042_v19 = vadd.f32 %v3930_v3, %v3704_v62  ;;  %v3719_v59 = vld [vmem:[#allocation2 + $0x34] sm:$0x1] }
 0x37a   : > { %4136 = vst [vmem:[#allocation2 + $0x13] sm:$0x1] %v4024_v9  ;;  %v7317_v9 = vld [vmem:[%s8275_s14 + $0x41] sm:$0x1]  ;;  %v3933_v16 = vmul.f32 %v7316_v5, %v9722_v11  ;;  %v4043_v23 = vadd.f32 %v3931_v7, %v3705_v4  ;;  %v3720_v63 = vld [vmem:[#allocation2 + $0x35] sm:$0x1] }
 0x37b   : > { %4137 = vst [vmem:[#allocation2 + $0x14] sm:$0x1] %v4025_v14  ;;  %v7318_v14 = vld [vmem:[%s8275_s14 + $0x42] sm:$0x1]  ;;  %v3934_v20 = vmul.f32 %v7317_v9, %v9722_v11  ;;  %v4044_v27 = vadd.f32 %v3932_v12, %v3706_v8  ;;  %v3721_v5 = vld [vmem:[#allocation2 + $0x36] sm:$0x1] }
 0x37c   : > { %4138 = vst [vmem:[#allocation2 + $0x15] sm:$0x1] %v4026_v18  ;;  %v7319_v18 = vld [vmem:[%s8275_s14 + $0x43] sm:$0x1]  ;;  %v3935_v24 = vmul.f32 %v7318_v14, %v9722_v11  ;;  %v4045_v31 = vadd.f32 %v3933_v16, %v3707_v13  ;;  %v3722_v9 = vld [vmem:[#allocation2 + $0x37] sm:$0x1] }
 0x37d   : > { %4139 = vst [vmem:[#allocation2 + $0x16] sm:$0x1] %v4027_v22  ;;  %v7320_v22 = vld [vmem:[%s8275_s14 + $0x44] sm:$0x1]  ;;  %v3936_v28 = vmul.f32 %v7319_v18, %v9722_v11  ;;  %v4046_v35 = vadd.f32 %v3934_v20, %v3708_v17  ;;  %v3723_v14 = vld [vmem:[#allocation2 + $0x38] sm:$0x1] }
 0x37e   : > { %4140 = vst [vmem:[#allocation2 + $0x17] sm:$0x1] %v4028_v26  ;;  %v7321_v26 = vld [vmem:[%s8275_s14 + $0x45] sm:$0x1]  ;;  %v3937_v32 = vmul.f32 %v7320_v22, %v9722_v11  ;;  %v4047_v39 = vadd.f32 %v3935_v24, %v3709_v21  ;;  %v3724_v18 = vld [vmem:[#allocation2 + $0x39] sm:$0x1] }
 0x37f   : > { %4141 = vst [vmem:[#allocation2 + $0x18] sm:$0x1] %v4029_v30  ;;  %v7322_v30 = vld [vmem:[%s8275_s14 + $0x46] sm:$0x1]  ;;  %v3938_v36 = vmul.f32 %v7321_v26, %v9722_v11  ;;  %v4048_v43 = vadd.f32 %v3936_v28, %v3710_v25  ;;  %v3725_v22 = vld [vmem:[#allocation2 + $0x3a] sm:$0x1] }
 0x380   : > { %4142 = vst [vmem:[#allocation2 + $0x19] sm:$0x1] %v4030_v34  ;;  %v7323_v34 = vld [vmem:[%s8275_s14 + $0x47] sm:$0x1]  ;;  %v3939_v40 = vmul.f32 %v7322_v30, %v9722_v11  ;;  %v4049_v46 = vadd.f32 %v3937_v32, %v3711_v29  ;;  %v3726_v26 = vld [vmem:[#allocation2 + $0x3b] sm:$0x1] }
 0x381   : > { %4143 = vst [vmem:[#allocation2 + $0x1a] sm:$0x1] %v4031_v38  ;;  %v7324_v38 = vld [vmem:[%s8275_s14 + $0x4a] sm:$0x1]  ;;  %v3940_v2 = vmul.f32 %v7323_v34, %v9722_v11  ;;  %v4050_v50 = vadd.f32 %v3938_v36, %v3712_v33  ;;  %v3727_v30 = vld [vmem:[#allocation2 + $0x3c] sm:$0x1] }
 0x382   : > { %4144 = vst [vmem:[#allocation2 + $0x1b] sm:$0x1] %v4032_v42  ;;  %v7325_v42 = vld [vmem:[%s8275_s14 + $0x4b] sm:$0x1]  ;;  %v3941_v47 = vmul.f32 %v7324_v38, %v9722_v11  ;;  %v4051_v53 = vadd.f32 %v3939_v40, %v3713_v37  ;;  %v3728_v34 = vld [vmem:[#allocation2 + $0x3d] sm:$0x1] }
 0x383   : > { %4145 = vst [vmem:[#allocation2 + $0x1c] sm:$0x1] %v4033_v45  ;;  %v7326_v45 = vld [vmem:[%s8275_s14 + $0x4c] sm:$0x1]  ;;  %v3942_v51 = vmul.f32 %v7325_v42, %v9722_v11  ;;  %v4052_v57 = vadd.f32 %v3940_v2, %v3714_v41  ;;  %v3729_v38 = vld [vmem:[#allocation2 + $0x3e] sm:$0x1] }
 0x384   : > { %4146 = vst [vmem:[#allocation2 + $0x1d] sm:$0x1] %v4034_v49  ;;  %v7327_v49 = vld [vmem:[%s8275_s14 + $0x4d] sm:$0x1]  ;;  %v3943_v54 = vmul.f32 %v7326_v45, %v9722_v11  ;;  %v4053_v61 = vadd.f32 %v3941_v47, %v3715_v44  ;;  %v3730_v42 = vld [vmem:[#allocation2 + $0x3f] sm:$0x1] }
 0x385   : > { %4147 = vst [vmem:[#allocation2 + $0x1e] sm:$0x1] %v4035_v52  ;;  %v7328_v52 = vld [vmem:[%s8275_s14 + $0x4e] sm:$0x1]  ;;  %v3944_v58 = vmul.f32 %v7327_v49, %v9722_v11  ;;  %v4054_v3 = vadd.f32 %v3942_v51, %v3716_v48  ;;  %v3731_v45 = vld [vmem:[#allocation2 + $0x40] sm:$0x1] }
 0x386   : > { %4148 = vst [vmem:[#allocation2 + $0x1f] sm:$0x1] %v4036_v56  ;;  %v7329_v56 = vld [vmem:[%s8275_s14 + $0x4f] sm:$0x1]  ;;  %v3945_v62 = vmul.f32 %v7328_v52, %v9722_v11  ;;  %v4055_v7 = vadd.f32 %v3943_v54, %v3717_v1  ;;  %v3732_v49 = vld [vmem:[#allocation2 + $0x41] sm:$0x1] }
 0x387   : > { %4149 = vst [vmem:[#allocation2 + $0x20] sm:$0x1] %v4037_v60  ;;  %v7330_v60 = vld [vmem:[%s8275_s14 + $0x50] sm:$0x1]  ;;  %v3946_v4 = vmul.f32 %v7329_v56, %v9722_v11  ;;  %v4056_v12 = vadd.f32 %v3944_v58, %v3718_v55  ;;  %v3733_v52 = vld [vmem:[#allocation2 + $0x42] sm:$0x1] }
 0x388   : > { %4150 = vst [vmem:[#allocation2 + $0x21] sm:$0x1] %v4038_v0  ;;  %v7331_v0 = vld [vmem:[%s8275_s14 + $0x51] sm:$0x1]  ;;  %v3947_v8 = vmul.f32 %v7330_v60, %v9722_v11  ;;  %v4057_v16 = vadd.f32 %v3945_v62, %v3719_v59  ;;  %v3734_v56 = vld [vmem:[#allocation2 + $0x43] sm:$0x1] }
 0x389   : > { %4151 = vst [vmem:[#allocation2 + $0x22] sm:$0x1] %v4039_v6  ;;  %v7332_v6 = vld [vmem:[%s8275_s14 + $0x52] sm:$0x1]  ;;  %v3948_v13 = vmul.f32 %v7331_v0, %v9722_v11  ;;  %v4058_v20 = vadd.f32 %v3946_v4, %v3720_v63  ;;  %v3735_v60 = vld [vmem:[#allocation2 + $0x44] sm:$0x1] }
 0x38a   : > { %4152 = vst [vmem:[#allocation2 + $0x23] sm:$0x1] %v4040_v10  ;;  %v7333_v10 = vld [vmem:[%s8275_s14 + $0x53] sm:$0x1]  ;;  %v3949_v17 = vmul.f32 %v7332_v6, %v9722_v11  ;;  %v4059_v24 = vadd.f32 %v3947_v8, %v3721_v5  ;;  %v3736_v0 = vld [vmem:[#allocation2 + $0x45] sm:$0x1] }
 0x38b   : > { %4153 = vst [vmem:[#allocation2 + $0x24] sm:$0x1] %v4041_v15  ;;  %v7334_v15 = vld [vmem:[%s8275_s14 + $0x54] sm:$0x1]  ;;  %v3950_v21 = vmul.f32 %v7333_v10, %v9722_v11  ;;  %v4060_v28 = vadd.f32 %v3948_v13, %v3722_v9  ;;  %v3737_v6 = vld [vmem:[#allocation2 + $0x46] sm:$0x1] }
 0x38c   : > { %4154 = vst [vmem:[#allocation2 + $0x25] sm:$0x1] %v4042_v19  ;;  %v7335_v19 = vld [vmem:[%s8275_s14 + $0x55] sm:$0x1]  ;;  %v3951_v25 = vmul.f32 %v7334_v15, %v9722_v11  ;;  %v4061_v32 = vadd.f32 %v3949_v17, %v3723_v14  ;;  %v3738_v10 = vld [vmem:[#allocation2 + $0x47] sm:$0x1] }
 0x38d   : > { %4155 = vst [vmem:[#allocation2 + $0x26] sm:$0x1] %v4043_v23  ;;  %v7336_v23 = vld [vmem:[%s8275_s14 + $0x56] sm:$0x1]  ;;  %v3952_v29 = vmul.f32 %v7335_v19, %v9722_v11  ;;  %v4062_v36 = vadd.f32 %v3950_v21, %v3724_v18  ;;  %v3739_v15 = vld [vmem:[#allocation2 + $0x48] sm:$0x1] }
 0x38e   : > { %4156 = vst [vmem:[#allocation2 + $0x27] sm:$0x1] %v4044_v27  ;;  %v7337_v27 = vld [vmem:[%s8275_s14 + $0x57] sm:$0x1]  ;;  %v3953_v33 = vmul.f32 %v7336_v23, %v9722_v11  ;;  %v4063_v40 = vadd.f32 %v3951_v25, %v3725_v22  ;;  %v3740_v19 = vld [vmem:[#allocation2 + $0x49] sm:$0x1] }
 0x38f   : > { %4157 = vst [vmem:[#allocation2 + $0x28] sm:$0x1] %v4045_v31  ;;  %v7338_v31 = vld [vmem:[%s8275_s14 + $0x58] sm:$0x1]  ;;  %v3954_v37 = vmul.f32 %v7337_v27, %v9722_v11  ;;  %v4064_v2 = vadd.f32 %v3952_v29, %v3726_v26  ;;  %v3741_v23 = vld [vmem:[#allocation2 + $0x4a] sm:$0x1] }
 0x390   : > { %4158 = vst [vmem:[#allocation2 + $0x29] sm:$0x1] %v4046_v35  ;;  %v7339_v35 = vld [vmem:[%s8275_s14 + $0x59] sm:$0x1]  ;;  %v3955_v41 = vmul.f32 %v7338_v31, %v9722_v11  ;;  %v4065_v47 = vadd.f32 %v3953_v33, %v3727_v30  ;;  %v3742_v27 = vld [vmem:[#allocation2 + $0x4b] sm:$0x1] }
 0x391   : > { %4159 = vst [vmem:[#allocation2 + $0x2a] sm:$0x1] %v4047_v39  ;;  %v7340_v39 = vld [vmem:[%s8275_s14 + $0x5c] sm:$0x1]  ;;  %v3956_v44 = vmul.f32 %v7339_v35, %v9722_v11  ;;  %v4066_v51 = vadd.f32 %v3954_v37, %v3728_v34  ;;  %v3744_v35 = vld [vmem:[#allocation2 + $0x4d] sm:$0x1] }
 0x392   : > { %4160 = vst [vmem:[#allocation2 + $0x2b] sm:$0x1] %v4048_v43  ;;  %v7341_v43 = vld [vmem:[%s8275_s14 + $0x5d] sm:$0x1]  ;;  %v3957_v48 = vmul.f32 %v7340_v39, %v9722_v11  ;;  %v4067_v54 = vadd.f32 %v3955_v41, %v3729_v38  ;;  %v3743_v31 = vld [vmem:[#allocation2 + $0x4c] sm:$0x1] }
 0x393   : > { %4161 = vst [vmem:[#allocation2 + $0x2c] sm:$0x1] %v4049_v46  ;;  %v7342_v46 = vld [vmem:[%s8275_s14 + $0x5e] sm:$0x1]  ;;  %v3958_v1 = vmul.f32 %v7341_v43, %v9722_v11  ;;  %v4068_v58 = vadd.f32 %v3956_v44, %v3730_v42  ;;  %v3746_v43 = vld [vmem:[#allocation2 + $0x4f] sm:$0x1] }
 0x394   : > { %4162 = vst [vmem:[#allocation2 + $0x2d] sm:$0x1] %v4050_v50  ;;  %v7343_v50 = vld [vmem:[%s8275_s14 + $0x5f] sm:$0x1]  ;;  %v3959_v55 = vmul.f32 %v7342_v46, %v9722_v11  ;;  %v4069_v62 = vadd.f32 %v3957_v48, %v3731_v45  ;;  %v3745_v39 = vld [vmem:[#allocation2 + $0x4e] sm:$0x1] }
 0x395   : > { %4163 = vst [vmem:[#allocation2 + $0x2e] sm:$0x1] %v4051_v53  ;;  %v7344_v53 = vld [vmem:[%s8275_s14 + $0x60] sm:$0x1]  ;;  %v3960_v59 = vmul.f32 %v7343_v50, %v9722_v11  ;;  %v4070_v4 = vadd.f32 %v3958_v1, %v3732_v49  ;;  %v3748_v50 = vld [vmem:[#allocation2 + $0x51] sm:$0x1] }
 0x396   : > { %4164 = vst [vmem:[#allocation2 + $0x2f] sm:$0x1] %v4052_v57  ;;  %v7345_v57 = vld [vmem:[%s8275_s14 + $0x61] sm:$0x1]  ;;  %v3961_v63 = vmul.f32 %v7344_v53, %v9722_v11  ;;  %v4071_v8 = vadd.f32 %v3959_v55, %v3733_v52  ;;  %v3747_v46 = vld [vmem:[#allocation2 + $0x50] sm:$0x1] }
 0x397   : > { %4165 = vst [vmem:[#allocation2 + $0x30] sm:$0x1] %v4053_v61  ;;  %v7346_v61 = vld [vmem:[%s8275_s14 + $0x62] sm:$0x1]  ;;  %v3962_v5 = vmul.f32 %v7345_v57, %v9722_v11  ;;  %v4072_v13 = vadd.f32 %v3960_v59, %v3734_v56  ;;  %v3750_v57 = vld [vmem:[#allocation2 + $0x53] sm:$0x1] }
 0x398   : > { %4166 = vst [vmem:[#allocation2 + $0x31] sm:$0x1] %v4054_v3  ;;  %v7347_v3 = vld [vmem:[%s8275_s14 + $0x63] sm:$0x1]  ;;  %v3963_v9 = vmul.f32 %v7346_v61, %v9722_v11  ;;  %v4073_v17 = vadd.f32 %v3961_v63, %v3735_v60  ;;  %v3749_v53 = vld [vmem:[#allocation2 + $0x52] sm:$0x1] }
 0x399   : > { %4167 = vst [vmem:[#allocation2 + $0x32] sm:$0x1] %v4055_v7  ;;  %v7348_v7 = vld [vmem:[%s8275_s14 + $0x64] sm:$0x1]  ;;  %v3964_v14 = vmul.f32 %v7347_v3, %v9722_v11  ;;  %v4074_v21 = vadd.f32 %v3962_v5, %v3736_v0  ;;  %v3752_v3 = vld [vmem:[#allocation2 + $0x55] sm:$0x1] }
 0x39a   : > { %4168 = vst [vmem:[#allocation2 + $0x33] sm:$0x1] %v4056_v12  ;;  %v7349_v12 = vld [vmem:[%s8275_s14 + $0x65] sm:$0x1]  ;;  %v3965_v18 = vmul.f32 %v7348_v7, %v9722_v11  ;;  %v4075_v25 = vadd.f32 %v3963_v9, %v3737_v6  ;;  %v3751_v61 = vld [vmem:[#allocation2 + $0x54] sm:$0x1] }
 0x39b   : > { %4169 = vst [vmem:[#allocation2 + $0x34] sm:$0x1] %v4057_v16  ;;  %v7350_v16 = vld [vmem:[%s8275_s14 + $0x66] sm:$0x1]  ;;  %v3966_v22 = vmul.f32 %v7349_v12, %v9722_v11  ;;  %v4076_v29 = vadd.f32 %v3964_v14, %v3738_v10  ;;  %v3754_v12 = vld [vmem:[#allocation2 + $0x57] sm:$0x1] }
 0x39c   : > { %4170 = vst [vmem:[#allocation2 + $0x35] sm:$0x1] %v4058_v20  ;;  %v7351_v20 = vld [vmem:[%s8275_s14 + $0x67] sm:$0x1]  ;;  %v3967_v26 = vmul.f32 %v7350_v16, %v9722_v11  ;;  %v4077_v33 = vadd.f32 %v3965_v18, %v3739_v15  ;;  %v3753_v7 = vld [vmem:[#allocation2 + $0x56] sm:$0x1] }
 0x39d   : > { %4171 = vst [vmem:[#allocation2 + $0x36] sm:$0x1] %v4059_v24  ;;  %v7352_v24 = vld [vmem:[%s8275_s14 + $0x68] sm:$0x1]  ;;  %v3968_v30 = vmul.f32 %v7351_v20, %v9722_v11  ;;  %v4078_v37 = vadd.f32 %v3966_v22, %v3740_v19  ;;  %v3756_v20 = vld [vmem:[#allocation2 + $0x59] sm:$0x1] }
 0x39e   : > { %4172 = vst [vmem:[#allocation2 + $0x37] sm:$0x1] %v4060_v28  ;;  %v7353_v28 = vld [vmem:[%s8275_s14 + $0x69] sm:$0x1]  ;;  %v3969_v34 = vmul.f32 %v7352_v24, %v9722_v11  ;;  %v4079_v41 = vadd.f32 %v3967_v26, %v3741_v23  ;;  %v3755_v16 = vld [vmem:[#allocation2 + $0x58] sm:$0x1] }
 0x39f   : > { %4173 = vst [vmem:[#allocation2 + $0x38] sm:$0x1] %v4061_v32  ;;  %v7354_v32 = vld [vmem:[%s8275_s14 + $0x6a] sm:$0x1]  ;;  %v3970_v38 = vmul.f32 %v7353_v28, %v9722_v11  ;;  %v4080_v44 = vadd.f32 %v3968_v30, %v3742_v27  ;;  %v3758_v28 = vld [vmem:[#allocation2 + $0x5b] sm:$0x1] }
 0x3a0   : > { %4174 = vst [vmem:[#allocation2 + $0x39] sm:$0x1] %v4062_v36  ;;  %v7355_v36 = vld [vmem:[%s8275_s14 + $0x6b] sm:$0x1]  ;;  %v3971_v42 = vmul.f32 %v7354_v32, %v9722_v11  ;;  %v4081_v48 = vadd.f32 %v3969_v34, %v3743_v31  ;;  %v3757_v24 = vld [vmem:[#allocation2 + $0x5a] sm:$0x1] }
 0x3a1   : > { %4175 = vst [vmem:[#allocation2 + $0x3a] sm:$0x1] %v4063_v40  ;;  %v7356_v40 = vld [vmem:[%s8275_s14 + $0x6e] sm:$0x1]  ;;  %v3972_v45 = vmul.f32 %v7355_v36, %v9722_v11  ;;  %v4082_v1 = vadd.f32 %v3970_v38, %v3744_v35  ;;  %v3759_v32 = vld [vmem:[#allocation2 + $0x5c] sm:$0x1] }
 0x3a2   : > { %4176 = vst [vmem:[#allocation2 + $0x3b] sm:$0x1] %v4064_v2  ;;  %v7357_v2 = vld [vmem:[%s8275_s14 + $0x6f] sm:$0x1]  ;;  %v3973_v49 = vmul.f32 %v7356_v40, %v9722_v11  ;;  %v4083_v55 = vadd.f32 %v3971_v42, %v3745_v39  ;;  %v3760_v36 = vld [vmem:[#allocation2 + $0x5d] sm:$0x1] }
 0x3a3   : > { %4177 = vst [vmem:[#allocation2 + $0x3c] sm:$0x1] %v4065_v47  ;;  %v7358_v47 = vld [vmem:[%s8275_s14 + $0x70] sm:$0x1]  ;;  %v3974_v52 = vmul.f32 %v7357_v2, %v9722_v11  ;;  %v4084_v59 = vadd.f32 %v3972_v45, %v3746_v43  ;;  %v3761_v40 = vld [vmem:[#allocation2 + $0x5e] sm:$0x1] }
 0x3a4   : > { %4178 = vst [vmem:[#allocation2 + $0x3d] sm:$0x1] %v4066_v51  ;;  %v7359_v51 = vld [vmem:[%s8275_s14 + $0x71] sm:$0x1]  ;;  %v3975_v56 = vmul.f32 %v7358_v47, %v9722_v11  ;;  %v4085_v63 = vadd.f32 %v3973_v49, %v3747_v46  ;;  %v3762_v2 = vld [vmem:[#allocation2 + $0x5f] sm:$0x1] }
 0x3a5   : > { %4179 = vst [vmem:[#allocation2 + $0x3e] sm:$0x1] %v4067_v54  ;;  %v7360_v54 = vld [vmem:[%s8275_s14 + $0x72] sm:$0x1]  ;;  %v3976_v60 = vmul.f32 %v7359_v51, %v9722_v11  ;;  %v4086_v5 = vadd.f32 %v3974_v52, %v3748_v50  ;;  %v3763_v47 = vld [vmem:[#allocation2 + $0x60] sm:$0x1] }
 0x3a6   : > { %4180 = vst [vmem:[#allocation2 + $0x3f] sm:$0x1] %v4068_v58  ;;  %v7361_v58 = vld [vmem:[%s8275_s14 + $0x73] sm:$0x1]  ;;  %v3977_v0 = vmul.f32 %v7360_v54, %v9722_v11  ;;  %v4087_v9 = vadd.f32 %v3975_v56, %v3749_v53  ;;  %v3764_v51 = vld [vmem:[#allocation2 + $0x61] sm:$0x1] }
 0x3a7   : > { %4181 = vst [vmem:[#allocation2 + $0x40] sm:$0x1] %v4069_v62  ;;  %v7362_v62 = vld [vmem:[%s8275_s14 + $0x74] sm:$0x1]  ;;  %v3978_v6 = vmul.f32 %v7361_v58, %v9722_v11  ;;  %v4088_v14 = vadd.f32 %v3976_v60, %v3750_v57  ;;  %v3765_v54 = vld [vmem:[#allocation2 + $0x62] sm:$0x1] }
 0x3a8   : > { %4182 = vst [vmem:[#allocation2 + $0x41] sm:$0x1] %v4070_v4  ;;  %v7363_v4 = vld [vmem:[%s8275_s14 + $0x75] sm:$0x1]  ;;  %v3979_v10 = vmul.f32 %v7362_v62, %v9722_v11  ;;  %v4089_v18 = vadd.f32 %v3977_v0, %v3751_v61  ;;  %v3766_v58 = vld [vmem:[#allocation2 + $0x63] sm:$0x1] }
 0x3a9   : > { %4183 = vst [vmem:[#allocation2 + $0x42] sm:$0x1] %v4071_v8  ;;  %v7364_v8 = vld [vmem:[%s8275_s14 + $0x76] sm:$0x1]  ;;  %v3980_v15 = vmul.f32 %v7363_v4, %v9722_v11  ;;  %v4090_v22 = vadd.f32 %v3978_v6, %v3752_v3  ;;  %v3767_v62 = vld [vmem:[#allocation2 + $0x64] sm:$0x1] }
 0x3aa   : > { %4184 = vst [vmem:[#allocation2 + $0x43] sm:$0x1] %v4072_v13  ;;  %v7365_v13 = vld [vmem:[%s8275_s14 + $0x77] sm:$0x1]  ;;  %v3981_v19 = vmul.f32 %v7364_v8, %v9722_v11  ;;  %v4091_v26 = vadd.f32 %v3979_v10, %v3753_v7  ;;  %v3768_v4 = vld [vmem:[#allocation2 + $0x65] sm:$0x1] }
 0x3ab   : > { %4185 = vst [vmem:[#allocation2 + $0x44] sm:$0x1] %v4073_v17  ;;  %v7366_v17 = vld [vmem:[%s8275_s14 + $0x78] sm:$0x1]  ;;  %v3982_v23 = vmul.f32 %v7365_v13, %v9722_v11  ;;  %v4092_v30 = vadd.f32 %v3980_v15, %v3754_v12  ;;  %v3769_v8 = vld [vmem:[#allocation2 + $0x66] sm:$0x1] }
 0x3ac   : > { %4186 = vst [vmem:[#allocation2 + $0x45] sm:$0x1] %v4074_v21  ;;  %v7367_v21 = vld [vmem:[%s8275_s14 + $0x79] sm:$0x1]  ;;  %v3983_v27 = vmul.f32 %v7366_v17, %v9722_v11  ;;  %v4093_v34 = vadd.f32 %v3981_v19, %v3755_v16  ;;  %v3770_v13 = vld [vmem:[#allocation2 + $0x67] sm:$0x1] }
 0x3ad   : > { %4187 = vst [vmem:[#allocation2 + $0x46] sm:$0x1] %v4075_v25  ;;  %v7368_v25 = vld [vmem:[%s8275_s14 + $0x7a] sm:$0x1]  ;;  %v3984_v31 = vmul.f32 %v7367_v21, %v9722_v11  ;;  %v4094_v38 = vadd.f32 %v3982_v23, %v3756_v20  ;;  %v3771_v17 = vld [vmem:[#allocation2 + $0x68] sm:$0x1] }
 0x3ae   : > { %4188 = vst [vmem:[#allocation2 + $0x47] sm:$0x1] %v4076_v29  ;;  %v7369_v29 = vld [vmem:[%s8275_s14 + $0x7b] sm:$0x1]  ;;  %v3985_v35 = vmul.f32 %v7368_v25, %v9722_v11  ;;  %v4095_v42 = vadd.f32 %v3983_v27, %v3757_v24  ;;  %v3772_v21 = vld [vmem:[#allocation2 + $0x69] sm:$0x1] }
 0x3af   : > { %4189 = vst [vmem:[#allocation2 + $0x48] sm:$0x1] %v4077_v33  ;;  %v7370_v33 = vld [vmem:[%s8275_s14 + $0x7c] sm:$0x1]  ;;  %v3986_v39 = vmul.f32 %v7369_v29, %v9722_v11  ;;  %v4096_v45 = vadd.f32 %v3984_v31, %v3758_v28  ;;  %v3773_v25 = vld [vmem:[#allocation2 + $0x6a] sm:$0x1] }
 0x3b0   : > { %4190 = vst [vmem:[#allocation2 + $0x49] sm:$0x1] %v4078_v37  ;;  %v7371_v37 = vld [vmem:[%s8275_s14 + $0x7d] sm:$0x1]  ;;  %v3987_v43 = vmul.f32 %v7370_v33, %v9722_v11  ;;  %v4097_v49 = vadd.f32 %v3985_v35, %v3759_v32  ;;  %v3774_v29 = vld [vmem:[#allocation2 + $0x6b] sm:$0x1] }
 0x3b1   : > { %4191 = vst [vmem:[#allocation2 + $0x4a] sm:$0x1] %v4079_v41  ;;  %v7372_v41 = vld [vmem:[%s8275_s14 + $0x80] sm:$0x1]  ;;  %v3988_v46 = vmul.f32 %v7371_v37, %v9722_v11  ;;  %v4098_v52 = vadd.f32 %v3986_v39, %v3760_v36  ;;  %v3775_v33 = vld [vmem:[#allocation2 + $0x6c] sm:$0x1] }
 0x3b2   : > { %4192 = vst [vmem:[#allocation2 + $0x4b] sm:$0x1] %v4080_v44  ;;  %v7373_v44 = vld [vmem:[%s8275_s14 + $0x81] sm:$0x1]  ;;  %v3989_v50 = vmul.f32 %v7372_v41, %v9722_v11  ;;  %v4099_v56 = vadd.f32 %v3987_v43, %v3761_v40  ;;  %v3776_v37 = vld [vmem:[#allocation2 + $0x6d] sm:$0x1] }
 0x3b3   : > { %4193 = vst [vmem:[#allocation2 + $0x4c] sm:$0x1] %v4081_v48  ;;  %v7374_v48 = vld [vmem:[%s8275_s14 + $0x82] sm:$0x1]  ;;  %v3990_v53 = vmul.f32 %v7373_v44, %v9722_v11  ;;  %v4100_v60 = vadd.f32 %v3988_v46, %v3762_v2  ;;  %v3777_v41 = vld [vmem:[#allocation2 + $0x6e] sm:$0x1] }
 0x3b4   : > { %4194 = vst [vmem:[#allocation2 + $0x4d] sm:$0x1] %v4082_v1  ;;  %v7375_v1 = vld [vmem:[%s8275_s14 + $0x83] sm:$0x1]  ;;  %v3991_v57 = vmul.f32 %v7374_v48, %v9722_v11  ;;  %v4101_v0 = vadd.f32 %v3989_v50, %v3763_v47  ;;  %v3778_v44 = vld [vmem:[#allocation2 + $0x6f] sm:$0x1] }
 0x3b5   : > { %4195 = vst [vmem:[#allocation2 + $0x4e] sm:$0x1] %v4083_v55  ;;  %v7376_v55 = vld [vmem:[%s8275_s14 + $0x84] sm:$0x1]  ;;  %v3992_v61 = vmul.f32 %v7375_v1, %v9722_v11  ;;  %v4102_v6 = vadd.f32 %v3990_v53, %v3764_v51  ;;  %v4229_v48 = vld [vmem:[#allocation2 + $0x70] sm:$0x1] }
 0x3b6   : > { %4196 = vst [vmem:[#allocation2 + $0x4f] sm:$0x1] %v4084_v59  ;;  %v7377_v59 = vld [vmem:[%s8275_s14 + $0x85] sm:$0x1]  ;;  %v3993_v3 = vmul.f32 %v7376_v55, %v9722_v11  ;;  %v4103_v10 = vadd.f32 %v3991_v57, %v3765_v54  ;;  %v4230_v1 = vld [vmem:[#allocation2 + $0x71] sm:$0x1] }
 0x3b7   : > { %4197 = vst [vmem:[#allocation2 + $0x50] sm:$0x1] %v4085_v63  ;;  %v7378_v63 = vld [vmem:[%s8275_s14 + $0x86] sm:$0x1]  ;;  %v3994_v7 = vmul.f32 %v7377_v59, %v9722_v11  ;;  %v4104_v15 = vadd.f32 %v3992_v61, %v3766_v58  ;;  %v4231_v55 = vld [vmem:[#allocation2 + $0x72] sm:$0x1] }
 0x3b8   : > { %4198 = vst [vmem:[#allocation2 + $0x51] sm:$0x1] %v4086_v5  ;;  %v7379_v5 = vld [vmem:[%s8275_s14 + $0x87] sm:$0x1]  ;;  %v3995_v12 = vmul.f32 %v7378_v63, %v9722_v11  ;;  %v4105_v19 = vadd.f32 %v3993_v3, %v3767_v62  ;;  %v4232_v59 = vld [vmem:[#allocation2 + $0x73] sm:$0x1] }
 0x3b9   : > { %4199 = vst [vmem:[#allocation2 + $0x52] sm:$0x1] %v4087_v9  ;;  %v7380_v9 = vld [vmem:[%s8275_s14 + $0x88] sm:$0x1]  ;;  %v3996_v16 = vmul.f32 %v7379_v5, %v9722_v11  ;;  %v4106_v23 = vadd.f32 %v3994_v7, %v3768_v4  ;;  %v4233_v63 = vld [vmem:[#allocation2 + $0x74] sm:$0x1] }
 0x3ba   : > { %4200 = vst [vmem:[#allocation2 + $0x53] sm:$0x1] %v4088_v14  ;;  %v7381_v14 = vld [vmem:[%s8275_s14 + $0x89] sm:$0x1]  ;;  %v3997_v20 = vmul.f32 %v7380_v9, %v9722_v11  ;;  %v4107_v27 = vadd.f32 %v3995_v12, %v3769_v8  ;;  %v4234_v5 = vld [vmem:[#allocation2 + $0x75] sm:$0x1] }
 0x3bb   : > { %4201 = vst [vmem:[#allocation2 + $0x54] sm:$0x1] %v4089_v18  ;;  %v7382_v18 = vld [vmem:[%s8275_s14 + $0x8a] sm:$0x1]  ;;  %v3998_v24 = vmul.f32 %v7381_v14, %v9722_v11  ;;  %v4108_v31 = vadd.f32 %v3996_v16, %v3770_v13  ;;  %v4235_v9 = vld [vmem:[#allocation2 + $0x76] sm:$0x1] }
 0x3bc   : > { %4202 = vst [vmem:[#allocation2 + $0x55] sm:$0x1] %v4090_v22  ;;  %v7383_v22 = vld [vmem:[%s8275_s14 + $0x8b] sm:$0x1]  ;;  %v3999_v28 = vmul.f32 %v7382_v18, %v9722_v11  ;;  %v4109_v35 = vadd.f32 %v3997_v20, %v3771_v17  ;;  %v4236_v14 = vld [vmem:[#allocation2 + $0x77] sm:$0x1] }
 0x3bd   : > { %4203 = vst [vmem:[#allocation2 + $0x56] sm:$0x1] %v4091_v26  ;;  %v7384_v26 = vld [vmem:[%s8275_s14 + $0x8c] sm:$0x1]  ;;  %v4000_v32 = vmul.f32 %v7383_v22, %v9722_v11  ;;  %v4110_v39 = vadd.f32 %v3998_v24, %v3772_v21  ;;  %v4237_v18 = vld [vmem:[#allocation2 + $0x78] sm:$0x1] }
 0x3be   : > { %4204 = vst [vmem:[#allocation2 + $0x57] sm:$0x1] %v4092_v30  ;;  %v7385_v30 = vld [vmem:[%s8275_s14 + $0x8d] sm:$0x1]  ;;  %v4001_v36 = vmul.f32 %v7384_v26, %v9722_v11  ;;  %v4111_v43 = vadd.f32 %v3999_v28, %v3773_v25  ;;  %v4238_v22 = vld [vmem:[#allocation2 + $0x79] sm:$0x1] }
 0x3bf   : > { %4205 = vst [vmem:[#allocation2 + $0x58] sm:$0x1] %v4093_v34  ;;  %v7386_v34 = vld [vmem:[%s8275_s14 + $0x8e] sm:$0x1]  ;;  %v4002_v40 = vmul.f32 %v7385_v30, %v9722_v11  ;;  %v4112_v46 = vadd.f32 %v4000_v32, %v3774_v29  ;;  %v4239_v26 = vld [vmem:[#allocation2 + $0x7a] sm:$0x1] }
 0x3c0   : > { %4206 = vst [vmem:[#allocation2 + $0x59] sm:$0x1] %v4094_v38  ;;  %v7387_v38 = vld [vmem:[%s8275_s14 + $0x8f] sm:$0x1]  ;;  %v4003_v2 = vmul.f32 %v7386_v34, %v9722_v11  ;;  %v4113_v50 = vadd.f32 %v4001_v36, %v3775_v33  ;;  %v4240_v30 = vld [vmem:[#allocation2 + $0x7b] sm:$0x1] }
 0x3c1   : > { %4207 = vst [vmem:[#allocation2 + $0x5a] sm:$0x1] %v4095_v42  ;;  %v7388_v42 = vld [vmem:[%s8282_s25 + $0x2] sm:$0x1]  ;;  %v4004_v47 = vmul.f32 %v7387_v38, %v9722_v11  ;;  %v4114_v53 = vadd.f32 %v4002_v40, %v3776_v37  ;;  %v4241_v34 = vld [vmem:[#allocation2 + $0x7c] sm:$0x1] }
 0x3c2   : > { %4208 = vst [vmem:[#allocation2 + $0x5b] sm:$0x1] %v4096_v45  ;;  %v7389_v45 = vld [vmem:[%s8282_s25 + $0x3] sm:$0x1]  ;;  %v4262_v51 = vmul.f32 %v7388_v42, %v9722_v11  ;;  %v4115_v57 = vadd.f32 %v4003_v2, %v3777_v41  ;;  %v4242_v38 = vld [vmem:[#allocation2 + $0x7d] sm:$0x1]  ;;  %v9983_v2 = vstv %s9964_s29 }
 0x3c3   : > { %4209 = vst [vmem:[#allocation2 + $0x5c] sm:$0x1] %v4097_v49  ;;  %v7390_v49 = vld [vmem:[%s8282_s25 + $0x4] sm:$0x1]  ;;  %v4263_v54 = vmul.f32 %v7389_v45, %v9722_v11  ;;  %v4116_v61 = vadd.f32 %v4004_v47, %v3778_v44  ;;  %v4243_v42 = vld [vmem:[#allocation2 + $0x7e] sm:$0x1] }
 0x3c4   : > { %4210 = vst [vmem:[#allocation2 + $0x5d] sm:$0x1] %v4098_v52  ;;  %v7391_v52 = vld [vmem:[%s8282_s25 + $0x5] sm:$0x1]  ;;  %v4264_v58 = vmul.f32 %v7390_v49, %v9722_v11  ;;  %v4278_v3 = vadd.f32 %v4262_v51, %v4229_v48  ;;  %v7406_v51 = vld [vmem:[%s8275_s14 + $0x26] sm:$0x1] }
 0x3c5   : > { %4211 = vst [vmem:[#allocation2 + $0x5e] sm:$0x1] %v4099_v56  ;;  %v7392_v56 = vld [vmem:[%s8282_s25 + $0x6] sm:$0x1]  ;;  %v4265_v62 = vmul.f32 %v7391_v52, %v9722_v11  ;;  %v4279_v7 = vadd.f32 %v4263_v54, %v4230_v1  ;;  %v7405_v47 = vld [vmem:[%s8275_s14 + $0x25] sm:$0x1] }
 0x3c6   : > { %4212 = vst [vmem:[#allocation2 + $0x5f] sm:$0x1] %v4100_v60  ;;  %v7393_v60 = vld [vmem:[%s8282_s25 + $0x7] sm:$0x1]  ;;  %v4266_v4 = vmul.f32 %v7392_v56, %v9722_v11  ;;  %v4280_v12 = vadd.f32 %v4264_v58, %v4231_v55  ;;  %v4505_v56 = vmul.f32 %v7405_v47, %v9983_v2  ;;  %v7408_v58 = vld [vmem:[%s8275_s14 + $0x28] sm:$0x1] }
 0x3c7   : > { %4213 = vst [vmem:[#allocation2 + $0x60] sm:$0x1] %v4101_v0  ;;  %v7394_v0 = vld [vmem:[%s8282_s25 + $0x8] sm:$0x1]  ;;  %v4267_v8 = vmul.f32 %v7393_v60, %v9722_v11  ;;  %v4281_v16 = vadd.f32 %v4265_v62, %v4232_v59  ;;  %v7407_v54 = vld [vmem:[%s8275_s14 + $0x27] sm:$0x1] }
 0x3c8   : > { %4214 = vst [vmem:[#allocation2 + $0x61] sm:$0x1] %v4102_v6  ;;  %v7395_v6 = vld [vmem:[%s8282_s25 + $0x9] sm:$0x1]  ;;  %v4268_v13 = vmul.f32 %v7394_v0, %v9722_v11  ;;  %v4282_v20 = vadd.f32 %v4266_v4, %v4233_v63  ;;  %v4313_v60 = vld [vmem:[#allocation2 + $0x3] sm:$0x1]  ;;  %v4507_v63 = vmul.f32 %v7407_v54, %v9983_v2 }
 0x3c9   : > { %4215 = vst [vmem:[#allocation2 + $0x62] sm:$0x1] %v4103_v10  ;;  %v7396_v10 = vld [vmem:[%s8282_s25 + $0xa] sm:$0x1]  ;;  %v4269_v17 = vmul.f32 %v7395_v6, %v9722_v11  ;;  %v4283_v24 = vadd.f32 %v4267_v8, %v4234_v5  ;;  %v4314_v0 = vld [vmem:[#allocation2 + $0x4] sm:$0x1]  ;;  %v4508_v5 = vmul.f32 %v7408_v58, %v9983_v2 }
 0x3ca   : > { %4216 = vst [vmem:[#allocation2 + $0x63] sm:$0x1] %v4104_v15  ;;  %v7397_v15 = vld [vmem:[%s8282_s25 + $0xb] sm:$0x1]  ;;  %v4270_v21 = vmul.f32 %v7396_v10, %v9722_v11  ;;  %v4284_v28 = vadd.f32 %v4268_v13, %v4235_v9  ;;  %v4315_v6 = vld [vmem:[#allocation2 + $0x5] sm:$0x1] }
 0x3cb   : > { %4217 = vst [vmem:[#allocation2 + $0x64] sm:$0x1] %v4105_v19  ;;  %v7398_v19 = vld [vmem:[%s8282_s25 + $0xc] sm:$0x1]  ;;  %v4271_v25 = vmul.f32 %v7397_v15, %v9722_v11  ;;  %v4285_v32 = vadd.f32 %v4269_v17, %v4236_v14  ;;  %v4316_v10 = vld [vmem:[#allocation2 + $0x6] sm:$0x1]  ;;  %v4603_v17 = vadd.f32 %v4507_v63, %v4313_v60 }
 0x3cc   : > { %4218 = vst [vmem:[#allocation2 + $0x65] sm:$0x1] %v4106_v23  ;;  %v7399_v23 = vld [vmem:[%s8282_s25 + $0xd] sm:$0x1]  ;;  %v4272_v29 = vmul.f32 %v7398_v19, %v9722_v11  ;;  %v4286_v36 = vadd.f32 %v4270_v21, %v4237_v18  ;;  %v4317_v15 = vld [vmem:[#allocation2 + $0x7] sm:$0x1]  ;;  %v4604_v21 = vadd.f32 %v4508_v5, %v4314_v0 }
 0x3cd   : > { %4219 = vst [vmem:[#allocation2 + $0x66] sm:$0x1] %v4107_v27  ;;  %v7400_v27 = vld [vmem:[%s8282_s25 + $0xe] sm:$0x1]  ;;  %v4273_v33 = vmul.f32 %v7399_v23, %v9722_v11  ;;  %v4287_v40 = vadd.f32 %v4271_v25, %v4238_v22  ;;  %v4318_v19 = vld [vmem:[#allocation2 + $0x8] sm:$0x1] }
 0x3ce   : > { %4220 = vst [vmem:[#allocation2 + $0x67] sm:$0x1] %v4108_v31  ;;  %v7401_v31 = vld [vmem:[%s8282_s25 + $0xf] sm:$0x1]  ;;  %v4274_v37 = vmul.f32 %v7400_v27, %v9722_v11  ;;  %v4288_v44 = vadd.f32 %v4272_v29, %v4239_v26  ;;  %v4319_v23 = vld [vmem:[#allocation2 + $0x9] sm:$0x1] }
 0x3cf   : > { %4221 = vst [vmem:[#allocation2 + $0x68] sm:$0x1] %v4109_v35  ;;  %v7402_v35 = vld [vmem:[%s8282_s25 + $0x10] sm:$0x1]  ;;  %v4275_v41 = vmul.f32 %v7401_v31, %v9722_v11  ;;  %v4289_v48 = vadd.f32 %v4273_v33, %v4240_v30  ;;  %v4320_v27 = vld [vmem:[#allocation2 + $0xa] sm:$0x1] }
 0x3d0   : > { %4222 = vst [vmem:[#allocation2 + $0x69] sm:$0x1] %v4110_v39  ;;  %v7403_v39 = vld [vmem:[%s8282_s25 + $0x11] sm:$0x1]  ;;  %v4276_v45 = vmul.f32 %v7402_v35, %v9722_v11  ;;  %v4290_v1 = vadd.f32 %v4274_v37, %v4241_v34  ;;  %v4321_v31 = vld [vmem:[#allocation2 + $0xb] sm:$0x1] }
 0x3d1   : > { %4223 = vst [vmem:[#allocation2 + $0x6a] sm:$0x1] %v4111_v43  ;;  %v7404_v43 = vld [vmem:[%s8275_s14 + $0x24] sm:$0x1]  ;;  %v4277_v49 = vmul.f32 %v7403_v39, %v9722_v11  ;;  %v4291_v55 = vadd.f32 %v4275_v41, %v4242_v38  ;;  %v4506_v11 = vmul.f32 %v7406_v51, %v9983_v2  ;;  %v4322_v35 = vld [vmem:[#allocation2 + $0xc] sm:$0x1] }
 0x3d2   : > { %4224 = vst [vmem:[#allocation2 + $0x6b] sm:$0x1] %v4112_v46  ;;  %v4244_v46 = vld [vmem:[#allocation2 + $0x7f] sm:$0x1]  ;;  %v4504_v52 = vmul.f32 %v7404_v43, %v9983_v2  ;;  %v4292_v59 = vadd.f32 %v4276_v45, %v4243_v42  ;;  %v4323_v39 = vld [vmem:[#allocation2 + $0xd] sm:$0x1] }
 0x3d3   : > { %4225 = vst [vmem:[#allocation2 + $0x6c] sm:$0x1] %v4113_v50  ;;  %v4310_v50 = vld [vmem:[#allocation2] sm:$0x1]  ;;  %v4293_v62 = vadd.f32 %v4277_v49, %v4244_v46  ;;  %v4324_v43 = vld [vmem:[#allocation2 + $0xe] sm:$0x1] }
 0x3d4   : > { %4226 = vst [vmem:[#allocation2 + $0x6d] sm:$0x1] %v4114_v53  ;;  %v4311_v53 = vld [vmem:[#allocation2 + $0x1] sm:$0x1]  ;;  %v4600_v4 = vadd.f32 %v4504_v52, %v4310_v50  ;;  %v4325_v47 = vld [vmem:[#allocation2 + $0xf] sm:$0x1] }
 0x3d5   : > { %4227 = vst [vmem:[#allocation2 + $0x6e] sm:$0x1] %v4115_v57  ;;  %v4312_v57 = vld [vmem:[#allocation2 + $0x2] sm:$0x1]  ;;  %v4601_v8 = vadd.f32 %v4505_v56, %v4311_v53  ;;  %v4326_v51 = vld [vmem:[#allocation2 + $0x10] sm:$0x1] }
 0x3d6   : > { %4228 = vst [vmem:[#allocation2 + $0x6f] sm:$0x1] %v4116_v61  ;;  %v7409_v61 = vld [vmem:[%s8275_s14 + $0x29] sm:$0x1]  ;;  %v4602_v13 = vadd.f32 %v4506_v11, %v4312_v57  ;;  %v4327_v54 = vld [vmem:[#allocation2 + $0x11] sm:$0x1] }
 0x3d7   : > { %4294 = vst [vmem:[#allocation2 + $0x70] sm:$0x1] %v4278_v3  ;;  %v7410_v3 = vld [vmem:[%s8275_s14 + $0x2a] sm:$0x1]  ;;  %v4509_v9 = vmul.f32 %v7409_v61, %v9983_v2  ;;  %v4328_v58 = vld [vmem:[#allocation2 + $0x12] sm:$0x1] }
 0x3d8   : > { %4295 = vst [vmem:[#allocation2 + $0x71] sm:$0x1] %v4279_v7  ;;  %v7411_v7 = vld [vmem:[%s8275_s14 + $0x2b] sm:$0x1]  ;;  %v4510_v14 = vmul.f32 %v7410_v3, %v9983_v2  ;;  %v4329_v61 = vld [vmem:[#allocation2 + $0x13] sm:$0x1] }
 0x3d9   : > { %4296 = vst [vmem:[#allocation2 + $0x72] sm:$0x1] %v4280_v12  ;;  %v7412_v12 = vld [vmem:[%s8275_s14 + $0x2c] sm:$0x1]  ;;  %v4511_v18 = vmul.f32 %v7411_v7, %v9983_v2  ;;  %v4605_v25 = vadd.f32 %v4509_v9, %v4315_v6  ;;  %v4330_v3 = vld [vmem:[#allocation2 + $0x14] sm:$0x1] }
 0x3da   : > { %4297 = vst [vmem:[#allocation2 + $0x73] sm:$0x1] %v4281_v16  ;;  %v7413_v16 = vld [vmem:[%s8275_s14 + $0x2d] sm:$0x1]  ;;  %v4512_v22 = vmul.f32 %v7412_v12, %v9983_v2  ;;  %v4606_v29 = vadd.f32 %v4510_v14, %v4316_v10  ;;  %v4331_v7 = vld [vmem:[#allocation2 + $0x15] sm:$0x1] }
 0x3db   : > { %4298 = vst [vmem:[#allocation2 + $0x74] sm:$0x1] %v4282_v20  ;;  %v7414_v20 = vld [vmem:[%s8275_s14 + $0x2e] sm:$0x1]  ;;  %v4513_v26 = vmul.f32 %v7413_v16, %v9983_v2  ;;  %v4607_v33 = vadd.f32 %v4511_v18, %v4317_v15  ;;  %v4332_v12 = vld [vmem:[#allocation2 + $0x16] sm:$0x1] }
 0x3dc   : > { %4299 = vst [vmem:[#allocation2 + $0x75] sm:$0x1] %v4283_v24  ;;  %v7415_v24 = vld [vmem:[%s8275_s14 + $0x2f] sm:$0x1]  ;;  %v4514_v30 = vmul.f32 %v7414_v20, %v9983_v2  ;;  %v4608_v37 = vadd.f32 %v4512_v22, %v4318_v19  ;;  %v4333_v16 = vld [vmem:[#allocation2 + $0x17] sm:$0x1] }
 0x3dd   : > { %4300 = vst [vmem:[#allocation2 + $0x76] sm:$0x1] %v4284_v28  ;;  %v7416_v28 = vld [vmem:[%s8275_s14 + $0x30] sm:$0x1]  ;;  %v4515_v34 = vmul.f32 %v7415_v24, %v9983_v2  ;;  %v4609_v41 = vadd.f32 %v4513_v26, %v4319_v23  ;;  %v4334_v20 = vld [vmem:[#allocation2 + $0x18] sm:$0x1] }
 0x3de   : > { %4301 = vst [vmem:[#allocation2 + $0x77] sm:$0x1] %v4285_v32  ;;  %v7417_v32 = vld [vmem:[%s8275_s14 + $0x31] sm:$0x1]  ;;  %v4516_v38 = vmul.f32 %v7416_v28, %v9983_v2  ;;  %v4610_v45 = vadd.f32 %v4514_v30, %v4320_v27  ;;  %v4335_v24 = vld [vmem:[#allocation2 + $0x19] sm:$0x1] }
 0x3df   : > { %4302 = vst [vmem:[#allocation2 + $0x78] sm:$0x1] %v4286_v36  ;;  %v7418_v36 = vld [vmem:[%s8275_s14 + $0x32] sm:$0x1]  ;;  %v4517_v42 = vmul.f32 %v7417_v32, %v9983_v2  ;;  %v4611_v49 = vadd.f32 %v4515_v34, %v4321_v31  ;;  %v4336_v28 = vld [vmem:[#allocation2 + $0x1a] sm:$0x1] }
 0x3e0   : > { %4303 = vst [vmem:[#allocation2 + $0x79] sm:$0x1] %v4287_v40  ;;  %v7419_v40 = vld [vmem:[%s8275_s14 + $0x33] sm:$0x1]  ;;  %v4518_v46 = vmul.f32 %v7418_v36, %v9983_v2  ;;  %v4612_v52 = vadd.f32 %v4516_v38, %v4322_v35  ;;  %v4337_v32 = vld [vmem:[#allocation2 + $0x1b] sm:$0x1] }
 0x3e1   : > { %4304 = vst [vmem:[#allocation2 + $0x7a] sm:$0x1] %v4288_v44  ;;  %v7420_v44 = vld [vmem:[%s8275_s14 + $0x36] sm:$0x1]  ;;  %v4519_v50 = vmul.f32 %v7419_v40, %v9983_v2  ;;  %v4613_v56 = vadd.f32 %v4517_v42, %v4323_v39  ;;  %v4338_v36 = vld [vmem:[#allocation2 + $0x1c] sm:$0x1] }
 0x3e2   : > { %4305 = vst [vmem:[#allocation2 + $0x7b] sm:$0x1] %v4289_v48  ;;  %v7421_v48 = vld [vmem:[%s8275_s14 + $0x37] sm:$0x1]  ;;  %v4520_v53 = vmul.f32 %v7420_v44, %v9983_v2  ;;  %v4614_v11 = vadd.f32 %v4518_v46, %v4324_v43  ;;  %v4339_v40 = vld [vmem:[#allocation2 + $0x1d] sm:$0x1] }
 0x3e3   : > { %4306 = vst [vmem:[#allocation2 + $0x7c] sm:$0x1] %v4290_v1  ;;  %v7422_v1 = vld [vmem:[%s8275_s14 + $0x38] sm:$0x1]  ;;  %v4521_v57 = vmul.f32 %v7421_v48, %v9983_v2  ;;  %v4615_v63 = vadd.f32 %v4519_v50, %v4325_v47  ;;  %v4340_v44 = vld [vmem:[#allocation2 + $0x1e] sm:$0x1] }
 0x3e4   : > { %4307 = vst [vmem:[#allocation2 + $0x7d] sm:$0x1] %v4291_v55  ;;  %v7423_v55 = vld [vmem:[%s8275_s14 + $0x39] sm:$0x1]  ;;  %v4522_v60 = vmul.f32 %v7422_v1, %v9983_v2  ;;  %v4616_v5 = vadd.f32 %v4520_v53, %v4326_v51  ;;  %v4341_v48 = vld [vmem:[#allocation2 + $0x1f] sm:$0x1] }
 0x3e5   : > { %4308 = vst [vmem:[#allocation2 + $0x7e] sm:$0x1] %v4292_v59  ;;  %v7424_v59 = vld [vmem:[%s8275_s14 + $0x3a] sm:$0x1]  ;;  %v4523_v0 = vmul.f32 %v7423_v55, %v9983_v2  ;;  %v4617_v9 = vadd.f32 %v4521_v57, %v4327_v54  ;;  %v4342_v1 = vld [vmem:[#allocation2 + $0x20] sm:$0x1] }
 0x3e6   : > { %4309 = vst [vmem:[#allocation2 + $0x7f] sm:$0x1] %v4293_v62  ;;  %v7425_v62 = vld [vmem:[%s8275_s14 + $0x3b] sm:$0x1]  ;;  %v4524_v6 = vmul.f32 %v7424_v59, %v9983_v2  ;;  %v4618_v14 = vadd.f32 %v4522_v60, %v4328_v58  ;;  %v4343_v55 = vld [vmem:[#allocation2 + $0x21] sm:$0x1] }
 0x3e7   : > { %4696 = vst [vmem:[#allocation2] sm:$0x1] %v4600_v4  ;;  %v7426_v4 = vld [vmem:[%s8275_s14 + $0x3c] sm:$0x1]  ;;  %v4525_v10 = vmul.f32 %v7425_v62, %v9983_v2  ;;  %v4619_v18 = vadd.f32 %v4523_v0, %v4329_v61  ;;  %v4344_v59 = vld [vmem:[#allocation2 + $0x22] sm:$0x1] }
 0x3e8   : > { %4697 = vst [vmem:[#allocation2 + $0x1] sm:$0x1] %v4601_v8  ;;  %v7427_v8 = vld [vmem:[%s8275_s14 + $0x3d] sm:$0x1]  ;;  %v4526_v15 = vmul.f32 %v7426_v4, %v9983_v2  ;;  %v4620_v22 = vadd.f32 %v4524_v6, %v4330_v3  ;;  %v4345_v62 = vld [vmem:[#allocation2 + $0x23] sm:$0x1] }
 0x3e9   : > { %4698 = vst [vmem:[#allocation2 + $0x2] sm:$0x1] %v4602_v13  ;;  %v7428_v13 = vld [vmem:[%s8275_s14 + $0x3e] sm:$0x1]  ;;  %v4527_v19 = vmul.f32 %v7427_v8, %v9983_v2  ;;  %v4621_v26 = vadd.f32 %v4525_v10, %v4331_v7  ;;  %v4346_v4 = vld [vmem:[#allocation2 + $0x24] sm:$0x1] }
 0x3ea   : > { %4699 = vst [vmem:[#allocation2 + $0x3] sm:$0x1] %v4603_v17  ;;  %v7429_v17 = vld [vmem:[%s8275_s14 + $0x3f] sm:$0x1]  ;;  %v4528_v23 = vmul.f32 %v7428_v13, %v9983_v2  ;;  %v4622_v30 = vadd.f32 %v4526_v15, %v4332_v12  ;;  %v4347_v8 = vld [vmem:[#allocation2 + $0x25] sm:$0x1] }
 0x3eb   : > { %4700 = vst [vmem:[#allocation2 + $0x4] sm:$0x1] %v4604_v21  ;;  %v7430_v21 = vld [vmem:[%s8275_s14 + $0x40] sm:$0x1]  ;;  %v4529_v27 = vmul.f32 %v7429_v17, %v9983_v2  ;;  %v4623_v34 = vadd.f32 %v4527_v19, %v4333_v16  ;;  %v4348_v13 = vld [vmem:[#allocation2 + $0x26] sm:$0x1] }
 0x3ec   : > { %4701 = vst [vmem:[#allocation2 + $0x5] sm:$0x1] %v4605_v25  ;;  %v7431_v25 = vld [vmem:[%s8275_s14 + $0x41] sm:$0x1]  ;;  %v4530_v31 = vmul.f32 %v7430_v21, %v9983_v2  ;;  %v4624_v38 = vadd.f32 %v4528_v23, %v4334_v20  ;;  %v4349_v17 = vld [vmem:[#allocation2 + $0x27] sm:$0x1] }
 0x3ed   : > { %4702 = vst [vmem:[#allocation2 + $0x6] sm:$0x1] %v4606_v29  ;;  %v7432_v29 = vld [vmem:[%s8275_s14 + $0x42] sm:$0x1]  ;;  %v4531_v35 = vmul.f32 %v7431_v25, %v9983_v2  ;;  %v4625_v42 = vadd.f32 %v4529_v27, %v4335_v24  ;;  %v4350_v21 = vld [vmem:[#allocation2 + $0x28] sm:$0x1] }
 0x3ee   : > { %4703 = vst [vmem:[#allocation2 + $0x7] sm:$0x1] %v4607_v33  ;;  %v7433_v33 = vld [vmem:[%s8275_s14 + $0x43] sm:$0x1]  ;;  %v4532_v39 = vmul.f32 %v7432_v29, %v9983_v2  ;;  %v4626_v46 = vadd.f32 %v4530_v31, %v4336_v28  ;;  %v4351_v25 = vld [vmem:[#allocation2 + $0x29] sm:$0x1] }
 0x3ef   : > { %4704 = vst [vmem:[#allocation2 + $0x8] sm:$0x1] %v4608_v37  ;;  %v7434_v37 = vld [vmem:[%s8275_s14 + $0x44] sm:$0x1]  ;;  %v4533_v43 = vmul.f32 %v7433_v33, %v9983_v2  ;;  %v4627_v50 = vadd.f32 %v4531_v35, %v4337_v32  ;;  %v4352_v29 = vld [vmem:[#allocation2 + $0x2a] sm:$0x1] }
 0x3f0   : > { %4705 = vst [vmem:[#allocation2 + $0x9] sm:$0x1] %v4609_v41  ;;  %v7435_v41 = vld [vmem:[%s8275_s14 + $0x45] sm:$0x1]  ;;  %v4534_v47 = vmul.f32 %v7434_v37, %v9983_v2  ;;  %v4628_v53 = vadd.f32 %v4532_v39, %v4338_v36  ;;  %v4353_v33 = vld [vmem:[#allocation2 + $0x2b] sm:$0x1] }
 0x3f1   : > { %4706 = vst [vmem:[#allocation2 + $0xa] sm:$0x1] %v4610_v45  ;;  %v7436_v45 = vld [vmem:[%s8275_s14 + $0x48] sm:$0x1]  ;;  %v4535_v51 = vmul.f32 %v7435_v41, %v9983_v2  ;;  %v4629_v57 = vadd.f32 %v4533_v43, %v4339_v40  ;;  %v4354_v37 = vld [vmem:[#allocation2 + $0x2c] sm:$0x1] }
 0x3f2   : > { %4707 = vst [vmem:[#allocation2 + $0xb] sm:$0x1] %v4611_v49  ;;  %v7437_v49 = vld [vmem:[%s8275_s14 + $0x49] sm:$0x1]  ;;  %v4536_v54 = vmul.f32 %v7436_v45, %v9983_v2  ;;  %v4630_v60 = vadd.f32 %v4534_v47, %v4340_v44  ;;  %v4355_v41 = vld [vmem:[#allocation2 + $0x2d] sm:$0x1] }
 0x3f3   : > { %4708 = vst [vmem:[#allocation2 + $0xc] sm:$0x1] %v4612_v52  ;;  %v7438_v52 = vld [vmem:[%s8275_s14 + $0x4a] sm:$0x1]  ;;  %v4537_v58 = vmul.f32 %v7437_v49, %v9983_v2  ;;  %v4631_v0 = vadd.f32 %v4535_v51, %v4341_v48  ;;  %v4356_v45 = vld [vmem:[#allocation2 + $0x2e] sm:$0x1] }
 0x3f4   : > { %4709 = vst [vmem:[#allocation2 + $0xd] sm:$0x1] %v4613_v56  ;;  %v7439_v56 = vld [vmem:[%s8275_s14 + $0x4b] sm:$0x1]  ;;  %v4538_v61 = vmul.f32 %v7438_v52, %v9983_v2  ;;  %v4632_v6 = vadd.f32 %v4536_v54, %v4342_v1  ;;  %v4357_v49 = vld [vmem:[#allocation2 + $0x2f] sm:$0x1] }
 0x3f5   : > { %4710 = vst [vmem:[#allocation2 + $0xe] sm:$0x1] %v4614_v11  ;;  %v7440_v11 = vld [vmem:[%s8275_s14 + $0x4c] sm:$0x1]  ;;  %v4539_v3 = vmul.f32 %v7439_v56, %v9983_v2  ;;  %v4633_v10 = vadd.f32 %v4537_v58, %v4343_v55  ;;  %v4358_v52 = vld [vmem:[#allocation2 + $0x30] sm:$0x1] }
 0x3f6   : > { %4711 = vst [vmem:[#allocation2 + $0xf] sm:$0x1] %v4615_v63  ;;  %v7441_v63 = vld [vmem:[%s8275_s14 + $0x4d] sm:$0x1]  ;;  %v4540_v7 = vmul.f32 %v7440_v11, %v9983_v2  ;;  %v4634_v15 = vadd.f32 %v4538_v61, %v4344_v59  ;;  %v4359_v56 = vld [vmem:[#allocation2 + $0x31] sm:$0x1] }
 0x3f7   : > { %4712 = vst [vmem:[#allocation2 + $0x10] sm:$0x1] %v4616_v5  ;;  %v7442_v5 = vld [vmem:[%s8275_s14 + $0x4e] sm:$0x1]  ;;  %v4541_v12 = vmul.f32 %v7441_v63, %v9983_v2  ;;  %v4635_v19 = vadd.f32 %v4539_v3, %v4345_v62  ;;  %v4360_v11 = vld [vmem:[#allocation2 + $0x32] sm:$0x1] }
 0x3f8   : > { %4713 = vst [vmem:[#allocation2 + $0x11] sm:$0x1] %v4617_v9  ;;  %v7443_v9 = vld [vmem:[%s8275_s14 + $0x4f] sm:$0x1]  ;;  %v4542_v16 = vmul.f32 %v7442_v5, %v9983_v2  ;;  %v4636_v23 = vadd.f32 %v4540_v7, %v4346_v4  ;;  %v4361_v63 = vld [vmem:[#allocation2 + $0x33] sm:$0x1] }
 0x3f9   : > { %4714 = vst [vmem:[#allocation2 + $0x12] sm:$0x1] %v4618_v14  ;;  %v7444_v14 = vld [vmem:[%s8275_s14 + $0x50] sm:$0x1]  ;;  %v4543_v20 = vmul.f32 %v7443_v9, %v9983_v2  ;;  %v4637_v27 = vadd.f32 %v4541_v12, %v4347_v8  ;;  %v4362_v5 = vld [vmem:[#allocation2 + $0x34] sm:$0x1] }
 0x3fa   : > { %4715 = vst [vmem:[#allocation2 + $0x13] sm:$0x1] %v4619_v18  ;;  %v7445_v18 = vld [vmem:[%s8275_s14 + $0x51] sm:$0x1]  ;;  %v4544_v24 = vmul.f32 %v7444_v14, %v9983_v2  ;;  %v4638_v31 = vadd.f32 %v4542_v16, %v4348_v13  ;;  %v4363_v9 = vld [vmem:[#allocation2 + $0x35] sm:$0x1] }
 0x3fb   : > { %4716 = vst [vmem:[#allocation2 + $0x14] sm:$0x1] %v4620_v22  ;;  %v7446_v22 = vld [vmem:[%s8275_s14 + $0x52] sm:$0x1]  ;;  %v4545_v28 = vmul.f32 %v7445_v18, %v9983_v2  ;;  %v4639_v35 = vadd.f32 %v4543_v20, %v4349_v17  ;;  %v4364_v14 = vld [vmem:[#allocation2 + $0x36] sm:$0x1] }
 0x3fc   : > { %4717 = vst [vmem:[#allocation2 + $0x15] sm:$0x1] %v4621_v26  ;;  %v7447_v26 = vld [vmem:[%s8275_s14 + $0x53] sm:$0x1]  ;;  %v4546_v32 = vmul.f32 %v7446_v22, %v9983_v2  ;;  %v4640_v39 = vadd.f32 %v4544_v24, %v4350_v21  ;;  %v4365_v18 = vld [vmem:[#allocation2 + $0x37] sm:$0x1] }
 0x3fd   : > { %4718 = vst [vmem:[#allocation2 + $0x16] sm:$0x1] %v4622_v30  ;;  %v7448_v30 = vld [vmem:[%s8275_s14 + $0x54] sm:$0x1]  ;;  %v4547_v36 = vmul.f32 %v7447_v26, %v9983_v2  ;;  %v4641_v43 = vadd.f32 %v4545_v28, %v4351_v25  ;;  %v4366_v22 = vld [vmem:[#allocation2 + $0x38] sm:$0x1] }
 0x3fe   : > { %4719 = vst [vmem:[#allocation2 + $0x17] sm:$0x1] %v4623_v34  ;;  %v7449_v34 = vld [vmem:[%s8275_s14 + $0x55] sm:$0x1]  ;;  %v4548_v40 = vmul.f32 %v7448_v30, %v9983_v2  ;;  %v4642_v47 = vadd.f32 %v4546_v32, %v4352_v29  ;;  %v4367_v26 = vld [vmem:[#allocation2 + $0x39] sm:$0x1] }
 0x3ff   : > { %4720 = vst [vmem:[#allocation2 + $0x18] sm:$0x1] %v4624_v38  ;;  %v7450_v38 = vld [vmem:[%s8275_s14 + $0x56] sm:$0x1]  ;;  %v4549_v44 = vmul.f32 %v7449_v34, %v9983_v2  ;;  %v4643_v51 = vadd.f32 %v4547_v36, %v4353_v33  ;;  %v4368_v30 = vld [vmem:[#allocation2 + $0x3a] sm:$0x1] }
 0x400   : > { %4721 = vst [vmem:[#allocation2 + $0x19] sm:$0x1] %v4625_v42  ;;  %v7451_v42 = vld [vmem:[%s8275_s14 + $0x57] sm:$0x1]  ;;  %v4550_v48 = vmul.f32 %v7450_v38, %v9983_v2  ;;  %v4644_v54 = vadd.f32 %v4548_v40, %v4354_v37  ;;  %v4369_v34 = vld [vmem:[#allocation2 + $0x3b] sm:$0x1] }
 0x401   : > { %4722 = vst [vmem:[#allocation2 + $0x1a] sm:$0x1] %v4626_v46  ;;  %v7452_v46 = vld [vmem:[%s8275_s14 + $0x5a] sm:$0x1]  ;;  %v4551_v1 = vmul.f32 %v7451_v42, %v9983_v2  ;;  %v4645_v58 = vadd.f32 %v4549_v44, %v4355_v41  ;;  %v4370_v38 = vld [vmem:[#allocation2 + $0x3c] sm:$0x1] }
 0x402   : > { %4723 = vst [vmem:[#allocation2 + $0x1b] sm:$0x1] %v4627_v50  ;;  %v7453_v50 = vld [vmem:[%s8275_s14 + $0x5b] sm:$0x1]  ;;  %v4552_v55 = vmul.f32 %v7452_v46, %v9983_v2  ;;  %v4646_v61 = vadd.f32 %v4550_v48, %v4356_v45  ;;  %v4371_v42 = vld [vmem:[#allocation2 + $0x3d] sm:$0x1] }
 0x403   : > { %4724 = vst [vmem:[#allocation2 + $0x1c] sm:$0x1] %v4628_v53  ;;  %v7454_v53 = vld [vmem:[%s8275_s14 + $0x5c] sm:$0x1]  ;;  %v4553_v59 = vmul.f32 %v7453_v50, %v9983_v2  ;;  %v4647_v3 = vadd.f32 %v4551_v1, %v4357_v49  ;;  %v4372_v46 = vld [vmem:[#allocation2 + $0x3e] sm:$0x1] }
 0x404   : > { %4725 = vst [vmem:[#allocation2 + $0x1d] sm:$0x1] %v4629_v57  ;;  %v7455_v57 = vld [vmem:[%s8275_s14 + $0x5d] sm:$0x1]  ;;  %v4554_v62 = vmul.f32 %v7454_v53, %v9983_v2  ;;  %v4648_v7 = vadd.f32 %v4552_v55, %v4358_v52  ;;  %v4373_v50 = vld [vmem:[#allocation2 + $0x3f] sm:$0x1] }
 0x405   : > { %4726 = vst [vmem:[#allocation2 + $0x1e] sm:$0x1] %v4630_v60  ;;  %v7456_v60 = vld [vmem:[%s8275_s14 + $0x5e] sm:$0x1]  ;;  %v4555_v4 = vmul.f32 %v7455_v57, %v9983_v2  ;;  %v4649_v12 = vadd.f32 %v4553_v59, %v4359_v56  ;;  %v4374_v53 = vld [vmem:[#allocation2 + $0x40] sm:$0x1] }
 0x406   : > { %4727 = vst [vmem:[#allocation2 + $0x1f] sm:$0x1] %v4631_v0  ;;  %v7457_v0 = vld [vmem:[%s8275_s14 + $0x5f] sm:$0x1]  ;;  %v4556_v8 = vmul.f32 %v7456_v60, %v9983_v2  ;;  %v4650_v16 = vadd.f32 %v4554_v62, %v4360_v11  ;;  %v4375_v57 = vld [vmem:[#allocation2 + $0x41] sm:$0x1] }
 0x407   : > { %4728 = vst [vmem:[#allocation2 + $0x20] sm:$0x1] %v4632_v6  ;;  %v7458_v6 = vld [vmem:[%s8275_s14 + $0x60] sm:$0x1]  ;;  %v4557_v13 = vmul.f32 %v7457_v0, %v9983_v2  ;;  %v4651_v20 = vadd.f32 %v4555_v4, %v4361_v63  ;;  %v4376_v60 = vld [vmem:[#allocation2 + $0x42] sm:$0x1] }
 0x408   : > { %4729 = vst [vmem:[#allocation2 + $0x21] sm:$0x1] %v4633_v10  ;;  %v7459_v10 = vld [vmem:[%s8275_s14 + $0x61] sm:$0x1]  ;;  %v4558_v17 = vmul.f32 %v7458_v6, %v9983_v2  ;;  %v4652_v24 = vadd.f32 %v4556_v8, %v4362_v5  ;;  %v4377_v0 = vld [vmem:[#allocation2 + $0x43] sm:$0x1] }
 0x409   : > { %4730 = vst [vmem:[#allocation2 + $0x22] sm:$0x1] %v4634_v15  ;;  %v7460_v15 = vld [vmem:[%s8275_s14 + $0x62] sm:$0x1]  ;;  %v4559_v21 = vmul.f32 %v7459_v10, %v9983_v2  ;;  %v4653_v28 = vadd.f32 %v4557_v13, %v4363_v9  ;;  %v4378_v6 = vld [vmem:[#allocation2 + $0x44] sm:$0x1] }
 0x40a   : > { %4731 = vst [vmem:[#allocation2 + $0x23] sm:$0x1] %v4635_v19  ;;  %v7461_v19 = vld [vmem:[%s8275_s14 + $0x63] sm:$0x1]  ;;  %v4560_v25 = vmul.f32 %v7460_v15, %v9983_v2  ;;  %v4654_v32 = vadd.f32 %v4558_v17, %v4364_v14  ;;  %v4379_v10 = vld [vmem:[#allocation2 + $0x45] sm:$0x1] }
 0x40b   : > { %4732 = vst [vmem:[#allocation2 + $0x24] sm:$0x1] %v4636_v23  ;;  %v7462_v23 = vld [vmem:[%s8275_s14 + $0x64] sm:$0x1]  ;;  %v4561_v29 = vmul.f32 %v7461_v19, %v9983_v2  ;;  %v4655_v36 = vadd.f32 %v4559_v21, %v4365_v18  ;;  %v4380_v15 = vld [vmem:[#allocation2 + $0x46] sm:$0x1] }
 0x40c   : > { %4733 = vst [vmem:[#allocation2 + $0x25] sm:$0x1] %v4637_v27  ;;  %v7463_v27 = vld [vmem:[%s8275_s14 + $0x65] sm:$0x1]  ;;  %v4562_v33 = vmul.f32 %v7462_v23, %v9983_v2  ;;  %v4656_v40 = vadd.f32 %v4560_v25, %v4366_v22  ;;  %v4381_v19 = vld [vmem:[#allocation2 + $0x47] sm:$0x1] }
 0x40d   : > { %4734 = vst [vmem:[#allocation2 + $0x26] sm:$0x1] %v4638_v31  ;;  %v7464_v31 = vld [vmem:[%s8275_s14 + $0x66] sm:$0x1]  ;;  %v4563_v37 = vmul.f32 %v7463_v27, %v9983_v2  ;;  %v4657_v44 = vadd.f32 %v4561_v29, %v4367_v26  ;;  %v4382_v23 = vld [vmem:[#allocation2 + $0x48] sm:$0x1] }
 0x40e   : > { %4735 = vst [vmem:[#allocation2 + $0x27] sm:$0x1] %v4639_v35  ;;  %v7465_v35 = vld [vmem:[%s8275_s14 + $0x67] sm:$0x1]  ;;  %v4564_v41 = vmul.f32 %v7464_v31, %v9983_v2  ;;  %v4658_v48 = vadd.f32 %v4562_v33, %v4368_v30  ;;  %v4383_v27 = vld [vmem:[#allocation2 + $0x49] sm:$0x1] }
 0x40f   : > { %4736 = vst [vmem:[#allocation2 + $0x28] sm:$0x1] %v4640_v39  ;;  %v7466_v39 = vld [vmem:[%s8275_s14 + $0x68] sm:$0x1]  ;;  %v4565_v45 = vmul.f32 %v7465_v35, %v9983_v2  ;;  %v4659_v1 = vadd.f32 %v4563_v37, %v4369_v34  ;;  %v4384_v31 = vld [vmem:[#allocation2 + $0x4a] sm:$0x1] }
 0x410   : > { %4737 = vst [vmem:[#allocation2 + $0x29] sm:$0x1] %v4641_v43  ;;  %v7467_v43 = vld [vmem:[%s8275_s14 + $0x69] sm:$0x1]  ;;  %v4566_v49 = vmul.f32 %v7466_v39, %v9983_v2  ;;  %v4660_v55 = vadd.f32 %v4564_v41, %v4370_v38  ;;  %v4385_v35 = vld [vmem:[#allocation2 + $0x4b] sm:$0x1] }
 0x411   : > { %4738 = vst [vmem:[#allocation2 + $0x2a] sm:$0x1] %v4642_v47  ;;  %v7468_v47 = vld [vmem:[%s8275_s14 + $0x6c] sm:$0x1]  ;;  %v4567_v52 = vmul.f32 %v7467_v43, %v9983_v2  ;;  %v4661_v59 = vadd.f32 %v4565_v45, %v4371_v42  ;;  %v4387_v43 = vld [vmem:[#allocation2 + $0x4d] sm:$0x1] }
 0x412   : > { %4739 = vst [vmem:[#allocation2 + $0x2b] sm:$0x1] %v4643_v51  ;;  %v7469_v51 = vld [vmem:[%s8275_s14 + $0x6d] sm:$0x1]  ;;  %v4568_v56 = vmul.f32 %v7468_v47, %v9983_v2  ;;  %v4662_v62 = vadd.f32 %v4566_v49, %v4372_v46  ;;  %v4386_v39 = vld [vmem:[#allocation2 + $0x4c] sm:$0x1] }
 0x413   : > { %4740 = vst [vmem:[#allocation2 + $0x2c] sm:$0x1] %v4644_v54  ;;  %v7470_v54 = vld [vmem:[%s8275_s14 + $0x6e] sm:$0x1]  ;;  %v4569_v11 = vmul.f32 %v7469_v51, %v9983_v2  ;;  %v4663_v4 = vadd.f32 %v4567_v52, %v4373_v50  ;;  %v4389_v51 = vld [vmem:[#allocation2 + $0x4f] sm:$0x1] }
 0x414   : > { %4741 = vst [vmem:[#allocation2 + $0x2d] sm:$0x1] %v4645_v58  ;;  %v7471_v58 = vld [vmem:[%s8275_s14 + $0x6f] sm:$0x1]  ;;  %v4570_v63 = vmul.f32 %v7470_v54, %v9983_v2  ;;  %v4664_v8 = vadd.f32 %v4568_v56, %v4374_v53  ;;  %v4388_v47 = vld [vmem:[#allocation2 + $0x4e] sm:$0x1] }
 0x415   : > { %4742 = vst [vmem:[#allocation2 + $0x2e] sm:$0x1] %v4646_v61  ;;  %v7472_v61 = vld [vmem:[%s8275_s14 + $0x70] sm:$0x1]  ;;  %v4571_v5 = vmul.f32 %v7471_v58, %v9983_v2  ;;  %v4665_v13 = vadd.f32 %v4569_v11, %v4375_v57  ;;  %v4391_v58 = vld [vmem:[#allocation2 + $0x51] sm:$0x1] }
 0x416   : > { %4743 = vst [vmem:[#allocation2 + $0x2f] sm:$0x1] %v4647_v3  ;;  %v7473_v3 = vld [vmem:[%s8275_s14 + $0x71] sm:$0x1]  ;;  %v4572_v9 = vmul.f32 %v7472_v61, %v9983_v2  ;;  %v4666_v17 = vadd.f32 %v4570_v63, %v4376_v60  ;;  %v4390_v54 = vld [vmem:[#allocation2 + $0x50] sm:$0x1] }
 0x417   : > { %4744 = vst [vmem:[#allocation2 + $0x30] sm:$0x1] %v4648_v7  ;;  %v7474_v7 = vld [vmem:[%s8275_s14 + $0x72] sm:$0x1]  ;;  %v4573_v14 = vmul.f32 %v7473_v3, %v9983_v2  ;;  %v4667_v21 = vadd.f32 %v4571_v5, %v4377_v0  ;;  %v4393_v3 = vld [vmem:[#allocation2 + $0x53] sm:$0x1] }
 0x418   : > { %4745 = vst [vmem:[#allocation2 + $0x31] sm:$0x1] %v4649_v12  ;;  %v7475_v12 = vld [vmem:[%s8275_s14 + $0x73] sm:$0x1]  ;;  %v4574_v18 = vmul.f32 %v7474_v7, %v9983_v2  ;;  %v4668_v25 = vadd.f32 %v4572_v9, %v4378_v6  ;;  %v4392_v61 = vld [vmem:[#allocation2 + $0x52] sm:$0x1] }
 0x419   : > { %4746 = vst [vmem:[#allocation2 + $0x32] sm:$0x1] %v4650_v16  ;;  %v7476_v16 = vld [vmem:[%s8275_s14 + $0x74] sm:$0x1]  ;;  %v4575_v22 = vmul.f32 %v7475_v12, %v9983_v2  ;;  %v4669_v29 = vadd.f32 %v4573_v14, %v4379_v10  ;;  %v4395_v12 = vld [vmem:[#allocation2 + $0x55] sm:$0x1] }
 0x41a   : > { %4747 = vst [vmem:[#allocation2 + $0x33] sm:$0x1] %v4651_v20  ;;  %v7477_v20 = vld [vmem:[%s8275_s14 + $0x75] sm:$0x1]  ;;  %v4576_v26 = vmul.f32 %v7476_v16, %v9983_v2  ;;  %v4670_v33 = vadd.f32 %v4574_v18, %v4380_v15  ;;  %v4394_v7 = vld [vmem:[#allocation2 + $0x54] sm:$0x1] }
 0x41b   : > { %4748 = vst [vmem:[#allocation2 + $0x34] sm:$0x1] %v4652_v24  ;;  %v7478_v24 = vld [vmem:[%s8275_s14 + $0x76] sm:$0x1]  ;;  %v4577_v30 = vmul.f32 %v7477_v20, %v9983_v2  ;;  %v4671_v37 = vadd.f32 %v4575_v22, %v4381_v19  ;;  %v4397_v20 = vld [vmem:[#allocation2 + $0x57] sm:$0x1] }
 0x41c   : > { %4749 = vst [vmem:[#allocation2 + $0x35] sm:$0x1] %v4653_v28  ;;  %v7479_v28 = vld [vmem:[%s8275_s14 + $0x77] sm:$0x1]  ;;  %v4578_v34 = vmul.f32 %v7478_v24, %v9983_v2  ;;  %v4672_v41 = vadd.f32 %v4576_v26, %v4382_v23  ;;  %v4396_v16 = vld [vmem:[#allocation2 + $0x56] sm:$0x1] }
 0x41d   : > { %4750 = vst [vmem:[#allocation2 + $0x36] sm:$0x1] %v4654_v32  ;;  %v7480_v32 = vld [vmem:[%s8275_s14 + $0x78] sm:$0x1]  ;;  %v4579_v38 = vmul.f32 %v7479_v28, %v9983_v2  ;;  %v4673_v45 = vadd.f32 %v4577_v30, %v4383_v27  ;;  %v4399_v28 = vld [vmem:[#allocation2 + $0x59] sm:$0x1] }
 0x41e   : > { %4751 = vst [vmem:[#allocation2 + $0x37] sm:$0x1] %v4655_v36  ;;  %v7481_v36 = vld [vmem:[%s8275_s14 + $0x79] sm:$0x1]  ;;  %v4580_v42 = vmul.f32 %v7480_v32, %v9983_v2  ;;  %v4674_v49 = vadd.f32 %v4578_v34, %v4384_v31  ;;  %v4398_v24 = vld [vmem:[#allocation2 + $0x58] sm:$0x1] }
 0x41f   : > { %4752 = vst [vmem:[#allocation2 + $0x38] sm:$0x1] %v4656_v40  ;;  %v7482_v40 = vld [vmem:[%s8275_s14 + $0x7a] sm:$0x1]  ;;  %v4581_v46 = vmul.f32 %v7481_v36, %v9983_v2  ;;  %v4675_v52 = vadd.f32 %v4579_v38, %v4385_v35  ;;  %v4401_v36 = vld [vmem:[#allocation2 + $0x5b] sm:$0x1] }
 0x420   : > { %4753 = vst [vmem:[#allocation2 + $0x39] sm:$0x1] %v4657_v44  ;;  %v7483_v44 = vld [vmem:[%s8275_s14 + $0x7b] sm:$0x1]  ;;  %v4582_v50 = vmul.f32 %v7482_v40, %v9983_v2  ;;  %v4676_v56 = vadd.f32 %v4580_v42, %v4386_v39  ;;  %v4400_v32 = vld [vmem:[#allocation2 + $0x5a] sm:$0x1] }
 0x421   : > { %4754 = vst [vmem:[#allocation2 + $0x3a] sm:$0x1] %v4658_v48  ;;  %v7484_v48 = vld [vmem:[%s8275_s14 + $0x7e] sm:$0x1]  ;;  %v4583_v53 = vmul.f32 %v7483_v44, %v9983_v2  ;;  %v4677_v11 = vadd.f32 %v4581_v46, %v4387_v43  ;;  %v4402_v40 = vld [vmem:[#allocation2 + $0x5c] sm:$0x1] }
 0x422   : > { %4755 = vst [vmem:[#allocation2 + $0x3b] sm:$0x1] %v4659_v1  ;;  %v7485_v1 = vld [vmem:[%s8275_s14 + $0x7f] sm:$0x1]  ;;  %v4584_v57 = vmul.f32 %v7484_v48, %v9983_v2  ;;  %v4678_v63 = vadd.f32 %v4582_v50, %v4388_v47  ;;  %v4403_v44 = vld [vmem:[#allocation2 + $0x5d] sm:$0x1] }
 0x423   : > { %4756 = vst [vmem:[#allocation2 + $0x3c] sm:$0x1] %v4660_v55  ;;  %v7486_v55 = vld [vmem:[%s8275_s14 + $0x80] sm:$0x1]  ;;  %v4585_v60 = vmul.f32 %v7485_v1, %v9983_v2  ;;  %v4679_v5 = vadd.f32 %v4583_v53, %v4389_v51  ;;  %v4404_v48 = vld [vmem:[#allocation2 + $0x5e] sm:$0x1] }
 0x424   : > { %4757 = vst [vmem:[#allocation2 + $0x3d] sm:$0x1] %v4661_v59  ;;  %v7487_v59 = vld [vmem:[%s8275_s14 + $0x81] sm:$0x1]  ;;  %v4586_v0 = vmul.f32 %v7486_v55, %v9983_v2  ;;  %v4680_v9 = vadd.f32 %v4584_v57, %v4390_v54  ;;  %v4405_v1 = vld [vmem:[#allocation2 + $0x5f] sm:$0x1] }
 0x425   : > { %4758 = vst [vmem:[#allocation2 + $0x3e] sm:$0x1] %v4662_v62  ;;  %v7488_v62 = vld [vmem:[%s8275_s14 + $0x82] sm:$0x1]  ;;  %v4587_v6 = vmul.f32 %v7487_v59, %v9983_v2  ;;  %v4681_v14 = vadd.f32 %v4585_v60, %v4391_v58  ;;  %v4793_v55 = vld [vmem:[#allocation2 + $0x60] sm:$0x1] }
 0x426   : > { %4759 = vst [vmem:[#allocation2 + $0x3f] sm:$0x1] %v4663_v4  ;;  %v7489_v4 = vld [vmem:[%s8275_s14 + $0x83] sm:$0x1]  ;;  %v4588_v10 = vmul.f32 %v7488_v62, %v9983_v2  ;;  %v4682_v18 = vadd.f32 %v4586_v0, %v4392_v61  ;;  %v4794_v59 = vld [vmem:[#allocation2 + $0x61] sm:$0x1] }
 0x427   : > { %4760 = vst [vmem:[#allocation2 + $0x40] sm:$0x1] %v4664_v8  ;;  %v7490_v8 = vld [vmem:[%s8275_s14 + $0x84] sm:$0x1]  ;;  %v4589_v15 = vmul.f32 %v7489_v4, %v9983_v2  ;;  %v4683_v22 = vadd.f32 %v4587_v6, %v4393_v3  ;;  %v4795_v62 = vld [vmem:[#allocation2 + $0x62] sm:$0x1] }
 0x428   : > { %4761 = vst [vmem:[#allocation2 + $0x41] sm:$0x1] %v4665_v13  ;;  %v7491_v13 = vld [vmem:[%s8275_s14 + $0x85] sm:$0x1]  ;;  %v4590_v19 = vmul.f32 %v7490_v8, %v9983_v2  ;;  %v4684_v26 = vadd.f32 %v4588_v10, %v4394_v7  ;;  %v4796_v4 = vld [vmem:[#allocation2 + $0x63] sm:$0x1] }
 0x429   : > { %4762 = vst [vmem:[#allocation2 + $0x42] sm:$0x1] %v4666_v17  ;;  %v7492_v17 = vld [vmem:[%s8275_s14 + $0x86] sm:$0x1]  ;;  %v4591_v23 = vmul.f32 %v7491_v13, %v9983_v2  ;;  %v4685_v30 = vadd.f32 %v4589_v15, %v4395_v12  ;;  %v4797_v8 = vld [vmem:[#allocation2 + $0x64] sm:$0x1] }
 0x42a   : > { %4763 = vst [vmem:[#allocation2 + $0x43] sm:$0x1] %v4667_v21  ;;  %v7493_v21 = vld [vmem:[%s8275_s14 + $0x87] sm:$0x1]  ;;  %v4592_v27 = vmul.f32 %v7492_v17, %v9983_v2  ;;  %v4686_v34 = vadd.f32 %v4590_v19, %v4396_v16  ;;  %v4798_v13 = vld [vmem:[#allocation2 + $0x65] sm:$0x1] }
 0x42b   : > { %4764 = vst [vmem:[#allocation2 + $0x44] sm:$0x1] %v4668_v25  ;;  %v7494_v25 = vld [vmem:[%s8275_s14 + $0x88] sm:$0x1]  ;;  %v4593_v31 = vmul.f32 %v7493_v21, %v9983_v2  ;;  %v4687_v38 = vadd.f32 %v4591_v23, %v4397_v20  ;;  %v4799_v17 = vld [vmem:[#allocation2 + $0x66] sm:$0x1] }
 0x42c   : > { %4765 = vst [vmem:[#allocation2 + $0x45] sm:$0x1] %v4669_v29  ;;  %v7495_v29 = vld [vmem:[%s8275_s14 + $0x89] sm:$0x1]  ;;  %v4594_v35 = vmul.f32 %v7494_v25, %v9983_v2  ;;  %v4688_v42 = vadd.f32 %v4592_v27, %v4398_v24  ;;  %v4800_v21 = vld [vmem:[#allocation2 + $0x67] sm:$0x1] }
 0x42d   : > { %4766 = vst [vmem:[#allocation2 + $0x46] sm:$0x1] %v4670_v33  ;;  %v7496_v33 = vld [vmem:[%s8275_s14 + $0x8a] sm:$0x1]  ;;  %v4595_v39 = vmul.f32 %v7495_v29, %v9983_v2  ;;  %v4689_v46 = vadd.f32 %v4593_v31, %v4399_v28  ;;  %v4801_v25 = vld [vmem:[#allocation2 + $0x68] sm:$0x1] }
 0x42e   : > { %4767 = vst [vmem:[#allocation2 + $0x47] sm:$0x1] %v4671_v37  ;;  %v7497_v37 = vld [vmem:[%s8275_s14 + $0x8b] sm:$0x1]  ;;  %v4596_v43 = vmul.f32 %v7496_v33, %v9983_v2  ;;  %v4690_v50 = vadd.f32 %v4594_v35, %v4400_v32  ;;  %v4802_v29 = vld [vmem:[#allocation2 + $0x69] sm:$0x1] }
 0x42f   : > { %4768 = vst [vmem:[#allocation2 + $0x48] sm:$0x1] %v4672_v41  ;;  %v7498_v41 = vld [vmem:[%s8275_s14 + $0x8c] sm:$0x1]  ;;  %v4597_v47 = vmul.f32 %v7497_v37, %v9983_v2  ;;  %v4691_v53 = vadd.f32 %v4595_v39, %v4401_v36  ;;  %v4803_v33 = vld [vmem:[#allocation2 + $0x6a] sm:$0x1] }
 0x430   : > { %4769 = vst [vmem:[#allocation2 + $0x49] sm:$0x1] %v4673_v45  ;;  %v7499_v45 = vld [vmem:[%s8275_s14 + $0x8d] sm:$0x1]  ;;  %v4598_v51 = vmul.f32 %v7498_v41, %v9983_v2  ;;  %v4692_v57 = vadd.f32 %v4596_v43, %v4402_v40  ;;  %v4804_v37 = vld [vmem:[#allocation2 + $0x6b] sm:$0x1] }
 0x431   : > { %4770 = vst [vmem:[#allocation2 + $0x4a] sm:$0x1] %v4674_v49  ;;  %v4825_v49 = vld [vmem:[%s8282_s25] sm:$0x1]  ;;  %v4599_v54 = vmul.f32 %v7499_v45, %v9983_v2  ;;  %v4693_v60 = vadd.f32 %v4597_v47, %v4403_v44  ;;  %v4805_v41 = vld [vmem:[#allocation2 + $0x6c] sm:$0x1] }
 0x432   : > { %4771 = vst [vmem:[#allocation2 + $0x4b] sm:$0x1] %v4675_v52  ;;  %v4826_v52 = vld [vmem:[%s8282_s25 + $0x1] sm:$0x1]  ;;  %v4857_v58 = vmul.f32 %v4825_v49, %v9983_v2  ;;  %v4694_v0 = vadd.f32 %v4598_v51, %v4404_v48  ;;  %v4806_v45 = vld [vmem:[#allocation2 + $0x6d] sm:$0x1] }
 0x433   : > { %4772 = vst [vmem:[#allocation2 + $0x4c] sm:$0x1] %v4676_v56  ;;  %v4827_v56 = vld [vmem:[%s8282_s25 + $0x2] sm:$0x1]  ;;  %v4858_v61 = vmul.f32 %v4826_v52, %v9983_v2  ;;  %v4695_v6 = vadd.f32 %v4599_v54, %v4405_v1  ;;  %v4807_v49 = vld [vmem:[#allocation2 + $0x6e] sm:$0x1] }
 0x434   : > { %4773 = vst [vmem:[#allocation2 + $0x4d] sm:$0x1] %v4677_v11  ;;  %v4828_v11 = vld [vmem:[%s8282_s25 + $0x3] sm:$0x1]  ;;  %v4859_v3 = vmul.f32 %v4827_v56, %v9983_v2  ;;  %v4889_v10 = vadd.f32 %v4857_v58, %v4793_v55  ;;  %v4808_v52 = vld [vmem:[#allocation2 + $0x6f] sm:$0x1] }
 0x435   : > { %4774 = vst [vmem:[#allocation2 + $0x4e] sm:$0x1] %v4678_v63  ;;  %v4829_v63 = vld [vmem:[%s8282_s25 + $0x4] sm:$0x1]  ;;  %v4860_v7 = vmul.f32 %v4828_v11, %v9983_v2  ;;  %v4890_v15 = vadd.f32 %v4858_v61, %v4794_v59  ;;  %v4809_v56 = vld [vmem:[#allocation2 + $0x70] sm:$0x1] }
 0x436   : > { %4775 = vst [vmem:[#allocation2 + $0x4f] sm:$0x1] %v4679_v5  ;;  %v4830_v5 = vld [vmem:[%s8282_s25 + $0x5] sm:$0x1]  ;;  %v4861_v12 = vmul.f32 %v4829_v63, %v9983_v2  ;;  %v4891_v19 = vadd.f32 %v4859_v3, %v4795_v62  ;;  %v4810_v11 = vld [vmem:[#allocation2 + $0x71] sm:$0x1] }
 0x437   : > { %4776 = vst [vmem:[#allocation2 + $0x50] sm:$0x1] %v4680_v9  ;;  %v4831_v9 = vld [vmem:[%s8282_s25 + $0x6] sm:$0x1]  ;;  %v4862_v16 = vmul.f32 %v4830_v5, %v9983_v2  ;;  %v4892_v23 = vadd.f32 %v4860_v7, %v4796_v4  ;;  %v4811_v63 = vld [vmem:[#allocation2 + $0x72] sm:$0x1] }
 0x438   : > { %4777 = vst [vmem:[#allocation2 + $0x51] sm:$0x1] %v4681_v14  ;;  %v4832_v14 = vld [vmem:[%s8282_s25 + $0x7] sm:$0x1]  ;;  %v4863_v20 = vmul.f32 %v4831_v9, %v9983_v2  ;;  %v4893_v27 = vadd.f32 %v4861_v12, %v4797_v8  ;;  %v4812_v5 = vld [vmem:[#allocation2 + $0x73] sm:$0x1] }
 0x439   : > { %4778 = vst [vmem:[#allocation2 + $0x52] sm:$0x1] %v4682_v18  ;;  %v4833_v18 = vld [vmem:[%s8282_s25 + $0x8] sm:$0x1]  ;;  %v4864_v24 = vmul.f32 %v4832_v14, %v9983_v2  ;;  %v4894_v31 = vadd.f32 %v4862_v16, %v4798_v13  ;;  %v4813_v9 = vld [vmem:[#allocation2 + $0x74] sm:$0x1] }
 0x43a   : > { %4779 = vst [vmem:[#allocation2 + $0x53] sm:$0x1] %v4683_v22  ;;  %v4834_v22 = vld [vmem:[%s8282_s25 + $0x9] sm:$0x1]  ;;  %v4865_v28 = vmul.f32 %v4833_v18, %v9983_v2  ;;  %v4895_v35 = vadd.f32 %v4863_v20, %v4799_v17  ;;  %v4814_v14 = vld [vmem:[#allocation2 + $0x75] sm:$0x1] }
 0x43b   : > { %4780 = vst [vmem:[#allocation2 + $0x54] sm:$0x1] %v4684_v26  ;;  %v4835_v26 = vld [vmem:[%s8282_s25 + $0xa] sm:$0x1]  ;;  %v4866_v32 = vmul.f32 %v4834_v22, %v9983_v2  ;;  %v4896_v39 = vadd.f32 %v4864_v24, %v4800_v21  ;;  %v4849_v18 = vld [vmem:[%s8282_s25 + $0x1a] sm:$0x1] }
 0x43c   : > { %4781 = vst [vmem:[#allocation2 + $0x55] sm:$0x1] %v4685_v30  ;;  %v4836_v30 = vld [vmem:[%s8282_s25 + $0xb] sm:$0x1]  ;;  %v4867_v36 = vmul.f32 %v4835_v26, %v9983_v2  ;;  %v4897_v43 = vadd.f32 %v4865_v28, %v4801_v25  ;;  %v4815_v20 = vld [vmem:[#allocation2 + $0x76] sm:$0x1] }
 0x43d   : > { %4782 = vst [vmem:[#allocation2 + $0x56] sm:$0x1] %v4686_v34  ;;  %v4837_v34 = vld [vmem:[%s8282_s25 + $0xc] sm:$0x1]  ;;  %v4868_v40 = vmul.f32 %v4836_v30, %v9983_v2  ;;  %v4898_v47 = vadd.f32 %v4866_v32, %v4802_v29  ;;  %v4850_v22 = vld [vmem:[%s8282_s25 + $0x1b] sm:$0x1]  ;;  %v4881_v29 = vmul.f32 %v4849_v18, %v9983_v2 }
 0x43e   : > { %4783 = vst [vmem:[#allocation2 + $0x57] sm:$0x1] %v4687_v38  ;;  %v4838_v38 = vld [vmem:[%s8282_s25 + $0xd] sm:$0x1]  ;;  %v4869_v44 = vmul.f32 %v4837_v34, %v9983_v2  ;;  %v4899_v51 = vadd.f32 %v4867_v36, %v4803_v33  ;;  %v4816_v24 = vld [vmem:[#allocation2 + $0x77] sm:$0x1]  ;;  %v4882_v33 = vmul.f32 %v4850_v22, %v9983_v2 }
 0x43f   : > { %4784 = vst [vmem:[#allocation2 + $0x58] sm:$0x1] %v4688_v42  ;;  %v4839_v42 = vld [vmem:[%s8282_s25 + $0xe] sm:$0x1]  ;;  %v4870_v48 = vmul.f32 %v4838_v38, %v9983_v2  ;;  %v4900_v54 = vadd.f32 %v4868_v40, %v4804_v37  ;;  %v4851_v26 = vld [vmem:[%s8282_s25 + $0x1c] sm:$0x1] }
 0x440   : > { %4785 = vst [vmem:[#allocation2 + $0x59] sm:$0x1] %v4689_v46  ;;  %v4840_v46 = vld [vmem:[%s8282_s25 + $0xf] sm:$0x1]  ;;  %v4871_v1 = vmul.f32 %v4839_v42, %v9983_v2  ;;  %v4901_v58 = vadd.f32 %v4869_v44, %v4805_v41  ;;  %v4817_v28 = vld [vmem:[#allocation2 + $0x78] sm:$0x1]  ;;  %v4883_v37 = vmul.f32 %v4851_v26, %v9983_v2 }
 0x441   : > { %4786 = vst [vmem:[#allocation2 + $0x5a] sm:$0x1] %v4690_v50  ;;  %v4841_v50 = vld [vmem:[%s8282_s25 + $0x12] sm:$0x1]  ;;  %v4872_v55 = vmul.f32 %v4840_v46, %v9983_v2  ;;  %v4902_v61 = vadd.f32 %v4870_v48, %v4806_v45  ;;  %v4852_v30 = vld [vmem:[%s8282_s25 + $0x1d] sm:$0x1] }
 0x442   : > { %4787 = vst [vmem:[#allocation2 + $0x5b] sm:$0x1] %v4691_v53  ;;  %v4842_v53 = vld [vmem:[%s8282_s25 + $0x13] sm:$0x1]  ;;  %v4873_v59 = vmul.f32 %v4841_v50, %v9983_v2  ;;  %v4903_v3 = vadd.f32 %v4871_v1, %v4807_v49  ;;  %v4818_v32 = vld [vmem:[#allocation2 + $0x79] sm:$0x1]  ;;  %v4884_v41 = vmul.f32 %v4852_v30, %v9983_v2 }
 0x443   : > { %4788 = vst [vmem:[#allocation2 + $0x5c] sm:$0x1] %v4692_v57  ;;  %v4843_v57 = vld [vmem:[%s8282_s25 + $0x14] sm:$0x1]  ;;  %v4874_v62 = vmul.f32 %v4842_v53, %v9983_v2  ;;  %v4904_v7 = vadd.f32 %v4872_v55, %v4808_v52  ;;  %v4853_v34 = vld [vmem:[%s8282_s25 + $0x1e] sm:$0x1] }
 0x444   : > { %4789 = vst [vmem:[#allocation2 + $0x5d] sm:$0x1] %v4693_v60  ;;  %v4844_v60 = vld [vmem:[%s8282_s25 + $0x15] sm:$0x1]  ;;  %v4875_v4 = vmul.f32 %v4843_v57, %v9983_v2  ;;  %v4905_v12 = vadd.f32 %v4873_v59, %v4809_v56  ;;  %v4819_v36 = vld [vmem:[#allocation2 + $0x7a] sm:$0x1]  ;;  %v4885_v45 = vmul.f32 %v4853_v34, %v9983_v2 }
 0x445   : > { %4790 = vst [vmem:[#allocation2 + $0x5e] sm:$0x1] %v4694_v0  ;;  %v4845_v0 = vld [vmem:[%s8282_s25 + $0x16] sm:$0x1]  ;;  %v4876_v8 = vmul.f32 %v4844_v60, %v9983_v2  ;;  %v4906_v16 = vadd.f32 %v4874_v62, %v4810_v11  ;;  %v4854_v38 = vld [vmem:[%s8282_s25 + $0x1f] sm:$0x1]  ;;  %v4915_v1 = vadd.f32 %v4883_v37, %v4819_v36 }
 0x446   : > { %4791 = vst [vmem:[#allocation2 + $0x5f] sm:$0x1] %v4695_v6  ;;  %v4846_v6 = vld [vmem:[%s8282_s25 + $0x17] sm:$0x1]  ;;  %v4877_v13 = vmul.f32 %v4845_v0, %v9983_v2  ;;  %v4855_v42 = vld [vmem:[%s8282_s25 + $0x20] sm:$0x1]  ;;  %v4886_v49 = vmul.f32 %v4854_v38, %v9983_v2 }
 0x447   : > { %4921 = vst [vmem:[#allocation2 + $0x60] sm:$0x1] %v4889_v10  ;;  %v4847_v10 = vld [vmem:[%s8282_s25 + $0x18] sm:$0x1]  ;;  %v4878_v17 = vmul.f32 %v4846_v6, %v9983_v2  ;;  %v4820_v40 = vld [vmem:[#allocation2 + $0x7b] sm:$0x1]  ;;  %v4887_v53 = vmul.f32 %v4855_v42, %v9983_v2 }
 0x448   : > { %4922 = vst [vmem:[#allocation2 + $0x61] sm:$0x1] %v4890_v15  ;;  %v4848_v15 = vld [vmem:[%s8282_s25 + $0x19] sm:$0x1]  ;;  %v4879_v21 = vmul.f32 %v4847_v10, %v9983_v2  ;;  %v4821_v44 = vld [vmem:[#allocation2 + $0x7c] sm:$0x1]  ;;  %v4916_v55 = vadd.f32 %v4884_v41, %v4820_v40 }
 0x449   : > { %4923 = vst [vmem:[#allocation2 + $0x62] sm:$0x1] %v4891_v19  ;;  %v4907_v19 = vadd.f32 %v4875_v4, %v4811_v63  ;;  %v4880_v25 = vmul.f32 %v4848_v15, %v9983_v2  ;;  %v4856_v46 = vld [vmem:[%s8282_s25 + $0x21] sm:$0x1]  ;;  %v4822_v48 = vld [vmem:[#allocation2 + $0x7d] sm:$0x1]  ;;  %v4917_v59 = vadd.f32 %v4885_v45, %v4821_v44 }
 0x44a   : > { %4924 = vst [vmem:[#allocation2 + $0x63] sm:$0x1] %v4892_v23  ;;  %v4908_v23 = vadd.f32 %v4876_v8, %v4812_v5  ;;  %v7500_v50 = vld [vmem:[%s8275_s14 + $0x25] sm:$0x1]  ;;  %v4823_v52 = vld [vmem:[#allocation2 + $0x7e] sm:$0x1]  ;;  %v4888_v57 = vmul.f32 %v4856_v46, %v9983_v2  ;;  %v4918_v62 = vadd.f32 %v4886_v49, %v4822_v48 }
 0x44b   : > { %4925 = vst [vmem:[#allocation2 + $0x64] sm:$0x1] %v4893_v27  ;;  %v4909_v27 = vadd.f32 %v4877_v13, %v4813_v9  ;;  %v4824_v56 = vld [vmem:[#allocation2 + $0x7f] sm:$0x1]  ;;  %v4953_v11 = vld [vmem:[#allocation2] sm:$0x1]  ;;  %v4919_v4 = vadd.f32 %v4887_v53, %v4823_v52 }
 0x44c   : > { %4926 = vst [vmem:[#allocation2 + $0x65] sm:$0x1] %v4894_v31  ;;  %v4910_v31 = vadd.f32 %v4878_v17, %v4814_v14  ;;  %v4954_v63 = vld [vmem:[#allocation2 + $0x1] sm:$0x1]  ;;  %v4955_v5 = vld [vmem:[#allocation2 + $0x2] sm:$0x1] }
 0x44d   : > { %4927 = vst [vmem:[#allocation2 + $0x66] sm:$0x1] %v4895_v35  ;;  %v4911_v35 = vadd.f32 %v4879_v21, %v4815_v20  ;;  %v7505_v6 = vld [vmem:[%s8275_s14 + $0x2a] sm:$0x1]  ;;  %v4956_v8 = vld [vmem:[#allocation2 + $0x3] sm:$0x1] }
 0x44e   : > { %4928 = vst [vmem:[#allocation2 + $0x67] sm:$0x1] %v4896_v39  ;;  %v4912_v39 = vadd.f32 %v4880_v25, %v4816_v24  ;;  %v7506_v10 = vld [vmem:[%s8275_s14 + $0x2b] sm:$0x1]  ;;  %v4957_v13 = vld [vmem:[#allocation2 + $0x4] sm:$0x1] }
 0x44f   : > { %4929 = vst [vmem:[#allocation2 + $0x68] sm:$0x1] %v4897_v43  ;;  %v4913_v43 = vadd.f32 %v4881_v29, %v4817_v28  ;;  %v7507_v15 = vld [vmem:[%s8275_s14 + $0x2c] sm:$0x1]  ;;  %v4958_v17 = vld [vmem:[#allocation2 + $0x5] sm:$0x1] }
 0x450   : > { %4930 = vst [vmem:[#allocation2 + $0x69] sm:$0x1] %v4898_v47  ;;  %v4914_v47 = vadd.f32 %v4882_v33, %v4818_v32  ;;  %v4959_v21 = vld [vmem:[#allocation2 + $0x6] sm:$0x1]  ;;  %v4960_v25 = vld [vmem:[#allocation2 + $0x7] sm:$0x1] }
 0x451   : > { %4931 = vst [vmem:[#allocation2 + $0x6a] sm:$0x1] %v4899_v51  ;;  %v10244_v51 = vstv %s10225_s9  ;;  %v4961_v29 = vld [vmem:[#allocation2 + $0x8] sm:$0x1]  ;;  %v4962_v33 = vld [vmem:[#allocation2 + $0x9] sm:$0x1] }
 0x452   : > { %4932 = vst [vmem:[#allocation2 + $0x6b] sm:$0x1] %v4900_v54  ;;  %v7501_v54 = vld [vmem:[%s8275_s14 + $0x26] sm:$0x1]  ;;  %v5147_v60 = vmul.f32 %v7500_v50, %v10244_v51  ;;  %v5152_v18 = vmul.f32 %v7505_v6, %v10244_v51  ;;  %v5153_v22 = vmul.f32 %v7506_v10, %v10244_v51  ;;  %v5154_v26 = vmul.f32 %v7507_v15, %v10244_v51  ;;  %v4963_v37 = vld [vmem:[#allocation2 + $0xa] sm:$0x1] }
 0x453   : > { %4933 = vst [vmem:[#allocation2 + $0x6c] sm:$0x1] %v4901_v58  ;;  %v7502_v58 = vld [vmem:[%s8275_s14 + $0x27] sm:$0x1]  ;;  %v5148_v0 = vmul.f32 %v7501_v54, %v10244_v51  ;;  %v4964_v41 = vld [vmem:[#allocation2 + $0xb] sm:$0x1] }
 0x454   : > { %4934 = vst [vmem:[#allocation2 + $0x6d] sm:$0x1] %v4902_v61  ;;  %v7503_v61 = vld [vmem:[%s8275_s14 + $0x28] sm:$0x1]  ;;  %v5149_v2 = vmul.f32 %v7502_v58, %v10244_v51  ;;  %v5248_v32 = vadd.f32 %v5152_v18, %v4958_v17  ;;  %v5249_v36 = vadd.f32 %v5153_v22, %v4959_v21  ;;  %v5250_v40 = vadd.f32 %v5154_v26, %v4960_v25  ;;  %v4965_v45 = vld [vmem:[#allocation2 + $0xc] sm:$0x1] }
 0x455   : > { %4935 = vst [vmem:[#allocation2 + $0x6e] sm:$0x1] %v4903_v3  ;;  %v7504_v3 = vld [vmem:[%s8275_s14 + $0x29] sm:$0x1]  ;;  %v5150_v9 = vmul.f32 %v7503_v61, %v10244_v51  ;;  %v4966_v49 = vld [vmem:[#allocation2 + $0xd] sm:$0x1] }
 0x456   : > { %4936 = vst [vmem:[#allocation2 + $0x6f] sm:$0x1] %v4904_v7  ;;  %v4920_v7 = vadd.f32 %v4888_v57, %v4824_v56  ;;  %v5151_v14 = vmul.f32 %v7504_v3, %v10244_v51  ;;  %v5245_v20 = vadd.f32 %v5149_v2, %v4955_v5  ;;  %v4967_v53 = vld [vmem:[#allocation2 + $0xe] sm:$0x1]  ;;  %v4968_v57 = vld [vmem:[#allocation2 + $0xf] sm:$0x1] }
 0x457   : > { %4937 = vst [vmem:[#allocation2 + $0x70] sm:$0x1] %v4905_v12  ;;  %v5243_v12 = vadd.f32 %v5147_v60, %v4953_v11  ;;  %v5246_v24 = vadd.f32 %v5150_v9, %v4956_v8  ;;  %v4969_v60 = vld [vmem:[#allocation2 + $0x10] sm:$0x1]  ;;  %v4971_v2 = vld [vmem:[#allocation2 + $0x12] sm:$0x1] }
 0x458   : > { %4938 = vst [vmem:[#allocation2 + $0x71] sm:$0x1] %v4906_v16  ;;  %v5244_v16 = vadd.f32 %v5148_v0, %v4954_v63  ;;  %v5247_v28 = vadd.f32 %v5151_v14, %v4957_v13  ;;  %v4970_v0 = vld [vmem:[#allocation2 + $0x11] sm:$0x1]  ;;  %v4972_v9 = vld [vmem:[#allocation2 + $0x13] sm:$0x1] }
 0x459   : > { %4939 = vst [vmem:[#allocation2 + $0x72] sm:$0x1] %v4907_v19  ;;  %v7508_v19 = vld [vmem:[%s8275_s14 + $0x2d] sm:$0x1]  ;;  %v4973_v14 = vld [vmem:[#allocation2 + $0x14] sm:$0x1] }
 0x45a   : > { %4940 = vst [vmem:[#allocation2 + $0x73] sm:$0x1] %v4908_v23  ;;  %v7509_v23 = vld [vmem:[%s8275_s14 + $0x2e] sm:$0x1]  ;;  %v5155_v30 = vmul.f32 %v7508_v19, %v10244_v51  ;;  %v4974_v18 = vld [vmem:[#allocation2 + $0x15] sm:$0x1] }
 0x45b   : > { %4941 = vst [vmem:[#allocation2 + $0x74] sm:$0x1] %v4909_v27  ;;  %v7510_v27 = vld [vmem:[%s8275_s14 + $0x2f] sm:$0x1]  ;;  %v5156_v34 = vmul.f32 %v7509_v23, %v10244_v51  ;;  %v4975_v22 = vld [vmem:[#allocation2 + $0x16] sm:$0x1] }
 0x45c   : > { %4942 = vst [vmem:[#allocation2 + $0x75] sm:$0x1] %v4910_v31  ;;  %v7511_v31 = vld [vmem:[%s8275_s14 + $0x30] sm:$0x1]  ;;  %v5157_v38 = vmul.f32 %v7510_v27, %v10244_v51  ;;  %v5251_v44 = vadd.f32 %v5155_v30, %v4961_v29  ;;  %v4976_v26 = vld [vmem:[#allocation2 + $0x17] sm:$0x1] }
 0x45d   : > { %4943 = vst [vmem:[#allocation2 + $0x76] sm:$0x1] %v4911_v35  ;;  %v7512_v35 = vld [vmem:[%s8275_s14 + $0x31] sm:$0x1]  ;;  %v5158_v42 = vmul.f32 %v7511_v31, %v10244_v51  ;;  %v5252_v48 = vadd.f32 %v5156_v34, %v4962_v33  ;;  %v4977_v30 = vld [vmem:[#allocation2 + $0x18] sm:$0x1] }
 0x45e   : > { %4944 = vst [vmem:[#allocation2 + $0x77] sm:$0x1] %v4912_v39  ;;  %v7513_v39 = vld [vmem:[%s8275_s14 + $0x32] sm:$0x1]  ;;  %v5159_v46 = vmul.f32 %v7512_v35, %v10244_v51  ;;  %v5253_v52 = vadd.f32 %v5157_v38, %v4963_v37  ;;  %v4978_v34 = vld [vmem:[#allocation2 + $0x19] sm:$0x1] }
 0x45f   : > { %4945 = vst [vmem:[#allocation2 + $0x78] sm:$0x1] %v4913_v43  ;;  %v7514_v43 = vld [vmem:[%s8275_s14 + $0x33] sm:$0x1]  ;;  %v5160_v50 = vmul.f32 %v7513_v39, %v10244_v51  ;;  %v5254_v56 = vadd.f32 %v5158_v42, %v4964_v41  ;;  %v4979_v38 = vld [vmem:[#allocation2 + $0x1a] sm:$0x1] }
 0x460   : > { %4946 = vst [vmem:[#allocation2 + $0x79] sm:$0x1] %v4914_v47  ;;  %v7515_v47 = vld [vmem:[%s8275_s14 + $0x34] sm:$0x1]  ;;  %v5161_v54 = vmul.f32 %v7514_v43, %v10244_v51  ;;  %v5255_v11 = vadd.f32 %v5159_v46, %v4965_v45  ;;  %v4980_v42 = vld [vmem:[#allocation2 + $0x1b] sm:$0x1] }
 0x461   : > { %4947 = vst [vmem:[#allocation2 + $0x7a] sm:$0x1] %v4915_v1  ;;  %v7516_v1 = vld [vmem:[%s8275_s14 + $0x37] sm:$0x1]  ;;  %v5162_v58 = vmul.f32 %v7515_v47, %v10244_v51  ;;  %v5256_v63 = vadd.f32 %v5160_v50, %v4966_v49  ;;  %v4981_v46 = vld [vmem:[#allocation2 + $0x1c] sm:$0x1] }
 0x462   : > { %4948 = vst [vmem:[#allocation2 + $0x7b] sm:$0x1] %v4916_v55  ;;  %v7517_v55 = vld [vmem:[%s8275_s14 + $0x38] sm:$0x1]  ;;  %v5163_v61 = vmul.f32 %v7516_v1, %v10244_v51  ;;  %v5257_v5 = vadd.f32 %v5161_v54, %v4967_v53  ;;  %v4982_v50 = vld [vmem:[#allocation2 + $0x1d] sm:$0x1] }
 0x463   : > { %4949 = vst [vmem:[#allocation2 + $0x7c] sm:$0x1] %v4917_v59  ;;  %v7518_v59 = vld [vmem:[%s8275_s14 + $0x39] sm:$0x1]  ;;  %v5164_v3 = vmul.f32 %v7517_v55, %v10244_v51  ;;  %v5258_v8 = vadd.f32 %v5162_v58, %v4968_v57  ;;  %v4983_v54 = vld [vmem:[#allocation2 + $0x1e] sm:$0x1] }
 0x464   : > { %4950 = vst [vmem:[#allocation2 + $0x7d] sm:$0x1] %v4918_v62  ;;  %v7519_v62 = vld [vmem:[%s8275_s14 + $0x3a] sm:$0x1]  ;;  %v5165_v6 = vmul.f32 %v7518_v59, %v10244_v51  ;;  %v5259_v13 = vadd.f32 %v5163_v61, %v4969_v60  ;;  %v4984_v58 = vld [vmem:[#allocation2 + $0x1f] sm:$0x1] }
 0x465   : > { %4951 = vst [vmem:[#allocation2 + $0x7e] sm:$0x1] %v4919_v4  ;;  %v7520_v4 = vld [vmem:[%s8275_s14 + $0x3b] sm:$0x1]  ;;  %v5166_v10 = vmul.f32 %v7519_v62, %v10244_v51  ;;  %v5260_v17 = vadd.f32 %v5164_v3, %v4970_v0  ;;  %v4985_v61 = vld [vmem:[#allocation2 + $0x20] sm:$0x1] }
 0x466   : > { %4952 = vst [vmem:[#allocation2 + $0x7f] sm:$0x1] %v4920_v7  ;;  %v7521_v7 = vld [vmem:[%s8275_s14 + $0x3c] sm:$0x1]  ;;  %v5167_v15 = vmul.f32 %v7520_v4, %v10244_v51  ;;  %v5261_v21 = vadd.f32 %v5165_v6, %v4971_v2  ;;  %v4986_v3 = vld [vmem:[#allocation2 + $0x21] sm:$0x1] }
 0x467   : > { %5339 = vst [vmem:[#allocation2] sm:$0x1] %v5243_v12  ;;  %v7522_v12 = vld [vmem:[%s8275_s14 + $0x3d] sm:$0x1]  ;;  %v5168_v19 = vmul.f32 %v7521_v7, %v10244_v51  ;;  %v5262_v25 = vadd.f32 %v5166_v10, %v4972_v9  ;;  %v4987_v6 = vld [vmem:[#allocation2 + $0x22] sm:$0x1] }
 0x468   : > { %5340 = vst [vmem:[#allocation2 + $0x1] sm:$0x1] %v5244_v16  ;;  %v7523_v16 = vld [vmem:[%s8275_s14 + $0x3e] sm:$0x1]  ;;  %v5169_v23 = vmul.f32 %v7522_v12, %v10244_v51  ;;  %v5263_v29 = vadd.f32 %v5167_v15, %v4973_v14  ;;  %v4988_v10 = vld [vmem:[#allocation2 + $0x23] sm:$0x1] }
 0x469   : > { %5341 = vst [vmem:[#allocation2 + $0x2] sm:$0x1] %v5245_v20  ;;  %v7524_v20 = vld [vmem:[%s8275_s14 + $0x3f] sm:$0x1]  ;;  %v5170_v27 = vmul.f32 %v7523_v16, %v10244_v51  ;;  %v5264_v33 = vadd.f32 %v5168_v19, %v4974_v18  ;;  %v4989_v15 = vld [vmem:[#allocation2 + $0x24] sm:$0x1] }
 0x46a   : > { %5342 = vst [vmem:[#allocation2 + $0x3] sm:$0x1] %v5246_v24  ;;  %v7525_v24 = vld [vmem:[%s8275_s14 + $0x40] sm:$0x1]  ;;  %v5171_v31 = vmul.f32 %v7524_v20, %v10244_v51  ;;  %v5265_v37 = vadd.f32 %v5169_v23, %v4975_v22  ;;  %v4990_v19 = vld [vmem:[#allocation2 + $0x25] sm:$0x1] }
 0x46b   : > { %5343 = vst [vmem:[#allocation2 + $0x4] sm:$0x1] %v5247_v28  ;;  %v7526_v28 = vld [vmem:[%s8275_s14 + $0x41] sm:$0x1]  ;;  %v5172_v35 = vmul.f32 %v7525_v24, %v10244_v51  ;;  %v5266_v41 = vadd.f32 %v5170_v27, %v4976_v26  ;;  %v4991_v23 = vld [vmem:[#allocation2 + $0x26] sm:$0x1] }
 0x46c   : > { %5344 = vst [vmem:[#allocation2 + $0x5] sm:$0x1] %v5248_v32  ;;  %v7527_v32 = vld [vmem:[%s8275_s14 + $0x42] sm:$0x1]  ;;  %v5173_v39 = vmul.f32 %v7526_v28, %v10244_v51  ;;  %v5267_v45 = vadd.f32 %v5171_v31, %v4977_v30  ;;  %v4992_v27 = vld [vmem:[#allocation2 + $0x27] sm:$0x1] }
 0x46d   : > { %5345 = vst [vmem:[#allocation2 + $0x6] sm:$0x1] %v5249_v36  ;;  %v7528_v36 = vld [vmem:[%s8275_s14 + $0x43] sm:$0x1]  ;;  %v5174_v43 = vmul.f32 %v7527_v32, %v10244_v51  ;;  %v5268_v49 = vadd.f32 %v5172_v35, %v4978_v34  ;;  %v4993_v31 = vld [vmem:[#allocation2 + $0x28] sm:$0x1] }
 0x46e   : > { %5346 = vst [vmem:[#allocation2 + $0x7] sm:$0x1] %v5250_v40  ;;  %v7529_v40 = vld [vmem:[%s8275_s14 + $0x44] sm:$0x1]  ;;  %v5175_v47 = vmul.f32 %v7528_v36, %v10244_v51  ;;  %v5269_v53 = vadd.f32 %v5173_v39, %v4979_v38  ;;  %v4994_v35 = vld [vmem:[#allocation2 + $0x29] sm:$0x1] }
 0x46f   : > { %5347 = vst [vmem:[#allocation2 + $0x8] sm:$0x1] %v5251_v44  ;;  %v7530_v44 = vld [vmem:[%s8275_s14 + $0x45] sm:$0x1]  ;;  %v5176_v1 = vmul.f32 %v7529_v40, %v10244_v51  ;;  %v5270_v57 = vadd.f32 %v5174_v43, %v4980_v42  ;;  %v4995_v39 = vld [vmem:[#allocation2 + $0x2a] sm:$0x1] }
 0x470   : > { %5348 = vst [vmem:[#allocation2 + $0x9] sm:$0x1] %v5252_v48  ;;  %v7531_v48 = vld [vmem:[%s8275_s14 + $0x46] sm:$0x1]  ;;  %v5177_v55 = vmul.f32 %v7530_v44, %v10244_v51  ;;  %v5271_v60 = vadd.f32 %v5175_v47, %v4981_v46  ;;  %v4996_v43 = vld [vmem:[#allocation2 + $0x2b] sm:$0x1] }
 0x471   : > { %5349 = vst [vmem:[#allocation2 + $0xa] sm:$0x1] %v5253_v52  ;;  %v7532_v52 = vld [vmem:[%s8275_s14 + $0x49] sm:$0x1]  ;;  %v5178_v59 = vmul.f32 %v7531_v48, %v10244_v51  ;;  %v5272_v0 = vadd.f32 %v5176_v1, %v4982_v50  ;;  %v4997_v47 = vld [vmem:[#allocation2 + $0x2c] sm:$0x1] }
 0x472   : > { %5350 = vst [vmem:[#allocation2 + $0xb] sm:$0x1] %v5254_v56  ;;  %v7533_v56 = vld [vmem:[%s8275_s14 + $0x4a] sm:$0x1]  ;;  %v5179_v62 = vmul.f32 %v7532_v52, %v10244_v51  ;;  %v5273_v2 = vadd.f32 %v5177_v55, %v4983_v54  ;;  %v4998_v1 = vld [vmem:[#allocation2 + $0x2d] sm:$0x1] }
 0x473   : > { %5351 = vst [vmem:[#allocation2 + $0xc] sm:$0x1] %v5255_v11  ;;  %v7534_v11 = vld [vmem:[%s8275_s14 + $0x4b] sm:$0x1]  ;;  %v5180_v4 = vmul.f32 %v7533_v56, %v10244_v51  ;;  %v5274_v9 = vadd.f32 %v5178_v59, %v4984_v58  ;;  %v4999_v55 = vld [vmem:[#allocation2 + $0x2e] sm:$0x1] }
 0x474   : > { %5352 = vst [vmem:[#allocation2 + $0xd] sm:$0x1] %v5256_v63  ;;  %v7535_v63 = vld [vmem:[%s8275_s14 + $0x4c] sm:$0x1]  ;;  %v5181_v7 = vmul.f32 %v7534_v11, %v10244_v51  ;;  %v5275_v14 = vadd.f32 %v5179_v62, %v4985_v61  ;;  %v5000_v59 = vld [vmem:[#allocation2 + $0x2f] sm:$0x1] }
 0x475   : > { %5353 = vst [vmem:[#allocation2 + $0xe] sm:$0x1] %v5257_v5  ;;  %v7536_v5 = vld [vmem:[%s8275_s14 + $0x4d] sm:$0x1]  ;;  %v5182_v12 = vmul.f32 %v7535_v63, %v10244_v51  ;;  %v5276_v18 = vadd.f32 %v5180_v4, %v4986_v3  ;;  %v5001_v62 = vld [vmem:[#allocation2 + $0x30] sm:$0x1] }
 0x476   : > { %5354 = vst [vmem:[#allocation2 + $0xf] sm:$0x1] %v5258_v8  ;;  %v7537_v8 = vld [vmem:[%s8275_s14 + $0x4e] sm:$0x1]  ;;  %v5183_v16 = vmul.f32 %v7536_v5, %v10244_v51  ;;  %v5277_v22 = vadd.f32 %v5181_v7, %v4987_v6  ;;  %v5002_v4 = vld [vmem:[#allocation2 + $0x31] sm:$0x1] }
 0x477   : > { %5355 = vst [vmem:[#allocation2 + $0x10] sm:$0x1] %v5259_v13  ;;  %v7538_v13 = vld [vmem:[%s8275_s14 + $0x4f] sm:$0x1]  ;;  %v5184_v20 = vmul.f32 %v7537_v8, %v10244_v51  ;;  %v5278_v26 = vadd.f32 %v5182_v12, %v4988_v10  ;;  %v5003_v7 = vld [vmem:[#allocation2 + $0x32] sm:$0x1] }
 0x478   : > { %5356 = vst [vmem:[#allocation2 + $0x11] sm:$0x1] %v5260_v17  ;;  %v7539_v17 = vld [vmem:[%s8275_s14 + $0x50] sm:$0x1]  ;;  %v5185_v24 = vmul.f32 %v7538_v13, %v10244_v51  ;;  %v5279_v30 = vadd.f32 %v5183_v16, %v4989_v15  ;;  %v5004_v12 = vld [vmem:[#allocation2 + $0x33] sm:$0x1] }
 0x479   : > { %5357 = vst [vmem:[#allocation2 + $0x12] sm:$0x1] %v5261_v21  ;;  %v7540_v21 = vld [vmem:[%s8275_s14 + $0x51] sm:$0x1]  ;;  %v5186_v28 = vmul.f32 %v7539_v17, %v10244_v51  ;;  %v5280_v34 = vadd.f32 %v5184_v20, %v4990_v19  ;;  %v5005_v16 = vld [vmem:[#allocation2 + $0x34] sm:$0x1] }
 0x47a   : > { %5358 = vst [vmem:[#allocation2 + $0x13] sm:$0x1] %v5262_v25  ;;  %v7541_v25 = vld [vmem:[%s8275_s14 + $0x52] sm:$0x1]  ;;  %v5187_v32 = vmul.f32 %v7540_v21, %v10244_v51  ;;  %v5281_v38 = vadd.f32 %v5185_v24, %v4991_v23  ;;  %v5006_v20 = vld [vmem:[#allocation2 + $0x35] sm:$0x1] }
 0x47b   : > { %5359 = vst [vmem:[#allocation2 + $0x14] sm:$0x1] %v5263_v29  ;;  %v7542_v29 = vld [vmem:[%s8275_s14 + $0x53] sm:$0x1]  ;;  %v5188_v36 = vmul.f32 %v7541_v25, %v10244_v51  ;;  %v5282_v42 = vadd.f32 %v5186_v28, %v4992_v27  ;;  %v5007_v24 = vld [vmem:[#allocation2 + $0x36] sm:$0x1] }
 0x47c   : > { %5360 = vst [vmem:[#allocation2 + $0x15] sm:$0x1] %v5264_v33  ;;  %v7543_v33 = vld [vmem:[%s8275_s14 + $0x54] sm:$0x1]  ;;  %v5189_v40 = vmul.f32 %v7542_v29, %v10244_v51  ;;  %v5283_v46 = vadd.f32 %v5187_v32, %v4993_v31  ;;  %v5008_v28 = vld [vmem:[#allocation2 + $0x37] sm:$0x1] }
 0x47d   : > { %5361 = vst [vmem:[#allocation2 + $0x16] sm:$0x1] %v5265_v37  ;;  %v7544_v37 = vld [vmem:[%s8275_s14 + $0x55] sm:$0x1]  ;;  %v5190_v44 = vmul.f32 %v7543_v33, %v10244_v51  ;;  %v5284_v50 = vadd.f32 %v5188_v36, %v4994_v35  ;;  %v5009_v32 = vld [vmem:[#allocation2 + $0x38] sm:$0x1] }
 0x47e   : > { %5362 = vst [vmem:[#allocation2 + $0x17] sm:$0x1] %v5266_v41  ;;  %v7545_v41 = vld [vmem:[%s8275_s14 + $0x56] sm:$0x1]  ;;  %v5191_v48 = vmul.f32 %v7544_v37, %v10244_v51  ;;  %v5285_v54 = vadd.f32 %v5189_v40, %v4995_v39  ;;  %v5010_v36 = vld [vmem:[#allocation2 + $0x39] sm:$0x1] }
 0x47f   : > { %5363 = vst [vmem:[#allocation2 + $0x18] sm:$0x1] %v5267_v45  ;;  %v7546_v45 = vld [vmem:[%s8275_s14 + $0x57] sm:$0x1]  ;;  %v5192_v52 = vmul.f32 %v7545_v41, %v10244_v51  ;;  %v5286_v58 = vadd.f32 %v5190_v44, %v4996_v43  ;;  %v5011_v40 = vld [vmem:[#allocation2 + $0x3a] sm:$0x1] }
 0x480   : > { %5364 = vst [vmem:[#allocation2 + $0x19] sm:$0x1] %v5268_v49  ;;  %v7547_v49 = vld [vmem:[%s8275_s14 + $0x58] sm:$0x1]  ;;  %v5193_v56 = vmul.f32 %v7546_v45, %v10244_v51  ;;  %v5287_v61 = vadd.f32 %v5191_v48, %v4997_v47  ;;  %v5012_v44 = vld [vmem:[#allocation2 + $0x3b] sm:$0x1] }
 0x481   : > { %5365 = vst [vmem:[#allocation2 + $0x1a] sm:$0x1] %v5269_v53  ;;  %v7548_v53 = vld [vmem:[%s8275_s14 + $0x5b] sm:$0x1]  ;;  %v5194_v11 = vmul.f32 %v7547_v49, %v10244_v51  ;;  %v5288_v3 = vadd.f32 %v5192_v52, %v4998_v1  ;;  %v5013_v48 = vld [vmem:[#allocation2 + $0x3c] sm:$0x1] }
 0x482   : > { %5366 = vst [vmem:[#allocation2 + $0x1b] sm:$0x1] %v5270_v57  ;;  %v7549_v57 = vld [vmem:[%s8275_s14 + $0x5c] sm:$0x1]  ;;  %v5195_v63 = vmul.f32 %v7548_v53, %v10244_v51  ;;  %v5289_v6 = vadd.f32 %v5193_v56, %v4999_v55  ;;  %v5014_v52 = vld [vmem:[#allocation2 + $0x3d] sm:$0x1] }
 0x483   : > { %5367 = vst [vmem:[#allocation2 + $0x1c] sm:$0x1] %v5271_v60  ;;  %v7550_v60 = vld [vmem:[%s8275_s14 + $0x5d] sm:$0x1]  ;;  %v5196_v5 = vmul.f32 %v7549_v57, %v10244_v51  ;;  %v5290_v10 = vadd.f32 %v5194_v11, %v5000_v59  ;;  %v5015_v56 = vld [vmem:[#allocation2 + $0x3e] sm:$0x1] }
 0x484   : > { %5368 = vst [vmem:[#allocation2 + $0x1d] sm:$0x1] %v5272_v0  ;;  %v7551_v0 = vld [vmem:[%s8275_s14 + $0x5e] sm:$0x1]  ;;  %v5197_v8 = vmul.f32 %v7550_v60, %v10244_v51  ;;  %v5291_v15 = vadd.f32 %v5195_v63, %v5001_v62  ;;  %v5016_v11 = vld [vmem:[#allocation2 + $0x3f] sm:$0x1] }
 0x485   : > { %5369 = vst [vmem:[#allocation2 + $0x1e] sm:$0x1] %v5273_v2  ;;  %v7552_v2 = vld [vmem:[%s8275_s14 + $0x5f] sm:$0x1]  ;;  %v5198_v13 = vmul.f32 %v7551_v0, %v10244_v51  ;;  %v5292_v19 = vadd.f32 %v5196_v5, %v5002_v4  ;;  %v5017_v63 = vld [vmem:[#allocation2 + $0x40] sm:$0x1] }
 0x486   : > { %5370 = vst [vmem:[#allocation2 + $0x1f] sm:$0x1] %v5274_v9  ;;  %v7553_v9 = vld [vmem:[%s8275_s14 + $0x60] sm:$0x1]  ;;  %v5199_v17 = vmul.f32 %v7552_v2, %v10244_v51  ;;  %v5293_v23 = vadd.f32 %v5197_v8, %v5003_v7  ;;  %v5018_v5 = vld [vmem:[#allocation2 + $0x41] sm:$0x1] }
 0x487   : > { %5371 = vst [vmem:[#allocation2 + $0x20] sm:$0x1] %v5275_v14  ;;  %v7554_v14 = vld [vmem:[%s8275_s14 + $0x61] sm:$0x1]  ;;  %v5200_v21 = vmul.f32 %v7553_v9, %v10244_v51  ;;  %v5294_v27 = vadd.f32 %v5198_v13, %v5004_v12  ;;  %v5019_v8 = vld [vmem:[#allocation2 + $0x42] sm:$0x1] }
 0x488   : > { %5372 = vst [vmem:[#allocation2 + $0x21] sm:$0x1] %v5276_v18  ;;  %v7555_v18 = vld [vmem:[%s8275_s14 + $0x62] sm:$0x1]  ;;  %v5201_v25 = vmul.f32 %v7554_v14, %v10244_v51  ;;  %v5295_v31 = vadd.f32 %v5199_v17, %v5005_v16  ;;  %v5020_v13 = vld [vmem:[#allocation2 + $0x43] sm:$0x1] }
 0x489   : > { %5373 = vst [vmem:[#allocation2 + $0x22] sm:$0x1] %v5277_v22  ;;  %v7556_v22 = vld [vmem:[%s8275_s14 + $0x63] sm:$0x1]  ;;  %v5202_v29 = vmul.f32 %v7555_v18, %v10244_v51  ;;  %v5296_v35 = vadd.f32 %v5200_v21, %v5006_v20  ;;  %v5021_v17 = vld [vmem:[#allocation2 + $0x44] sm:$0x1] }
 0x48a   : > { %5374 = vst [vmem:[#allocation2 + $0x23] sm:$0x1] %v5278_v26  ;;  %v7557_v26 = vld [vmem:[%s8275_s14 + $0x64] sm:$0x1]  ;;  %v5203_v33 = vmul.f32 %v7556_v22, %v10244_v51  ;;  %v5297_v39 = vadd.f32 %v5201_v25, %v5007_v24  ;;  %v5022_v21 = vld [vmem:[#allocation2 + $0x45] sm:$0x1] }
 0x48b   : > { %5375 = vst [vmem:[#allocation2 + $0x24] sm:$0x1] %v5279_v30  ;;  %v7558_v30 = vld [vmem:[%s8275_s14 + $0x65] sm:$0x1]  ;;  %v5204_v37 = vmul.f32 %v7557_v26, %v10244_v51  ;;  %v5298_v43 = vadd.f32 %v5202_v29, %v5008_v28  ;;  %v5023_v25 = vld [vmem:[#allocation2 + $0x46] sm:$0x1] }
 0x48c   : > { %5376 = vst [vmem:[#allocation2 + $0x25] sm:$0x1] %v5280_v34  ;;  %v7559_v34 = vld [vmem:[%s8275_s14 + $0x66] sm:$0x1]  ;;  %v5205_v41 = vmul.f32 %v7558_v30, %v10244_v51  ;;  %v5299_v47 = vadd.f32 %v5203_v33, %v5009_v32  ;;  %v5024_v29 = vld [vmem:[#allocation2 + $0x47] sm:$0x1] }
 0x48d   : > { %5377 = vst [vmem:[#allocation2 + $0x26] sm:$0x1] %v5281_v38  ;;  %v7560_v38 = vld [vmem:[%s8275_s14 + $0x67] sm:$0x1]  ;;  %v5206_v45 = vmul.f32 %v7559_v34, %v10244_v51  ;;  %v5300_v1 = vadd.f32 %v5204_v37, %v5010_v36  ;;  %v5025_v33 = vld [vmem:[#allocation2 + $0x48] sm:$0x1] }
 0x48e   : > { %5378 = vst [vmem:[#allocation2 + $0x27] sm:$0x1] %v5282_v42  ;;  %v7561_v42 = vld [vmem:[%s8275_s14 + $0x68] sm:$0x1]  ;;  %v5207_v49 = vmul.f32 %v7560_v38, %v10244_v51  ;;  %v5301_v55 = vadd.f32 %v5205_v41, %v5011_v40  ;;  %v5026_v37 = vld [vmem:[#allocation2 + $0x49] sm:$0x1] }
 0x48f   : > { %5379 = vst [vmem:[#allocation2 + $0x28] sm:$0x1] %v5283_v46  ;;  %v7562_v46 = vld [vmem:[%s8275_s14 + $0x69] sm:$0x1]  ;;  %v5208_v53 = vmul.f32 %v7561_v42, %v10244_v51  ;;  %v5302_v59 = vadd.f32 %v5206_v45, %v5012_v44  ;;  %v5027_v41 = vld [vmem:[#allocation2 + $0x4a] sm:$0x1] }
 0x490   : > { %5380 = vst [vmem:[#allocation2 + $0x29] sm:$0x1] %v5284_v50  ;;  %v7563_v50 = vld [vmem:[%s8275_s14 + $0x6a] sm:$0x1]  ;;  %v5209_v57 = vmul.f32 %v7562_v46, %v10244_v51  ;;  %v5303_v62 = vadd.f32 %v5207_v49, %v5013_v48  ;;  %v5028_v45 = vld [vmem:[#allocation2 + $0x4b] sm:$0x1] }
 0x491   : > { %5381 = vst [vmem:[#allocation2 + $0x2a] sm:$0x1] %v5285_v54  ;;  %v7564_v54 = vld [vmem:[%s8275_s14 + $0x6d] sm:$0x1]  ;;  %v5210_v60 = vmul.f32 %v7563_v50, %v10244_v51  ;;  %v5304_v4 = vadd.f32 %v5208_v53, %v5014_v52  ;;  %v5029_v49 = vld [vmem:[#allocation2 + $0x4c] sm:$0x1] }
 0x492   : > { %5382 = vst [vmem:[#allocation2 + $0x2b] sm:$0x1] %v5286_v58  ;;  %v7565_v58 = vld [vmem:[%s8275_s14 + $0x6e] sm:$0x1]  ;;  %v5211_v0 = vmul.f32 %v7564_v54, %v10244_v51  ;;  %v5305_v7 = vadd.f32 %v5209_v57, %v5015_v56  ;;  %v5030_v53 = vld [vmem:[#allocation2 + $0x4d] sm:$0x1] }
 0x493   : > { %5383 = vst [vmem:[#allocation2 + $0x2c] sm:$0x1] %v5287_v61  ;;  %v7566_v61 = vld [vmem:[%s8275_s14 + $0x6f] sm:$0x1]  ;;  %v5212_v2 = vmul.f32 %v7565_v58, %v10244_v51  ;;  %v5306_v12 = vadd.f32 %v5210_v60, %v5016_v11  ;;  %v5031_v57 = vld [vmem:[#allocation2 + $0x4e] sm:$0x1] }
 0x494   : > { %5384 = vst [vmem:[#allocation2 + $0x2d] sm:$0x1] %v5288_v3  ;;  %v7567_v3 = vld [vmem:[%s8275_s14 + $0x70] sm:$0x1]  ;;  %v5213_v9 = vmul.f32 %v7566_v61, %v10244_v51  ;;  %v5307_v16 = vadd.f32 %v5211_v0, %v5017_v63  ;;  %v5032_v60 = vld [vmem:[#allocation2 + $0x4f] sm:$0x1] }
 0x495   : > { %5385 = vst [vmem:[#allocation2 + $0x2e] sm:$0x1] %v5289_v6  ;;  %v7568_v6 = vld [vmem:[%s8275_s14 + $0x71] sm:$0x1]  ;;  %v5214_v14 = vmul.f32 %v7567_v3, %v10244_v51  ;;  %v5308_v20 = vadd.f32 %v5212_v2, %v5018_v5  ;;  %v5033_v0 = vld [vmem:[#allocation2 + $0x50] sm:$0x1] }
 0x496   : > { %5386 = vst [vmem:[#allocation2 + $0x2f] sm:$0x1] %v5290_v10  ;;  %v7569_v10 = vld [vmem:[%s8275_s14 + $0x72] sm:$0x1]  ;;  %v5215_v18 = vmul.f32 %v7568_v6, %v10244_v51  ;;  %v5309_v24 = vadd.f32 %v5213_v9, %v5019_v8  ;;  %v5034_v2 = vld [vmem:[#allocation2 + $0x51] sm:$0x1] }
 0x497   : > { %5387 = vst [vmem:[#allocation2 + $0x30] sm:$0x1] %v5291_v15  ;;  %v7570_v15 = vld [vmem:[%s8275_s14 + $0x73] sm:$0x1]  ;;  %v5216_v22 = vmul.f32 %v7569_v10, %v10244_v51  ;;  %v5310_v28 = vadd.f32 %v5214_v14, %v5020_v13  ;;  %v5035_v9 = vld [vmem:[#allocation2 + $0x52] sm:$0x1] }
 0x498   : > { %5388 = vst [vmem:[#allocation2 + $0x31] sm:$0x1] %v5292_v19  ;;  %v7571_v19 = vld [vmem:[%s8275_s14 + $0x74] sm:$0x1]  ;;  %v5217_v26 = vmul.f32 %v7570_v15, %v10244_v51  ;;  %v5311_v32 = vadd.f32 %v5215_v18, %v5021_v17  ;;  %v5036_v14 = vld [vmem:[#allocation2 + $0x53] sm:$0x1] }
 0x499   : > { %5389 = vst [vmem:[#allocation2 + $0x32] sm:$0x1] %v5293_v23  ;;  %v7572_v23 = vld [vmem:[%s8275_s14 + $0x75] sm:$0x1]  ;;  %v5218_v30 = vmul.f32 %v7571_v19, %v10244_v51  ;;  %v5312_v36 = vadd.f32 %v5216_v22, %v5022_v21  ;;  %v5037_v18 = vld [vmem:[#allocation2 + $0x54] sm:$0x1] }
 0x49a   : > { %5390 = vst [vmem:[#allocation2 + $0x33] sm:$0x1] %v5294_v27  ;;  %v7573_v27 = vld [vmem:[%s8275_s14 + $0x76] sm:$0x1]  ;;  %v5219_v34 = vmul.f32 %v7572_v23, %v10244_v51  ;;  %v5313_v40 = vadd.f32 %v5217_v26, %v5023_v25  ;;  %v5038_v22 = vld [vmem:[#allocation2 + $0x55] sm:$0x1] }
 0x49b   : > { %5391 = vst [vmem:[#allocation2 + $0x34] sm:$0x1] %v5295_v31  ;;  %v7574_v31 = vld [vmem:[%s8275_s14 + $0x77] sm:$0x1]  ;;  %v5220_v38 = vmul.f32 %v7573_v27, %v10244_v51  ;;  %v5314_v44 = vadd.f32 %v5218_v30, %v5024_v29  ;;  %v5039_v26 = vld [vmem:[#allocation2 + $0x56] sm:$0x1] }
 0x49c   : > { %5392 = vst [vmem:[#allocation2 + $0x35] sm:$0x1] %v5296_v35  ;;  %v7575_v35 = vld [vmem:[%s8275_s14 + $0x78] sm:$0x1]  ;;  %v5221_v42 = vmul.f32 %v7574_v31, %v10244_v51  ;;  %v5315_v48 = vadd.f32 %v5219_v34, %v5025_v33  ;;  %v5040_v30 = vld [vmem:[#allocation2 + $0x57] sm:$0x1] }
 0x49d   : > { %5393 = vst [vmem:[#allocation2 + $0x36] sm:$0x1] %v5297_v39  ;;  %v7576_v39 = vld [vmem:[%s8275_s14 + $0x79] sm:$0x1]  ;;  %v5222_v46 = vmul.f32 %v7575_v35, %v10244_v51  ;;  %v5316_v52 = vadd.f32 %v5220_v38, %v5026_v37  ;;  %v5041_v34 = vld [vmem:[#allocation2 + $0x58] sm:$0x1] }
 0x49e   : > { %5394 = vst [vmem:[#allocation2 + $0x37] sm:$0x1] %v5298_v43  ;;  %v7577_v43 = vld [vmem:[%s8275_s14 + $0x7a] sm:$0x1]  ;;  %v5223_v50 = vmul.f32 %v7576_v39, %v10244_v51  ;;  %v5317_v56 = vadd.f32 %v5221_v42, %v5027_v41  ;;  %v5042_v38 = vld [vmem:[#allocation2 + $0x59] sm:$0x1] }
 0x49f   : > { %5395 = vst [vmem:[#allocation2 + $0x38] sm:$0x1] %v5299_v47  ;;  %v7578_v47 = vld [vmem:[%s8275_s14 + $0x7b] sm:$0x1]  ;;  %v5224_v54 = vmul.f32 %v7577_v43, %v10244_v51  ;;  %v5318_v11 = vadd.f32 %v5222_v46, %v5028_v45  ;;  %v5043_v42 = vld [vmem:[#allocation2 + $0x5a] sm:$0x1] }
 0x4a0   : > { %5396 = vst [vmem:[#allocation2 + $0x39] sm:$0x1] %v5300_v1  ;;  %v7579_v1 = vld [vmem:[%s8275_s14 + $0x7c] sm:$0x1]  ;;  %v5225_v58 = vmul.f32 %v7578_v47, %v10244_v51  ;;  %v5319_v63 = vadd.f32 %v5223_v50, %v5029_v49  ;;  %v5044_v46 = vld [vmem:[#allocation2 + $0x5b] sm:$0x1] }
 0x4a1   : > { %5397 = vst [vmem:[#allocation2 + $0x3a] sm:$0x1] %v5301_v55  ;;  %v7580_v55 = vld [vmem:[%s8275_s14 + $0x7f] sm:$0x1]  ;;  %v5226_v61 = vmul.f32 %v7579_v1, %v10244_v51  ;;  %v5320_v5 = vadd.f32 %v5224_v54, %v5030_v53  ;;  %v5045_v50 = vld [vmem:[#allocation2 + $0x5c] sm:$0x1] }
 0x4a2   : > { %5398 = vst [vmem:[#allocation2 + $0x3b] sm:$0x1] %v5302_v59  ;;  %v7581_v59 = vld [vmem:[%s8275_s14 + $0x80] sm:$0x1]  ;;  %v5227_v3 = vmul.f32 %v7580_v55, %v10244_v51  ;;  %v5321_v8 = vadd.f32 %v5225_v58, %v5031_v57  ;;  %v5046_v54 = vld [vmem:[#allocation2 + $0x5d] sm:$0x1] }
 0x4a3   : > { %5399 = vst [vmem:[#allocation2 + $0x3c] sm:$0x1] %v5303_v62  ;;  %v7582_v62 = vld [vmem:[%s8275_s14 + $0x81] sm:$0x1]  ;;  %v5228_v6 = vmul.f32 %v7581_v59, %v10244_v51  ;;  %v5322_v13 = vadd.f32 %v5226_v61, %v5032_v60  ;;  %v5047_v58 = vld [vmem:[#allocation2 + $0x5e] sm:$0x1] }
 0x4a4   : > { %5400 = vst [vmem:[#allocation2 + $0x3d] sm:$0x1] %v5304_v4  ;;  %v7583_v4 = vld [vmem:[%s8275_s14 + $0x82] sm:$0x1]  ;;  %v5229_v10 = vmul.f32 %v7582_v62, %v10244_v51  ;;  %v5323_v17 = vadd.f32 %v5227_v3, %v5033_v0  ;;  %v5048_v61 = vld [vmem:[#allocation2 + $0x5f] sm:$0x1] }
 0x4a5   : > { %5401 = vst [vmem:[#allocation2 + $0x3e] sm:$0x1] %v5305_v7  ;;  %v7584_v7 = vld [vmem:[%s8275_s14 + $0x83] sm:$0x1]  ;;  %v5230_v15 = vmul.f32 %v7583_v4, %v10244_v51  ;;  %v5324_v21 = vadd.f32 %v5228_v6, %v5034_v2  ;;  %v5435_v3 = vld [vmem:[#allocation2 + $0x60] sm:$0x1] }
 0x4a6   : > { %5402 = vst [vmem:[#allocation2 + $0x3f] sm:$0x1] %v5306_v12  ;;  %v7585_v12 = vld [vmem:[%s8275_s14 + $0x84] sm:$0x1]  ;;  %v5231_v19 = vmul.f32 %v7584_v7, %v10244_v51  ;;  %v5325_v25 = vadd.f32 %v5229_v10, %v5035_v9  ;;  %v5436_v6 = vld [vmem:[#allocation2 + $0x61] sm:$0x1] }
 0x4a7   : > { %5403 = vst [vmem:[#allocation2 + $0x40] sm:$0x1] %v5307_v16  ;;  %v7586_v16 = vld [vmem:[%s8275_s14 + $0x85] sm:$0x1]  ;;  %v5232_v23 = vmul.f32 %v7585_v12, %v10244_v51  ;;  %v5326_v29 = vadd.f32 %v5230_v15, %v5036_v14  ;;  %v5437_v10 = vld [vmem:[#allocation2 + $0x62] sm:$0x1] }
 0x4a8   : > { %5404 = vst [vmem:[#allocation2 + $0x41] sm:$0x1] %v5308_v20  ;;  %v7587_v20 = vld [vmem:[%s8275_s14 + $0x86] sm:$0x1]  ;;  %v5233_v27 = vmul.f32 %v7586_v16, %v10244_v51  ;;  %v5327_v33 = vadd.f32 %v5231_v19, %v5037_v18  ;;  %v5438_v15 = vld [vmem:[#allocation2 + $0x63] sm:$0x1] }
 0x4a9   : > { %5405 = vst [vmem:[#allocation2 + $0x42] sm:$0x1] %v5309_v24  ;;  %v7588_v24 = vld [vmem:[%s8275_s14 + $0x87] sm:$0x1]  ;;  %v5234_v31 = vmul.f32 %v7587_v20, %v10244_v51  ;;  %v5328_v37 = vadd.f32 %v5232_v23, %v5038_v22  ;;  %v5439_v19 = vld [vmem:[#allocation2 + $0x64] sm:$0x1] }
 0x4aa   : > { %5406 = vst [vmem:[#allocation2 + $0x43] sm:$0x1] %v5310_v28  ;;  %v7589_v28 = vld [vmem:[%s8275_s14 + $0x88] sm:$0x1]  ;;  %v5235_v35 = vmul.f32 %v7588_v24, %v10244_v51  ;;  %v5329_v41 = vadd.f32 %v5233_v27, %v5039_v26  ;;  %v5440_v23 = vld [vmem:[#allocation2 + $0x65] sm:$0x1] }
 0x4ab   : > { %5407 = vst [vmem:[#allocation2 + $0x44] sm:$0x1] %v5311_v32  ;;  %v7590_v32 = vld [vmem:[%s8275_s14 + $0x89] sm:$0x1]  ;;  %v5236_v39 = vmul.f32 %v7589_v28, %v10244_v51  ;;  %v5330_v45 = vadd.f32 %v5234_v31, %v5040_v30  ;;  %v5441_v27 = vld [vmem:[#allocation2 + $0x66] sm:$0x1] }
 0x4ac   : > { %5408 = vst [vmem:[#allocation2 + $0x45] sm:$0x1] %v5312_v36  ;;  %v7591_v36 = vld [vmem:[%s8275_s14 + $0x8a] sm:$0x1]  ;;  %v5237_v43 = vmul.f32 %v7590_v32, %v10244_v51  ;;  %v5331_v49 = vadd.f32 %v5235_v35, %v5041_v34  ;;  %v5442_v31 = vld [vmem:[#allocation2 + $0x67] sm:$0x1] }
 0x4ad   : > { %5409 = vst [vmem:[#allocation2 + $0x46] sm:$0x1] %v5313_v40  ;;  %v7592_v40 = vld [vmem:[%s8275_s14 + $0x8b] sm:$0x1]  ;;  %v5238_v47 = vmul.f32 %v7591_v36, %v10244_v51  ;;  %v5332_v53 = vadd.f32 %v5236_v39, %v5042_v38  ;;  %v5443_v35 = vld [vmem:[#allocation2 + $0x68] sm:$0x1] }
 0x4ae   : > { %5410 = vst [vmem:[#allocation2 + $0x47] sm:$0x1] %v5314_v44  ;;  %v7593_v44 = vld [vmem:[%s8275_s14 + $0x8c] sm:$0x1]  ;;  %v5239_v1 = vmul.f32 %v7592_v40, %v10244_v51  ;;  %v5333_v57 = vadd.f32 %v5237_v43, %v5043_v42  ;;  %v5444_v39 = vld [vmem:[#allocation2 + $0x69] sm:$0x1] }
 0x4af   : > { %5411 = vst [vmem:[#allocation2 + $0x48] sm:$0x1] %v5315_v48  ;;  %v7594_v48 = vld [vmem:[%s8275_s14 + $0x8d] sm:$0x1]  ;;  %v5240_v55 = vmul.f32 %v7593_v44, %v10244_v51  ;;  %v5334_v60 = vadd.f32 %v5238_v47, %v5044_v46  ;;  %v5445_v43 = vld [vmem:[#allocation2 + $0x6a] sm:$0x1] }
 0x4b0   : > { %5412 = vst [vmem:[#allocation2 + $0x49] sm:$0x1] %v5316_v52  ;;  %v7595_v52 = vld [vmem:[%s8275_s14 + $0x8e] sm:$0x1]  ;;  %v5241_v59 = vmul.f32 %v7594_v48, %v10244_v51  ;;  %v5335_v0 = vadd.f32 %v5239_v1, %v5045_v50  ;;  %v5446_v47 = vld [vmem:[#allocation2 + $0x6b] sm:$0x1] }
 0x4b1   : > { %5413 = vst [vmem:[#allocation2 + $0x4a] sm:$0x1] %v5317_v56  ;;  %v7596_v56 = vld [vmem:[%s8282_s25 + $0x1] sm:$0x1]  ;;  %v5242_v62 = vmul.f32 %v7595_v52, %v10244_v51  ;;  %v5336_v2 = vadd.f32 %v5240_v55, %v5046_v54  ;;  %v5447_v1 = vld [vmem:[#allocation2 + $0x6c] sm:$0x1] }
 0x4b2   : > { %5414 = vst [vmem:[#allocation2 + $0x4b] sm:$0x1] %v5318_v11  ;;  %v7597_v11 = vld [vmem:[%s8282_s25 + $0x2] sm:$0x1]  ;;  %v5499_v4 = vmul.f32 %v7596_v56, %v10244_v51  ;;  %v5337_v9 = vadd.f32 %v5241_v59, %v5047_v58  ;;  %v5448_v55 = vld [vmem:[#allocation2 + $0x6d] sm:$0x1] }
 0x4b3   : > { %5415 = vst [vmem:[#allocation2 + $0x4c] sm:$0x1] %v5319_v63  ;;  %v7598_v63 = vld [vmem:[%s8282_s25 + $0x3] sm:$0x1]  ;;  %v5500_v7 = vmul.f32 %v7597_v11, %v10244_v51  ;;  %v5338_v14 = vadd.f32 %v5242_v62, %v5048_v61  ;;  %v5449_v59 = vld [vmem:[#allocation2 + $0x6e] sm:$0x1] }
 0x4b4   : > { %5416 = vst [vmem:[#allocation2 + $0x4d] sm:$0x1] %v5320_v5  ;;  %v7599_v5 = vld [vmem:[%s8282_s25 + $0x4] sm:$0x1]  ;;  %v5501_v12 = vmul.f32 %v7598_v63, %v10244_v51  ;;  %v5531_v18 = vadd.f32 %v5499_v4, %v5435_v3  ;;  %v5450_v62 = vld [vmem:[#allocation2 + $0x6f] sm:$0x1] }
 0x4b5   : > { %5417 = vst [vmem:[#allocation2 + $0x4e] sm:$0x1] %v5321_v8  ;;  %v7600_v8 = vld [vmem:[%s8282_s25 + $0x5] sm:$0x1]  ;;  %v5502_v16 = vmul.f32 %v7599_v5, %v10244_v51  ;;  %v5532_v22 = vadd.f32 %v5500_v7, %v5436_v6  ;;  %v5451_v4 = vld [vmem:[#allocation2 + $0x70] sm:$0x1] }
 0x4b6   : > { %5418 = vst [vmem:[#allocation2 + $0x4f] sm:$0x1] %v5322_v13  ;;  %v7601_v13 = vld [vmem:[%s8282_s25 + $0x6] sm:$0x1]  ;;  %v5503_v20 = vmul.f32 %v7600_v8, %v10244_v51  ;;  %v5533_v26 = vadd.f32 %v5501_v12, %v5437_v10  ;;  %v5452_v7 = vld [vmem:[#allocation2 + $0x71] sm:$0x1] }
 0x4b7   : > { %5419 = vst [vmem:[#allocation2 + $0x50] sm:$0x1] %v5323_v17  ;;  %v7602_v17 = vld [vmem:[%s8282_s25 + $0x7] sm:$0x1]  ;;  %v5504_v24 = vmul.f32 %v7601_v13, %v10244_v51  ;;  %v5534_v30 = vadd.f32 %v5502_v16, %v5438_v15  ;;  %v5453_v12 = vld [vmem:[#allocation2 + $0x72] sm:$0x1] }
 0x4b8   : > { %5420 = vst [vmem:[#allocation2 + $0x51] sm:$0x1] %v5324_v21  ;;  %v7603_v21 = vld [vmem:[%s8282_s25 + $0x8] sm:$0x1]  ;;  %v5505_v28 = vmul.f32 %v7602_v17, %v10244_v51  ;;  %v5535_v34 = vadd.f32 %v5503_v20, %v5439_v19  ;;  %v5454_v16 = vld [vmem:[#allocation2 + $0x73] sm:$0x1] }
 0x4b9   : > { %5421 = vst [vmem:[#allocation2 + $0x52] sm:$0x1] %v5325_v25  ;;  %v7604_v25 = vld [vmem:[%s8282_s25 + $0x9] sm:$0x1]  ;;  %v5506_v32 = vmul.f32 %v7603_v21, %v10244_v51  ;;  %v5536_v38 = vadd.f32 %v5504_v24, %v5440_v23  ;;  %v5455_v20 = vld [vmem:[#allocation2 + $0x74] sm:$0x1] }
 0x4ba   : > { %5422 = vst [vmem:[#allocation2 + $0x53] sm:$0x1] %v5326_v29  ;;  %v7605_v29 = vld [vmem:[%s8282_s25 + $0xa] sm:$0x1]  ;;  %v5507_v36 = vmul.f32 %v7604_v25, %v10244_v51  ;;  %v5537_v42 = vadd.f32 %v5505_v28, %v5441_v27  ;;  %v7620_v25 = vld [vmem:[%s8282_s25 + $0x1b] sm:$0x1] }
 0x4bb   : > { %5423 = vst [vmem:[#allocation2 + $0x54] sm:$0x1] %v5327_v33  ;;  %v7606_v33 = vld [vmem:[%s8282_s25 + $0xb] sm:$0x1]  ;;  %v5508_v40 = vmul.f32 %v7605_v29, %v10244_v51  ;;  %v5538_v46 = vadd.f32 %v5506_v32, %v5442_v31  ;;  %v5456_v27 = vld [vmem:[#allocation2 + $0x75] sm:$0x1] }
 0x4bc   : > { %5424 = vst [vmem:[#allocation2 + $0x55] sm:$0x1] %v5328_v37  ;;  %v7607_v37 = vld [vmem:[%s8282_s25 + $0xc] sm:$0x1]  ;;  %v5509_v44 = vmul.f32 %v7606_v33, %v10244_v51  ;;  %v5539_v50 = vadd.f32 %v5507_v36, %v5443_v35  ;;  %v7621_v29 = vld [vmem:[%s8282_s25 + $0x1c] sm:$0x1]  ;;  %v5523_v36 = vmul.f32 %v7620_v25, %v10244_v51 }
 0x4bd   : > { %5425 = vst [vmem:[#allocation2 + $0x56] sm:$0x1] %v5329_v41  ;;  %v7608_v41 = vld [vmem:[%s8282_s25 + $0xd] sm:$0x1]  ;;  %v5510_v48 = vmul.f32 %v7607_v37, %v10244_v51  ;;  %v5540_v54 = vadd.f32 %v5508_v40, %v5444_v39  ;;  %v5457_v31 = vld [vmem:[#allocation2 + $0x76] sm:$0x1]  ;;  %v5524_v40 = vmul.f32 %v7621_v29, %v10244_v51 }
 0x4be   : > { %5426 = vst [vmem:[#allocation2 + $0x57] sm:$0x1] %v5330_v45  ;;  %v7609_v45 = vld [vmem:[%s8282_s25 + $0xe] sm:$0x1]  ;;  %v5511_v52 = vmul.f32 %v7608_v41, %v10244_v51  ;;  %v5541_v58 = vadd.f32 %v5509_v44, %v5445_v43  ;;  %v7622_v33 = vld [vmem:[%s8282_s25 + $0x1d] sm:$0x1] }
 0x4bf   : > { %5427 = vst [vmem:[#allocation2 + $0x58] sm:$0x1] %v5331_v49  ;;  %v7610_v49 = vld [vmem:[%s8282_s25 + $0xf] sm:$0x1]  ;;  %v5512_v56 = vmul.f32 %v7609_v45, %v10244_v51  ;;  %v5542_v61 = vadd.f32 %v5510_v48, %v5446_v47  ;;  %v5458_v35 = vld [vmem:[#allocation2 + $0x77] sm:$0x1]  ;;  %v5525_v44 = vmul.f32 %v7622_v33, %v10244_v51 }
 0x4c0   : > { %5428 = vst [vmem:[#allocation2 + $0x59] sm:$0x1] %v5332_v53  ;;  %v7611_v53 = vld [vmem:[%s8282_s25 + $0x10] sm:$0x1]  ;;  %v5513_v11 = vmul.f32 %v7610_v49, %v10244_v51  ;;  %v5543_v3 = vadd.f32 %v5511_v52, %v5447_v1  ;;  %v7623_v37 = vld [vmem:[%s8282_s25 + $0x1e] sm:$0x1] }
 0x4c1   : > { %5429 = vst [vmem:[#allocation2 + $0x5a] sm:$0x1] %v5333_v57  ;;  %v7612_v57 = vld [vmem:[%s8282_s25 + $0x13] sm:$0x1]  ;;  %v5514_v63 = vmul.f32 %v7611_v53, %v10244_v51  ;;  %v5544_v6 = vadd.f32 %v5512_v56, %v5448_v55  ;;  %v5459_v39 = vld [vmem:[#allocation2 + $0x78] sm:$0x1]  ;;  %v5526_v48 = vmul.f32 %v7623_v37, %v10244_v51 }
 0x4c2   : > { %5430 = vst [vmem:[#allocation2 + $0x5b] sm:$0x1] %v5334_v60  ;;  %v7613_v60 = vld [vmem:[%s8282_s25 + $0x14] sm:$0x1]  ;;  %v5515_v5 = vmul.f32 %v7612_v57, %v10244_v51  ;;  %v5545_v10 = vadd.f32 %v5513_v11, %v5449_v59  ;;  %v7624_v41 = vld [vmem:[%s8282_s25 + $0x1f] sm:$0x1] }
 0x4c3   : > { %5431 = vst [vmem:[#allocation2 + $0x5c] sm:$0x1] %v5335_v0  ;;  %v7614_v0 = vld [vmem:[%s8282_s25 + $0x15] sm:$0x1]  ;;  %v5516_v8 = vmul.f32 %v7613_v60, %v10244_v51  ;;  %v5546_v15 = vadd.f32 %v5514_v63, %v5450_v62  ;;  %v7625_v45 = vld [vmem:[%s8282_s25 + $0x20] sm:$0x1]  ;;  %v5527_v52 = vmul.f32 %v7624_v41, %v10244_v51 }
 0x4c4   : > { %5432 = vst [vmem:[#allocation2 + $0x5d] sm:$0x1] %v5336_v2  ;;  %v7615_v2 = vld [vmem:[%s8282_s25 + $0x16] sm:$0x1]  ;;  %v5517_v13 = vmul.f32 %v7614_v0, %v10244_v51  ;;  %v5547_v19 = vadd.f32 %v5515_v5, %v5451_v4  ;;  %v5460_v43 = vld [vmem:[#allocation2 + $0x79] sm:$0x1]  ;;  %v5528_v56 = vmul.f32 %v7625_v45, %v10244_v51 }
 0x4c5   : > { %5433 = vst [vmem:[#allocation2 + $0x5e] sm:$0x1] %v5337_v9  ;;  %v7616_v9 = vld [vmem:[%s8282_s25 + $0x17] sm:$0x1]  ;;  %v5518_v17 = vmul.f32 %v7615_v2, %v10244_v51  ;;  %v5548_v23 = vadd.f32 %v5516_v8, %v5452_v7  ;;  %v5461_v47 = vld [vmem:[#allocation2 + $0x7a] sm:$0x1] }
 0x4c6   : > { %5434 = vst [vmem:[#allocation2 + $0x5f] sm:$0x1] %v5338_v14  ;;  %v7617_v14 = vld [vmem:[%s8282_s25 + $0x18] sm:$0x1]  ;;  %v5519_v21 = vmul.f32 %v7616_v9, %v10244_v51  ;;  %v7626_v49 = vld [vmem:[%s8282_s25 + $0x21] sm:$0x1]  ;;  %v5557_v59 = vadd.f32 %v5525_v44, %v5461_v47 }
 0x4c7   : > { %5563 = vst [vmem:[#allocation2 + $0x60] sm:$0x1] %v5531_v18  ;;  %v7618_v18 = vld [vmem:[%s8282_s25 + $0x19] sm:$0x1]  ;;  %v5520_v24 = vmul.f32 %v7617_v14, %v10244_v51  ;;  %v5462_v1 = vld [vmem:[#allocation2 + $0x7b] sm:$0x1]  ;;  %v5529_v60 = vmul.f32 %v7626_v49, %v10244_v51 }
 0x4c8   : > { %5564 = vst [vmem:[#allocation2 + $0x61] sm:$0x1] %v5532_v22  ;;  %v7619_v22 = vld [vmem:[%s8282_s25 + $0x1a] sm:$0x1]  ;;  %v5521_v28 = vmul.f32 %v7618_v18, %v10244_v51  ;;  %v7627_v53 = vld [vmem:[%s8282_s25 + $0x22] sm:$0x1]  ;;  %v5558_v62 = vadd.f32 %v5526_v48, %v5462_v1 }
 0x4c9   : > { %5565 = vst [vmem:[#allocation2 + $0x62] sm:$0x1] %v5533_v26  ;;  %v5549_v26 = vadd.f32 %v5517_v13, %v5453_v12  ;;  %v5522_v32 = vmul.f32 %v7619_v22, %v10244_v51  ;;  %v5463_v55 = vld [vmem:[#allocation2 + $0x7c] sm:$0x1]  ;;  %v7628_v57 = vld [vmem:[%s8275_s14 + $0x26] sm:$0x1]  ;;  %v5530_v0 = vmul.f32 %v7627_v53, %v10244_v51 }
 0x4ca   : > { %5566 = vst [vmem:[#allocation2 + $0x63] sm:$0x1] %v5534_v30  ;;  %v5550_v30 = vadd.f32 %v5518_v17, %v5454_v16  ;;  %v5464_v11 = vld [vmem:[#allocation2 + $0x7d] sm:$0x1]  ;;  %v5465_v63 = vld [vmem:[#allocation2 + $0x7e] sm:$0x1]  ;;  %v5559_v4 = vadd.f32 %v5527_v52, %v5463_v55 }
 0x4cb   : > { %5567 = vst [vmem:[#allocation2 + $0x64] sm:$0x1] %v5535_v34  ;;  %v5551_v34 = vadd.f32 %v5519_v21, %v5455_v20  ;;  %v5466_v5 = vld [vmem:[#allocation2 + $0x7f] sm:$0x1]  ;;  %v5560_v7 = vadd.f32 %v5528_v56, %v5464_v11  ;;  %v5595_v8 = vld [vmem:[#allocation2] sm:$0x1]  ;;  %v5561_v12 = vadd.f32 %v5529_v60, %v5465_v63 }
 0x4cc   : > { %5568 = vst [vmem:[#allocation2 + $0x65] sm:$0x1] %v5536_v38  ;;  %v5552_v38 = vadd.f32 %v5520_v24, %v5456_v27  ;;  %v5596_v13 = vld [vmem:[#allocation2 + $0x1] sm:$0x1]  ;;  %v7633_v14 = vld [vmem:[%s8275_s14 + $0x2b] sm:$0x1] }
 0x4cd   : > { %5569 = vst [vmem:[#allocation2 + $0x66] sm:$0x1] %v5537_v42  ;;  %v5553_v42 = vadd.f32 %v5521_v28, %v5457_v31  ;;  %v5597_v16 = vld [vmem:[#allocation2 + $0x2] sm:$0x1]  ;;  %v7634_v18 = vld [vmem:[%s8275_s14 + $0x2c] sm:$0x1] }
 0x4ce   : > { %5570 = vst [vmem:[#allocation2 + $0x67] sm:$0x1] %v5538_v46  ;;  %v5554_v46 = vadd.f32 %v5522_v32, %v5458_v35  ;;  %v5598_v20 = vld [vmem:[#allocation2 + $0x3] sm:$0x1]  ;;  %v7635_v22 = vld [vmem:[%s8275_s14 + $0x2d] sm:$0x1] }
 0x4cf   : > { %5571 = vst [vmem:[#allocation2 + $0x68] sm:$0x1] %v5539_v50  ;;  %v5555_v50 = vadd.f32 %v5523_v36, %v5459_v39  ;;  %v5599_v24 = vld [vmem:[#allocation2 + $0x4] sm:$0x1]  ;;  %v5600_v28 = vld [vmem:[#allocation2 + $0x5] sm:$0x1] }
 0x4d0   : > { %5572 = vst [vmem:[#allocation2 + $0x69] sm:$0x1] %v5540_v54  ;;  %v5556_v54 = vadd.f32 %v5524_v40, %v5460_v43  ;;  %v5601_v32 = vld [vmem:[#allocation2 + $0x6] sm:$0x1]  ;;  %v5602_v36 = vld [vmem:[#allocation2 + $0x7] sm:$0x1] }
 0x4d1   : > { %5573 = vst [vmem:[#allocation2 + $0x6a] sm:$0x1] %v5541_v58  ;;  %v10505_v58 = vstv %s10486_s11  ;;  %v5603_v40 = vld [vmem:[#allocation2 + $0x8] sm:$0x1]  ;;  %v5604_v44 = vld [vmem:[#allocation2 + $0x9] sm:$0x1] }
 0x4d2   : > { %5574 = vst [vmem:[#allocation2 + $0x6b] sm:$0x1] %v5542_v61  ;;  %v7629_v61 = vld [vmem:[%s8275_s14 + $0x27] sm:$0x1]  ;;  %v5789_v2 = vmul.f32 %v7628_v57, %v10505_v58  ;;  %v5794_v25 = vmul.f32 %v7633_v14, %v10505_v58  ;;  %v5795_v29 = vmul.f32 %v7634_v18, %v10505_v58  ;;  %v5796_v33 = vmul.f32 %v7635_v22, %v10505_v58  ;;  %v5605_v48 = vld [vmem:[#allocation2 + $0xa] sm:$0x1] }
 0x4d3   : > { %5575 = vst [vmem:[#allocation2 + $0x6c] sm:$0x1] %v5543_v3  ;;  %v7630_v3 = vld [vmem:[%s8275_s14 + $0x28] sm:$0x1]  ;;  %v5790_v9 = vmul.f32 %v7629_v61, %v10505_v58  ;;  %v5606_v52 = vld [vmem:[#allocation2 + $0xb] sm:$0x1] }
 0x4d4   : > { %5576 = vst [vmem:[#allocation2 + $0x6d] sm:$0x1] %v5544_v6  ;;  %v7631_v6 = vld [vmem:[%s8275_s14 + $0x29] sm:$0x1]  ;;  %v5791_v51 = vmul.f32 %v7630_v3, %v10505_v58  ;;  %v5890_v39 = vadd.f32 %v5794_v25, %v5600_v28  ;;  %v5891_v43 = vadd.f32 %v5795_v29, %v5601_v32  ;;  %v5892_v47 = vadd.f32 %v5796_v33, %v5602_v36  ;;  %v5607_v56 = vld [vmem:[#allocation2 + $0xc] sm:$0x1] }
 0x4d5   : > { %5577 = vst [vmem:[#allocation2 + $0x6e] sm:$0x1] %v5545_v10  ;;  %v7632_v10 = vld [vmem:[%s8275_s14 + $0x2a] sm:$0x1]  ;;  %v5792_v17 = vmul.f32 %v7631_v6, %v10505_v58  ;;  %v5608_v60 = vld [vmem:[#allocation2 + $0xd] sm:$0x1] }
 0x4d6   : > { %5578 = vst [vmem:[#allocation2 + $0x6f] sm:$0x1] %v5546_v15  ;;  %v5562_v15 = vadd.f32 %v5530_v0, %v5466_v5  ;;  %v5793_v21 = vmul.f32 %v7632_v10, %v10505_v58  ;;  %v5887_v27 = vadd.f32 %v5791_v51, %v5597_v16  ;;  %v5609_v0 = vld [vmem:[#allocation2 + $0xe] sm:$0x1]  ;;  %v5612_v51 = vld [vmem:[#allocation2 + $0x11] sm:$0x1] }
 0x4d7   : > { %5579 = vst [vmem:[#allocation2 + $0x70] sm:$0x1] %v5547_v19  ;;  %v5885_v19 = vadd.f32 %v5789_v2, %v5595_v8  ;;  %v5888_v31 = vadd.f32 %v5792_v17, %v5598_v20  ;;  %v5610_v2 = vld [vmem:[#allocation2 + $0xf] sm:$0x1]  ;;  %v5613_v17 = vld [vmem:[#allocation2 + $0x12] sm:$0x1] }
 0x4d8   : > { %5580 = vst [vmem:[#allocation2 + $0x71] sm:$0x1] %v5548_v23  ;;  %v5886_v23 = vadd.f32 %v5790_v9, %v5596_v13  ;;  %v5889_v35 = vadd.f32 %v5793_v21, %v5599_v24  ;;  %v5611_v9 = vld [vmem:[#allocation2 + $0x10] sm:$0x1]  ;;  %v5614_v21 = vld [vmem:[#allocation2 + $0x13] sm:$0x1] }
 0x4d9   : > { %5581 = vst [vmem:[#allocation2 + $0x72] sm:$0x1] %v5549_v26  ;;  %v7636_v26 = vld [vmem:[%s8275_s14 + $0x2e] sm:$0x1]  ;;  %v5615_v25 = vld [vmem:[#allocation2 + $0x14] sm:$0x1] }
 0x4da   : > { %5582 = vst [vmem:[#allocation2 + $0x73] sm:$0x1] %v5550_v30  ;;  %v7637_v30 = vld [vmem:[%s8275_s14 + $0x2f] sm:$0x1]  ;;  %v5797_v37 = vmul.f32 %v7636_v26, %v10505_v58  ;;  %v5616_v29 = vld [vmem:[#allocation2 + $0x15] sm:$0x1] }
 0x4db   : > { %5583 = vst [vmem:[#allocation2 + $0x74] sm:$0x1] %v5551_v34  ;;  %v7638_v34 = vld [vmem:[%s8275_s14 + $0x30] sm:$0x1]  ;;  %v5798_v41 = vmul.f32 %v7637_v30, %v10505_v58  ;;  %v5617_v33 = vld [vmem:[#allocation2 + $0x16] sm:$0x1] }
 0x4dc   : > { %5584 = vst [vmem:[#allocation2 + $0x75] sm:$0x1] %v5552_v38  ;;  %v7639_v38 = vld [vmem:[%s8275_s14 + $0x31] sm:$0x1]  ;;  %v5799_v45 = vmul.f32 %v7638_v34, %v10505_v58  ;;  %v5893_v1 = vadd.f32 %v5797_v37, %v5603_v40  ;;  %v5618_v37 = vld [vmem:[#allocation2 + $0x17] sm:$0x1] }
 0x4dd   : > { %5585 = vst [vmem:[#allocation2 + $0x76] sm:$0x1] %v5553_v42  ;;  %v7640_v42 = vld [vmem:[%s8275_s14 + $0x32] sm:$0x1]  ;;  %v5800_v49 = vmul.f32 %v7639_v38, %v10505_v58  ;;  %v5894_v55 = vadd.f32 %v5798_v41, %v5604_v44  ;;  %v5619_v41 = vld [vmem:[#allocation2 + $0x18] sm:$0x1] }
 0x4de   : > { %5586 = vst [vmem:[#allocation2 + $0x77] sm:$0x1] %v5554_v46  ;;  %v7641_v46 = vld [vmem:[%s8275_s14 + $0x33] sm:$0x1]  ;;  %v5801_v53 = vmul.f32 %v7640_v42, %v10505_v58  ;;  %v5895_v11 = vadd.f32 %v5799_v45, %v5605_v48  ;;  %v5620_v45 = vld [vmem:[#allocation2 + $0x19] sm:$0x1] }
 0x4df   : > { %5587 = vst [vmem:[#allocation2 + $0x78] sm:$0x1] %v5555_v50  ;;  %v7642_v50 = vld [vmem:[%s8275_s14 + $0x34] sm:$0x1]  ;;  %v5802_v57 = vmul.f32 %v7641_v46, %v10505_v58  ;;  %v5896_v63 = vadd.f32 %v5800_v49, %v5606_v52  ;;  %v5621_v49 = vld [vmem:[#allocation2 + $0x1a] sm:$0x1] }
 0x4e0   : > { %5588 = vst [vmem:[#allocation2 + $0x79] sm:$0x1] %v5556_v54  ;;  %v7643_v54 = vld [vmem:[%s8275_s14 + $0x35] sm:$0x1]  ;;  %v5803_v61 = vmul.f32 %v7642_v50, %v10505_v58  ;;  %v5897_v5 = vadd.f32 %v5801_v53, %v5607_v56  ;;  %v5622_v53 = vld [vmem:[#allocation2 + $0x1b] sm:$0x1] }
 0x4e1   : > { %5589 = vst [vmem:[#allocation2 + $0x7a] sm:$0x1] %v5557_v59  ;;  %v7644_v59 = vld [vmem:[%s8275_s14 + $0x38] sm:$0x1]  ;;  %v5804_v3 = vmul.f32 %v7643_v54, %v10505_v58  ;;  %v5898_v8 = vadd.f32 %v5802_v57, %v5608_v60  ;;  %v5623_v57 = vld [vmem:[#allocation2 + $0x1c] sm:$0x1] }
 0x4e2   : > { %5590 = vst [vmem:[#allocation2 + $0x7b] sm:$0x1] %v5558_v62  ;;  %v7645_v62 = vld [vmem:[%s8275_s14 + $0x39] sm:$0x1]  ;;  %v5805_v6 = vmul.f32 %v7644_v59, %v10505_v58  ;;  %v5899_v13 = vadd.f32 %v5803_v61, %v5609_v0  ;;  %v5624_v61 = vld [vmem:[#allocation2 + $0x1d] sm:$0x1] }
 0x4e3   : > { %5591 = vst [vmem:[#allocation2 + $0x7c] sm:$0x1] %v5559_v4  ;;  %v7646_v4 = vld [vmem:[%s8275_s14 + $0x3a] sm:$0x1]  ;;  %v5806_v10 = vmul.f32 %v7645_v62, %v10505_v58  ;;  %v5900_v16 = vadd.f32 %v5804_v3, %v5610_v2  ;;  %v5625_v3 = vld [vmem:[#allocation2 + $0x1e] sm:$0x1] }
 0x4e4   : > { %5592 = vst [vmem:[#allocation2 + $0x7d] sm:$0x1] %v5560_v7  ;;  %v7647_v7 = vld [vmem:[%s8275_s14 + $0x3b] sm:$0x1]  ;;  %v5807_v14 = vmul.f32 %v7646_v4, %v10505_v58  ;;  %v5901_v20 = vadd.f32 %v5805_v6, %v5611_v9  ;;  %v5626_v6 = vld [vmem:[#allocation2 + $0x1f] sm:$0x1] }
 0x4e5   : > { %5593 = vst [vmem:[#allocation2 + $0x7e] sm:$0x1] %v5561_v12  ;;  %v7648_v12 = vld [vmem:[%s8275_s14 + $0x3c] sm:$0x1]  ;;  %v5808_v18 = vmul.f32 %v7647_v7, %v10505_v58  ;;  %v5902_v24 = vadd.f32 %v5806_v10, %v5612_v51  ;;  %v5627_v10 = vld [vmem:[#allocation2 + $0x20] sm:$0x1] }
 0x4e6   : > { %5594 = vst [vmem:[#allocation2 + $0x7f] sm:$0x1] %v5562_v15  ;;  %v7649_v15 = vld [vmem:[%s8275_s14 + $0x3d] sm:$0x1]  ;;  %v5809_v22 = vmul.f32 %v7648_v12, %v10505_v58  ;;  %v5903_v28 = vadd.f32 %v5807_v14, %v5613_v17  ;;  %v5628_v14 = vld [vmem:[#allocation2 + $0x21] sm:$0x1] }
 0x4e7   : > { %5981 = vst [vmem:[#allocation2] sm:$0x1] %v5885_v19  ;;  %v7650_v19 = vld [vmem:[%s8275_s14 + $0x3e] sm:$0x1]  ;;  %v5810_v26 = vmul.f32 %v7649_v15, %v10505_v58  ;;  %v5904_v32 = vadd.f32 %v5808_v18, %v5614_v21  ;;  %v5629_v18 = vld [vmem:[#allocation2 + $0x22] sm:$0x1] }
 0x4e8   : > { %5982 = vst [vmem:[#allocation2 + $0x1] sm:$0x1] %v5886_v23  ;;  %v7651_v23 = vld [vmem:[%s8275_s14 + $0x3f] sm:$0x1]  ;;  %v5811_v30 = vmul.f32 %v7650_v19, %v10505_v58  ;;  %v5905_v36 = vadd.f32 %v5809_v22, %v5615_v25  ;;  %v5630_v22 = vld [vmem:[#allocation2 + $0x23] sm:$0x1] }
 0x4e9   : > { %5983 = vst [vmem:[#allocation2 + $0x2] sm:$0x1] %v5887_v27  ;;  %v7652_v27 = vld [vmem:[%s8275_s14 + $0x40] sm:$0x1]  ;;  %v5812_v34 = vmul.f32 %v7651_v23, %v10505_v58  ;;  %v5906_v40 = vadd.f32 %v5810_v26, %v5616_v29  ;;  %v5631_v26 = vld [vmem:[#allocation2 + $0x24] sm:$0x1] }
 0x4ea   : > { %5984 = vst [vmem:[#allocation2 + $0x3] sm:$0x1] %v5888_v31  ;;  %v7653_v31 = vld [vmem:[%s8275_s14 + $0x41] sm:$0x1]  ;;  %v5813_v38 = vmul.f32 %v7652_v27, %v10505_v58  ;;  %v5907_v44 = vadd.f32 %v5811_v30, %v5617_v33  ;;  %v5632_v30 = vld [vmem:[#allocation2 + $0x25] sm:$0x1] }
 0x4eb   : > { %5985 = vst [vmem:[#allocation2 + $0x4] sm:$0x1] %v5889_v35  ;;  %v7654_v35 = vld [vmem:[%s8275_s14 + $0x42] sm:$0x1]  ;;  %v5814_v42 = vmul.f32 %v7653_v31, %v10505_v58  ;;  %v5908_v48 = vadd.f32 %v5812_v34, %v5618_v37  ;;  %v5633_v34 = vld [vmem:[#allocation2 + $0x26] sm:$0x1] }
 0x4ec   : > { %5986 = vst [vmem:[#allocation2 + $0x5] sm:$0x1] %v5890_v39  ;;  %v7655_v39 = vld [vmem:[%s8275_s14 + $0x43] sm:$0x1]  ;;  %v5815_v46 = vmul.f32 %v7654_v35, %v10505_v58  ;;  %v5909_v52 = vadd.f32 %v5813_v38, %v5619_v41  ;;  %v5634_v38 = vld [vmem:[#allocation2 + $0x27] sm:$0x1] }
 0x4ed   : > { %5987 = vst [vmem:[#allocation2 + $0x6] sm:$0x1] %v5891_v43  ;;  %v7656_v43 = vld [vmem:[%s8275_s14 + $0x44] sm:$0x1]  ;;  %v5816_v50 = vmul.f32 %v7655_v39, %v10505_v58  ;;  %v5910_v56 = vadd.f32 %v5814_v42, %v5620_v45  ;;  %v5635_v42 = vld [vmem:[#allocation2 + $0x28] sm:$0x1] }
 0x4ee   : > { %5988 = vst [vmem:[#allocation2 + $0x7] sm:$0x1] %v5892_v47  ;;  %v7657_v47 = vld [vmem:[%s8275_s14 + $0x45] sm:$0x1]  ;;  %v5817_v54 = vmul.f32 %v7656_v43, %v10505_v58  ;;  %v5911_v60 = vadd.f32 %v5815_v46, %v5621_v49  ;;  %v5636_v46 = vld [vmem:[#allocation2 + $0x29] sm:$0x1] }
 0x4ef   : > { %5989 = vst [vmem:[#allocation2 + $0x8] sm:$0x1] %v5893_v1  ;;  %v7658_v1 = vld [vmem:[%s8275_s14 + $0x46] sm:$0x1]  ;;  %v5818_v59 = vmul.f32 %v7657_v47, %v10505_v58  ;;  %v5912_v0 = vadd.f32 %v5816_v50, %v5622_v53  ;;  %v5637_v50 = vld [vmem:[#allocation2 + $0x2a] sm:$0x1] }
 0x4f0   : > { %5990 = vst [vmem:[#allocation2 + $0x9] sm:$0x1] %v5894_v55  ;;  %v7659_v55 = vld [vmem:[%s8275_s14 + $0x47] sm:$0x1]  ;;  %v5819_v62 = vmul.f32 %v7658_v1, %v10505_v58  ;;  %v5913_v2 = vadd.f32 %v5817_v54, %v5623_v57  ;;  %v5638_v54 = vld [vmem:[#allocation2 + $0x2b] sm:$0x1] }
 0x4f1   : > { %5991 = vst [vmem:[#allocation2 + $0xa] sm:$0x1] %v5895_v11  ;;  %v7660_v11 = vld [vmem:[%s8275_s14 + $0x4a] sm:$0x1]  ;;  %v5820_v4 = vmul.f32 %v7659_v55, %v10505_v58  ;;  %v5914_v9 = vadd.f32 %v5818_v59, %v5624_v61  ;;  %v5639_v59 = vld [vmem:[#allocation2 + $0x2c] sm:$0x1] }
 0x4f2   : > { %5992 = vst [vmem:[#allocation2 + $0xb] sm:$0x1] %v5896_v63  ;;  %v7661_v63 = vld [vmem:[%s8275_s14 + $0x4b] sm:$0x1]  ;;  %v5821_v7 = vmul.f32 %v7660_v11, %v10505_v58  ;;  %v5915_v51 = vadd.f32 %v5819_v62, %v5625_v3  ;;  %v5640_v62 = vld [vmem:[#allocation2 + $0x2d] sm:$0x1] }
 0x4f3   : > { %5993 = vst [vmem:[#allocation2 + $0xc] sm:$0x1] %v5897_v5  ;;  %v7662_v5 = vld [vmem:[%s8275_s14 + $0x4c] sm:$0x1]  ;;  %v5822_v12 = vmul.f32 %v7661_v63, %v10505_v58  ;;  %v5916_v17 = vadd.f32 %v5820_v4, %v5626_v6  ;;  %v5641_v4 = vld [vmem:[#allocation2 + $0x2e] sm:$0x1] }
 0x4f4   : > { %5994 = vst [vmem:[#allocation2 + $0xd] sm:$0x1] %v5898_v8  ;;  %v7663_v8 = vld [vmem:[%s8275_s14 + $0x4d] sm:$0x1]  ;;  %v5823_v15 = vmul.f32 %v7662_v5, %v10505_v58  ;;  %v5917_v21 = vadd.f32 %v5821_v7, %v5627_v10  ;;  %v5642_v7 = vld [vmem:[#allocation2 + $0x2f] sm:$0x1] }
 0x4f5   : > { %5995 = vst [vmem:[#allocation2 + $0xe] sm:$0x1] %v5899_v13  ;;  %v7664_v13 = vld [vmem:[%s8275_s14 + $0x4e] sm:$0x1]  ;;  %v5824_v19 = vmul.f32 %v7663_v8, %v10505_v58  ;;  %v5918_v25 = vadd.f32 %v5822_v12, %v5628_v14  ;;  %v5643_v12 = vld [vmem:[#allocation2 + $0x30] sm:$0x1] }
 0x4f6   : > { %5996 = vst [vmem:[#allocation2 + $0xf] sm:$0x1] %v5900_v16  ;;  %v7665_v16 = vld [vmem:[%s8275_s14 + $0x4f] sm:$0x1]  ;;  %v5825_v23 = vmul.f32 %v7664_v13, %v10505_v58  ;;  %v5919_v29 = vadd.f32 %v5823_v15, %v5629_v18  ;;  %v5644_v15 = vld [vmem:[#allocation2 + $0x31] sm:$0x1] }
 0x4f7   : > { %5997 = vst [vmem:[#allocation2 + $0x10] sm:$0x1] %v5901_v20  ;;  %v7666_v20 = vld [vmem:[%s8275_s14 + $0x50] sm:$0x1]  ;;  %v5826_v27 = vmul.f32 %v7665_v16, %v10505_v58  ;;  %v5920_v33 = vadd.f32 %v5824_v19, %v5630_v22  ;;  %v5645_v19 = vld [vmem:[#allocation2 + $0x32] sm:$0x1] }
 0x4f8   : > { %5998 = vst [vmem:[#allocation2 + $0x11] sm:$0x1] %v5902_v24  ;;  %v7667_v24 = vld [vmem:[%s8275_s14 + $0x51] sm:$0x1]  ;;  %v5827_v31 = vmul.f32 %v7666_v20, %v10505_v58  ;;  %v5921_v37 = vadd.f32 %v5825_v23, %v5631_v26  ;;  %v5646_v23 = vld [vmem:[#allocation2 + $0x33] sm:$0x1] }
 0x4f9   : > { %5999 = vst [vmem:[#allocation2 + $0x12] sm:$0x1] %v5903_v28  ;;  %v7668_v28 = vld [vmem:[%s8275_s14 + $0x52] sm:$0x1]  ;;  %v5828_v35 = vmul.f32 %v7667_v24, %v10505_v58  ;;  %v5922_v41 = vadd.f32 %v5826_v27, %v5632_v30  ;;  %v5647_v27 = vld [vmem:[#allocation2 + $0x34] sm:$0x1] }
 0x4fa   : > { %6000 = vst [vmem:[#allocation2 + $0x13] sm:$0x1] %v5904_v32  ;;  %v7669_v32 = vld [vmem:[%s8275_s14 + $0x53] sm:$0x1]  ;;  %v5829_v39 = vmul.f32 %v7668_v28, %v10505_v58  ;;  %v5923_v45 = vadd.f32 %v5827_v31, %v5633_v34  ;;  %v5648_v31 = vld [vmem:[#allocation2 + $0x35] sm:$0x1] }
 0x4fb   : > { %6001 = vst [vmem:[#allocation2 + $0x14] sm:$0x1] %v5905_v36  ;;  %v7670_v36 = vld [vmem:[%s8275_s14 + $0x54] sm:$0x1]  ;;  %v5830_v43 = vmul.f32 %v7669_v32, %v10505_v58  ;;  %v5924_v49 = vadd.f32 %v5828_v35, %v5634_v38  ;;  %v5649_v35 = vld [vmem:[#allocation2 + $0x36] sm:$0x1] }
 0x4fc   : > { %6002 = vst [vmem:[#allocation2 + $0x15] sm:$0x1] %v5906_v40  ;;  %v7671_v40 = vld [vmem:[%s8275_s14 + $0x55] sm:$0x1]  ;;  %v5831_v47 = vmul.f32 %v7670_v36, %v10505_v58  ;;  %v5925_v53 = vadd.f32 %v5829_v39, %v5635_v42  ;;  %v5650_v39 = vld [vmem:[#allocation2 + $0x37] sm:$0x1] }
 0x4fd   : > { %6003 = vst [vmem:[#allocation2 + $0x16] sm:$0x1] %v5907_v44  ;;  %v7672_v44 = vld [vmem:[%s8275_s14 + $0x56] sm:$0x1]  ;;  %v5832_v1 = vmul.f32 %v7671_v40, %v10505_v58  ;;  %v5926_v57 = vadd.f32 %v5830_v43, %v5636_v46  ;;  %v5651_v43 = vld [vmem:[#allocation2 + $0x38] sm:$0x1] }
 0x4fe   : > { %6004 = vst [vmem:[#allocation2 + $0x17] sm:$0x1] %v5908_v48  ;;  %v7673_v48 = vld [vmem:[%s8275_s14 + $0x57] sm:$0x1]  ;;  %v5833_v55 = vmul.f32 %v7672_v44, %v10505_v58  ;;  %v5927_v61 = vadd.f32 %v5831_v47, %v5637_v50  ;;  %v5652_v47 = vld [vmem:[#allocation2 + $0x39] sm:$0x1] }
 0x4ff   : > { %6005 = vst [vmem:[#allocation2 + $0x18] sm:$0x1] %v5909_v52  ;;  %v7674_v52 = vld [vmem:[%s8275_s14 + $0x58] sm:$0x1]  ;;  %v5834_v11 = vmul.f32 %v7673_v48, %v10505_v58  ;;  %v5928_v3 = vadd.f32 %v5832_v1, %v5638_v54  ;;  %v5653_v1 = vld [vmem:[#allocation2 + $0x3a] sm:$0x1] }
 0x500   : > { %6006 = vst [vmem:[#allocation2 + $0x19] sm:$0x1] %v5910_v56  ;;  %v7675_v56 = vld [vmem:[%s8275_s14 + $0x59] sm:$0x1]  ;;  %v5835_v63 = vmul.f32 %v7674_v52, %v10505_v58  ;;  %v5929_v6 = vadd.f32 %v5833_v55, %v5639_v59  ;;  %v5654_v55 = vld [vmem:[#allocation2 + $0x3b] sm:$0x1] }
 0x501   : > { %6007 = vst [vmem:[#allocation2 + $0x1a] sm:$0x1] %v5911_v60  ;;  %v7676_v60 = vld [vmem:[%s8275_s14 + $0x5c] sm:$0x1]  ;;  %v5836_v5 = vmul.f32 %v7675_v56, %v10505_v58  ;;  %v5930_v10 = vadd.f32 %v5834_v11, %v5640_v62 }
 0x502   : > { %6008 = vst [vmem:[#allocation2 + $0x1b] sm:$0x1] %v5912_v0  ;;  %v7677_v0 = vld [vmem:[%s8275_s14 + $0x5d] sm:$0x1]  ;;  %v5837_v8 = vmul.f32 %v7676_v60, %v10505_v58  ;;  %v5931_v14 = vadd.f32 %v5835_v63, %v5641_v4  ;;  %v5655_v11 = vld [vmem:[#allocation2 + $0x3c] sm:$0x1] }
 0x503   : > { %6009 = vst [vmem:[#allocation2 + $0x1c] sm:$0x1] %v5913_v2  ;;  %v7678_v2 = vld [vmem:[%s8275_s14 + $0x5e] sm:$0x1]  ;;  %v5838_v13 = vmul.f32 %v7677_v0, %v10505_v58  ;;  %v5932_v18 = vadd.f32 %v5836_v5, %v5642_v7  ;;  %v5656_v63 = vld [vmem:[#allocation2 + $0x3d] sm:$0x1] }
 0x504   : > { %6010 = vst [vmem:[#allocation2 + $0x1d] sm:$0x1] %v5914_v9  ;;  %v7679_v9 = vld [vmem:[%s8275_s14 + $0x5f] sm:$0x1]  ;;  %v5839_v16 = vmul.f32 %v7678_v2, %v10505_v58  ;;  %v5933_v22 = vadd.f32 %v5837_v8, %v5643_v12  ;;  %v5657_v5 = vld [vmem:[#allocation2 + $0x3e] sm:$0x1] }
 0x505   : > { %6011 = vst [vmem:[#allocation2 + $0x1e] sm:$0x1] %v5915_v51  ;;  %v7680_v51 = vld [vmem:[%s8275_s14 + $0x60] sm:$0x1]  ;;  %v5840_v20 = vmul.f32 %v7679_v9, %v10505_v58  ;;  %v5934_v26 = vadd.f32 %v5838_v13, %v5644_v15  ;;  %v5658_v8 = vld [vmem:[#allocation2 + $0x3f] sm:$0x1] }
 0x506   : > { %6012 = vst [vmem:[#allocation2 + $0x1f] sm:$0x1] %v5916_v17  ;;  %v7681_v17 = vld [vmem:[%s8275_s14 + $0x61] sm:$0x1]  ;;  %v5841_v24 = vmul.f32 %v7680_v51, %v10505_v58  ;;  %v5935_v30 = vadd.f32 %v5839_v16, %v5645_v19  ;;  %v5659_v13 = vld [vmem:[#allocation2 + $0x40] sm:$0x1] }
 0x507   : > { %6013 = vst [vmem:[#allocation2 + $0x20] sm:$0x1] %v5917_v21  ;;  %v7682_v21 = vld [vmem:[%s8275_s14 + $0x62] sm:$0x1]  ;;  %v5842_v28 = vmul.f32 %v7681_v17, %v10505_v58  ;;  %v5936_v34 = vadd.f32 %v5840_v20, %v5646_v23  ;;  %v5660_v16 = vld [vmem:[#allocation2 + $0x41] sm:$0x1] }
 0x508   : > { %6014 = vst [vmem:[#allocation2 + $0x21] sm:$0x1] %v5918_v25  ;;  %v7683_v25 = vld [vmem:[%s8275_s14 + $0x63] sm:$0x1]  ;;  %v5843_v32 = vmul.f32 %v7682_v21, %v10505_v58  ;;  %v5937_v38 = vadd.f32 %v5841_v24, %v5647_v27  ;;  %v5661_v20 = vld [vmem:[#allocation2 + $0x42] sm:$0x1] }
 0x509   : > { %6015 = vst [vmem:[#allocation2 + $0x22] sm:$0x1] %v5919_v29  ;;  %v7684_v29 = vld [vmem:[%s8275_s14 + $0x64] sm:$0x1]  ;;  %v5844_v36 = vmul.f32 %v7683_v25, %v10505_v58  ;;  %v5938_v42 = vadd.f32 %v5842_v28, %v5648_v31  ;;  %v5662_v24 = vld [vmem:[#allocation2 + $0x43] sm:$0x1] }
 0x50a   : > { %6016 = vst [vmem:[#allocation2 + $0x23] sm:$0x1] %v5920_v33  ;;  %v7685_v33 = vld [vmem:[%s8275_s14 + $0x65] sm:$0x1]  ;;  %v5845_v40 = vmul.f32 %v7684_v29, %v10505_v58  ;;  %v5939_v46 = vadd.f32 %v5843_v32, %v5649_v35  ;;  %v5663_v28 = vld [vmem:[#allocation2 + $0x44] sm:$0x1] }
 0x50b   : > { %6017 = vst [vmem:[#allocation2 + $0x24] sm:$0x1] %v5921_v37  ;;  %v7686_v37 = vld [vmem:[%s8275_s14 + $0x66] sm:$0x1]  ;;  %v5846_v44 = vmul.f32 %v7685_v33, %v10505_v58  ;;  %v5940_v50 = vadd.f32 %v5844_v36, %v5650_v39  ;;  %v5664_v32 = vld [vmem:[#allocation2 + $0x45] sm:$0x1] }
 0x50c   : > { %6018 = vst [vmem:[#allocation2 + $0x25] sm:$0x1] %v5922_v41  ;;  %v7687_v41 = vld [vmem:[%s8275_s14 + $0x67] sm:$0x1]  ;;  %v5847_v48 = vmul.f32 %v7686_v37, %v10505_v58  ;;  %v5941_v54 = vadd.f32 %v5845_v40, %v5651_v43  ;;  %v5665_v36 = vld [vmem:[#allocation2 + $0x46] sm:$0x1] }
 0x50d   : > { %6019 = vst [vmem:[#allocation2 + $0x26] sm:$0x1] %v5923_v45  ;;  %v7688_v45 = vld [vmem:[%s8275_s14 + $0x68] sm:$0x1]  ;;  %v5848_v52 = vmul.f32 %v7687_v41, %v10505_v58  ;;  %v5942_v59 = vadd.f32 %v5846_v44, %v5652_v47  ;;  %v5666_v40 = vld [vmem:[#allocation2 + $0x47] sm:$0x1] }
 0x50e   : > { %6020 = vst [vmem:[#allocation2 + $0x27] sm:$0x1] %v5924_v49  ;;  %v7689_v49 = vld [vmem:[%s8275_s14 + $0x69] sm:$0x1]  ;;  %v5849_v56 = vmul.f32 %v7688_v45, %v10505_v58  ;;  %v5943_v62 = vadd.f32 %v5847_v48, %v5653_v1  ;;  %v5667_v44 = vld [vmem:[#allocation2 + $0x48] sm:$0x1] }
 0x50f   : > { %6021 = vst [vmem:[#allocation2 + $0x28] sm:$0x1] %v5925_v53  ;;  %v7690_v53 = vld [vmem:[%s8275_s14 + $0x6a] sm:$0x1]  ;;  %v5850_v60 = vmul.f32 %v7689_v49, %v10505_v58  ;;  %v5944_v4 = vadd.f32 %v5848_v52, %v5654_v55  ;;  %v5668_v48 = vld [vmem:[#allocation2 + $0x49] sm:$0x1] }
 0x510   : > { %6022 = vst [vmem:[#allocation2 + $0x29] sm:$0x1] %v5926_v57  ;;  %v7691_v57 = vld [vmem:[%s8275_s14 + $0x6b] sm:$0x1]  ;;  %v5851_v0 = vmul.f32 %v7690_v53, %v10505_v58  ;;  %v5945_v7 = vadd.f32 %v5849_v56, %v5655_v11  ;;  %v5669_v52 = vld [vmem:[#allocation2 + $0x4a] sm:$0x1] }
 0x511   : > { %6023 = vst [vmem:[#allocation2 + $0x2a] sm:$0x1] %v5927_v61  ;;  %v7692_v61 = vld [vmem:[%s8275_s14 + $0x6e] sm:$0x1]  ;;  %v5852_v2 = vmul.f32 %v7691_v57, %v10505_v58  ;;  %v5946_v12 = vadd.f32 %v5850_v60, %v5656_v63  ;;  %v5670_v56 = vld [vmem:[#allocation2 + $0x4b] sm:$0x1] }
 0x512   : > { %6024 = vst [vmem:[#allocation2 + $0x2b] sm:$0x1] %v5928_v3  ;;  %v7693_v3 = vld [vmem:[%s8275_s14 + $0x6f] sm:$0x1]  ;;  %v5853_v9 = vmul.f32 %v7692_v61, %v10505_v58  ;;  %v5947_v15 = vadd.f32 %v5851_v0, %v5657_v5  ;;  %v5671_v60 = vld [vmem:[#allocation2 + $0x4c] sm:$0x1] }
 0x513   : > { %6025 = vst [vmem:[#allocation2 + $0x2c] sm:$0x1] %v5929_v6  ;;  %v7694_v6 = vld [vmem:[%s8275_s14 + $0x70] sm:$0x1]  ;;  %v5854_v51 = vmul.f32 %v7693_v3, %v10505_v58  ;;  %v5948_v19 = vadd.f32 %v5852_v2, %v5658_v8  ;;  %v5672_v0 = vld [vmem:[#allocation2 + $0x4d] sm:$0x1] }
 0x514   : > { %6026 = vst [vmem:[#allocation2 + $0x2d] sm:$0x1] %v5930_v10  ;;  %v7695_v10 = vld [vmem:[%s8275_s14 + $0x71] sm:$0x1]  ;;  %v5855_v17 = vmul.f32 %v7694_v6, %v10505_v58  ;;  %v5949_v23 = vadd.f32 %v5853_v9, %v5659_v13  ;;  %v5673_v2 = vld [vmem:[#allocation2 + $0x4e] sm:$0x1] }
 0x515   : > { %6027 = vst [vmem:[#allocation2 + $0x2e] sm:$0x1] %v5931_v14  ;;  %v7696_v14 = vld [vmem:[%s8275_s14 + $0x72] sm:$0x1]  ;;  %v5856_v21 = vmul.f32 %v7695_v10, %v10505_v58  ;;  %v5950_v27 = vadd.f32 %v5854_v51, %v5660_v16  ;;  %v5674_v9 = vld [vmem:[#allocation2 + $0x4f] sm:$0x1] }
 0x516   : > { %6028 = vst [vmem:[#allocation2 + $0x2f] sm:$0x1] %v5932_v18  ;;  %v7697_v18 = vld [vmem:[%s8275_s14 + $0x73] sm:$0x1]  ;;  %v5857_v25 = vmul.f32 %v7696_v14, %v10505_v58  ;;  %v5951_v31 = vadd.f32 %v5855_v17, %v5661_v20  ;;  %v5675_v51 = vld [vmem:[#allocation2 + $0x50] sm:$0x1] }
 0x517   : > { %6029 = vst [vmem:[#allocation2 + $0x30] sm:$0x1] %v5933_v22  ;;  %v7698_v22 = vld [vmem:[%s8275_s14 + $0x74] sm:$0x1]  ;;  %v5858_v29 = vmul.f32 %v7697_v18, %v10505_v58  ;;  %v5952_v35 = vadd.f32 %v5856_v21, %v5662_v24  ;;  %v5676_v17 = vld [vmem:[#allocation2 + $0x51] sm:$0x1] }
 0x518   : > { %6030 = vst [vmem:[#allocation2 + $0x31] sm:$0x1] %v5934_v26  ;;  %v7699_v26 = vld [vmem:[%s8275_s14 + $0x75] sm:$0x1]  ;;  %v5859_v33 = vmul.f32 %v7698_v22, %v10505_v58  ;;  %v5953_v39 = vadd.f32 %v5857_v25, %v5663_v28  ;;  %v5677_v21 = vld [vmem:[#allocation2 + $0x52] sm:$0x1] }
 0x519   : > { %6031 = vst [vmem:[#allocation2 + $0x32] sm:$0x1] %v5935_v30  ;;  %v7700_v30 = vld [vmem:[%s8275_s14 + $0x76] sm:$0x1]  ;;  %v5860_v37 = vmul.f32 %v7699_v26, %v10505_v58  ;;  %v5954_v43 = vadd.f32 %v5858_v29, %v5664_v32  ;;  %v5678_v25 = vld [vmem:[#allocation2 + $0x53] sm:$0x1] }
 0x51a   : > { %6032 = vst [vmem:[#allocation2 + $0x33] sm:$0x1] %v5936_v34  ;;  %v7701_v34 = vld [vmem:[%s8275_s14 + $0x77] sm:$0x1]  ;;  %v5861_v41 = vmul.f32 %v7700_v30, %v10505_v58  ;;  %v5955_v47 = vadd.f32 %v5859_v33, %v5665_v36  ;;  %v5679_v29 = vld [vmem:[#allocation2 + $0x54] sm:$0x1] }
 0x51b   : > { %6033 = vst [vmem:[#allocation2 + $0x34] sm:$0x1] %v5937_v38  ;;  %v7702_v38 = vld [vmem:[%s8275_s14 + $0x78] sm:$0x1]  ;;  %v5862_v45 = vmul.f32 %v7701_v34, %v10505_v58  ;;  %v5956_v1 = vadd.f32 %v5860_v37, %v5666_v40  ;;  %v5680_v33 = vld [vmem:[#allocation2 + $0x55] sm:$0x1] }
 0x51c   : > { %6034 = vst [vmem:[#allocation2 + $0x35] sm:$0x1] %v5938_v42  ;;  %v7703_v42 = vld [vmem:[%s8275_s14 + $0x79] sm:$0x1]  ;;  %v5863_v49 = vmul.f32 %v7702_v38, %v10505_v58  ;;  %v5957_v55 = vadd.f32 %v5861_v41, %v5667_v44  ;;  %v5681_v37 = vld [vmem:[#allocation2 + $0x56] sm:$0x1] }
 0x51d   : > { %6035 = vst [vmem:[#allocation2 + $0x36] sm:$0x1] %v5939_v46  ;;  %v7704_v46 = vld [vmem:[%s8275_s14 + $0x7a] sm:$0x1]  ;;  %v5864_v53 = vmul.f32 %v7703_v42, %v10505_v58  ;;  %v5958_v11 = vadd.f32 %v5862_v45, %v5668_v48  ;;  %v5682_v41 = vld [vmem:[#allocation2 + $0x57] sm:$0x1] }
 0x51e   : > { %6036 = vst [vmem:[#allocation2 + $0x37] sm:$0x1] %v5940_v50  ;;  %v7705_v50 = vld [vmem:[%s8275_s14 + $0x7b] sm:$0x1]  ;;  %v5865_v57 = vmul.f32 %v7704_v46, %v10505_v58  ;;  %v5959_v63 = vadd.f32 %v5863_v49, %v5669_v52  ;;  %v5683_v45 = vld [vmem:[#allocation2 + $0x58] sm:$0x1] }
 0x51f   : > { %6037 = vst [vmem:[#allocation2 + $0x38] sm:$0x1] %v5941_v54  ;;  %v7706_v54 = vld [vmem:[%s8275_s14 + $0x7c] sm:$0x1]  ;;  %v5866_v61 = vmul.f32 %v7705_v50, %v10505_v58  ;;  %v5960_v5 = vadd.f32 %v5864_v53, %v5670_v56  ;;  %v5684_v49 = vld [vmem:[#allocation2 + $0x59] sm:$0x1] }
 0x520   : > { %6038 = vst [vmem:[#allocation2 + $0x39] sm:$0x1] %v5942_v59  ;;  %v7707_v59 = vld [vmem:[%s8275_s14 + $0x7d] sm:$0x1]  ;;  %v5867_v3 = vmul.f32 %v7706_v54, %v10505_v58  ;;  %v5961_v8 = vadd.f32 %v5865_v57, %v5671_v60  ;;  %v5685_v53 = vld [vmem:[#allocation2 + $0x5a] sm:$0x1] }
 0x521   : > { %6039 = vst [vmem:[#allocation2 + $0x3a] sm:$0x1] %v5943_v62  ;;  %v7708_v62 = vld [vmem:[%s8275_s14 + $0x80] sm:$0x1]  ;;  %v5868_v6 = vmul.f32 %v7707_v59, %v10505_v58  ;;  %v5962_v13 = vadd.f32 %v5866_v61, %v5672_v0  ;;  %v5686_v57 = vld [vmem:[#allocation2 + $0x5b] sm:$0x1] }
 0x522   : > { %6040 = vst [vmem:[#allocation2 + $0x3b] sm:$0x1] %v5944_v4  ;;  %v7709_v4 = vld [vmem:[%s8275_s14 + $0x81] sm:$0x1]  ;;  %v5869_v10 = vmul.f32 %v7708_v62, %v10505_v58  ;;  %v5963_v16 = vadd.f32 %v5867_v3, %v5673_v2  ;;  %v5687_v61 = vld [vmem:[#allocation2 + $0x5c] sm:$0x1] }
 0x523   : > { %6041 = vst [vmem:[#allocation2 + $0x3c] sm:$0x1] %v5945_v7  ;;  %v7710_v7 = vld [vmem:[%s8275_s14 + $0x82] sm:$0x1]  ;;  %v5870_v14 = vmul.f32 %v7709_v4, %v10505_v58  ;;  %v5964_v20 = vadd.f32 %v5868_v6, %v5674_v9  ;;  %v5688_v3 = vld [vmem:[#allocation2 + $0x5d] sm:$0x1] }
 0x524   : > { %6042 = vst [vmem:[#allocation2 + $0x3d] sm:$0x1] %v5946_v12  ;;  %v7711_v12 = vld [vmem:[%s8275_s14 + $0x83] sm:$0x1]  ;;  %v5871_v18 = vmul.f32 %v7710_v7, %v10505_v58  ;;  %v5965_v24 = vadd.f32 %v5869_v10, %v5675_v51  ;;  %v5689_v6 = vld [vmem:[#allocation2 + $0x5e] sm:$0x1] }
 0x525   : > { %6043 = vst [vmem:[#allocation2 + $0x3e] sm:$0x1] %v5947_v15  ;;  %v7712_v15 = vld [vmem:[%s8275_s14 + $0x84] sm:$0x1]  ;;  %v5872_v22 = vmul.f32 %v7711_v12, %v10505_v58  ;;  %v5966_v28 = vadd.f32 %v5870_v14, %v5676_v17  ;;  %v5690_v10 = vld [vmem:[#allocation2 + $0x5f] sm:$0x1] }
 0x526   : > { %6044 = vst [vmem:[#allocation2 + $0x3f] sm:$0x1] %v5948_v19  ;;  %v7713_v19 = vld [vmem:[%s8275_s14 + $0x85] sm:$0x1]  ;;  %v5873_v26 = vmul.f32 %v7712_v15, %v10505_v58  ;;  %v5967_v32 = vadd.f32 %v5871_v18, %v5677_v21  ;;  %v6077_v14 = vld [vmem:[#allocation2 + $0x60] sm:$0x1] }
 0x527   : > { %6045 = vst [vmem:[#allocation2 + $0x40] sm:$0x1] %v5949_v23  ;;  %v7714_v23 = vld [vmem:[%s8275_s14 + $0x86] sm:$0x1]  ;;  %v5874_v30 = vmul.f32 %v7713_v19, %v10505_v58  ;;  %v5968_v36 = vadd.f32 %v5872_v22, %v5678_v25  ;;  %v6078_v18 = vld [vmem:[#allocation2 + $0x61] sm:$0x1] }
 0x528   : > { %6046 = vst [vmem:[#allocation2 + $0x41] sm:$0x1] %v5950_v27  ;;  %v7715_v27 = vld [vmem:[%s8275_s14 + $0x87] sm:$0x1]  ;;  %v5875_v34 = vmul.f32 %v7714_v23, %v10505_v58  ;;  %v5969_v40 = vadd.f32 %v5873_v26, %v5679_v29  ;;  %v6079_v22 = vld [vmem:[#allocation2 + $0x62] sm:$0x1] }
 0x529   : > { %6047 = vst [vmem:[#allocation2 + $0x42] sm:$0x1] %v5951_v31  ;;  %v7716_v31 = vld [vmem:[%s8275_s14 + $0x88] sm:$0x1]  ;;  %v5876_v38 = vmul.f32 %v7715_v27, %v10505_v58  ;;  %v5970_v44 = vadd.f32 %v5874_v30, %v5680_v33  ;;  %v6080_v26 = vld [vmem:[#allocation2 + $0x63] sm:$0x1] }
 0x52a   : > { %6048 = vst [vmem:[#allocation2 + $0x43] sm:$0x1] %v5952_v35  ;;  %v7717_v35 = vld [vmem:[%s8275_s14 + $0x89] sm:$0x1]  ;;  %v5877_v42 = vmul.f32 %v7716_v31, %v10505_v58  ;;  %v5971_v48 = vadd.f32 %v5875_v34, %v5681_v37  ;;  %v6081_v30 = vld [vmem:[#allocation2 + $0x64] sm:$0x1] }
 0x52b   : > { %6049 = vst [vmem:[#allocation2 + $0x44] sm:$0x1] %v5953_v39  ;;  %v7718_v39 = vld [vmem:[%s8275_s14 + $0x8a] sm:$0x1]  ;;  %v5878_v46 = vmul.f32 %v7717_v35, %v10505_v58  ;;  %v5972_v52 = vadd.f32 %v5876_v38, %v5682_v41  ;;  %v6082_v34 = vld [vmem:[#allocation2 + $0x65] sm:$0x1] }
 0x52c   : > { %6050 = vst [vmem:[#allocation2 + $0x45] sm:$0x1] %v5954_v43  ;;  %v7719_v43 = vld [vmem:[%s8275_s14 + $0x8b] sm:$0x1]  ;;  %v5879_v50 = vmul.f32 %v7718_v39, %v10505_v58  ;;  %v5973_v56 = vadd.f32 %v5877_v42, %v5683_v45  ;;  %v6083_v38 = vld [vmem:[#allocation2 + $0x66] sm:$0x1] }
 0x52d   : > { %6051 = vst [vmem:[#allocation2 + $0x46] sm:$0x1] %v5955_v47  ;;  %v7720_v47 = vld [vmem:[%s8275_s14 + $0x8c] sm:$0x1]  ;;  %v5880_v54 = vmul.f32 %v7719_v43, %v10505_v58  ;;  %v5974_v60 = vadd.f32 %v5878_v46, %v5684_v49  ;;  %v6084_v42 = vld [vmem:[#allocation2 + $0x67] sm:$0x1] }
 0x52e   : > { %6052 = vst [vmem:[#allocation2 + $0x47] sm:$0x1] %v5956_v1  ;;  %v7721_v1 = vld [vmem:[%s8275_s14 + $0x8d] sm:$0x1]  ;;  %v5881_v59 = vmul.f32 %v7720_v47, %v10505_v58  ;;  %v5975_v0 = vadd.f32 %v5879_v50, %v5685_v53  ;;  %v6085_v46 = vld [vmem:[#allocation2 + $0x68] sm:$0x1] }
 0x52f   : > { %6053 = vst [vmem:[#allocation2 + $0x48] sm:$0x1] %v5957_v55  ;;  %v7722_v55 = vld [vmem:[%s8275_s14 + $0x8e] sm:$0x1]  ;;  %v5882_v62 = vmul.f32 %v7721_v1, %v10505_v58  ;;  %v5976_v2 = vadd.f32 %v5880_v54, %v5686_v57  ;;  %v6086_v50 = vld [vmem:[#allocation2 + $0x69] sm:$0x1] }
 0x530   : > { %6054 = vst [vmem:[#allocation2 + $0x49] sm:$0x1] %v5958_v11  ;;  %v7723_v11 = vld [vmem:[%s8275_s14 + $0x8f] sm:$0x1]  ;;  %v5883_v4 = vmul.f32 %v7722_v55, %v10505_v58  ;;  %v5977_v9 = vadd.f32 %v5881_v59, %v5687_v61  ;;  %v6087_v54 = vld [vmem:[#allocation2 + $0x6a] sm:$0x1] }
 0x531   : > { %6055 = vst [vmem:[#allocation2 + $0x4a] sm:$0x1] %v5959_v63  ;;  %v7724_v63 = vld [vmem:[%s8282_s25 + $0x2] sm:$0x1]  ;;  %v5884_v7 = vmul.f32 %v7723_v11, %v10505_v58  ;;  %v5978_v51 = vadd.f32 %v5882_v62, %v5688_v3  ;;  %v6088_v59 = vld [vmem:[#allocation2 + $0x6b] sm:$0x1] }
 0x532   : > { %6056 = vst [vmem:[#allocation2 + $0x4b] sm:$0x1] %v5960_v5  ;;  %v7725_v5 = vld [vmem:[%s8282_s25 + $0x3] sm:$0x1]  ;;  %v6141_v12 = vmul.f32 %v7724_v63, %v10505_v58  ;;  %v5979_v17 = vadd.f32 %v5883_v4, %v5689_v6  ;;  %v6089_v62 = vld [vmem:[#allocation2 + $0x6c] sm:$0x1] }
 0x533   : > { %6057 = vst [vmem:[#allocation2 + $0x4c] sm:$0x1] %v5961_v8  ;;  %v7726_v8 = vld [vmem:[%s8282_s25 + $0x4] sm:$0x1]  ;;  %v6142_v15 = vmul.f32 %v7725_v5, %v10505_v58  ;;  %v5980_v21 = vadd.f32 %v5884_v7, %v5690_v10  ;;  %v6090_v4 = vld [vmem:[#allocation2 + $0x6d] sm:$0x1] }
 0x534   : > { %6058 = vst [vmem:[#allocation2 + $0x4d] sm:$0x1] %v5962_v13  ;;  %v7727_v13 = vld [vmem:[%s8282_s25 + $0x5] sm:$0x1]  ;;  %v6143_v19 = vmul.f32 %v7726_v8, %v10505_v58  ;;  %v6173_v25 = vadd.f32 %v6141_v12, %v6077_v14  ;;  %v6091_v7 = vld [vmem:[#allocation2 + $0x6e] sm:$0x1] }
 0x535   : > { %6059 = vst [vmem:[#allocation2 + $0x4e] sm:$0x1] %v5963_v16  ;;  %v7728_v16 = vld [vmem:[%s8282_s25 + $0x6] sm:$0x1]  ;;  %v6144_v23 = vmul.f32 %v7727_v13, %v10505_v58  ;;  %v6174_v29 = vadd.f32 %v6142_v15, %v6078_v18  ;;  %v6092_v12 = vld [vmem:[#allocation2 + $0x6f] sm:$0x1] }
 0x536   : > { %6060 = vst [vmem:[#allocation2 + $0x4f] sm:$0x1] %v5964_v20  ;;  %v7729_v20 = vld [vmem:[%s8282_s25 + $0x7] sm:$0x1]  ;;  %v6145_v27 = vmul.f32 %v7728_v16, %v10505_v58  ;;  %v6175_v33 = vadd.f32 %v6143_v19, %v6079_v22  ;;  %v6093_v15 = vld [vmem:[#allocation2 + $0x70] sm:$0x1] }
 0x537   : > { %6061 = vst [vmem:[#allocation2 + $0x50] sm:$0x1] %v5965_v24  ;;  %v7730_v24 = vld [vmem:[%s8282_s25 + $0x8] sm:$0x1]  ;;  %v6146_v31 = vmul.f32 %v7729_v20, %v10505_v58  ;;  %v6176_v37 = vadd.f32 %v6144_v23, %v6080_v26  ;;  %v6094_v19 = vld [vmem:[#allocation2 + $0x71] sm:$0x1] }
 0x538   : > { %6062 = vst [vmem:[#allocation2 + $0x51] sm:$0x1] %v5966_v28  ;;  %v7731_v28 = vld [vmem:[%s8282_s25 + $0x9] sm:$0x1]  ;;  %v6147_v35 = vmul.f32 %v7730_v24, %v10505_v58  ;;  %v6177_v41 = vadd.f32 %v6145_v27, %v6081_v30  ;;  %v6095_v23 = vld [vmem:[#allocation2 + $0x72] sm:$0x1] }
 0x539   : > { %6063 = vst [vmem:[#allocation2 + $0x52] sm:$0x1] %v5967_v32  ;;  %v7732_v32 = vld [vmem:[%s8282_s25 + $0xa] sm:$0x1]  ;;  %v6148_v39 = vmul.f32 %v7731_v28, %v10505_v58  ;;  %v6178_v45 = vadd.f32 %v6146_v31, %v6082_v34  ;;  %v6096_v27 = vld [vmem:[#allocation2 + $0x73] sm:$0x1] }
 0x53a   : > { %6064 = vst [vmem:[#allocation2 + $0x53] sm:$0x1] %v5968_v36  ;;  %v7733_v36 = vld [vmem:[%s8282_s25 + $0xb] sm:$0x1]  ;;  %v6149_v43 = vmul.f32 %v7732_v32, %v10505_v58  ;;  %v6179_v49 = vadd.f32 %v6147_v35, %v6083_v38  ;;  %v6097_v31 = vld [vmem:[#allocation2 + $0x74] sm:$0x1] }
 0x53b   : > { %6065 = vst [vmem:[#allocation2 + $0x54] sm:$0x1] %v5969_v40  ;;  %v7734_v40 = vld [vmem:[%s8282_s25 + $0xc] sm:$0x1]  ;;  %v6150_v47 = vmul.f32 %v7733_v36, %v10505_v58  ;;  %v6180_v53 = vadd.f32 %v6148_v39, %v6084_v42  ;;  %v6098_v35 = vld [vmem:[#allocation2 + $0x75] sm:$0x1] }
 0x53c   : > { %6066 = vst [vmem:[#allocation2 + $0x55] sm:$0x1] %v5970_v44  ;;  %v7735_v44 = vld [vmem:[%s8282_s25 + $0xd] sm:$0x1]  ;;  %v6151_v1 = vmul.f32 %v7734_v40, %v10505_v58  ;;  %v6181_v57 = vadd.f32 %v6149_v43, %v6085_v46  ;;  %v6099_v39 = vld [vmem:[#allocation2 + $0x76] sm:$0x1] }
 0x53d   : > { %6067 = vst [vmem:[#allocation2 + $0x56] sm:$0x1] %v5971_v48  ;;  %v7736_v48 = vld [vmem:[%s8282_s25 + $0xe] sm:$0x1]  ;;  %v6152_v55 = vmul.f32 %v7735_v44, %v10505_v58  ;;  %v6182_v61 = vadd.f32 %v6150_v47, %v6086_v50  ;;  %v6100_v43 = vld [vmem:[#allocation2 + $0x77] sm:$0x1] }
 0x53e   : > { %6068 = vst [vmem:[#allocation2 + $0x57] sm:$0x1] %v5972_v52  ;;  %v7737_v52 = vld [vmem:[%s8282_s25 + $0xf] sm:$0x1]  ;;  %v6153_v11 = vmul.f32 %v7736_v48, %v10505_v58  ;;  %v6183_v3 = vadd.f32 %v6151_v1, %v6087_v54  ;;  %v6101_v47 = vld [vmem:[#allocation2 + $0x78] sm:$0x1] }
 0x53f   : > { %6069 = vst [vmem:[#allocation2 + $0x58] sm:$0x1] %v5973_v56  ;;  %v7738_v56 = vld [vmem:[%s8282_s25 + $0x10] sm:$0x1]  ;;  %v6154_v63 = vmul.f32 %v7737_v52, %v10505_v58  ;;  %v6184_v6 = vadd.f32 %v6152_v55, %v6088_v59  ;;  %v6102_v1 = vld [vmem:[#allocation2 + $0x79] sm:$0x1] }
 0x540   : > { %6070 = vst [vmem:[#allocation2 + $0x59] sm:$0x1] %v5974_v60  ;;  %v7739_v60 = vld [vmem:[%s8282_s25 + $0x11] sm:$0x1]  ;;  %v6155_v5 = vmul.f32 %v7738_v56, %v10505_v58  ;;  %v6185_v10 = vadd.f32 %v6153_v11, %v6089_v62  ;;  %v6103_v55 = vld [vmem:[#allocation2 + $0x7a] sm:$0x1] }
 0x541   : > { %6071 = vst [vmem:[#allocation2 + $0x5a] sm:$0x1] %v5975_v0  ;;  %v7740_v0 = vld [vmem:[%s8282_s25 + $0x14] sm:$0x1]  ;;  %v6156_v8 = vmul.f32 %v7739_v60, %v10505_v58  ;;  %v6186_v14 = vadd.f32 %v6154_v63, %v6090_v4  ;;  %v6104_v11 = vld [vmem:[#allocation2 + $0x7b] sm:$0x1] }
 0x542   : > { %6072 = vst [vmem:[#allocation2 + $0x5b] sm:$0x1] %v5976_v2  ;;  %v7741_v2 = vld [vmem:[%s8282_s25 + $0x15] sm:$0x1]  ;;  %v6157_v13 = vmul.f32 %v7740_v0, %v10505_v58  ;;  %v6187_v18 = vadd.f32 %v6155_v5, %v6091_v7  ;;  %v6105_v63 = vld [vmem:[#allocation2 + $0x7c] sm:$0x1] }
 0x543   : > { %6073 = vst [vmem:[#allocation2 + $0x5c] sm:$0x1] %v5977_v9  ;;  %v7742_v9 = vld [vmem:[%s8282_s25 + $0x16] sm:$0x1]  ;;  %v6158_v16 = vmul.f32 %v7741_v2, %v10505_v58  ;;  %v6188_v22 = vadd.f32 %v6156_v8, %v6092_v12  ;;  %v6106_v4 = vld [vmem:[#allocation2 + $0x7d] sm:$0x1] }
 0x544   : > { %6074 = vst [vmem:[#allocation2 + $0x5d] sm:$0x1] %v5978_v51  ;;  %v7743_v51 = vld [vmem:[%s8282_s25 + $0x17] sm:$0x1]  ;;  %v6159_v20 = vmul.f32 %v7742_v9, %v10505_v58  ;;  %v6189_v26 = vadd.f32 %v6157_v13, %v6093_v15  ;;  %v6108_v9 = vld [vmem:[#allocation2 + $0x7f] sm:$0x1] }
 0x545   : > { %6075 = vst [vmem:[#allocation2 + $0x5e] sm:$0x1] %v5979_v17  ;;  %v7744_v17 = vld [vmem:[%s8282_s25 + $0x18] sm:$0x1]  ;;  %v6160_v24 = vmul.f32 %v7743_v51, %v10505_v58  ;;  %v6190_v30 = vadd.f32 %v6158_v16, %v6094_v19  ;;  %v6237_v12 = vld [vmem:[#allocation2] sm:$0x1] }
 0x546   : > { %6076 = vst [vmem:[#allocation2 + $0x5f] sm:$0x1] %v5980_v21  ;;  %v7745_v21 = vld [vmem:[%s8282_s25 + $0x19] sm:$0x1]  ;;  %v6161_v28 = vmul.f32 %v7744_v17, %v10505_v58  ;;  %v6191_v34 = vadd.f32 %v6159_v20, %v6095_v23  ;;  %v6238_v51 = vld [vmem:[#allocation2 + $0x1] sm:$0x1] }
 0x547   : > { %6205 = vst [vmem:[#allocation2 + $0x60] sm:$0x1] %v6173_v25  ;;  %v7746_v25 = vld [vmem:[%s8282_s25 + $0x1a] sm:$0x1]  ;;  %v6162_v32 = vmul.f32 %v7745_v21, %v10505_v58  ;;  %v6192_v38 = vadd.f32 %v6160_v24, %v6096_v27  ;;  %v6239_v15 = vld [vmem:[#allocation2 + $0x2] sm:$0x1] }
 0x548   : > { %6206 = vst [vmem:[#allocation2 + $0x61] sm:$0x1] %v6174_v29  ;;  %v7747_v29 = vld [vmem:[%s8282_s25 + $0x1b] sm:$0x1]  ;;  %v6163_v36 = vmul.f32 %v7746_v25, %v10505_v58  ;;  %v6193_v42 = vadd.f32 %v6161_v28, %v6097_v31  ;;  %v6365_v16 = vmax.f32 %v6237_v12, 0.0  ;;  %s6637_s14 = sshll.u32 %s6634_s6, 4  ;;  %s6638_s14 = int_to_ptr.hbm [resolvable:$true] %s6637_s14 }
 0x549   : > { %6207 = vst [vmem:[#allocation2 + $0x62] sm:$0x1] %v6175_v33  ;;  %v7748_v33 = vld [vmem:[%s8282_s25 + $0x1c] sm:$0x1]  ;;  %v6164_v40 = vmul.f32 %v7747_v29, %v10505_v58  ;;  %v6194_v46 = vadd.f32 %v6162_v32, %v6098_v35  ;;  %v6240_v17 = vld [vmem:[#allocation2 + $0x3] sm:$0x1] }
 0x54a   : > { %6208 = vst [vmem:[#allocation2 + $0x63] sm:$0x1] %v6176_v37  ;;  %v7749_v37 = vld [vmem:[%s8282_s25 + $0x1d] sm:$0x1]  ;;  %v6165_v44 = vmul.f32 %v7748_v33, %v10505_v58  ;;  %v6195_v50 = vadd.f32 %v6163_v36, %v6099_v39  ;;  %v6241_v19 = vld [vmem:[#allocation2 + $0x4] sm:$0x1] }
 0x54b   : > { %6209 = vst [vmem:[#allocation2 + $0x64] sm:$0x1] %v6177_v41  ;;  %v7750_v41 = vld [vmem:[%s8282_s25 + $0x1e] sm:$0x1]  ;;  %v6166_v48 = vmul.f32 %v7749_v37, %v10505_v58  ;;  %v6196_v54 = vadd.f32 %v6164_v40, %v6100_v43  ;;  %v6242_v20 = vld [vmem:[#allocation2 + $0x5] sm:$0x1] }
 0x54c   : > { %6210 = vst [vmem:[#allocation2 + $0x65] sm:$0x1] %v6178_v45  ;;  %v7751_v45 = vld [vmem:[%s8282_s25 + $0x1f] sm:$0x1]  ;;  %v6167_v52 = vmul.f32 %v7750_v41, %v10505_v58  ;;  %v6197_v59 = vadd.f32 %v6165_v44, %v6101_v47  ;;  %v6368_v21 = vmax.f32 %v6240_v17, 0.0  ;;  %v6369_v23 = vmax.f32 %v6241_v19, 0.0 }
 0x54d   : > { %6211 = vst [vmem:[#allocation2 + $0x66] sm:$0x1] %v6179_v49  ;;  %v7752_v49 = vld [vmem:[%s8282_s25 + $0x20] sm:$0x1]  ;;  %v6168_v56 = vmul.f32 %v7751_v45, %v10505_v58  ;;  %v6198_v62 = vadd.f32 %v6166_v48, %v6102_v1  ;;  %v6244_v24 = vld [vmem:[#allocation2 + $0x7] sm:$0x1] }
 0x54e   : > { %6212 = vst [vmem:[#allocation2 + $0x67] sm:$0x1] %v6180_v53  ;;  %v7753_v53 = vld [vmem:[%s8282_s25 + $0x21] sm:$0x1]  ;;  %v6169_v60 = vmul.f32 %v7752_v49, %v10505_v58  ;;  %v6370_v25 = vmax.f32 %v6242_v20, 0.0  ;;  %v6372_v29 = vmax.f32 %v6244_v24, 0.0 }
 0x54f   : > { %6213 = vst [vmem:[#allocation2 + $0x68] sm:$0x1] %v6181_v57  ;;  %v7754_v57 = vld [vmem:[%s8282_s25 + $0x22] sm:$0x1]  ;;  %v6170_v0 = vmul.f32 %v7753_v53, %v10505_v58  ;;  %v6200_v2 = vadd.f32 %v6168_v56, %v6104_v11  ;;  %v6246_v28 = vld [vmem:[#allocation2 + $0x9] sm:$0x1] }
 0x550   : > { %6214 = vst [vmem:[#allocation2 + $0x69] sm:$0x1] %v6182_v61  ;;  %v7755_v61 = vld [vmem:[%s8282_s25 + $0x23] sm:$0x1]  ;;  %v6171_v5 = vmul.f32 %v7754_v57, %v10505_v58  ;;  %v6201_v8 = vadd.f32 %v6169_v60, %v6105_v63  ;;  %v6248_v32 = vld [vmem:[#allocation2 + $0xb] sm:$0x1] }
 0x551   : > { %6215 = vst [vmem:[#allocation2 + $0x6a] sm:$0x1] %v6183_v3  ;;  %v6199_v3 = vadd.f32 %v6167_v52, %v6103_v55  ;;  %v6172_v7 = vmul.f32 %v7755_v61, %v10505_v58  ;;  %v6367_v58 = vmax.f32 %v6239_v15, 0.0  ;;  %v6374_v33 = vmax.f32 %v6246_v28, 0.0  ;;  %v6250_v36 = vld [vmem:[#allocation2 + $0xd] sm:$0x1] }
 0x552   : > { %6216 = vst [vmem:[#allocation2 + $0x6b] sm:$0x1] %v6184_v6  ;;  %v6107_v6 = vld [vmem:[#allocation2 + $0x7e] sm:$0x1]  ;;  %v6376_v37 = vmax.f32 %v6248_v32, 0.0  ;;  %v6378_v41 = vmax.f32 %v6250_v36, 0.0 }
 0x553   : > { %6217 = vst [vmem:[#allocation2 + $0x6c] sm:$0x1] %v6185_v10  ;;  %v6202_v10 = vadd.f32 %v6170_v0, %v6106_v4  ;;  %v6203_v13 = vadd.f32 %v6171_v5, %v6107_v6  ;;  %v6252_v40 = vld [vmem:[#allocation2 + $0xf] sm:$0x1]  ;;  %v6254_v44 = vld [vmem:[#allocation2 + $0x11] sm:$0x1] }
 0x554   : > { %6218 = vst [vmem:[#allocation2 + $0x6d] sm:$0x1] %v6186_v14  ;;  %v6204_v14 = vadd.f32 %v6172_v7, %v6108_v9  ;;  %v6380_v45 = vmax.f32 %v6252_v40, 0.0  ;;  %v6256_v48 = vld [vmem:[#allocation2 + $0x13] sm:$0x1]  ;;  %v6382_v49 = vmax.f32 %v6254_v44, 0.0 }
 0x555   : > { %6219 = vst [vmem:[#allocation2 + $0x6e] sm:$0x1] %v6187_v18  ;;  %v6366_v18 = vmax.f32 %v6238_v51, 0.0  ;;  %v6258_v52 = vld [vmem:[#allocation2 + $0x15] sm:$0x1]  ;;  %v6384_v53 = vmax.f32 %v6256_v48, 0.0 }
 0x556   : > { %6220 = vst [vmem:[#allocation2 + $0x6f] sm:$0x1] %v6188_v22  ;;  %v6243_v22 = vld [vmem:[#allocation2 + $0x6] sm:$0x1]  ;;  %v6260_v56 = vld [vmem:[#allocation2 + $0x17] sm:$0x1] }
 0x557   : > { %6221 = vst [vmem:[#allocation2 + $0x70] sm:$0x1] %v6189_v26  ;;  %v6245_v26 = vld [vmem:[#allocation2 + $0x8] sm:$0x1]  ;;  %v6371_v27 = vmax.f32 %v6243_v22, 0.0  ;;  %v6386_v57 = vmax.f32 %v6258_v52, 0.0 }
 0x558   : > { %6222 = vst [vmem:[#allocation2 + $0x71] sm:$0x1] %v6190_v30  ;;  %v6247_v30 = vld [vmem:[#allocation2 + $0xa] sm:$0x1]  ;;  %v6373_v31 = vmax.f32 %v6245_v26, 0.0  ;;  %v6388_v61 = vmax.f32 %v6260_v56, 0.0 }
 0x559   : > { %6223 = vst [vmem:[#allocation2 + $0x72] sm:$0x1] %v6191_v34  ;;  %v6249_v34 = vld [vmem:[#allocation2 + $0xc] sm:$0x1]  ;;  %v6375_v35 = vmax.f32 %v6247_v30, 0.0  ;;  %s7966_s30 = sshra.s32 %s6638_s14, 4  ;;  %s7967_s30 = int_to_ptr.hbm [resolvable:$true] %s7966_s30 }
 0x55a   : > { %6224 = vst [vmem:[#allocation2 + $0x73] sm:$0x1] %v6192_v38  ;;  %v6251_v38 = vld [vmem:[#allocation2 + $0xe] sm:$0x1]  ;;  %v6377_v39 = vmax.f32 %v6249_v34, 0.0  ;;  %s7968_s17 = scalar_lea.hbm %s7967_s30, 128  ;;  %p7973_p10 = scmp.lt.s32.totalorder %s7967_s30, %s10947_s4 }
 0x55b   : > { %6225 = vst [vmem:[#allocation2 + $0x74] sm:$0x1] %v6193_v42  ;;  %v6253_v42 = vld [vmem:[#allocation2 + $0x10] sm:$0x1]  ;;  %v6379_v43 = vmax.f32 %v6251_v38, 0.0  ;;  %p7969_p5 = scmp.ne.s32.totalorder %s7967_s30, %s7968_s17  ;;  %p7974_p3 = scmp.lt.s32.totalorder %s7972_s7, %s7968_s17 }
 0x55c   : > { %6226 = vst [vmem:[#allocation2 + $0x75] sm:$0x1] %v6194_v46  ;;  %v6255_v46 = vld [vmem:[#allocation2 + $0x12] sm:$0x1]  ;;  %v6381_v47 = vmax.f32 %v6253_v42, 0.0 }
 0x55d   : > { %6227 = vst [vmem:[#allocation2 + $0x76] sm:$0x1] %v6195_v50  ;;  %v6257_v50 = vld [vmem:[#allocation2 + $0x14] sm:$0x1]  ;;  %v6383_v1 = vmax.f32 %v6255_v46, 0.0  ;;  %p7970_p13 = pnand %p7969_p5, %p8214_p0  ;;  %p7975_p4 = por %p7974_p3, %p7973_p10 }
 0x55e   : > { %6228 = vst [vmem:[#allocation2 + $0x77] sm:$0x1] %v6196_v54  ;;  %v6259_v54 = vld [vmem:[#allocation2 + $0x16] sm:$0x1]  ;;  %v6385_v55 = vmax.f32 %v6257_v50, 0.0 }
 0x55f   : > { %6229 = vst [vmem:[#allocation2 + $0x78] sm:$0x1] %v6197_v59  ;;  %v6261_v59 = vld [vmem:[#allocation2 + $0x18] sm:$0x1]  ;;  %v6387_v11 = vmax.f32 %v6259_v54, 0.0  ;;  %p7971_p9 = pneg %p7970_p13 }
 0x560   : > { %6230 = vst [vmem:[#allocation2 + $0x79] sm:$0x1] %v6198_v62  ;;  %v6262_v60 = vld [vmem:[#allocation2 + $0x19] sm:$0x1]  ;;  %v6263_v62 = vld [vmem:[#allocation2 + $0x1a] sm:$0x1] }
 0x561   : > { %6231 = vst [vmem:[#allocation2 + $0x7a] sm:$0x1] %v6199_v3  ;;  %v6389_v63 = vmax.f32 %v6261_v59, 0.0  ;;  %v6264_v0 = vld [vmem:[#allocation2 + $0x1b] sm:$0x1]  ;;  %v6390_v3 = vmax.f32 %v6262_v60, 0.0  ;;  %p7976_p7 = pnand %p7975_p4, %p7971_p9 }
 0x562   : > { %6232 = vst [vmem:[#allocation2 + $0x7b] sm:$0x1] %v6200_v2  ;;  %v6265_v4 = vld [vmem:[#allocation2 + $0x1c] sm:$0x1]  ;;  %v6391_v5 = vmax.f32 %v6263_v62, 0.0  ;;  %v6392_v6 = vmax.f32 %v6264_v0, 0.0 }
 0x563   : > { %6233 = vst [vmem:[#allocation2 + $0x7c] sm:$0x1] %v6201_v8  ;;  %v6266_v2 = vld [vmem:[#allocation2 + $0x1d] sm:$0x1]  ;;  %v6267_v7 = vld [vmem:[#allocation2 + $0x1e] sm:$0x1] }
 0x564   : > { %6234 = vst [vmem:[#allocation2 + $0x7d] sm:$0x1] %v6202_v10  ;;  %v6393_v8 = vmax.f32 %v6265_v4, 0.0  ;;  %v6268_v9 = vld [vmem:[#allocation2 + $0x1f] sm:$0x1]  ;;  %v6394_v10 = vmax.f32 %v6266_v2, 0.0 }
 0x565   : > { %6235 = vst [vmem:[#allocation2 + $0x7e] sm:$0x1] %v6203_v13  ;;  %v6269_v12 = vld [vmem:[#allocation2 + $0x20] sm:$0x1]  ;;  %v6395_v13 = vmax.f32 %v6267_v7, 0.0 }
 0x566   : > { %6236 = vst [vmem:[#allocation2 + $0x7f] sm:$0x1] %v6204_v14  ;;  %v6270_v51 = vld [vmem:[#allocation2 + $0x21] sm:$0x1]  ;;  %v6396_v14 = vmax.f32 %v6268_v9, 0.0 }
 0x567   : > { %6493 = vst [vmem:[%s10765_s13] sm:$0x1] %v6365_v16  ;;  %v6271_v15 = vld [vmem:[#allocation2 + $0x22] sm:$0x1]  ;;  %v6397_v16 = vmax.f32 %v6269_v12, 0.0  ;;  %v6272_v17 = vld [vmem:[#allocation2 + $0x23] sm:$0x1] }
 0x568   : > { %6494 = vst [vmem:[%s10765_s13 + $0x1] sm:$0x1] %v6366_v18  ;;  %v6398_v18 = vmax.f32 %v6270_v51, 0.0  ;;  %v6273_v19 = vld [vmem:[#allocation2 + $0x24] sm:$0x1] }
 0x569   : > { %6495 = vst [vmem:[%s10765_s13 + $0x2] sm:$0x1] %v6367_v58  ;;  %v6399_v58 = vmax.f32 %v6271_v15, 0.0  ;;  %v6274_v20 = vld [vmem:[#allocation2 + $0x25] sm:$0x1] }
 0x56a   : > { %6496 = vst [vmem:[%s10765_s13 + $0x3] sm:$0x1] %v6368_v21  ;;  %v6400_v21 = vmax.f32 %v6272_v17, 0.0  ;;  %v6275_v22 = vld [vmem:[#allocation2 + $0x26] sm:$0x1] }
 0x56b   : > { %6497 = vst [vmem:[%s10765_s13 + $0x4] sm:$0x1] %v6369_v23  ;;  %v6401_v23 = vmax.f32 %v6273_v19, 0.0  ;;  %v6276_v24 = vld [vmem:[#allocation2 + $0x27] sm:$0x1] }
 0x56c   : > { %6498 = vst [vmem:[%s10765_s13 + $0x5] sm:$0x1] %v6370_v25  ;;  %v6402_v25 = vmax.f32 %v6274_v20, 0.0  ;;  %v6277_v26 = vld [vmem:[#allocation2 + $0x28] sm:$0x1] }
 0x56d   : > { %6499 = vst [vmem:[%s10765_s13 + $0x6] sm:$0x1] %v6371_v27  ;;  %v6403_v27 = vmax.f32 %v6275_v22, 0.0  ;;  %v6278_v28 = vld [vmem:[#allocation2 + $0x29] sm:$0x1] }
 0x56e   : > { %6500 = vst [vmem:[%s10765_s13 + $0x7] sm:$0x1] %v6372_v29  ;;  %v6404_v29 = vmax.f32 %v6276_v24, 0.0  ;;  %v6279_v30 = vld [vmem:[#allocation2 + $0x2a] sm:$0x1] }
 0x56f   : > { %6501 = vst [vmem:[%s10765_s13 + $0x8] sm:$0x1] %v6373_v31  ;;  %v6405_v31 = vmax.f32 %v6277_v26, 0.0  ;;  %v6280_v32 = vld [vmem:[#allocation2 + $0x2b] sm:$0x1] }
 0x570   : > { %6502 = vst [vmem:[%s10765_s13 + $0x9] sm:$0x1] %v6374_v33  ;;  %v6406_v33 = vmax.f32 %v6278_v28, 0.0  ;;  %v6281_v34 = vld [vmem:[#allocation2 + $0x2c] sm:$0x1] }
 0x571   : > { %6503 = vst [vmem:[%s10765_s13 + $0xa] sm:$0x1] %v6375_v35  ;;  %v6407_v35 = vmax.f32 %v6279_v30, 0.0  ;;  %v6282_v36 = vld [vmem:[#allocation2 + $0x2d] sm:$0x1] }
 0x572   : > { %6504 = vst [vmem:[%s10765_s13 + $0xb] sm:$0x1] %v6376_v37  ;;  %v6408_v37 = vmax.f32 %v6280_v32, 0.0  ;;  %v6283_v38 = vld [vmem:[#allocation2 + $0x2e] sm:$0x1] }
 0x573   : > { %6505 = vst [vmem:[%s10765_s13 + $0xc] sm:$0x1] %v6377_v39  ;;  %v6409_v39 = vmax.f32 %v6281_v34, 0.0  ;;  %v6284_v40 = vld [vmem:[#allocation2 + $0x2f] sm:$0x1] }
 0x574   : > { %6506 = vst [vmem:[%s10765_s13 + $0xd] sm:$0x1] %v6378_v41  ;;  %v6410_v41 = vmax.f32 %v6282_v36, 0.0  ;;  %v6285_v42 = vld [vmem:[#allocation2 + $0x30] sm:$0x1] }
 0x575   : > { %6507 = vst [vmem:[%s10765_s13 + $0xe] sm:$0x1] %v6379_v43  ;;  %v6411_v43 = vmax.f32 %v6283_v38, 0.0  ;;  %v6286_v44 = vld [vmem:[#allocation2 + $0x31] sm:$0x1] }
 0x576   : > { %6508 = vst [vmem:[%s10765_s13 + $0xf] sm:$0x1] %v6380_v45  ;;  %v6412_v45 = vmax.f32 %v6284_v40, 0.0  ;;  %v6287_v46 = vld [vmem:[#allocation2 + $0x32] sm:$0x1] }
 0x577   : > { %6509 = vst [vmem:[%s10765_s13 + $0x10] sm:$0x1] %v6381_v47  ;;  %v6413_v47 = vmax.f32 %v6285_v42, 0.0  ;;  %v6288_v48 = vld [vmem:[#allocation2 + $0x33] sm:$0x1] }
 0x578   : > { %6510 = vst [vmem:[%s10765_s13 + $0x11] sm:$0x1] %v6382_v49  ;;  %v6414_v49 = vmax.f32 %v6286_v44, 0.0  ;;  %v6289_v50 = vld [vmem:[#allocation2 + $0x34] sm:$0x1] }
 0x579   : > { %6511 = vst [vmem:[%s10765_s13 + $0x12] sm:$0x1] %v6383_v1  ;;  %v6415_v1 = vmax.f32 %v6287_v46, 0.0  ;;  %v6290_v52 = vld [vmem:[#allocation2 + $0x35] sm:$0x1] }
 0x57a   : > { %6512 = vst [vmem:[%s10765_s13 + $0x13] sm:$0x1] %v6384_v53  ;;  %v6416_v53 = vmax.f32 %v6288_v48, 0.0  ;;  %v6291_v54 = vld [vmem:[#allocation2 + $0x36] sm:$0x1] }
 0x57b   : > { %6513 = vst [vmem:[%s10765_s13 + $0x14] sm:$0x1] %v6385_v55  ;;  %v6417_v55 = vmax.f32 %v6289_v50, 0.0  ;;  %v6292_v56 = vld [vmem:[#allocation2 + $0x37] sm:$0x1] }
 0x57c   : > { %6514 = vst [vmem:[%s10765_s13 + $0x15] sm:$0x1] %v6386_v57  ;;  %v6418_v57 = vmax.f32 %v6290_v52, 0.0  ;;  %v6293_v59 = vld [vmem:[#allocation2 + $0x38] sm:$0x1] }
 0x57d   : > { %6515 = vst [vmem:[%s10765_s13 + $0x16] sm:$0x1] %v6387_v11  ;;  %v6419_v11 = vmax.f32 %v6291_v54, 0.0  ;;  %v6294_v60 = vld [vmem:[#allocation2 + $0x39] sm:$0x1] }
 0x57e   : > { %6516 = vst [vmem:[%s10765_s13 + $0x17] sm:$0x1] %v6388_v61  ;;  %v6420_v61 = vmax.f32 %v6292_v56, 0.0  ;;  %v6295_v62 = vld [vmem:[#allocation2 + $0x3a] sm:$0x1] }
 0x57f   : > { %6517 = vst [vmem:[%s10765_s13 + $0x18] sm:$0x1] %v6389_v63  ;;  %v6421_v63 = vmax.f32 %v6293_v59, 0.0  ;;  %v6296_v0 = vld [vmem:[#allocation2 + $0x3b] sm:$0x1] }
 0x580   : > { %6518 = vst [vmem:[%s10765_s13 + $0x19] sm:$0x1] %v6390_v3  ;;  %v6422_v3 = vmax.f32 %v6294_v60, 0.0  ;;  %v6297_v4 = vld [vmem:[#allocation2 + $0x3c] sm:$0x1] }
 0x581   : > { %6519 = vst [vmem:[%s10765_s13 + $0x1a] sm:$0x1] %v6391_v5  ;;  %v6423_v5 = vmax.f32 %v6295_v62, 0.0  ;;  %v6298_v2 = vld [vmem:[#allocation2 + $0x3d] sm:$0x1] }
 0x582   : > { %6520 = vst [vmem:[%s10765_s13 + $0x1b] sm:$0x1] %v6392_v6  ;;  %v6424_v6 = vmax.f32 %v6296_v0, 0.0  ;;  %v6299_v7 = vld [vmem:[#allocation2 + $0x3e] sm:$0x1] }
 0x583   : > { %6521 = vst [vmem:[%s10765_s13 + $0x1c] sm:$0x1] %v6393_v8  ;;  %v6425_v8 = vmax.f32 %v6297_v4, 0.0  ;;  %v6300_v9 = vld [vmem:[#allocation2 + $0x3f] sm:$0x1] }
 0x584   : > { %6522 = vst [vmem:[%s10765_s13 + $0x1d] sm:$0x1] %v6394_v10  ;;  %v6426_v10 = vmax.f32 %v6298_v2, 0.0  ;;  %v6301_v12 = vld [vmem:[#allocation2 + $0x40] sm:$0x1] }
 0x585   : > { %6523 = vst [vmem:[%s10765_s13 + $0x1e] sm:$0x1] %v6395_v13  ;;  %v6427_v13 = vmax.f32 %v6299_v7, 0.0  ;;  %v6302_v51 = vld [vmem:[#allocation2 + $0x41] sm:$0x1] }
 0x586   : > { %6524 = vst [vmem:[%s10765_s13 + $0x1f] sm:$0x1] %v6396_v14  ;;  %v6428_v14 = vmax.f32 %v6300_v9, 0.0  ;;  %v6303_v15 = vld [vmem:[#allocation2 + $0x42] sm:$0x1] }
 0x587   : > { %6525 = vst [vmem:[%s10765_s13 + $0x20] sm:$0x1] %v6397_v16  ;;  %v6429_v16 = vmax.f32 %v6301_v12, 0.0  ;;  %v6304_v17 = vld [vmem:[#allocation2 + $0x43] sm:$0x1] }
 0x588   : > { %6526 = vst [vmem:[%s10765_s13 + $0x21] sm:$0x1] %v6398_v18  ;;  %v6430_v18 = vmax.f32 %v6302_v51, 0.0  ;;  %v6305_v19 = vld [vmem:[#allocation2 + $0x44] sm:$0x1] }
 0x589   : > { %6527 = vst [vmem:[%s10765_s13 + $0x22] sm:$0x1] %v6399_v58  ;;  %v6431_v58 = vmax.f32 %v6303_v15, 0.0  ;;  %v6306_v20 = vld [vmem:[#allocation2 + $0x45] sm:$0x1] }
 0x58a   : > { %6528 = vst [vmem:[%s10765_s13 + $0x23] sm:$0x1] %v6400_v21  ;;  %v6432_v21 = vmax.f32 %v6304_v17, 0.0  ;;  %v6307_v22 = vld [vmem:[#allocation2 + $0x46] sm:$0x1] }
 0x58b   : > { %6529 = vst [vmem:[%s10765_s13 + $0x24] sm:$0x1] %v6401_v23  ;;  %v6433_v23 = vmax.f32 %v6305_v19, 0.0  ;;  %v6308_v24 = vld [vmem:[#allocation2 + $0x47] sm:$0x1] }
 0x58c   : > { %6530 = vst [vmem:[%s10765_s13 + $0x25] sm:$0x1] %v6402_v25  ;;  %v6434_v25 = vmax.f32 %v6306_v20, 0.0  ;;  %v6309_v26 = vld [vmem:[#allocation2 + $0x48] sm:$0x1] }
 0x58d   : > { %6531 = vst [vmem:[%s10765_s13 + $0x26] sm:$0x1] %v6403_v27  ;;  %v6435_v27 = vmax.f32 %v6307_v22, 0.0  ;;  %v6310_v28 = vld [vmem:[#allocation2 + $0x49] sm:$0x1] }
 0x58e   : > { %6532 = vst [vmem:[%s10765_s13 + $0x27] sm:$0x1] %v6404_v29  ;;  %v6436_v29 = vmax.f32 %v6308_v24, 0.0  ;;  %v6311_v30 = vld [vmem:[#allocation2 + $0x4a] sm:$0x1] }
 0x58f   : > { %6533 = vst [vmem:[%s10765_s13 + $0x28] sm:$0x1] %v6405_v31  ;;  %v6437_v31 = vmax.f32 %v6309_v26, 0.0  ;;  %v6312_v32 = vld [vmem:[#allocation2 + $0x4b] sm:$0x1] }
 0x590   : > { %6534 = vst [vmem:[%s10765_s13 + $0x29] sm:$0x1] %v6406_v33  ;;  %v6438_v33 = vmax.f32 %v6310_v28, 0.0  ;;  %v6313_v34 = vld [vmem:[#allocation2 + $0x4c] sm:$0x1] }
 0x591   : > { %6535 = vst [vmem:[%s10765_s13 + $0x2a] sm:$0x1] %v6407_v35  ;;  %v6439_v35 = vmax.f32 %v6311_v30, 0.0  ;;  %v6314_v36 = vld [vmem:[#allocation2 + $0x4d] sm:$0x1] }
 0x592   : > { %6536 = vst [vmem:[%s10765_s13 + $0x2b] sm:$0x1] %v6408_v37  ;;  %v6440_v37 = vmax.f32 %v6312_v32, 0.0  ;;  %v6315_v38 = vld [vmem:[#allocation2 + $0x4e] sm:$0x1] }
 0x593   : > { %6537 = vst [vmem:[%s10765_s13 + $0x2c] sm:$0x1] %v6409_v39  ;;  %v6441_v39 = vmax.f32 %v6313_v34, 0.0  ;;  %v6316_v40 = vld [vmem:[#allocation2 + $0x4f] sm:$0x1] }
 0x594   : > { %6538 = vst [vmem:[%s10765_s13 + $0x2d] sm:$0x1] %v6410_v41  ;;  %v6442_v41 = vmax.f32 %v6314_v36, 0.0  ;;  %v6317_v42 = vld [vmem:[#allocation2 + $0x50] sm:$0x1] }
 0x595   : > { %6539 = vst [vmem:[%s10765_s13 + $0x2e] sm:$0x1] %v6411_v43  ;;  %v6443_v43 = vmax.f32 %v6315_v38, 0.0  ;;  %v6318_v44 = vld [vmem:[#allocation2 + $0x51] sm:$0x1] }
 0x596   : > { %6540 = vst [vmem:[%s10765_s13 + $0x2f] sm:$0x1] %v6412_v45  ;;  %v6444_v45 = vmax.f32 %v6316_v40, 0.0  ;;  %v6319_v46 = vld [vmem:[#allocation2 + $0x52] sm:$0x1] }
 0x597   : > { %6541 = vst [vmem:[%s10765_s13 + $0x30] sm:$0x1] %v6413_v47  ;;  %v6445_v47 = vmax.f32 %v6317_v42, 0.0  ;;  %v6320_v48 = vld [vmem:[#allocation2 + $0x53] sm:$0x1] }
 0x598   : > { %6542 = vst [vmem:[%s10765_s13 + $0x31] sm:$0x1] %v6414_v49  ;;  %v6446_v49 = vmax.f32 %v6318_v44, 0.0  ;;  %v6321_v50 = vld [vmem:[#allocation2 + $0x54] sm:$0x1] }
 0x599   : > { %6543 = vst [vmem:[%s10765_s13 + $0x32] sm:$0x1] %v6415_v1  ;;  %v6447_v1 = vmax.f32 %v6319_v46, 0.0  ;;  %v6322_v52 = vld [vmem:[#allocation2 + $0x55] sm:$0x1] }
 0x59a   : > { %6544 = vst [vmem:[%s10765_s13 + $0x33] sm:$0x1] %v6416_v53  ;;  %v6448_v53 = vmax.f32 %v6320_v48, 0.0  ;;  %v6323_v54 = vld [vmem:[#allocation2 + $0x56] sm:$0x1] }
 0x59b   : > { %6545 = vst [vmem:[%s10765_s13 + $0x34] sm:$0x1] %v6417_v55  ;;  %v6449_v55 = vmax.f32 %v6321_v50, 0.0  ;;  %v6324_v56 = vld [vmem:[#allocation2 + $0x57] sm:$0x1] }
 0x59c   : > { %6546 = vst [vmem:[%s10765_s13 + $0x35] sm:$0x1] %v6418_v57  ;;  %v6450_v57 = vmax.f32 %v6322_v52, 0.0  ;;  %v6325_v59 = vld [vmem:[#allocation2 + $0x58] sm:$0x1] }
 0x59d   : > { %6547 = vst [vmem:[%s10765_s13 + $0x36] sm:$0x1] %v6419_v11  ;;  %v6451_v11 = vmax.f32 %v6323_v54, 0.0  ;;  %v6326_v60 = vld [vmem:[#allocation2 + $0x59] sm:$0x1] }
 0x59e   : > { %6548 = vst [vmem:[%s10765_s13 + $0x37] sm:$0x1] %v6420_v61  ;;  %v6452_v61 = vmax.f32 %v6324_v56, 0.0  ;;  %v6327_v62 = vld [vmem:[#allocation2 + $0x5a] sm:$0x1] }
 0x59f   : > { %6549 = vst [vmem:[%s10765_s13 + $0x38] sm:$0x1] %v6421_v63  ;;  %v6453_v63 = vmax.f32 %v6325_v59, 0.0  ;;  %v6328_v0 = vld [vmem:[#allocation2 + $0x5b] sm:$0x1] }
 0x5a0   : > { %6550 = vst [vmem:[%s10765_s13 + $0x39] sm:$0x1] %v6422_v3  ;;  %v6454_v3 = vmax.f32 %v6326_v60, 0.0  ;;  %v6329_v4 = vld [vmem:[#allocation2 + $0x5c] sm:$0x1] }
 0x5a1   : > { %6551 = vst [vmem:[%s10765_s13 + $0x3a] sm:$0x1] %v6423_v5  ;;  %v6455_v5 = vmax.f32 %v6327_v62, 0.0  ;;  %v6330_v2 = vld [vmem:[#allocation2 + $0x5d] sm:$0x1] }
 0x5a2   : > { %6552 = vst [vmem:[%s10765_s13 + $0x3b] sm:$0x1] %v6424_v6  ;;  %v6456_v6 = vmax.f32 %v6328_v0, 0.0  ;;  %v6331_v7 = vld [vmem:[#allocation2 + $0x5e] sm:$0x1] }
 0x5a3   : > { %6553 = vst [vmem:[%s10765_s13 + $0x3c] sm:$0x1] %v6425_v8  ;;  %v6457_v8 = vmax.f32 %v6329_v4, 0.0  ;;  %v6332_v9 = vld [vmem:[#allocation2 + $0x5f] sm:$0x1] }
 0x5a4   : > { %6554 = vst [vmem:[%s10765_s13 + $0x3d] sm:$0x1] %v6426_v10  ;;  %v6458_v10 = vmax.f32 %v6330_v2, 0.0  ;;  %v6333_v12 = vld [vmem:[#allocation2 + $0x60] sm:$0x1] }
 0x5a5   : > { %6555 = vst [vmem:[%s10765_s13 + $0x3e] sm:$0x1] %v6427_v13  ;;  %v6459_v13 = vmax.f32 %v6331_v7, 0.0  ;;  %v6334_v51 = vld [vmem:[#allocation2 + $0x61] sm:$0x1] }
 0x5a6   : > { %6556 = vst [vmem:[%s10765_s13 + $0x3f] sm:$0x1] %v6428_v14  ;;  %v6460_v14 = vmax.f32 %v6332_v9, 0.0  ;;  %v6335_v15 = vld [vmem:[#allocation2 + $0x62] sm:$0x1] }
 0x5a7   : > { %6557 = vst [vmem:[%s10765_s13 + $0x40] sm:$0x1] %v6429_v16  ;;  %v6461_v16 = vmax.f32 %v6333_v12, 0.0  ;;  %v6336_v17 = vld [vmem:[#allocation2 + $0x63] sm:$0x1] }
 0x5a8   : > { %6558 = vst [vmem:[%s10765_s13 + $0x41] sm:$0x1] %v6430_v18  ;;  %v6462_v18 = vmax.f32 %v6334_v51, 0.0  ;;  %v6337_v19 = vld [vmem:[#allocation2 + $0x64] sm:$0x1] }
 0x5a9   : > { %6559 = vst [vmem:[%s10765_s13 + $0x42] sm:$0x1] %v6431_v58  ;;  %v6463_v58 = vmax.f32 %v6335_v15, 0.0  ;;  %v6338_v20 = vld [vmem:[#allocation2 + $0x65] sm:$0x1] }
 0x5aa   : > { %6560 = vst [vmem:[%s10765_s13 + $0x43] sm:$0x1] %v6432_v21  ;;  %v6464_v21 = vmax.f32 %v6336_v17, 0.0  ;;  %v6339_v22 = vld [vmem:[#allocation2 + $0x66] sm:$0x1] }
 0x5ab   : > { %6561 = vst [vmem:[%s10765_s13 + $0x44] sm:$0x1] %v6433_v23  ;;  %v6465_v23 = vmax.f32 %v6337_v19, 0.0  ;;  %v6340_v24 = vld [vmem:[#allocation2 + $0x67] sm:$0x1] }
 0x5ac   : > { %6562 = vst [vmem:[%s10765_s13 + $0x45] sm:$0x1] %v6434_v25  ;;  %v6466_v25 = vmax.f32 %v6338_v20, 0.0  ;;  %v6341_v26 = vld [vmem:[#allocation2 + $0x68] sm:$0x1] }
 0x5ad   : > { %6563 = vst [vmem:[%s10765_s13 + $0x46] sm:$0x1] %v6435_v27  ;;  %v6467_v27 = vmax.f32 %v6339_v22, 0.0  ;;  %v6342_v28 = vld [vmem:[#allocation2 + $0x69] sm:$0x1] }
 0x5ae   : > { %6564 = vst [vmem:[%s10765_s13 + $0x47] sm:$0x1] %v6436_v29  ;;  %v6468_v29 = vmax.f32 %v6340_v24, 0.0  ;;  %v6343_v30 = vld [vmem:[#allocation2 + $0x6a] sm:$0x1] }
 0x5af   : > { %6565 = vst [vmem:[%s10765_s13 + $0x48] sm:$0x1] %v6437_v31  ;;  %v6469_v31 = vmax.f32 %v6341_v26, 0.0  ;;  %v6344_v32 = vld [vmem:[#allocation2 + $0x6b] sm:$0x1] }
 0x5b0   : > { %6566 = vst [vmem:[%s10765_s13 + $0x49] sm:$0x1] %v6438_v33  ;;  %v6470_v33 = vmax.f32 %v6342_v28, 0.0  ;;  %v6345_v34 = vld [vmem:[#allocation2 + $0x6c] sm:$0x1] }
 0x5b1   : > { %6567 = vst [vmem:[%s10765_s13 + $0x4a] sm:$0x1] %v6439_v35  ;;  %v6471_v35 = vmax.f32 %v6343_v30, 0.0  ;;  %v6346_v36 = vld [vmem:[#allocation2 + $0x6d] sm:$0x1] }
 0x5b2   : > { %6568 = vst [vmem:[%s10765_s13 + $0x4b] sm:$0x1] %v6440_v37  ;;  %v6472_v37 = vmax.f32 %v6344_v32, 0.0  ;;  %v6347_v38 = vld [vmem:[#allocation2 + $0x6e] sm:$0x1] }
 0x5b3   : > { %6569 = vst [vmem:[%s10765_s13 + $0x4c] sm:$0x1] %v6441_v39  ;;  %v6473_v39 = vmax.f32 %v6345_v34, 0.0  ;;  %v6348_v40 = vld [vmem:[#allocation2 + $0x6f] sm:$0x1] }
 0x5b4   : > { %6570 = vst [vmem:[%s10765_s13 + $0x4d] sm:$0x1] %v6442_v41  ;;  %v6474_v41 = vmax.f32 %v6346_v36, 0.0  ;;  %v6349_v42 = vld [vmem:[#allocation2 + $0x70] sm:$0x1] }
 0x5b5   : > { %6571 = vst [vmem:[%s10765_s13 + $0x4e] sm:$0x1] %v6443_v43  ;;  %v6475_v43 = vmax.f32 %v6347_v38, 0.0  ;;  %v6350_v44 = vld [vmem:[#allocation2 + $0x71] sm:$0x1] }
 0x5b6   : > { %6572 = vst [vmem:[%s10765_s13 + $0x4f] sm:$0x1] %v6444_v45  ;;  %v6476_v45 = vmax.f32 %v6348_v40, 0.0  ;;  %v6351_v46 = vld [vmem:[#allocation2 + $0x72] sm:$0x1] }
 0x5b7   : > { %6573 = vst [vmem:[%s10765_s13 + $0x50] sm:$0x1] %v6445_v47  ;;  %v6477_v47 = vmax.f32 %v6349_v42, 0.0  ;;  %v6352_v48 = vld [vmem:[#allocation2 + $0x73] sm:$0x1] }
 0x5b8   : > { %6574 = vst [vmem:[%s10765_s13 + $0x51] sm:$0x1] %v6446_v49  ;;  %v6478_v49 = vmax.f32 %v6350_v44, 0.0  ;;  %v6353_v50 = vld [vmem:[#allocation2 + $0x74] sm:$0x1] }
 0x5b9   : > { %6575 = vst [vmem:[%s10765_s13 + $0x52] sm:$0x1] %v6447_v1  ;;  %v6479_v1 = vmax.f32 %v6351_v46, 0.0  ;;  %v6354_v52 = vld [vmem:[#allocation2 + $0x75] sm:$0x1] }
 0x5ba   : > { %6576 = vst [vmem:[%s10765_s13 + $0x53] sm:$0x1] %v6448_v53  ;;  %v6480_v53 = vmax.f32 %v6352_v48, 0.0  ;;  %v6355_v54 = vld [vmem:[#allocation2 + $0x76] sm:$0x1] }
 0x5bb   : > { %6577 = vst [vmem:[%s10765_s13 + $0x54] sm:$0x1] %v6449_v55  ;;  %v6481_v55 = vmax.f32 %v6353_v50, 0.0  ;;  %v6356_v56 = vld [vmem:[#allocation2 + $0x77] sm:$0x1] }
 0x5bc   : > { %6578 = vst [vmem:[%s10765_s13 + $0x55] sm:$0x1] %v6450_v57  ;;  %v6482_v57 = vmax.f32 %v6354_v52, 0.0  ;;  %v6357_v59 = vld [vmem:[#allocation2 + $0x78] sm:$0x1] }
 0x5bd   : > { %6579 = vst [vmem:[%s10765_s13 + $0x56] sm:$0x1] %v6451_v11  ;;  %v6483_v11 = vmax.f32 %v6355_v54, 0.0  ;;  %v6358_v60 = vld [vmem:[#allocation2 + $0x79] sm:$0x1] }
 0x5be   : > { %6580 = vst [vmem:[%s10765_s13 + $0x57] sm:$0x1] %v6452_v61  ;;  %v6484_v61 = vmax.f32 %v6356_v56, 0.0  ;;  %v6359_v62 = vld [vmem:[#allocation2 + $0x7a] sm:$0x1] }
 0x5bf   : > { %6581 = vst [vmem:[%s10765_s13 + $0x58] sm:$0x1] %v6453_v63  ;;  %v6485_v63 = vmax.f32 %v6357_v59, 0.0  ;;  %v6360_v0 = vld [vmem:[#allocation2 + $0x7b] sm:$0x1] }
 0x5c0   : > { %6582 = vst [vmem:[%s10765_s13 + $0x59] sm:$0x1] %v6454_v3  ;;  %v6486_v3 = vmax.f32 %v6358_v60, 0.0  ;;  %v6361_v4 = vld [vmem:[#allocation2 + $0x7c] sm:$0x1] }
 0x5c1   : > { %6583 = vst [vmem:[%s10765_s13 + $0x5a] sm:$0x1] %v6455_v5  ;;  %v6487_v5 = vmax.f32 %v6359_v62, 0.0  ;;  %v6362_v2 = vld [vmem:[#allocation2 + $0x7d] sm:$0x1] }
 0x5c2   : > { %6584 = vst [vmem:[%s10765_s13 + $0x5b] sm:$0x1] %v6456_v6  ;;  %v6488_v6 = vmax.f32 %v6360_v0, 0.0  ;;  %v6363_v7 = vld [vmem:[#allocation2 + $0x7e] sm:$0x1] }
 0x5c3   : > { %6585 = vst [vmem:[%s10765_s13 + $0x5c] sm:$0x1] %v6457_v8  ;;  %v6489_v8 = vmax.f32 %v6361_v4, 0.0  ;;  %v6364_v9 = vld [vmem:[#allocation2 + $0x7f] sm:$0x1]  ;;  %v6491_v12 = vmax.f32 %v6363_v7, 0.0 }
 0x5c4   : > { %6586 = vst [vmem:[%s10765_s13 + $0x5d] sm:$0x1] %v6458_v10  ;;  %v6490_v10 = vmax.f32 %v6362_v2, 0.0 }
 0x5c5   : > { %6587 = vst [vmem:[%s10765_s13 + $0x5e] sm:$0x1] %v6459_v13  ;;  %v6492_v13 = vmax.f32 %v6364_v9, 0.0 }
 0x5c6   : > { %6588 = vst [vmem:[%s10765_s13 + $0x5f] sm:$0x1] %v6460_v14 }
 0x5c7   : > { %6589 = vst [vmem:[%s10765_s13 + $0x60] sm:$0x1] %v6461_v16 }
 0x5c8   : > { %6590 = vst [vmem:[%s10765_s13 + $0x61] sm:$0x1] %v6462_v18 }
 0x5c9   : > { %6591 = vst [vmem:[%s10765_s13 + $0x62] sm:$0x1] %v6463_v58 }
 0x5ca   : > { %6592 = vst [vmem:[%s10765_s13 + $0x63] sm:$0x1] %v6464_v21 }
 0x5cb   : > { %6593 = vst [vmem:[%s10765_s13 + $0x64] sm:$0x1] %v6465_v23 }
 0x5cc   : > { %6594 = vst [vmem:[%s10765_s13 + $0x65] sm:$0x1] %v6466_v25 }
 0x5cd   : > { %6595 = vst [vmem:[%s10765_s13 + $0x66] sm:$0x1] %v6467_v27 }
 0x5ce   : > { %6596 = vst [vmem:[%s10765_s13 + $0x67] sm:$0x1] %v6468_v29 }
 0x5cf   : > { %6597 = vst [vmem:[%s10765_s13 + $0x68] sm:$0x1] %v6469_v31 }
 0x5d0   : > { %6598 = vst [vmem:[%s10765_s13 + $0x69] sm:$0x1] %v6470_v33 }
 0x5d1   : > { %6599 = vst [vmem:[%s10765_s13 + $0x6a] sm:$0x1] %v6471_v35 }
 0x5d2   : > { %6600 = vst [vmem:[%s10765_s13 + $0x6b] sm:$0x1] %v6472_v37 }
 0x5d3   : > { %6601 = vst [vmem:[%s10765_s13 + $0x6c] sm:$0x1] %v6473_v39 }
 0x5d4   : > { %6602 = vst [vmem:[%s10765_s13 + $0x6d] sm:$0x1] %v6474_v41 }
 0x5d5   : > { %6603 = vst [vmem:[%s10765_s13 + $0x6e] sm:$0x1] %v6475_v43 }
 0x5d6   : > { %6604 = vst [vmem:[%s10765_s13 + $0x6f] sm:$0x1] %v6476_v45 }
 0x5d7   : > { %6605 = vst [vmem:[%s10765_s13 + $0x70] sm:$0x1] %v6477_v47 }
 0x5d8   : > { %6606 = vst [vmem:[%s10765_s13 + $0x71] sm:$0x1] %v6478_v49 }
 0x5d9   : > { %6607 = vst [vmem:[%s10765_s13 + $0x72] sm:$0x1] %v6479_v1 }
 0x5da   : > { %6608 = vst [vmem:[%s10765_s13 + $0x73] sm:$0x1] %v6480_v53 }
 0x5db   : > { %6609 = vst [vmem:[%s10765_s13 + $0x74] sm:$0x1] %v6481_v55 }
 0x5dc   : > { %6610 = vst [vmem:[%s10765_s13 + $0x75] sm:$0x1] %v6482_v57 }
 0x5dd   : > { %6611 = vst [vmem:[%s10765_s13 + $0x76] sm:$0x1] %v6483_v11 }
 0x5de   : > { %6612 = vst [vmem:[%s10765_s13 + $0x77] sm:$0x1] %v6484_v61 }
 0x5df   : > { %6613 = vst [vmem:[%s10765_s13 + $0x78] sm:$0x1] %v6485_v63 }
 0x5e0   : > { %6614 = vst [vmem:[%s10765_s13 + $0x79] sm:$0x1] %v6486_v3 }
 0x5e1   : > { %6615 = vst [vmem:[%s10765_s13 + $0x7a] sm:$0x1] %v6487_v5 }
 0x5e2   : > { %6616 = vst [vmem:[%s10765_s13 + $0x7b] sm:$0x1] %v6488_v6 }
 0x5e3   : > { %6617 = vst [vmem:[%s10765_s13 + $0x7c] sm:$0x1] %v6489_v8 }
 0x5e4   : > { %6618 = vst [vmem:[%s10765_s13 + $0x7d] sm:$0x1] %v6490_v10 }
 0x5e5   : > { %6619 = vst [vmem:[%s10765_s13 + $0x7e] sm:$0x1] %v6491_v12 }
 0x5e6   : > { %6620 = vst [vmem:[%s10765_s13 + $0x7f] sm:$0x1] %v6492_v13 }
 0x5e7   : > { %7979 = shalt.err (!%p7976_p7)
}
 0x5e8   : > { %s8076_s2 = smov 16   ;;  %s8077_s22 = smov 1  }
 0x5e9   : > { %7778 = dma.vmem_to_hbm [thread:$0]  (%p8214_p0), %s6636_s1, 2048, %s6638_s14, %s6622_s24, %s8076_s2, %s8076_s2, %s8077_s22  }
 0x5ea PF: > { %s10976_s15 = sld [smem:[#allocation17_spill]]  ;;  %s6652_s29 = sand.u32 1, %s8048_s20  }
 0x5eb   : > { %p7785_p6 = pnand %p6764_p12, %p8223_p8  ;;  %s6653_s9 = scalar_lea.sflag [#allocation6], %s6652_s29 }
 0x5ed   : > { %p7786_p2 = pneg %p7785_p6 }
 0x5ef   : > { %8029 = dma.done.wait (%p7786_p2), %s6653_s9, 2048  }
 0x5f0   : > { %8031 = vsyncadd (%p7786_p2), %s6653_s9, 4294965248  ;;  %s25_s24 = sadd.s32 1, %s10976_s15   ;;  %s10977_s11 = sld [smem:[#allocation20_spill]] }
 0x5f1   : > { %p22_p1 = scmp.ge.s32.totalorder %s25_s24, 4   ;;  %s10978_s28 = sld [smem:[#allocation16_spill]] }
 0x5f2   : > { %s10979_s22 = sld [smem:[#allocation19_spill]]  ;;  %s10981_s17 = smov %s8040_s18 }
 0x5f3   : > { %s10980_s0 = sld [smem:[#allocation18_spill]]  ;;  %s10982_s18 = smov %s8044_s19 }
 0x5f4   : > { %s10984_s20 = smov %s8052_s21  ;;  %s10986_s1 = smov %s8064_s23 }
 0x5f5   :  { %24 = sbr.rel (!%p22_p1) target bundleno = 15 (0xf), region = 111 }
 0x5f6   : > { %s10983_s19 = smov %s10977_s11 }
 0x5f7   : > { %s10985_s21 = smov %s10978_s28 }
 0x5f9   : > { %s10987_s23 = smov %s10980_s0 }
 0x5fa   :  { %6659 = vsyncpa [#allocation5], 1 }
 0x5fb   :  { %6661 = vsyncpa [#allocation5 + $0x1], 1 }
 0x5fc   :  { %6662 = vsyncpa [#allocation10], 1 }
 0x5fd   :  { %6664 = vsyncpa [#allocation10 + $0x1], 1 }
 0x5fe   :  { %6665 = vsyncpa [#allocation6], 1 }
 0x5ff   :  { %6667 = vsyncpa [#allocation6 + $0x1], 1 }
 0x600   :  { %6668 = vsyncpa [#allocation7], 1 }
 0x601   :  { %6670 = vsyncpa [#allocation7 + $0x1], 1 }

</bundles_post_ra>
